<compile_context>
chip_gen: v7x
topology: tpu7x:2x2x1
jax: 0.10.0
libtpu: 0.0.40
codegen_flags: <defaults>
</compile_context>

<pallas_src>
import functools

import jax
import jax.numpy as jnp
from jax.experimental import pallas as pl
from jax.experimental.pallas import tpu as pltpu


def _silu(x):
    return x * jax.nn.sigmoid(x)


def gnn_kernel(n_layers,
               nodes_ref, gcat_ref, scat_ref, ea_ref,
               wemb_ref, bemb_ref,
               we1s_ref, we1t_ref, we1a_ref, be1_ref,
               we2_ref, be2_ref,
               wn1_ref, bn1_ref,
               wn2_ref, bn2_ref,
               wd1_ref, bd1_ref, wd2_ref, bd2_ref,
               out_ref):
    f32 = jnp.float32
    # 0/1 block-diagonal gather/scatter matrices arrive as bf16 (exact); widen once.
    gcat = gcat_ref[...].astype(f32)   # (B*E, 2*B*N) = [one_hot(row) | one_hot(col)]
    scat = scat_ref[...].astype(f32)   # (B*N, B*E)  scatter-add (= one_hot(row).T)
    ea = ea_ref[...]                   # (B*E, 1) edge attributes

    # embedding: Linear(input_dim, H) on all graphs' nodes at once
    h = jnp.dot(nodes_ref[...], wemb_ref[...], preferred_element_type=f32) + bemb_ref[...]

    for i in range(n_layers):
        # ---- edge_model: edge_mlp(cat([h[row], h[col], edge_attr])) ----
        # Re-associated: project at node granularity (B*N rows), THEN gather both
        # projections with a single fused one-hot matmul (B*E, 2*B*N) @ (2*B*N, H).
        xcat = jnp.concatenate(
            [jnp.dot(h, we1s_ref[i], preferred_element_type=f32),
             jnp.dot(h, we1t_ref[i], preferred_element_type=f32)], axis=0)   # (2*B*N, H)
        m = (jnp.dot(gcat, xcat, preferred_element_type=f32)
             + ea * we1a_ref[i]          # edge_attr @ we1a via (B*E,1)*(1,H) broadcast
             + be1_ref[i])
        m = _silu(m)
        m = _silu(jnp.dot(m, we2_ref[i], preferred_element_type=f32) + be2_ref[i])

        # ---- node_model: node_mlp(cat([h, segment_sum(edge_feat, row)])) ----
        agg = jnp.dot(scat, m, preferred_element_type=f32)                   # (B*N, H)
        o = _silu(jnp.dot(jnp.concatenate([h, agg], axis=-1), wn1_ref[i],
                          preferred_element_type=f32) + bn1_ref[i])
        h = jnp.dot(o, wn2_ref[i], preferred_element_type=f32) + bn2_ref[i]
        # recurrent=False -> no residual; attention=0 -> no attention gate.

    # decoder: Linear(H,H) + SiLU + Linear(H, 3-padded-to-128)  (lane-dense store)
    d = _silu(jnp.dot(h, wd1_ref[...], preferred_element_type=f32) + bd1_ref[...])
    out_ref[...] = jnp.dot(d, wd2_ref[...], preferred_element_type=f32) + bd2_ref[...]


def gnn_forward_pallas(nodes, edges, edge_attr, params, n_layers):
    """nodes: (B, N, F_in); edge_attr: (B, E, 1); shared edge list across the batch."""
    B, n_nodes, in_dim = nodes.shape
    row, col = edges
    n_edges = row.shape[0]
    hidden = params[0].shape[1]

    (wemb, bemb, we1s, we1t, we1a, be1, we2, be2,
     wn1h, wn1a, bn1, wn2, bn2, wd1, bd1, wd2, bd2) = params

    # Fuse node-MLP first-layer weights: (L, 2H, H) applied to concat([h, agg], -1).
    wn1 = jnp.concatenate([wn1h, wn1a], axis=1)

    # Pad decoder output columns to the lane width so the final store is unmasked.
    out_pad = 128
    wd2p = jnp.zeros((hidden, out_pad), wd2.dtype).at[:, :3].set(wd2)
    bd2p = jnp.zeros((1, out_pad), bd2.dtype).at[:, :3].set(bd2)

    # Whole batch in one grid step: stack graphs along rows.
    BN = B * n_nodes
    BE = B * n_edges
    nodes_flat = nodes.reshape(BN, in_dim)
    ea_flat = edge_attr.reshape(BE, 1)

    # Block-diagonal one-hot gather/scatter across the batch, in bf16 (0/1 exact).
    offs = (jnp.arange(B, dtype=jnp.int32) * n_nodes)[:, None]
    row_all = (row[None, :] + offs).reshape(-1)                    # (B*E,)
    col_all = (col[None, :] + offs).reshape(-1)                    # (B*E,)
    g_row = jax.nn.one_hot(row_all, BN, dtype=jnp.bfloat16)        # (B*E, B*N)
    g_col = jax.nn.one_hot(col_all, BN, dtype=jnp.bfloat16)        # (B*E, B*N)
    gcat = jnp.concatenate([g_row, g_col], axis=1)                 # (B*E, 2*B*N)
    scat = g_row.T                                                 # (B*N, B*E)

    inputs = (nodes_flat, gcat, scat, ea_flat,
              wemb, bemb, we1s, we1t, we1a, be1, we2, be2,
              wn1, bn1, wn2, bn2, wd1, bd1, wd2p, bd2p)

    # Single grid step: every operand's block is the full array (allowed by the
    # (8,128) rule since block_shape == array shape).
    in_specs = [pl.BlockSpec(x.shape, lambda *_, nd=x.ndim: (0,) * nd) for x in inputs]
    out_specs = pl.BlockSpec((BN, out_pad), lambda *_: (0, 0))

    grid_spec = pltpu.PrefetchScalarGridSpec(
        num_scalar_prefetch=0,
        grid=(1,),
        in_specs=in_specs,
        out_specs=out_specs,
    )

    out = pl.pallas_call(
        functools.partial(gnn_kernel, n_layers),
        out_shape=jax.ShapeDtypeStruct((BN, out_pad), jnp.float32),
        grid_spec=grid_spec,
        compiler_params=pltpu.CompilerParams(
            dimension_semantics=("arbitrary",)),
    )(*inputs)

    return out[:, :3].reshape(B, n_nodes, 3)


def gnn_forward_ref(nodes_b, edges, edge_attr_b, params, n_layers):
    (wemb, bemb, we1s, we1t, we1a, be1, we2, be2,
     wn1h, wn1a, bn1, wn2, bn2, wd1, bd1, wd2, bd2) = params
    row, col = edges

    def single(nodes, edge_attr):
        h = nodes @ wemb + bemb
        for i in range(n_layers):
            hs, ht = h[row], h[col]
            m = _silu(hs @ we1s[i] + ht @ we1t[i] + edge_attr @ we1a[i] + be1[i])
            m = _silu(m @ we2[i] + be2[i])
            agg = jax.ops.segment_sum(m, row, num_segments=h.shape[0])
            o = _silu(h @ wn1h[i] + agg @ wn1a[i] + bn1[i])
            h = o @ wn2[i] + bn2[i]
        d = _silu(h @ wd1 + bd1)
        return d @ wd2 + bd2

    return jnp.stack([single(nodes_b[i], edge_attr_b[i])
                      for i in range(nodes_b.shape[0])], axis=0)


def init_params(key, input_dim, hidden_nf, n_layers):
    """Deterministic synthetic init (PyTorch-Linear-like uniform(-1/sqrt(fan_in)))."""
    def lin(k, fan_in, fan_out):
        kw, kb = jax.random.split(k)
        lim = 1.0 / jnp.sqrt(jnp.float32(fan_in))
        w = jax.random.uniform(kw, (fan_in, fan_out), jnp.float32, -lim, lim)
        b = jax.random.uniform(kb, (1, fan_out), jnp.float32, -lim, lim)
        return w, b

    h = hidden_nf
    keys = jax.random.split(key, 3 + n_layers)
    wemb, bemb = lin(keys[0], input_dim, h)

    we1s, we1t, we1a, be1 = [], [], [], []
    we2, be2, wn1h, wn1a, bn1, wn2, bn2 = [], [], [], [], [], [], []
    for i in range(n_layers):
        k1, k2, k3, k4 = jax.random.split(keys[1 + i], 4)
        # edge_mlp layer 1: Linear(2H+1, H), split into src/tgt/edge_attr pieces
        w_full, b1 = lin(k1, 2 * h + 1, h)
        we1s.append(w_full[:h]); we1t.append(w_full[h:2 * h]); we1a.append(w_full[2 * h:])
        be1.append(b1)
        w2, b2 = lin(k2, h, h); we2.append(w2); be2.append(b2)
        # node_mlp layer 1: Linear(2H, H), split into h / agg pieces
        wn_full, bn = lin(k3, 2 * h, h)
        wn1h.append(wn_full[:h]); wn1a.append(wn_full[h:]); bn1.append(bn)
        w4, b4 = lin(k4, h, h); wn2.append(w4); bn2.append(b4)

    wd1, bd1 = lin(keys[1 + n_layers], h, h)
    wd2, bd2 = lin(keys[2 + n_layers], h, 3)

    stk = lambda xs: jnp.stack(xs, axis=0)
    return (wemb, bemb,
            stk(we1s), stk(we1t), stk(we1a), stk(be1),
            stk(we2), stk(be2),
            stk(wn1h), stk(wn1a), stk(bn1),
            stk(wn2), stk(bn2),
            wd1, bd1, wd2, bd2)


if __name__ == "__main__":
    input_dim, hidden_nf, n_layers = 4, 32, 4
    n_nodes = 16
    batch = 2   # whole batch processed in a single grid step (rows stacked)

    # fully-connected directed graph without self loops (standard n-body setup)
    rows, cols = [], []
    for i in range(n_nodes):
        for j in range(n_nodes):
            if i != j:
                rows.append(i)
                cols.append(j)
    row = jnp.asarray(rows, dtype=jnp.int32)
    col = jnp.asarray(cols, dtype=jnp.int32)
    n_edges = row.shape[0]  # 240

    key = jax.random.PRNGKey(0)
    k_nodes, k_ea, k_params = jax.random.split(key, 3)
    nodes = jax.random.normal(k_nodes, (batch, n_nodes, input_dim), dtype=jnp.float32)
    edge_attr = jax.random.normal(k_ea, (batch, n_edges, 1), dtype=jnp.float32)
    params = init_params(k_params, input_dim, hidden_nf, n_layers)

    out = gnn_forward_pallas(nodes, (row, col), edge_attr, params, n_layers)
    out = jax.block_until_ready(out)

    ref = gnn_forward_ref(nodes, (row, col), edge_attr, params, n_layers)
    assert out.shape == (batch, n_nodes, 3)
    assert jnp.allclose(out, ref, atol=2e-4, rtol=2e-4), "Pallas output mismatch vs JAX reference"

    print("KERNEL_OK")
</pallas_src>

<mosaic_0001>
module attributes {stable_mosaic.version = 11 : i64} {
  func.func @gnn_kernel(%arg0: i32, %arg1: memref<32x4xf32, #tpu.memory_space<vmem>>, %arg2: memref<480x64xbf16, #tpu.memory_space<vmem>>, %arg3: memref<32x480xbf16, #tpu.memory_space<vmem>>, %arg4: memref<480x1xf32, #tpu.memory_space<vmem>>, %arg5: memref<4x32xf32, #tpu.memory_space<vmem>>, %arg6: memref<1x32xf32, #tpu.memory_space<vmem>>, %arg7: memref<4x32x32xf32, #tpu.memory_space<vmem>>, %arg8: memref<4x32x32xf32, #tpu.memory_space<vmem>>, %arg9: memref<4x1x32xf32, #tpu.memory_space<vmem>>, %arg10: memref<4x1x32xf32, #tpu.memory_space<vmem>>, %arg11: memref<4x32x32xf32, #tpu.memory_space<vmem>>, %arg12: memref<4x1x32xf32, #tpu.memory_space<vmem>>, %arg13: memref<4x64x32xf32, #tpu.memory_space<vmem>>, %arg14: memref<4x1x32xf32, #tpu.memory_space<vmem>>, %arg15: memref<4x32x32xf32, #tpu.memory_space<vmem>>, %arg16: memref<4x1x32xf32, #tpu.memory_space<vmem>>, %arg17: memref<32x32xf32, #tpu.memory_space<vmem>>, %arg18: memref<1x32xf32, #tpu.memory_space<vmem>>, %arg19: memref<32x128xf32, #tpu.memory_space<vmem>>, %arg20: memref<1x128xf32, #tpu.memory_space<vmem>>, %arg21: memref<32x128xf32, #tpu.memory_space<vmem>>) attributes {dimension_semantics = [#tpu.dimension_semantics<arbitrary>], iteration_bounds = array<i64: 1>, scalar_prefetch = 0 : i64, scratch_operands = 0 : i64, tpu.core_type = #tpu.core_type<tc>, window_params = [{pipeline_mode = #tpu.pipeline_mode<synchronous>, transform_indices = @transform_0, window_bounds = array<i64: 32, 4>}, {pipeline_mode = #tpu.pipeline_mode<synchronous>, transform_indices = @transform_1, window_bounds = array<i64: 480, 64>}, {pipeline_mode = #tpu.pipeline_mode<synchronous>, transform_indices = @transform_2, window_bounds = array<i64: 32, 480>}, {pipeline_mode = #tpu.pipeline_mode<synchronous>, transform_indices = @transform_3, window_bounds = array<i64: 480, 1>}, {pipeline_mode = #tpu.pipeline_mode<synchronous>, transform_indices = @transform_4, window_bounds = array<i64: 4, 32>}, {pipeline_mode = #tpu.pipeline_mode<synchronous>, transform_indices = @transform_5, window_bounds = array<i64: 1, 32>}, {pipeline_mode = #tpu.pipeline_mode<synchronous>, transform_indices = @transform_6, window_bounds = array<i64: 4, 32, 32>}, {pipeline_mode = #tpu.pipeline_mode<synchronous>, transform_indices = @transform_7, window_bounds = array<i64: 4, 32, 32>}, {pipeline_mode = #tpu.pipeline_mode<synchronous>, transform_indices = @transform_8, window_bounds = array<i64: 4, 1, 32>}, {pipeline_mode = #tpu.pipeline_mode<synchronous>, transform_indices = @transform_9, window_bounds = array<i64: 4, 1, 32>}, {pipeline_mode = #tpu.pipeline_mode<synchronous>, transform_indices = @transform_10, window_bounds = array<i64: 4, 32, 32>}, {pipeline_mode = #tpu.pipeline_mode<synchronous>, transform_indices = @transform_11, window_bounds = array<i64: 4, 1, 32>}, {pipeline_mode = #tpu.pipeline_mode<synchronous>, transform_indices = @transform_12, window_bounds = array<i64: 4, 64, 32>}, {pipeline_mode = #tpu.pipeline_mode<synchronous>, transform_indices = @transform_13, window_bounds = array<i64: 4, 1, 32>}, {pipeline_mode = #tpu.pipeline_mode<synchronous>, transform_indices = @transform_14, window_bounds = array<i64: 4, 32, 32>}, {pipeline_mode = #tpu.pipeline_mode<synchronous>, transform_indices = @transform_15, window_bounds = array<i64: 4, 1, 32>}, {pipeline_mode = #tpu.pipeline_mode<synchronous>, transform_indices = @transform_16, window_bounds = array<i64: 32, 32>}, {pipeline_mode = #tpu.pipeline_mode<synchronous>, transform_indices = @transform_17, window_bounds = array<i64: 1, 32>}, {pipeline_mode = #tpu.pipeline_mode<synchronous>, transform_indices = @transform_18, window_bounds = array<i64: 32, 128>}, {pipeline_mode = #tpu.pipeline_mode<synchronous>, transform_indices = @transform_19, window_bounds = array<i64: 1, 128>}, {pipeline_mode = #tpu.pipeline_mode<synchronous>, transform_indices = @transform_20, window_bounds = array<i64: 32, 128>}]} {
    %c0 = arith.constant 0 : index
    %c0_0 = arith.constant 0 : index
    %0 = vector.load %arg2[%c0, %c0_0] : memref<480x64xbf16, #tpu.memory_space<vmem>>, vector<480x64xbf16>
    %1 = arith.extf %0 : vector<480x64xbf16> to vector<480x64xf32>
    %c0_1 = arith.constant 0 : index
    %c0_2 = arith.constant 0 : index
    %2 = vector.load %arg3[%c0_1, %c0_2] : memref<32x480xbf16, #tpu.memory_space<vmem>>, vector<32x480xbf16>
    %3 = arith.extf %2 : vector<32x480xbf16> to vector<32x480xf32>
    %c0_3 = arith.constant 0 : index
    %c0_4 = arith.constant 0 : index
    %4 = vector.load %arg4[%c0_3, %c0_4] : memref<480x1xf32, #tpu.memory_space<vmem>>, vector<480x1xf32>
    %c0_5 = arith.constant 0 : index
    %c0_6 = arith.constant 0 : index
    %5 = vector.load %arg1[%c0_5, %c0_6] : memref<32x4xf32, #tpu.memory_space<vmem>>, vector<32x4xf32>
    %c0_7 = arith.constant 0 : index
    %c0_8 = arith.constant 0 : index
    %6 = vector.load %arg5[%c0_7, %c0_8] : memref<4x32xf32, #tpu.memory_space<vmem>>, vector<4x32xf32>
    %cst = arith.constant dense<0.000000e+00> : vector<32x32xf32>
    %7 = tpu.matmul %5, %6, %cst {dimension_numbers = #tpu.dot_dimension_numbers<[1], [0], [0], [1], [0, 0, 1, 1], [], []>} : vector<32x4xf32>, vector<4x32xf32>, vector<32x32xf32> -> vector<32x32xf32>
    %c0_9 = arith.constant 0 : index
    %c0_10 = arith.constant 0 : index
    %8 = vector.load %arg6[%c0_9, %c0_10] : memref<1x32xf32, #tpu.memory_space<vmem>>, vector<1x32xf32>
    %9 = vector.broadcast %8 : vector<1x32xf32> to vector<32x32xf32>
    %10 = arith.addf %7, %9 : vector<32x32xf32>
    %c0_11 = arith.constant 0 : index
    %c0_12 = arith.constant 0 : index
    %c0_13 = arith.constant 0 : index
    %11 = vector.load %arg7[%c0_11, %c0_12, %c0_13] : memref<4x32x32xf32, #tpu.memory_space<vmem>>, vector<1x32x32xf32>
    %12 = vector.shape_cast %11 : vector<1x32x32xf32> to vector<32x32xf32>
    %cst_14 = arith.constant dense<0.000000e+00> : vector<32x32xf32>
    %13 = tpu.matmul %10, %12, %cst_14 {dimension_numbers = #tpu.dot_dimension_numbers<[1], [0], [0], [1], [0, 0, 1, 1], [], []>} : vector<32x32xf32>, vector<32x32xf32>, vector<32x32xf32> -> vector<32x32xf32>
    %c0_15 = arith.constant 0 : index
    %c0_16 = arith.constant 0 : index
    %c0_17 = arith.constant 0 : index
    %14 = vector.load %arg8[%c0_15, %c0_16, %c0_17] : memref<4x32x32xf32, #tpu.memory_space<vmem>>, vector<1x32x32xf32>
    %15 = vector.shape_cast %14 : vector<1x32x32xf32> to vector<32x32xf32>
    %cst_18 = arith.constant dense<0.000000e+00> : vector<32x32xf32>
    %16 = tpu.matmul %10, %15, %cst_18 {dimension_numbers = #tpu.dot_dimension_numbers<[1], [0], [0], [1], [0, 0, 1, 1], [], []>} : vector<32x32xf32>, vector<32x32xf32>, vector<32x32xf32> -> vector<32x32xf32>
    %17 = tpu.concatenate %13, %16 in 0 : vector<32x32xf32>, vector<32x32xf32> -> vector<64x32xf32>
    %cst_19 = arith.constant dense<0.000000e+00> : vector<480x32xf32>
    %18 = tpu.matmul %1, %17, %cst_19 {dimension_numbers = #tpu.dot_dimension_numbers<[1], [0], [0], [1], [0, 0, 1, 1], [], []>} : vector<480x64xf32>, vector<64x32xf32>, vector<480x32xf32> -> vector<480x32xf32>
    %c0_20 = arith.constant 0 : index
    %c0_21 = arith.constant 0 : index
    %c0_22 = arith.constant 0 : index
    %19 = vector.load %arg9[%c0_20, %c0_21, %c0_22] : memref<4x1x32xf32, #tpu.memory_space<vmem>>, vector<1x1x32xf32>
    %20 = vector.shape_cast %19 : vector<1x1x32xf32> to vector<1x32xf32>
    %21 = vector.broadcast %4 : vector<480x1xf32> to vector<480x32xf32>
    %22 = vector.broadcast %20 : vector<1x32xf32> to vector<480x32xf32>
    %23 = arith.mulf %21, %22 : vector<480x32xf32>
    %24 = arith.addf %18, %23 : vector<480x32xf32>
    %c0_23 = arith.constant 0 : index
    %c0_24 = arith.constant 0 : index
    %c0_25 = arith.constant 0 : index
    %25 = vector.load %arg10[%c0_23, %c0_24, %c0_25] : memref<4x1x32xf32, #tpu.memory_space<vmem>>, vector<1x1x32xf32>
    %26 = vector.shape_cast %25 : vector<1x1x32xf32> to vector<1x32xf32>
    %27 = vector.broadcast %26 : vector<1x32xf32> to vector<480x32xf32>
    %28 = arith.addf %24, %27 : vector<480x32xf32>
    %29 = arith.negf %28 : vector<480x32xf32>
    %30 = math.exp %29 : vector<480x32xf32>
    %cst_26 = arith.constant 1.000000e+00 : f32
    %31 = vector.broadcast %cst_26 : f32 to vector<480x32xf32>
    %32 = arith.addf %31, %30 : vector<480x32xf32>
    %33 = arith.divf %31, %32 : vector<480x32xf32>
    %34 = arith.mulf %28, %33 : vector<480x32xf32>
    %c0_27 = arith.constant 0 : index
    %c0_28 = arith.constant 0 : index
    %c0_29 = arith.constant 0 : index
    %35 = vector.load %arg11[%c0_27, %c0_28, %c0_29] : memref<4x32x32xf32, #tpu.memory_space<vmem>>, vector<1x32x32xf32>
    %36 = vector.shape_cast %35 : vector<1x32x32xf32> to vector<32x32xf32>
    %cst_30 = arith.constant dense<0.000000e+00> : vector<480x32xf32>
    %37 = tpu.matmul %34, %36, %cst_30 {dimension_numbers = #tpu.dot_dimension_numbers<[1], [0], [0], [1], [0, 0, 1, 1], [], []>} : vector<480x32xf32>, vector<32x32xf32>, vector<480x32xf32> -> vector<480x32xf32>
    %c0_31 = arith.constant 0 : index
    %c0_32 = arith.constant 0 : index
    %c0_33 = arith.constant 0 : index
    %38 = vector.load %arg12[%c0_31, %c0_32, %c0_33] : memref<4x1x32xf32, #tpu.memory_space<vmem>>, vector<1x1x32xf32>
    %39 = vector.shape_cast %38 : vector<1x1x32xf32> to vector<1x32xf32>
    %40 = vector.broadcast %39 : vector<1x32xf32> to vector<480x32xf32>
    %41 = arith.addf %37, %40 : vector<480x32xf32>
    %42 = arith.negf %41 : vector<480x32xf32>
    %43 = math.exp %42 : vector<480x32xf32>
    %cst_34 = arith.constant 1.000000e+00 : f32
    %44 = vector.broadcast %cst_34 : f32 to vector<480x32xf32>
    %45 = arith.addf %44, %43 : vector<480x32xf32>
    %46 = arith.divf %44, %45 : vector<480x32xf32>
    %47 = arith.mulf %41, %46 : vector<480x32xf32>
    %cst_35 = arith.constant dense<0.000000e+00> : vector<32x32xf32>
    %48 = tpu.matmul %3, %47, %cst_35 {dimension_numbers = #tpu.dot_dimension_numbers<[1], [0], [0], [1], [0, 0, 1, 1], [], []>} : vector<32x480xf32>, vector<480x32xf32>, vector<32x32xf32> -> vector<32x32xf32>
    %49 = tpu.concatenate %10, %48 in 1 : vector<32x32xf32>, vector<32x32xf32> -> vector<32x64xf32>
    %c0_36 = arith.constant 0 : index
    %c0_37 = arith.constant 0 : index
    %c0_38 = arith.constant 0 : index
    %50 = vector.load %arg13[%c0_36, %c0_37, %c0_38] : memref<4x64x32xf32, #tpu.memory_space<vmem>>, vector<1x64x32xf32>
    %51 = vector.shape_cast %50 : vector<1x64x32xf32> to vector<64x32xf32>
    %cst_39 = arith.constant dense<0.000000e+00> : vector<32x32xf32>
    %52 = tpu.matmul %49, %51, %cst_39 {dimension_numbers = #tpu.dot_dimension_numbers<[1], [0], [0], [1], [0, 0, 1, 1], [], []>} : vector<32x64xf32>, vector<64x32xf32>, vector<32x32xf32> -> vector<32x32xf32>
    %c0_40 = arith.constant 0 : index
    %c0_41 = arith.constant 0 : index
    %c0_42 = arith.constant 0 : index
    %53 = vector.load %arg14[%c0_40, %c0_41, %c0_42] : memref<4x1x32xf32, #tpu.memory_space<vmem>>, vector<1x1x32xf32>
    %54 = vector.shape_cast %53 : vector<1x1x32xf32> to vector<1x32xf32>
    %55 = vector.broadcast %54 : vector<1x32xf32> to vector<32x32xf32>
    %56 = arith.addf %52, %55 : vector<32x32xf32>
    %57 = arith.negf %56 : vector<32x32xf32>
    %58 = math.exp %57 : vector<32x32xf32>
    %cst_43 = arith.constant 1.000000e+00 : f32
    %59 = vector.broadcast %cst_43 : f32 to vector<32x32xf32>
    %60 = arith.addf %59, %58 : vector<32x32xf32>
    %61 = arith.divf %59, %60 : vector<32x32xf32>
    %62 = arith.mulf %56, %61 : vector<32x32xf32>
    %c0_44 = arith.constant 0 : index
    %c0_45 = arith.constant 0 : index
    %c0_46 = arith.constant 0 : index
    %63 = vector.load %arg15[%c0_44, %c0_45, %c0_46] : memref<4x32x32xf32, #tpu.memory_space<vmem>>, vector<1x32x32xf32>
    %64 = vector.shape_cast %63 : vector<1x32x32xf32> to vector<32x32xf32>
    %cst_47 = arith.constant dense<0.000000e+00> : vector<32x32xf32>
    %65 = tpu.matmul %62, %64, %cst_47 {dimension_numbers = #tpu.dot_dimension_numbers<[1], [0], [0], [1], [0, 0, 1, 1], [], []>} : vector<32x32xf32>, vector<32x32xf32>, vector<32x32xf32> -> vector<32x32xf32>
    %c0_48 = arith.constant 0 : index
    %c0_49 = arith.constant 0 : index
    %c0_50 = arith.constant 0 : index
    %66 = vector.load %arg16[%c0_48, %c0_49, %c0_50] : memref<4x1x32xf32, #tpu.memory_space<vmem>>, vector<1x1x32xf32>
    %67 = vector.shape_cast %66 : vector<1x1x32xf32> to vector<1x32xf32>
    %68 = vector.broadcast %67 : vector<1x32xf32> to vector<32x32xf32>
    %69 = arith.addf %65, %68 : vector<32x32xf32>
    %c1 = arith.constant 1 : index
    %c0_51 = arith.constant 0 : index
    %c0_52 = arith.constant 0 : index
    %70 = vector.load %arg7[%c1, %c0_51, %c0_52] : memref<4x32x32xf32, #tpu.memory_space<vmem>>, vector<1x32x32xf32>
    %71 = vector.shape_cast %70 : vector<1x32x32xf32> to vector<32x32xf32>
    %cst_53 = arith.constant dense<0.000000e+00> : vector<32x32xf32>
    %72 = tpu.matmul %69, %71, %cst_53 {dimension_numbers = #tpu.dot_dimension_numbers<[1], [0], [0], [1], [0, 0, 1, 1], [], []>} : vector<32x32xf32>, vector<32x32xf32>, vector<32x32xf32> -> vector<32x32xf32>
    %c1_54 = arith.constant 1 : index
    %c0_55 = arith.constant 0 : index
    %c0_56 = arith.constant 0 : index
    %73 = vector.load %arg8[%c1_54, %c0_55, %c0_56] : memref<4x32x32xf32, #tpu.memory_space<vmem>>, vector<1x32x32xf32>
    %74 = vector.shape_cast %73 : vector<1x32x32xf32> to vector<32x32xf32>
    %cst_57 = arith.constant dense<0.000000e+00> : vector<32x32xf32>
    %75 = tpu.matmul %69, %74, %cst_57 {dimension_numbers = #tpu.dot_dimension_numbers<[1], [0], [0], [1], [0, 0, 1, 1], [], []>} : vector<32x32xf32>, vector<32x32xf32>, vector<32x32xf32> -> vector<32x32xf32>
    %76 = tpu.concatenate %72, %75 in 0 : vector<32x32xf32>, vector<32x32xf32> -> vector<64x32xf32>
    %cst_58 = arith.constant dense<0.000000e+00> : vector<480x32xf32>
    %77 = tpu.matmul %1, %76, %cst_58 {dimension_numbers = #tpu.dot_dimension_numbers<[1], [0], [0], [1], [0, 0, 1, 1], [], []>} : vector<480x64xf32>, vector<64x32xf32>, vector<480x32xf32> -> vector<480x32xf32>
    %c1_59 = arith.constant 1 : index
    %c0_60 = arith.constant 0 : index
    %c0_61 = arith.constant 0 : index
    %78 = vector.load %arg9[%c1_59, %c0_60, %c0_61] : memref<4x1x32xf32, #tpu.memory_space<vmem>>, vector<1x1x32xf32>
    %79 = vector.shape_cast %78 : vector<1x1x32xf32> to vector<1x32xf32>
    %80 = vector.broadcast %4 : vector<480x1xf32> to vector<480x32xf32>
    %81 = vector.broadcast %79 : vector<1x32xf32> to vector<480x32xf32>
    %82 = arith.mulf %80, %81 : vector<480x32xf32>
    %83 = arith.addf %77, %82 : vector<480x32xf32>
    %c1_62 = arith.constant 1 : index
    %c0_63 = arith.constant 0 : index
    %c0_64 = arith.constant 0 : index
    %84 = vector.load %arg10[%c1_62, %c0_63, %c0_64] : memref<4x1x32xf32, #tpu.memory_space<vmem>>, vector<1x1x32xf32>
    %85 = vector.shape_cast %84 : vector<1x1x32xf32> to vector<1x32xf32>
    %86 = vector.broadcast %85 : vector<1x32xf32> to vector<480x32xf32>
    %87 = arith.addf %83, %86 : vector<480x32xf32>
    %88 = arith.negf %87 : vector<480x32xf32>
    %89 = math.exp %88 : vector<480x32xf32>
    %cst_65 = arith.constant 1.000000e+00 : f32
    %90 = vector.broadcast %cst_65 : f32 to vector<480x32xf32>
    %91 = arith.addf %90, %89 : vector<480x32xf32>
    %92 = arith.divf %90, %91 : vector<480x32xf32>
    %93 = arith.mulf %87, %92 : vector<480x32xf32>
    %c1_66 = arith.constant 1 : index
    %c0_67 = arith.constant 0 : index
    %c0_68 = arith.constant 0 : index
    %94 = vector.load %arg11[%c1_66, %c0_67, %c0_68] : memref<4x32x32xf32, #tpu.memory_space<vmem>>, vector<1x32x32xf32>
    %95 = vector.shape_cast %94 : vector<1x32x32xf32> to vector<32x32xf32>
    %cst_69 = arith.constant dense<0.000000e+00> : vector<480x32xf32>
    %96 = tpu.matmul %93, %95, %cst_69 {dimension_numbers = #tpu.dot_dimension_numbers<[1], [0], [0], [1], [0, 0, 1, 1], [], []>} : vector<480x32xf32>, vector<32x32xf32>, vector<480x32xf32> -> vector<480x32xf32>
    %c1_70 = arith.constant 1 : index
    %c0_71 = arith.constant 0 : index
    %c0_72 = arith.constant 0 : index
    %97 = vector.load %arg12[%c1_70, %c0_71, %c0_72] : memref<4x1x32xf32, #tpu.memory_space<vmem>>, vector<1x1x32xf32>
    %98 = vector.shape_cast %97 : vector<1x1x32xf32> to vector<1x32xf32>
    %99 = vector.broadcast %98 : vector<1x32xf32> to vector<480x32xf32>
    %100 = arith.addf %96, %99 : vector<480x32xf32>
    %101 = arith.negf %100 : vector<480x32xf32>
    %102 = math.exp %101 : vector<480x32xf32>
    %cst_73 = arith.constant 1.000000e+00 : f32
    %103 = vector.broadcast %cst_73 : f32 to vector<480x32xf32>
    %104 = arith.addf %103, %102 : vector<480x32xf32>
    %105 = arith.divf %103, %104 : vector<480x32xf32>
    %106 = arith.mulf %100, %105 : vector<480x32xf32>
    %cst_74 = arith.constant dense<0.000000e+00> : vector<32x32xf32>
    %107 = tpu.matmul %3, %106, %cst_74 {dimension_numbers = #tpu.dot_dimension_numbers<[1], [0], [0], [1], [0, 0, 1, 1], [], []>} : vector<32x480xf32>, vector<480x32xf32>, vector<32x32xf32> -> vector<32x32xf32>
    %108 = tpu.concatenate %69, %107 in 1 : vector<32x32xf32>, vector<32x32xf32> -> vector<32x64xf32>
    %c1_75 = arith.constant 1 : index
    %c0_76 = arith.constant 0 : index
    %c0_77 = arith.constant 0 : index
    %109 = vector.load %arg13[%c1_75, %c0_76, %c0_77] : memref<4x64x32xf32, #tpu.memory_space<vmem>>, vector<1x64x32xf32>
    %110 = vector.shape_cast %109 : vector<1x64x32xf32> to vector<64x32xf32>
    %cst_78 = arith.constant dense<0.000000e+00> : vector<32x32xf32>
    %111 = tpu.matmul %108, %110, %cst_78 {dimension_numbers = #tpu.dot_dimension_numbers<[1], [0], [0], [1], [0, 0, 1, 1], [], []>} : vector<32x64xf32>, vector<64x32xf32>, vector<32x32xf32> -> vector<32x32xf32>
    %c1_79 = arith.constant 1 : index
    %c0_80 = arith.constant 0 : index
    %c0_81 = arith.constant 0 : index
    %112 = vector.load %arg14[%c1_79, %c0_80, %c0_81] : memref<4x1x32xf32, #tpu.memory_space<vmem>>, vector<1x1x32xf32>
    %113 = vector.shape_cast %112 : vector<1x1x32xf32> to vector<1x32xf32>
    %114 = vector.broadcast %113 : vector<1x32xf32> to vector<32x32xf32>
    %115 = arith.addf %111, %114 : vector<32x32xf32>
    %116 = arith.negf %115 : vector<32x32xf32>
    %117 = math.exp %116 : vector<32x32xf32>
    %cst_82 = arith.constant 1.000000e+00 : f32
    %118 = vector.broadcast %cst_82 : f32 to vector<32x32xf32>
    %119 = arith.addf %118, %117 : vector<32x32xf32>
    %120 = arith.divf %118, %119 : vector<32x32xf32>
    %121 = arith.mulf %115, %120 : vector<32x32xf32>
    %c1_83 = arith.constant 1 : index
    %c0_84 = arith.constant 0 : index
    %c0_85 = arith.constant 0 : index
    %122 = vector.load %arg15[%c1_83, %c0_84, %c0_85] : memref<4x32x32xf32, #tpu.memory_space<vmem>>, vector<1x32x32xf32>
    %123 = vector.shape_cast %122 : vector<1x32x32xf32> to vector<32x32xf32>
    %cst_86 = arith.constant dense<0.000000e+00> : vector<32x32xf32>
    %124 = tpu.matmul %121, %123, %cst_86 {dimension_numbers = #tpu.dot_dimension_numbers<[1], [0], [0], [1], [0, 0, 1, 1], [], []>} : vector<32x32xf32>, vector<32x32xf32>, vector<32x32xf32> -> vector<32x32xf32>
    %c1_87 = arith.constant 1 : index
    %c0_88 = arith.constant 0 : index
    %c0_89 = arith.constant 0 : index
    %125 = vector.load %arg16[%c1_87, %c0_88, %c0_89] : memref<4x1x32xf32, #tpu.memory_space<vmem>>, vector<1x1x32xf32>
    %126 = vector.shape_cast %125 : vector<1x1x32xf32> to vector<1x32xf32>
    %127 = vector.broadcast %126 : vector<1x32xf32> to vector<32x32xf32>
    %128 = arith.addf %124, %127 : vector<32x32xf32>
    %c2 = arith.constant 2 : index
    %c0_90 = arith.constant 0 : index
    %c0_91 = arith.constant 0 : index
    %129 = vector.load %arg7[%c2, %c0_90, %c0_91] : memref<4x32x32xf32, #tpu.memory_space<vmem>>, vector<1x32x32xf32>
    %130 = vector.shape_cast %129 : vector<1x32x32xf32> to vector<32x32xf32>
    %cst_92 = arith.constant dense<0.000000e+00> : vector<32x32xf32>
    %131 = tpu.matmul %128, %130, %cst_92 {dimension_numbers = #tpu.dot_dimension_numbers<[1], [0], [0], [1], [0, 0, 1, 1], [], []>} : vector<32x32xf32>, vector<32x32xf32>, vector<32x32xf32> -> vector<32x32xf32>
    %c2_93 = arith.constant 2 : index
    %c0_94 = arith.constant 0 : index
    %c0_95 = arith.constant 0 : index
    %132 = vector.load %arg8[%c2_93, %c0_94, %c0_95] : memref<4x32x32xf32, #tpu.memory_space<vmem>>, vector<1x32x32xf32>
    %133 = vector.shape_cast %132 : vector<1x32x32xf32> to vector<32x32xf32>
    %cst_96 = arith.constant dense<0.000000e+00> : vector<32x32xf32>
    %134 = tpu.matmul %128, %133, %cst_96 {dimension_numbers = #tpu.dot_dimension_numbers<[1], [0], [0], [1], [0, 0, 1, 1], [], []>} : vector<32x32xf32>, vector<32x32xf32>, vector<32x32xf32> -> vector<32x32xf32>
    %135 = tpu.concatenate %131, %134 in 0 : vector<32x32xf32>, vector<32x32xf32> -> vector<64x32xf32>
    %cst_97 = arith.constant dense<0.000000e+00> : vector<480x32xf32>
    %136 = tpu.matmul %1, %135, %cst_97 {dimension_numbers = #tpu.dot_dimension_numbers<[1], [0], [0], [1], [0, 0, 1, 1], [], []>} : vector<480x64xf32>, vector<64x32xf32>, vector<480x32xf32> -> vector<480x32xf32>
    %c2_98 = arith.constant 2 : index
    %c0_99 = arith.constant 0 : index
    %c0_100 = arith.constant 0 : index
    %137 = vector.load %arg9[%c2_98, %c0_99, %c0_100] : memref<4x1x32xf32, #tpu.memory_space<vmem>>, vector<1x1x32xf32>
    %138 = vector.shape_cast %137 : vector<1x1x32xf32> to vector<1x32xf32>
    %139 = vector.broadcast %4 : vector<480x1xf32> to vector<480x32xf32>
    %140 = vector.broadcast %138 : vector<1x32xf32> to vector<480x32xf32>
    %141 = arith.mulf %139, %140 : vector<480x32xf32>
    %142 = arith.addf %136, %141 : vector<480x32xf32>
    %c2_101 = arith.constant 2 : index
    %c0_102 = arith.constant 0 : index
    %c0_103 = arith.constant 0 : index
    %143 = vector.load %arg10[%c2_101, %c0_102, %c0_103] : memref<4x1x32xf32, #tpu.memory_space<vmem>>, vector<1x1x32xf32>
    %144 = vector.shape_cast %143 : vector<1x1x32xf32> to vector<1x32xf32>
    %145 = vector.broadcast %144 : vector<1x32xf32> to vector<480x32xf32>
    %146 = arith.addf %142, %145 : vector<480x32xf32>
    %147 = arith.negf %146 : vector<480x32xf32>
    %148 = math.exp %147 : vector<480x32xf32>
    %cst_104 = arith.constant 1.000000e+00 : f32
    %149 = vector.broadcast %cst_104 : f32 to vector<480x32xf32>
    %150 = arith.addf %149, %148 : vector<480x32xf32>
    %151 = arith.divf %149, %150 : vector<480x32xf32>
    %152 = arith.mulf %146, %151 : vector<480x32xf32>
    %c2_105 = arith.constant 2 : index
    %c0_106 = arith.constant 0 : index
    %c0_107 = arith.constant 0 : index
    %153 = vector.load %arg11[%c2_105, %c0_106, %c0_107] : memref<4x32x32xf32, #tpu.memory_space<vmem>>, vector<1x32x32xf32>
    %154 = vector.shape_cast %153 : vector<1x32x32xf32> to vector<32x32xf32>
    %cst_108 = arith.constant dense<0.000000e+00> : vector<480x32xf32>
    %155 = tpu.matmul %152, %154, %cst_108 {dimension_numbers = #tpu.dot_dimension_numbers<[1], [0], [0], [1], [0, 0, 1, 1], [], []>} : vector<480x32xf32>, vector<32x32xf32>, vector<480x32xf32> -> vector<480x32xf32>
    %c2_109 = arith.constant 2 : index
    %c0_110 = arith.constant 0 : index
    %c0_111 = arith.constant 0 : index
    %156 = vector.load %arg12[%c2_109, %c0_110, %c0_111] : memref<4x1x32xf32, #tpu.memory_space<vmem>>, vector<1x1x32xf32>
    %157 = vector.shape_cast %156 : vector<1x1x32xf32> to vector<1x32xf32>
    %158 = vector.broadcast %157 : vector<1x32xf32> to vector<480x32xf32>
    %159 = arith.addf %155, %158 : vector<480x32xf32>
    %160 = arith.negf %159 : vector<480x32xf32>
    %161 = math.exp %160 : vector<480x32xf32>
    %cst_112 = arith.constant 1.000000e+00 : f32
    %162 = vector.broadcast %cst_112 : f32 to vector<480x32xf32>
    %163 = arith.addf %162, %161 : vector<480x32xf32>
    %164 = arith.divf %162, %163 : vector<480x32xf32>
    %165 = arith.mulf %159, %164 : vector<480x32xf32>
    %cst_113 = arith.constant dense<0.000000e+00> : vector<32x32xf32>
    %166 = tpu.matmul %3, %165, %cst_113 {dimension_numbers = #tpu.dot_dimension_numbers<[1], [0], [0], [1], [0, 0, 1, 1], [], []>} : vector<32x480xf32>, vector<480x32xf32>, vector<32x32xf32> -> vector<32x32xf32>
    %167 = tpu.concatenate %128, %166 in 1 : vector<32x32xf32>, vector<32x32xf32> -> vector<32x64xf32>
    %c2_114 = arith.constant 2 : index
    %c0_115 = arith.constant 0 : index
    %c0_116 = arith.constant 0 : index
    %168 = vector.load %arg13[%c2_114, %c0_115, %c0_116] : memref<4x64x32xf32, #tpu.memory_space<vmem>>, vector<1x64x32xf32>
    %169 = vector.shape_cast %168 : vector<1x64x32xf32> to vector<64x32xf32>
    %cst_117 = arith.constant dense<0.000000e+00> : vector<32x32xf32>
    %170 = tpu.matmul %167, %169, %cst_117 {dimension_numbers = #tpu.dot_dimension_numbers<[1], [0], [0], [1], [0, 0, 1, 1], [], []>} : vector<32x64xf32>, vector<64x32xf32>, vector<32x32xf32> -> vector<32x32xf32>
    %c2_118 = arith.constant 2 : index
    %c0_119 = arith.constant 0 : index
    %c0_120 = arith.constant 0 : index
    %171 = vector.load %arg14[%c2_118, %c0_119, %c0_120] : memref<4x1x32xf32, #tpu.memory_space<vmem>>, vector<1x1x32xf32>
    %172 = vector.shape_cast %171 : vector<1x1x32xf32> to vector<1x32xf32>
    %173 = vector.broadcast %172 : vector<1x32xf32> to vector<32x32xf32>
    %174 = arith.addf %170, %173 : vector<32x32xf32>
    %175 = arith.negf %174 : vector<32x32xf32>
    %176 = math.exp %175 : vector<32x32xf32>
    %cst_121 = arith.constant 1.000000e+00 : f32
    %177 = vector.broadcast %cst_121 : f32 to vector<32x32xf32>
    %178 = arith.addf %177, %176 : vector<32x32xf32>
    %179 = arith.divf %177, %178 : vector<32x32xf32>
    %180 = arith.mulf %174, %179 : vector<32x32xf32>
    %c2_122 = arith.constant 2 : index
    %c0_123 = arith.constant 0 : index
    %c0_124 = arith.constant 0 : index
    %181 = vector.load %arg15[%c2_122, %c0_123, %c0_124] : memref<4x32x32xf32, #tpu.memory_space<vmem>>, vector<1x32x32xf32>
    %182 = vector.shape_cast %181 : vector<1x32x32xf32> to vector<32x32xf32>
    %cst_125 = arith.constant dense<0.000000e+00> : vector<32x32xf32>
    %183 = tpu.matmul %180, %182, %cst_125 {dimension_numbers = #tpu.dot_dimension_numbers<[1], [0], [0], [1], [0, 0, 1, 1], [], []>} : vector<32x32xf32>, vector<32x32xf32>, vector<32x32xf32> -> vector<32x32xf32>
    %c2_126 = arith.constant 2 : index
    %c0_127 = arith.constant 0 : index
    %c0_128 = arith.constant 0 : index
    %184 = vector.load %arg16[%c2_126, %c0_127, %c0_128] : memref<4x1x32xf32, #tpu.memory_space<vmem>>, vector<1x1x32xf32>
    %185 = vector.shape_cast %184 : vector<1x1x32xf32> to vector<1x32xf32>
    %186 = vector.broadcast %185 : vector<1x32xf32> to vector<32x32xf32>
    %187 = arith.addf %183, %186 : vector<32x32xf32>
    %c3 = arith.constant 3 : index
    %c0_129 = arith.constant 0 : index
    %c0_130 = arith.constant 0 : index
    %188 = vector.load %arg7[%c3, %c0_129, %c0_130] : memref<4x32x32xf32, #tpu.memory_space<vmem>>, vector<1x32x32xf32>
    %189 = vector.shape_cast %188 : vector<1x32x32xf32> to vector<32x32xf32>
    %cst_131 = arith.constant dense<0.000000e+00> : vector<32x32xf32>
    %190 = tpu.matmul %187, %189, %cst_131 {dimension_numbers = #tpu.dot_dimension_numbers<[1], [0], [0], [1], [0, 0, 1, 1], [], []>} : vector<32x32xf32>, vector<32x32xf32>, vector<32x32xf32> -> vector<32x32xf32>
    %c3_132 = arith.constant 3 : index
    %c0_133 = arith.constant 0 : index
    %c0_134 = arith.constant 0 : index
    %191 = vector.load %arg8[%c3_132, %c0_133, %c0_134] : memref<4x32x32xf32, #tpu.memory_space<vmem>>, vector<1x32x32xf32>
    %192 = vector.shape_cast %191 : vector<1x32x32xf32> to vector<32x32xf32>
    %cst_135 = arith.constant dense<0.000000e+00> : vector<32x32xf32>
    %193 = tpu.matmul %187, %192, %cst_135 {dimension_numbers = #tpu.dot_dimension_numbers<[1], [0], [0], [1], [0, 0, 1, 1], [], []>} : vector<32x32xf32>, vector<32x32xf32>, vector<32x32xf32> -> vector<32x32xf32>
    %194 = tpu.concatenate %190, %193 in 0 : vector<32x32xf32>, vector<32x32xf32> -> vector<64x32xf32>
    %cst_136 = arith.constant dense<0.000000e+00> : vector<480x32xf32>
    %195 = tpu.matmul %1, %194, %cst_136 {dimension_numbers = #tpu.dot_dimension_numbers<[1], [0], [0], [1], [0, 0, 1, 1], [], []>} : vector<480x64xf32>, vector<64x32xf32>, vector<480x32xf32> -> vector<480x32xf32>
    %c3_137 = arith.constant 3 : index
    %c0_138 = arith.constant 0 : index
    %c0_139 = arith.constant 0 : index
    %196 = vector.load %arg9[%c3_137, %c0_138, %c0_139] : memref<4x1x32xf32, #tpu.memory_space<vmem>>, vector<1x1x32xf32>
    %197 = vector.shape_cast %196 : vector<1x1x32xf32> to vector<1x32xf32>
    %198 = vector.broadcast %4 : vector<480x1xf32> to vector<480x32xf32>
    %199 = vector.broadcast %197 : vector<1x32xf32> to vector<480x32xf32>
    %200 = arith.mulf %198, %199 : vector<480x32xf32>
    %201 = arith.addf %195, %200 : vector<480x32xf32>
    %c3_140 = arith.constant 3 : index
    %c0_141 = arith.constant 0 : index
    %c0_142 = arith.constant 0 : index
    %202 = vector.load %arg10[%c3_140, %c0_141, %c0_142] : memref<4x1x32xf32, #tpu.memory_space<vmem>>, vector<1x1x32xf32>
    %203 = vector.shape_cast %202 : vector<1x1x32xf32> to vector<1x32xf32>
    %204 = vector.broadcast %203 : vector<1x32xf32> to vector<480x32xf32>
    %205 = arith.addf %201, %204 : vector<480x32xf32>
    %206 = arith.negf %205 : vector<480x32xf32>
    %207 = math.exp %206 : vector<480x32xf32>
    %cst_143 = arith.constant 1.000000e+00 : f32
    %208 = vector.broadcast %cst_143 : f32 to vector<480x32xf32>
    %209 = arith.addf %208, %207 : vector<480x32xf32>
    %210 = arith.divf %208, %209 : vector<480x32xf32>
    %211 = arith.mulf %205, %210 : vector<480x32xf32>
    %c3_144 = arith.constant 3 : index
    %c0_145 = arith.constant 0 : index
    %c0_146 = arith.constant 0 : index
    %212 = vector.load %arg11[%c3_144, %c0_145, %c0_146] : memref<4x32x32xf32, #tpu.memory_space<vmem>>, vector<1x32x32xf32>
    %213 = vector.shape_cast %212 : vector<1x32x32xf32> to vector<32x32xf32>
    %cst_147 = arith.constant dense<0.000000e+00> : vector<480x32xf32>
    %214 = tpu.matmul %211, %213, %cst_147 {dimension_numbers = #tpu.dot_dimension_numbers<[1], [0], [0], [1], [0, 0, 1, 1], [], []>} : vector<480x32xf32>, vector<32x32xf32>, vector<480x32xf32> -> vector<480x32xf32>
    %c3_148 = arith.constant 3 : index
    %c0_149 = arith.constant 0 : index
    %c0_150 = arith.constant 0 : index
    %215 = vector.load %arg12[%c3_148, %c0_149, %c0_150] : memref<4x1x32xf32, #tpu.memory_space<vmem>>, vector<1x1x32xf32>
    %216 = vector.shape_cast %215 : vector<1x1x32xf32> to vector<1x32xf32>
    %217 = vector.broadcast %216 : vector<1x32xf32> to vector<480x32xf32>
    %218 = arith.addf %214, %217 : vector<480x32xf32>
    %219 = arith.negf %218 : vector<480x32xf32>
    %220 = math.exp %219 : vector<480x32xf32>
    %cst_151 = arith.constant 1.000000e+00 : f32
    %221 = vector.broadcast %cst_151 : f32 to vector<480x32xf32>
    %222 = arith.addf %221, %220 : vector<480x32xf32>
    %223 = arith.divf %221, %222 : vector<480x32xf32>
    %224 = arith.mulf %218, %223 : vector<480x32xf32>
    %cst_152 = arith.constant dense<0.000000e+00> : vector<32x32xf32>
    %225 = tpu.matmul %3, %224, %cst_152 {dimension_numbers = #tpu.dot_dimension_numbers<[1], [0], [0], [1], [0, 0, 1, 1], [], []>} : vector<32x480xf32>, vector<480x32xf32>, vector<32x32xf32> -> vector<32x32xf32>
    %226 = tpu.concatenate %187, %225 in 1 : vector<32x32xf32>, vector<32x32xf32> -> vector<32x64xf32>
    %c3_153 = arith.constant 3 : index
    %c0_154 = arith.constant 0 : index
    %c0_155 = arith.constant 0 : index
    %227 = vector.load %arg13[%c3_153, %c0_154, %c0_155] : memref<4x64x32xf32, #tpu.memory_space<vmem>>, vector<1x64x32xf32>
    %228 = vector.shape_cast %227 : vector<1x64x32xf32> to vector<64x32xf32>
    %cst_156 = arith.constant dense<0.000000e+00> : vector<32x32xf32>
    %229 = tpu.matmul %226, %228, %cst_156 {dimension_numbers = #tpu.dot_dimension_numbers<[1], [0], [0], [1], [0, 0, 1, 1], [], []>} : vector<32x64xf32>, vector<64x32xf32>, vector<32x32xf32> -> vector<32x32xf32>
    %c3_157 = arith.constant 3 : index
    %c0_158 = arith.constant 0 : index
    %c0_159 = arith.constant 0 : index
    %230 = vector.load %arg14[%c3_157, %c0_158, %c0_159] : memref<4x1x32xf32, #tpu.memory_space<vmem>>, vector<1x1x32xf32>
    %231 = vector.shape_cast %230 : vector<1x1x32xf32> to vector<1x32xf32>
    %232 = vector.broadcast %231 : vector<1x32xf32> to vector<32x32xf32>
    %233 = arith.addf %229, %232 : vector<32x32xf32>
    %234 = arith.negf %233 : vector<32x32xf32>
    %235 = math.exp %234 : vector<32x32xf32>
    %cst_160 = arith.constant 1.000000e+00 : f32
    %236 = vector.broadcast %cst_160 : f32 to vector<32x32xf32>
    %237 = arith.addf %236, %235 : vector<32x32xf32>
    %238 = arith.divf %236, %237 : vector<32x32xf32>
    %239 = arith.mulf %233, %238 : vector<32x32xf32>
    %c3_161 = arith.constant 3 : index
    %c0_162 = arith.constant 0 : index
    %c0_163 = arith.constant 0 : index
    %240 = vector.load %arg15[%c3_161, %c0_162, %c0_163] : memref<4x32x32xf32, #tpu.memory_space<vmem>>, vector<1x32x32xf32>
    %241 = vector.shape_cast %240 : vector<1x32x32xf32> to vector<32x32xf32>
    %cst_164 = arith.constant dense<0.000000e+00> : vector<32x32xf32>
    %242 = tpu.matmul %239, %241, %cst_164 {dimension_numbers = #tpu.dot_dimension_numbers<[1], [0], [0], [1], [0, 0, 1, 1], [], []>} : vector<32x32xf32>, vector<32x32xf32>, vector<32x32xf32> -> vector<32x32xf32>
    %c3_165 = arith.constant 3 : index
    %c0_166 = arith.constant 0 : index
    %c0_167 = arith.constant 0 : index
    %243 = vector.load %arg16[%c3_165, %c0_166, %c0_167] : memref<4x1x32xf32, #tpu.memory_space<vmem>>, vector<1x1x32xf32>
    %244 = vector.shape_cast %243 : vector<1x1x32xf32> to vector<1x32xf32>
    %245 = vector.broadcast %244 : vector<1x32xf32> to vector<32x32xf32>
    %246 = arith.addf %242, %245 : vector<32x32xf32>
    %c0_168 = arith.constant 0 : index
    %c0_169 = arith.constant 0 : index
    %247 = vector.load %arg17[%c0_168, %c0_169] : memref<32x32xf32, #tpu.memory_space<vmem>>, vector<32x32xf32>
    %cst_170 = arith.constant dense<0.000000e+00> : vector<32x32xf32>
    %248 = tpu.matmul %246, %247, %cst_170 {dimension_numbers = #tpu.dot_dimension_numbers<[1], [0], [0], [1], [0, 0, 1, 1], [], []>} : vector<32x32xf32>, vector<32x32xf32>, vector<32x32xf32> -> vector<32x32xf32>
    %c0_171 = arith.constant 0 : index
    %c0_172 = arith.constant 0 : index
    %249 = vector.load %arg18[%c0_171, %c0_172] : memref<1x32xf32, #tpu.memory_space<vmem>>, vector<1x32xf32>
    %250 = vector.broadcast %249 : vector<1x32xf32> to vector<32x32xf32>
    %251 = arith.addf %248, %250 : vector<32x32xf32>
    %252 = arith.negf %251 : vector<32x32xf32>
    %253 = math.exp %252 : vector<32x32xf32>
    %cst_173 = arith.constant 1.000000e+00 : f32
    %254 = vector.broadcast %cst_173 : f32 to vector<32x32xf32>
    %255 = arith.addf %254, %253 : vector<32x32xf32>
    %256 = arith.divf %254, %255 : vector<32x32xf32>
    %257 = arith.mulf %251, %256 : vector<32x32xf32>
    %c0_174 = arith.constant 0 : index
    %c0_175 = arith.constant 0 : index
    %258 = vector.load %arg19[%c0_174, %c0_175] : memref<32x128xf32, #tpu.memory_space<vmem>>, vector<32x128xf32>
    %cst_176 = arith.constant dense<0.000000e+00> : vector<32x128xf32>
    %259 = tpu.matmul %257, %258, %cst_176 {dimension_numbers = #tpu.dot_dimension_numbers<[1], [0], [0], [1], [0, 0, 1, 1], [], []>} : vector<32x32xf32>, vector<32x128xf32>, vector<32x128xf32> -> vector<32x128xf32>
    %c0_177 = arith.constant 0 : index
    %c0_178 = arith.constant 0 : index
    %260 = vector.load %arg20[%c0_177, %c0_178] : memref<1x128xf32, #tpu.memory_space<vmem>>, vector<1x128xf32>
    %261 = vector.broadcast %260 : vector<1x128xf32> to vector<32x128xf32>
    %262 = arith.addf %259, %261 : vector<32x128xf32>
    %c0_179 = arith.constant 0 : index
    %c0_180 = arith.constant 0 : index
    %263 = vector.load %arg21[%c0_179, %c0_180] : memref<32x128xf32, #tpu.memory_space<vmem>>, vector<32x128xf32>
    tpu.vector_store %arg21[%c0_179, %c0_180], %262 {strides = array<i32>} : memref<32x128xf32, #tpu.memory_space<vmem>>, vector<32x128xf32>,
    return
  }
  func.func @transform_0(%arg0: i32) -> (i32, i32) {
    %c0_i32 = arith.constant 0 : i32
    %c0_i32_0 = arith.constant 0 : i32
    %c0_i32_1 = arith.constant 0 : i32
    return %c0_i32, %c0_i32_0 : i32, i32
  }
  func.func @transform_1(%arg0: i32) -> (i32, i32) {
    %c0_i32 = arith.constant 0 : i32
    %c0_i32_0 = arith.constant 0 : i32
    %c0_i32_1 = arith.constant 0 : i32
    return %c0_i32, %c0_i32_0 : i32, i32
  }
  func.func @transform_2(%arg0: i32) -> (i32, i32) {
    %c0_i32 = arith.constant 0 : i32
    %c0_i32_0 = arith.constant 0 : i32
    %c0_i32_1 = arith.constant 0 : i32
    return %c0_i32, %c0_i32_0 : i32, i32
  }
  func.func @transform_3(%arg0: i32) -> (i32, i32) {
    %c0_i32 = arith.constant 0 : i32
    %c0_i32_0 = arith.constant 0 : i32
    %c0_i32_1 = arith.constant 0 : i32
    return %c0_i32, %c0_i32_0 : i32, i32
  }
  func.func @transform_4(%arg0: i32) -> (i32, i32) {
    %c0_i32 = arith.constant 0 : i32
    %c0_i32_0 = arith.constant 0 : i32
    %c0_i32_1 = arith.constant 0 : i32
    return %c0_i32, %c0_i32_0 : i32, i32
  }
  func.func @transform_5(%arg0: i32) -> (i32, i32) {
    %c0_i32 = arith.constant 0 : i32
    %c0_i32_0 = arith.constant 0 : i32
    %c0_i32_1 = arith.constant 0 : i32
    return %c0_i32, %c0_i32_0 : i32, i32
  }
  func.func @transform_6(%arg0: i32) -> (i32, i32, i32) {
    %c0_i32 = arith.constant 0 : i32
    %c0_i32_0 = arith.constant 0 : i32
    %c0_i32_1 = arith.constant 0 : i32
    %c0_i32_2 = arith.constant 0 : i32
    return %c0_i32, %c0_i32_0, %c0_i32_1 : i32, i32, i32
  }
  func.func @transform_7(%arg0: i32) -> (i32, i32, i32) {
    %c0_i32 = arith.constant 0 : i32
    %c0_i32_0 = arith.constant 0 : i32
    %c0_i32_1 = arith.constant 0 : i32
    %c0_i32_2 = arith.constant 0 : i32
    return %c0_i32, %c0_i32_0, %c0_i32_1 : i32, i32, i32
  }
  func.func @transform_8(%arg0: i32) -> (i32, i32, i32) {
    %c0_i32 = arith.constant 0 : i32
    %c0_i32_0 = arith.constant 0 : i32
    %c0_i32_1 = arith.constant 0 : i32
    %c0_i32_2 = arith.constant 0 : i32
    return %c0_i32, %c0_i32_0, %c0_i32_1 : i32, i32, i32
  }
  func.func @transform_9(%arg0: i32) -> (i32, i32, i32) {
    %c0_i32 = arith.constant 0 : i32
    %c0_i32_0 = arith.constant 0 : i32
    %c0_i32_1 = arith.constant 0 : i32
    %c0_i32_2 = arith.constant 0 : i32
    return %c0_i32, %c0_i32_0, %c0_i32_1 : i32, i32, i32
  }
  func.func @transform_10(%arg0: i32) -> (i32, i32, i32) {
    %c0_i32 = arith.constant 0 : i32
    %c0_i32_0 = arith.constant 0 : i32
    %c0_i32_1 = arith.constant 0 : i32
    %c0_i32_2 = arith.constant 0 : i32
    return %c0_i32, %c0_i32_0, %c0_i32_1 : i32, i32, i32
  }
  func.func @transform_11(%arg0: i32) -> (i32, i32, i32) {
    %c0_i32 = arith.constant 0 : i32
    %c0_i32_0 = arith.constant 0 : i32
    %c0_i32_1 = arith.constant 0 : i32
    %c0_i32_2 = arith.constant 0 : i32
    return %c0_i32, %c0_i32_0, %c0_i32_1 : i32, i32, i32
  }
  func.func @transform_12(%arg0: i32) -> (i32, i32, i32) {
    %c0_i32 = arith.constant 0 : i32
    %c0_i32_0 = arith.constant 0 : i32
    %c0_i32_1 = arith.constant 0 : i32
    %c0_i32_2 = arith.constant 0 : i32
    return %c0_i32, %c0_i32_0, %c0_i32_1 : i32, i32, i32
  }
  func.func @transform_13(%arg0: i32) -> (i32, i32, i32) {
    %c0_i32 = arith.constant 0 : i32
    %c0_i32_0 = arith.constant 0 : i32
    %c0_i32_1 = arith.constant 0 : i32
    %c0_i32_2 = arith.constant 0 : i32
    return %c0_i32, %c0_i32_0, %c0_i32_1 : i32, i32, i32
  }
  func.func @transform_14(%arg0: i32) -> (i32, i32, i32) {
    %c0_i32 = arith.constant 0 : i32
    %c0_i32_0 = arith.constant 0 : i32
    %c0_i32_1 = arith.constant 0 : i32
    %c0_i32_2 = arith.constant 0 : i32
    return %c0_i32, %c0_i32_0, %c0_i32_1 : i32, i32, i32
  }
  func.func @transform_15(%arg0: i32) -> (i32, i32, i32) {
    %c0_i32 = arith.constant 0 : i32
    %c0_i32_0 = arith.constant 0 : i32
    %c0_i32_1 = arith.constant 0 : i32
    %c0_i32_2 = arith.constant 0 : i32
    return %c0_i32, %c0_i32_0, %c0_i32_1 : i32, i32, i32
  }
  func.func @transform_16(%arg0: i32) -> (i32, i32) {
    %c0_i32 = arith.constant 0 : i32
    %c0_i32_0 = arith.constant 0 : i32
    %c0_i32_1 = arith.constant 0 : i32
    return %c0_i32, %c0_i32_0 : i32, i32
  }
  func.func @transform_17(%arg0: i32) -> (i32, i32) {
    %c0_i32 = arith.constant 0 : i32
    %c0_i32_0 = arith.constant 0 : i32
    %c0_i32_1 = arith.constant 0 : i32
    return %c0_i32, %c0_i32_0 : i32, i32
  }
  func.func @transform_18(%arg0: i32) -> (i32, i32) {
    %c0_i32 = arith.constant 0 : i32
    %c0_i32_0 = arith.constant 0 : i32
    %c0_i32_1 = arith.constant 0 : i32
    return %c0_i32, %c0_i32_0 : i32, i32
  }
  func.func @transform_19(%arg0: i32) -> (i32, i32) {
    %c0_i32 = arith.constant 0 : i32
    %c0_i32_0 = arith.constant 0 : i32
    %c0_i32_1 = arith.constant 0 : i32
    return %c0_i32, %c0_i32_0 : i32, i32
  }
  func.func @transform_20(%arg0: i32) -> (i32, i32) {
    %c0_i32 = arith.constant 0 : i32
    %c0_i32_0 = arith.constant 0 : i32
    %c0_i32_1 = arith.constant 0 : i32
    return %c0_i32, %c0_i32_0 : i32, i32
  }
}

</mosaic_0001>

<bundles_post_ra>
// kernel: tpu_custom_call.1
= control target key start
LH: loop header
LB: loop body
LE: loop exit
PB: predicated region body
PF: predicated region fallthrough
CT: control target
= control target key end

     0   :  { %s22591_s0 = inlined_call_operand.vmem [shape: f32[32,4], index: 0, kind: input, shape index: {}]   ;;  %s22592_s1 = inlined_call_operand.vmem [shape: bf16[480,64], index: 1, kind: input, shape index: {}]   ;;  %s22593_s2 = inlined_call_operand.vmem [shape: bf16[32,480], index: 2, kind: input, shape index: {}]   ;;  %s22594_s3 = inlined_call_operand.vmem [shape: f32[480,1], index: 3, kind: input, shape index: {}]   ;;  %s22595_s4 = inlined_call_operand.vmem [shape: f32[4,32], index: 4, kind: input, shape index: {}]   ;;  %s22596_s5 = inlined_call_operand.vmem [shape: f32[1,32], index: 5, kind: input, shape index: {}]   ;;  %s22597_s6 = inlined_call_operand.vmem [shape: f32[4,32,32], index: 6, kind: input, shape index: {}]   ;;  %s22598_s7 = inlined_call_operand.vmem [shape: f32[4,32,32], index: 7, kind: input, shape index: {}]   ;;  %s22599_s8 = inlined_call_operand.vmem [shape: f32[4,1,32], index: 8, kind: input, shape index: {}]   ;;  %s22600_s9 = inlined_call_operand.vmem [shape: f32[4,1,32], index: 9, kind: input, shape index: {}]   ;;  %s22601_s10 = inlined_call_operand.vmem [shape: f32[4,32,32], index: 10, kind: input, shape index: {}]   ;;  %s22602_s11 = inlined_call_operand.vmem [shape: f32[4,1,32], index: 11, kind: input, shape index: {}]   ;;  %s22603_s12 = inlined_call_operand.vmem [shape: f32[4,64,32], index: 12, kind: input, shape index: {}]   ;;  %s22604_s13 = inlined_call_operand.vmem [shape: f32[4,1,32], index: 13, kind: input, shape index: {}]   ;;  %s22605_s14 = inlined_call_operand.vmem [shape: f32[4,32,32], index: 14, kind: input, shape index: {}]   ;;  %s22606_s15 = inlined_call_operand.vmem [shape: f32[4,1,32], index: 15, kind: input, shape index: {}]   ;;  %s22607_s16 = inlined_call_operand.vmem [shape: f32[32,32], index: 16, kind: input, shape index: {}]   ;;  %s22608_s17 = inlined_call_operand.vmem [shape: f32[1,32], index: 17, kind: input, shape index: {}]   ;;  %s22609_s18 = inlined_call_operand.vmem [shape: f32[32,128], index: 18, kind: input, shape index: {}]   ;;  %s22610_s19 = inlined_call_operand.vmem [shape: f32[1,128], index: 19, kind: input, shape index: {}]   ;;  %s22611_s20 = inlined_call_operand.hbm [shape: f32[32,128], index: 20, kind: output, shape index: {}]  }
   0x1   :  { %22866 = sst [smem:[#allocation138_spill]] %s22591_s0 }
   0x2   :  { %22867 = sst [smem:[#allocation139_spill]] %s22592_s1 }
   0x3   :  { %22868 = sst [smem:[#allocation140_spill]] %s22593_s2 }
   0x4   :  { %22869 = sst [smem:[#allocation141_spill]] %s22594_s3 }
   0x5   :  { %22870 = sst [smem:[#allocation142_spill]] %s22595_s4 }
   0x6   :  { %s22871_s23 = sld [smem:[#allocation142_spill]]  ;;  %vm295_vm0 = vcmask 1043456   ;;  %s22872_s25 = sld [smem:[#allocation138_spill]]  ;;  %vm282_vm1 = vcmask 31744   ;;  %v384_v4 = vld [vmem:[%s22597_s6] sm:$0xff]  ;;  %v385_v5 = vld [vmem:[%s22597_s6 + $0x8] sm:$0xff] }
   0x7   :  { %v486_v6 = vld [vmem:[%s22598_s7] sm:$0xff]  ;;  %v487_v7 = vld [vmem:[%s22598_s7 + $0x8] sm:$0xff]  ;;  %v14574_v8 = vpack.c.bf16 %v385_v5, %v384_v4 }
   0x8   :  { %v14582_v9 = vpack.c.bf16 %v487_v7, %v486_v6 }
   0xc   :  { %v274_v0 = vld [vmem:[%s22871_s23] sm:$0xf]  ;;  %v271_v2 = vld [vmem:[%s22872_s25 + $0x8] sm:$0xff]  ;;  %v272_v3 = vld [vmem:[%s22872_s25 + $0x10] sm:$0xff] }
   0xd   :  { %v270_v1 = vld [vmem:[%s22872_s25] sm:$0xff]  ;;  %13466 = vmatprep.subr.msk.mxu0 %vm295_vm0, %v274_v0 }
   0xe   :  { %13468 = vmatprep.mubr.msk.f32.mxu0 %vm282_vm1, %v270_v1  ;;  %13467 = vmatpush3.msk.msra.mxu0 %vm295_vm0, %v274_v0 }
   0xf   :  { %13469 = vmatmul.mubr.msk.f32.vlgmr.msra.gmra.mrb[0].mxu0 %vm282_vm1, %v271_v2 }
  0x10   :  { %25 = vsyncpa [#allocation3], 0  ;;  %13471 = vmatprep.mubr.msk.f32.mxu0 %vm282_vm1, %v272_v3  ;;  %v273_v10 = vld [vmem:[%s22872_s25 + $0x18] sm:$0xff]  ;;  %14575 = vmatprep.subr.bf16.mxu1 %v14574_v8  ;;  %v386_v11 = vld [vmem:[%s22597_s6 + $0x10] sm:$0xff]  ;;  %s22873_s1 = sld [smem:[#allocation141_spill]]  ;;  %v17190_v19 = vmov 0  }
  0x11   :  { %14583 = vmatprep.subr.bf16.mxu0 %v14582_v9  ;;  %14577 = vmatpush3.bf16.msra.mxu1 %v14574_v8  ;;  %v387_v12 = vld [vmem:[%s22597_s6 + $0x18] sm:$0xff]  ;;  %v488_v13 = vld [vmem:[%s22598_s7 + $0x10] sm:$0xff]  ;;  %v11265_v25 = vld [vmem:[%s22596_s5] ss:$0 sm:$0xff]  ;;  %vm388_vm2 = vcmask 261120   ;;  %s22878_s27 = sld [smem:[#allocation139_spill]] }
  0x12   :  { %14585 = vmatpush3.bf16.msra.mxu0 %v14582_v9  ;;  %v14578_v14 = vpack.c.bf16 %v387_v12, %v386_v11  ;;  %v489_v15 = vld [vmem:[%s22598_s7 + $0x18] sm:$0xff]  ;;  %15148 = vset.pattern.permute.xlu0 %v17190_v19  ;;  %vm942_vm3 = vcmask 523264   ;;  %s23021_s22 = sld [smem:[#allocation140_spill]]  ;;  %vm2951_vm4 = vcmask 785408   ;;  %s17192_s3 = smov 32  }
  0x13   :  { %13472 = vmatmul.mubr.msk.f32.gmra.mrb[2].mxu0 %vm282_vm1, %v273_v10  ;;  %v14586_v16 = vpack.c.bf16 %v489_v15, %v488_v13  ;;  %15149 = vset.pattern.permute.xlu1 %v17190_v19 }
  0x14   :  { %14579 = vmatprep.subr.bf16.mxu1 %v14578_v14 }
  0x15   :  { %14587 = vmatprep.subr.bf16.mxu0 %v14586_v16  ;;  %14581 = vmatpush3.bf16.msra.mxu1 %v14578_v14 }
  0x16   :  { %14589 = vmatpush3.bf16.msra.mxu0 %v14586_v16  ;;  %v210_v17 = vld [vmem:[%s22873_s1] sm:$0xff]  ;;  %v212_v18 = vld [vmem:[%s22873_s1 + $0x10] sm:$0xff]  ;;  %v211_v20 = vld [vmem:[%s22873_s1 + $0x8] sm:$0xff] }
  0x17   :  { %578 = vperm.xlu0 %15148, %v210_v17   ;;  %588 = vperm.xlu1 %15149, %v212_v18   ;;  %v213_v21 = vld [vmem:[%s22873_s1 + $0x18] sm:$0xff]  ;;  %v214_v22 = vld [vmem:[%s22873_s1 + $0x20] sm:$0xff]  ;;  %v215_v23 = vld [vmem:[%s22873_s1 + $0x28] sm:$0xff] }
  0x18   :  { %v216_v24 = vld [vmem:[%s22873_s1 + $0x30] sm:$0xff]  ;;  %v217_v34 = vld [vmem:[%s22873_s1 + $0x38] sm:$0xff]  ;;  %v218_v35 = vld [vmem:[%s22873_s1 + $0x40] sm:$0xff] }
  0x19   :  { %v219_v36 = vld [vmem:[%s22873_s1 + $0x48] sm:$0xff]  ;;  %v220_v37 = vld [vmem:[%s22873_s1 + $0x50] sm:$0xff]  ;;  %v221_v38 = vld [vmem:[%s22873_s1 + $0x58] sm:$0xff] }
  0x1a   :  { %v222_v39 = vld [vmem:[%s22873_s1 + $0x60] sm:$0xff]  ;;  %v223_v40 = vld [vmem:[%s22873_s1 + $0x68] sm:$0xff]  ;;  %v224_v41 = vld [vmem:[%s22873_s1 + $0x70] sm:$0xff] }
  0x1b   :  { %583 = vperm.xlu0 %15148, %v211_v20   ;;  %593 = vperm.xlu1 %15149, %v213_v21   ;;  %v225_v42 = vld [vmem:[%s22873_s1 + $0x78] sm:$0xff]  ;;  %v226_v43 = vld [vmem:[%s22873_s1 + $0x80] sm:$0xff]  ;;  %v227_v46 = vld [vmem:[%s22873_s1 + $0x88] sm:$0xff] }
  0x1c   :  { %v17425_v44 = vld [vmem:[%s22878_s27] sm:$0xff]   ;;  %v228_v47 = vld [vmem:[%s22873_s1 + $0x90] sm:$0xff]  ;;  %v229_v48 = vld [vmem:[%s22873_s1 + $0x98] sm:$0xff] }
  0x1d   :  { %v17428_v45 = vunpack.c.l.bf16 %v17425_v44  ;;  %v230_v49 = vld [vmem:[%s22873_s1 + $0xa0] sm:$0xff]  ;;  %v231_v50 = vld [vmem:[%s22873_s1 + $0xa8] sm:$0xff]  ;;  %v232_v51 = vld [vmem:[%s22873_s1 + $0xb0] sm:$0xff] }
  0x1e   :  { %v233_v52 = vld [vmem:[%s22873_s1 + $0xb8] sm:$0xff]  ;;  %v234_v53 = vld [vmem:[%s22873_s1 + $0xc0] sm:$0xff]  ;;  %v235_v54 = vld [vmem:[%s22873_s1 + $0xc8] sm:$0xff] }
  0x1f   :  { %598 = vperm.xlu0 %15148, %v214_v22   ;;  %603 = vperm.xlu1 %15149, %v215_v23   ;;  %22879 = vst [vmem:[#allocation9_spill] sm:$0xff] %v17428_v45  ;;  %v236_v55 = vld [vmem:[%s22873_s1 + $0xd0] sm:$0xff]  ;;  %v237_v56 = vld [vmem:[%s22873_s1 + $0xd8] sm:$0xff]  ;;  %v238_v57 = vld [vmem:[%s22873_s1 + $0xe0] sm:$0xff] }
  0x20   :  { %v239_v58 = vld [vmem:[%s22873_s1 + $0xe8] sm:$0xff]  ;;  %v240_v59 = vld [vmem:[%s22873_s1 + $0xf0] sm:$0xff]  ;;  %v241_v60 = vld [vmem:[%s22873_s1 + $0xf8] sm:$0xff] }
  0x21   :  { %v242_v61 = vld [vmem:[%s22873_s1 + $0x100] sm:$0xff]  ;;  %v243_v62 = vld [vmem:[%s22873_s1 + $0x108] sm:$0xff]  ;;  %v244_v63 = vld [vmem:[%s22873_s1 + $0x110] sm:$0xff] }
  0x22   :  { %v245_v0 = vld [vmem:[%s22873_s1 + $0x118] sm:$0xff]  ;;  %v246_v1 = vld [vmem:[%s22873_s1 + $0x120] sm:$0xff]  ;;  %v247_v2 = vld [vmem:[%s22873_s1 + $0x128] sm:$0xff] }
  0x23   :  { %608 = vperm.xlu0 %15148, %v216_v24   ;;  %613 = vperm.xlu1 %15149, %v217_v34   ;;  %v248_v3 = vld [vmem:[%s22873_s1 + $0x130] sm:$0xff]  ;;  %v249_v4 = vld [vmem:[%s22873_s1 + $0x138] sm:$0xff]  ;;  %v250_v5 = vld [vmem:[%s22873_s1 + $0x140] sm:$0xff] }
  0x24   :  { %v251_v6 = vld [vmem:[%s22873_s1 + $0x148] sm:$0xff]  ;;  %v252_v7 = vld [vmem:[%s22873_s1 + $0x150] sm:$0xff]  ;;  %v253_v8 = vld [vmem:[%s22873_s1 + $0x158] sm:$0xff] }
  0x25   :  { %v254_v9 = vld [vmem:[%s22873_s1 + $0x160] sm:$0xff]  ;;  %v255_v10 = vld [vmem:[%s22873_s1 + $0x168] sm:$0xff]  ;;  %v256_v11 = vld [vmem:[%s22873_s1 + $0x170] sm:$0xff] }
  0x26   :  { %v257_v12 = vld [vmem:[%s22873_s1 + $0x178] sm:$0xff]  ;;  %v258_v13 = vld [vmem:[%s22873_s1 + $0x180] sm:$0xff]  ;;  %v259_v14 = vld [vmem:[%s22873_s1 + $0x188] sm:$0xff] }
  0x27   :  { %618 = vperm.xlu0 %15148, %v218_v35   ;;  %623 = vperm.xlu1 %15149, %v219_v36   ;;  %v260_v15 = vld [vmem:[%s22873_s1 + $0x190] sm:$0xff]  ;;  %v261_v16 = vld [vmem:[%s22873_s1 + $0x198] sm:$0xff]  ;;  %v262_v17 = vld [vmem:[%s22873_s1 + $0x1a0] sm:$0xff] }
  0x28   :  { %v263_v18 = vld [vmem:[%s22873_s1 + $0x1a8] sm:$0xff]  ;;  %v264_v19 = vld [vmem:[%s22873_s1 + $0x1b0] sm:$0xff]  ;;  %v265_v20 = vld [vmem:[%s22873_s1 + $0x1b8] sm:$0xff] }
  0x29   :  { %v266_v21 = vld [vmem:[%s22873_s1 + $0x1c0] sm:$0xff]  ;;  %v267_v22 = vld [vmem:[%s22873_s1 + $0x1c8] sm:$0xff]  ;;  %v268_v23 = vld [vmem:[%s22873_s1 + $0x1d0] sm:$0xff] }
  0x2a   :  { %v269_v24 = vld [vmem:[%s22873_s1 + $0x1d8] sm:$0xff] }
  0x2b   :  { %628 = vperm.xlu0 %15148, %v220_v37   ;;  %633 = vperm.xlu1 %15149, %v221_v38  }
  0x2f   :  { %638 = vperm.xlu0 %15148, %v222_v39   ;;  %643 = vperm.xlu1 %15149, %v223_v40  }
  0x33   :  { %648 = vperm.xlu0 %15148, %v224_v41   ;;  %653 = vperm.xlu1 %15149, %v225_v42  }
  0x37   :  { %658 = vperm.xlu0 %15148, %v226_v43   ;;  %663 = vperm.xlu1 %15149, %v227_v46  }
  0x3b   :  { %668 = vperm.xlu0 %15148, %v228_v47   ;;  %673 = vperm.xlu1 %15149, %v229_v48  }
  0x3f   :  { %678 = vperm.xlu0 %15148, %v230_v49   ;;  %683 = vperm.xlu1 %15149, %v231_v50  }
  0x43   :  { %688 = vperm.xlu0 %15148, %v232_v51   ;;  %693 = vperm.xlu1 %15149, %v233_v52  }
  0x47   :  { %698 = vperm.xlu0 %15148, %v234_v53   ;;  %703 = vperm.xlu1 %15149, %v235_v54  }
  0x4b   :  { %708 = vperm.xlu0 %15148, %v236_v55   ;;  %713 = vperm.xlu1 %15149, %v237_v56  }
  0x4f   :  { %718 = vperm.xlu0 %15148, %v238_v57   ;;  %723 = vperm.xlu1 %15149, %v239_v58   ;;  %v12568_v58 = vld [vmem:[%s22878_s27 + $0x8] sm:$0xff]  }
  0x53   :  { %728 = vperm.xlu0 %15148, %v240_v59   ;;  %733 = vperm.xlu1 %15149, %v241_v60  }
  0x57   :  { %738 = vperm.xlu0 %15148, %v242_v61   ;;  %743 = vperm.xlu1 %15149, %v243_v62   ;;  %v17599_v61 = vunpack.c.h.bf16 %v17425_v44  ;;  %v17601_v62 = vunpack.c.l.bf16 %v12568_v58 }
  0x59   :  { %22897 = vst [vmem:[#allocation27_spill] sm:$0xff] %v17599_v61  ;;  %22898 = vst [vmem:[#allocation28_spill] sm:$0xff] %v17601_v62 }
  0x5b   :  { %748 = vperm.xlu0 %15148, %v244_v63   ;;  %753 = vperm.xlu1 %15149, %v245_v0   ;;  %v12569_v63 = vld [vmem:[%s22878_s27 + $0x10] sm:$0xff]  }
  0x5c   :  { %v17616_v44 = vunpack.c.l.bf16 %v12569_v63 }
  0x5e   :  { %22902 = vst [vmem:[#allocation32_spill] sm:$0xff] %v17616_v44 }
  0x5f   :  { %758 = vperm.xlu0 %15148, %v246_v1   ;;  %763 = vperm.xlu1 %15149, %v247_v2   ;;  %v17612_v2 = vunpack.c.h.bf16 %v12568_v58 }
  0x61   :  { %22901 = vst [vmem:[#allocation31_spill] sm:$0xff] %v17612_v2 }
  0x63   :  { %768 = vperm.xlu0 %15148, %v248_v3   ;;  %773 = vperm.xlu1 %15149, %v249_v4   ;;  %v12570_v3 = vld [vmem:[%s22878_s27 + $0x18] sm:$0xff]  }
  0x67   :  { %778 = vperm.xlu0 %15148, %v250_v5   ;;  %783 = vperm.xlu1 %15149, %v251_v6   ;;  %v17627_v6 = vunpack.c.h.bf16 %v12569_v63 }
  0x69   :  { %22905 = vst [vmem:[#allocation35_spill] sm:$0xff] %v17627_v6 }
  0x6b   :  { %788 = vperm.xlu0 %15148, %v252_v7   ;;  %793 = vperm.xlu1 %15149, %v253_v8   ;;  %v17631_v7 = vunpack.c.l.bf16 %v12570_v3  ;;  %v12571_v8 = vld [vmem:[%s22878_s27 + $0x20] sm:$0xff]  }
  0x6d   :  { %22906 = vst [vmem:[#allocation36_spill] sm:$0xff] %v17631_v7 }
  0x6f   :  { %798 = vperm.xlu0 %15148, %v254_v9   ;;  %803 = vperm.xlu1 %15149, %v255_v10  }
  0x73   :  { %808 = vperm.xlu0 %15148, %v256_v11   ;;  %813 = vperm.xlu1 %15149, %v257_v12   ;;  %v17642_v11 = vunpack.c.h.bf16 %v12570_v3  ;;  %v17646_v12 = vunpack.c.l.bf16 %v12571_v8 }
  0x75   :  { %22909 = vst [vmem:[#allocation39_spill] sm:$0xff] %v17642_v11  ;;  %22910 = vst [vmem:[#allocation40_spill] sm:$0xff] %v17646_v12 }
  0x77   :  { %818 = vperm.xlu0 %15148, %v258_v13   ;;  %823 = vperm.xlu1 %15149, %v259_v14   ;;  %v12572_v13 = vld [vmem:[%s22878_s27 + $0x28] sm:$0xff]  }
  0x7b   :  { %828 = vperm.xlu0 %15148, %v260_v15   ;;  %833 = vperm.xlu1 %15149, %v261_v16   ;;  %v17655_v15 = vunpack.c.h.bf16 %v12571_v8  ;;  %v17659_v16 = vunpack.c.l.bf16 %v12572_v13  ;;  %v12578_v8 = vld [vmem:[%s22878_s27 + $0x58] sm:$0xff]  }
  0x7d   :  { %22912 = vst [vmem:[#allocation42_spill] sm:$0xff] %v17655_v15  ;;  %22913 = vst [vmem:[#allocation43_spill] sm:$0xff] %v17659_v16 }
  0x7f   :  { %838 = vperm.xlu0 %15148, %v262_v17   ;;  %843 = vperm.xlu1 %15149, %v263_v18   ;;  %v12573_v18 = vld [vmem:[%s22878_s27 + $0x30] sm:$0xff]  }
  0x83   :  { %848 = vperm.xlu0 %15148, %v264_v19   ;;  %853 = vperm.xlu1 %15149, %v265_v20   ;;  %v17670_v20 = vunpack.c.h.bf16 %v12572_v13 }
  0x85   :  { %22916 = vst [vmem:[#allocation46_spill] sm:$0xff] %v17670_v20 }
  0x87   :  { %858 = vperm.xlu0 %15148, %v266_v21   ;;  %863 = vperm.xlu1 %15149, %v267_v22   ;;  %v17674_v21 = vunpack.c.l.bf16 %v12573_v18  ;;  %v12574_v22 = vld [vmem:[%s22878_s27 + $0x38] sm:$0xff]  }
  0x89   :  { %22917 = vst [vmem:[#allocation47_spill] sm:$0xff] %v17674_v21 }
  0x8b   :  { %868 = vperm.xlu0 %15148, %v268_v23   ;;  %873 = vperm.xlu1 %15149, %v269_v24  }
  0xe2   :  { %v13470_v26 = vpop.f32.mrb[0].mxu0 }
  0xe3   :  { %v365_v27 = vpop.f32.mrb[1].mxu0  ;;  %v17370_v29 = vadd.f32 %v13470_v26, %v11265_v25  ;;  %v17563_v26 = vpop.permute.xlu1 %588 }
  0xe4   :  { %v17368_v28 = vadd.f32 %v11265_v25, %v365_v27  ;;  %22881 = vst [vmem:[#allocation11_spill] sm:$0xff] %v17563_v26 }
  0xe5   :  { %22875 = vst [vmem:[#allocation6_spill] sm:$0xff] %v17370_v29 }
  0xe6   :  { %22874 = vst [vmem:[#allocation5_spill] sm:$0xff] %v17368_v28  ;;  %v13473_v30 = vpop.f32.mrb[2].mxu0  ;;  %13482 = vmatprep.mubr.msk.f32.mxu1 %vm388_vm2, %v17368_v28  ;;  %13496 = vmatprep.mubr.msk.f32.mxu0 %vm388_vm2, %v17368_v28 }
  0xe7   :  { %v375_v31 = vpop.f32.mrb[3].mxu0  ;;  %13483 = vmatmul.mubr.msk.f32.vlgmr.msra.gmra.mrb[0].mxu1 %vm388_vm2, %v17370_v29  ;;  %13497 = vmatmul.mubr.msk.f32.vlgmr.msra.gmra.mrb[4].mxu0 %vm388_vm2, %v17370_v29  ;;  %v17382_v33 = vadd.f32 %v13473_v30, %v11265_v25  ;;  %v17567_v30 = vpop.permute.xlu1 %593 }
  0xe8   :  { %v17380_v32 = vadd.f32 %v11265_v25, %v375_v31  ;;  %v17561_v25 = vpop.permute.xlu0 %578  ;;  %22883 = vst [vmem:[#allocation13_spill] sm:$0xff] %v17567_v30 }
  0xe9   :  { %22877 = vst [vmem:[#allocation8_spill] sm:$0xff] %v17382_v33  ;;  %22880 = vst [vmem:[#allocation10_spill] sm:$0xff] %v17561_v25 }
  0xea   :  { %22876 = vst [vmem:[#allocation7_spill] sm:$0xff] %v17380_v32  ;;  %13485 = vmatprep.mubr.msk.f32.mxu1 %vm388_vm2, %v17380_v32  ;;  %13499 = vmatprep.mubr.msk.f32.mxu0 %vm388_vm2, %v17380_v32 }
  0xeb   :  { %13486 = vmatmul.mubr.msk.f32.gmra.mrb[2].mxu1 %vm388_vm2, %v17382_v33  ;;  %13500 = vmatmul.mubr.msk.f32.gmra.mrb[6].mxu0 %vm388_vm2, %v17382_v33  ;;  %v17571_v34 = vpop.permute.xlu1 %603 }
  0xec   :  { %13518 = vmatprep.mubr.msk.f32.mxu1 %vm942_vm3, %v17428_v45  ;;  %v17565_v27 = vpop.permute.xlu0 %583  ;;  %22885 = vst [vmem:[#allocation15_spill] sm:$0xff] %v17571_v34 }
  0xed   :  { %22882 = vst [vmem:[#allocation12_spill] sm:$0xff] %v17565_v27 }
  0xef   :  { %v17575_v36 = vpop.permute.xlu1 %613 }
  0xf0   :  { %v17569_v31 = vpop.permute.xlu0 %598  ;;  %22887 = vst [vmem:[#allocation17_spill] sm:$0xff] %v17575_v36 }
  0xf1   :  { %22884 = vst [vmem:[#allocation14_spill] sm:$0xff] %v17569_v31 }
  0xf3   :  { %v17579_v46 = vpop.permute.xlu1 %623 }
  0xf4   :  { %v17573_v35 = vpop.permute.xlu0 %608  ;;  %22889 = vst [vmem:[#allocation19_spill] sm:$0xff] %v17579_v46 }
  0xf5   :  { %22886 = vst [vmem:[#allocation16_spill] sm:$0xff] %v17573_v35 }
  0xf7   :  { %v17583_v54 = vpop.permute.xlu1 %633 }
  0xf8   :  { %v17577_v37 = vpop.permute.xlu0 %618  ;;  %22891 = vst [vmem:[#allocation21_spill] sm:$0xff] %v17583_v54 }
  0xf9   :  { %22888 = vst [vmem:[#allocation18_spill] sm:$0xff] %v17577_v37 }
  0xfb   :  { %v17587_v56 = vpop.permute.xlu1 %643 }
  0xfc   :  { %v17581_v47 = vpop.permute.xlu0 %628  ;;  %22893 = vst [vmem:[#allocation23_spill] sm:$0xff] %v17587_v56 }
  0xfd   :  { %22890 = vst [vmem:[#allocation20_spill] sm:$0xff] %v17581_v47 }
  0xff   :  { %v17594_v59 = vpop.permute.xlu1 %653 }
 0x100   :  { %v17585_v55 = vpop.permute.xlu0 %638  ;;  %22895 = vst [vmem:[#allocation25_spill] sm:$0xff] %v17594_v59 }
 0x101   :  { %22892 = vst [vmem:[#allocation22_spill] sm:$0xff] %v17585_v55 }
 0x103   :  { %v17606_v0 = vpop.permute.xlu1 %663 }
 0x104   :  { %v17589_v57 = vpop.permute.xlu0 %648  ;;  %22899 = vst [vmem:[#allocation29_spill] sm:$0xff] %v17606_v0 }
 0x105   :  { %22894 = vst [vmem:[#allocation24_spill] sm:$0xff] %v17589_v57 }
 0x107   :  { %v17621_v4 = vpop.permute.xlu1 %673 }
 0x108   :  { %v17596_v60 = vpop.permute.xlu0 %658  ;;  %22903 = vst [vmem:[#allocation33_spill] sm:$0xff] %v17621_v4 }
 0x109   :  { %22896 = vst [vmem:[#allocation26_spill] sm:$0xff] %v17596_v60 }
 0x10b   :  { %v17636_v9 = vpop.permute.xlu1 %683 }
 0x10c   :  { %v17608_v1 = vpop.permute.xlu0 %668  ;;  %22907 = vst [vmem:[#allocation37_spill] sm:$0xff] %v17636_v9 }
 0x10d   :  { %22900 = vst [vmem:[#allocation30_spill] sm:$0xff] %v17608_v1 }
 0x10f   :  { %v17651_v14 = vpop.permute.xlu1 %693 }
 0x110   :  { %v17623_v5 = vpop.permute.xlu0 %678  ;;  %22911 = vst [vmem:[#allocation41_spill] sm:$0xff] %v17651_v14 }
 0x111   :  { %22904 = vst [vmem:[#allocation34_spill] sm:$0xff] %v17623_v5 }
 0x113   :  { %v17666_v19 = vpop.permute.xlu1 %703 }
 0x114   :  { %v17638_v10 = vpop.permute.xlu0 %688  ;;  %22915 = vst [vmem:[#allocation45_spill] sm:$0xff] %v17666_v19 }
 0x115   :  { %22908 = vst [vmem:[#allocation38_spill] sm:$0xff] %v17638_v10 }
 0x117   :  { %v17681_v24 = vpop.permute.xlu1 %713 }
 0x118   :  { %v17661_v17 = vpop.permute.xlu0 %698  ;;  %22919 = vst [vmem:[#allocation49_spill] sm:$0xff] %v17681_v24 }
 0x119   :  { %22914 = vst [vmem:[#allocation44_spill] sm:$0xff] %v17661_v17 }
 0x11c   :  { %v17679_v23 = vpop.permute.xlu0 %708 }
 0x11d   :  { %22918 = vst [vmem:[#allocation48_spill] sm:$0xff] %v17679_v23 }
 0x1ba   :  { %v13484_v38 = vpop.f32.mrb[0].mxu1  ;;  %v13498_v39 = vpop.f32.mrb[4].mxu0 }
 0x1bb   :  { %v467_v40 = vpop.f32.mrb[1].mxu1  ;;  %v556_v41 = vpop.f32.mrb[5].mxu0 }
 0x1bc   :  { %v14590_v42 = vpack.c.bf16 %v13484_v38, %v467_v40  ;;  %v14598_v43 = vpack.c.bf16 %v13498_v39, %v556_v41  ;;  %v17685_v38 = vunpack.c.h.bf16 %v12573_v18  ;;  %v17689_v39 = vunpack.c.l.bf16 %v12574_v22  ;;  %v12575_v40 = vld [vmem:[%s22878_s27 + $0x40] sm:$0xff]  }
 0x1bd   :  { %v17696_v41 = vunpack.c.h.bf16 %v12574_v22  ;;  %v17741_v18 = vunpack.c.l.bf16 %v12578_v8 }
 0x1be   :  { %v13487_v48 = vpop.f32.mrb[2].mxu1  ;;  %v13501_v49 = vpop.f32.mrb[6].mxu0  ;;  %14591 = vmatprep.subr.bf16.mxu1 %v14590_v42  ;;  %22920 = vst [vmem:[#allocation50_spill] sm:$0xff] %v17685_v38  ;;  %22921 = vst [vmem:[#allocation51_spill] sm:$0xff] %v17689_v39 }
 0x1bf   :  { %v477_v50 = vpop.f32.mrb[3].mxu1  ;;  %v566_v51 = vpop.f32.mrb[7].mxu0  ;;  %14593 = vmatpush3.bf16.msra.mxu1 %v14590_v42  ;;  %22922 = vst [vmem:[#allocation52_spill] sm:$0xff] %v17696_v41  ;;  %v17700_v42 = vunpack.c.l.bf16 %v12575_v40  ;;  %22933 = vst [vmem:[#allocation63_spill] sm:$0xff] %v17741_v18 }
 0x1c0   :  { %v14594_v52 = vpack.c.bf16 %v13487_v48, %v477_v50  ;;  %v14602_v53 = vpack.c.bf16 %v13501_v49, %v566_v51  ;;  %v17704_v48 = vpop.permute.xlu1 %723  ;;  %v12576_v49 = vld [vmem:[%s22878_s27 + $0x48] sm:$0xff]   ;;  %v17711_v50 = vunpack.c.h.bf16 %v12575_v40 }
 0x1c1   :  { %22923 = vst [vmem:[#allocation53_spill] sm:$0xff] %v17700_v42  ;;  %22925 = vst [vmem:[#allocation55_spill] sm:$0xff] %v17704_v48  ;;  %v17715_v51 = vunpack.c.l.bf16 %v12576_v49  ;;  %v17726_v63 = vunpack.c.h.bf16 %v12576_v49  ;;  %v12579_v49 = vld [vmem:[%s22878_s27 + $0x60] sm:$0xff]  }
 0x1c2   :  { %14595 = vmatprep.subr.bf16.mxu1 %v14594_v52  ;;  %22926 = vst [vmem:[#allocation56_spill] sm:$0xff] %v17711_v50 }
 0x1c3   :  { %14597 = vmatpush3.bf16.msra.mxu1 %v14594_v52  ;;  %22927 = vst [vmem:[#allocation57_spill] sm:$0xff] %v17715_v51  ;;  %v12577_v52 = vld [vmem:[%s22878_s27 + $0x50] sm:$0xff]   ;;  %22930 = vst [vmem:[#allocation60_spill] sm:$0xff] %v17726_v63 }
 0x1c4   :  { %14599 = vmatprep.subr.bf16.mxu1 %v14598_v43  ;;  %v17722_v58 = vpop.permute.xlu1 %733  ;;  %v17730_v3 = vunpack.c.l.bf16 %v12577_v52  ;;  %v17737_v13 = vunpack.c.h.bf16 %v12577_v52  ;;  %v17756_v52 = vunpack.c.l.bf16 %v12579_v49 }
 0x1c5   :  { %22929 = vst [vmem:[#allocation59_spill] sm:$0xff] %v17722_v58 }
 0x1c6   :  { %22931 = vst [vmem:[#allocation61_spill] sm:$0xff] %v17730_v3  ;;  %22932 = vst [vmem:[#allocation62_spill] sm:$0xff] %v17737_v13 }
 0x1c7   :  { %14601 = vmatpush3.bf16.msra.mxu1 %v14598_v43  ;;  %v17702_v43 = vpop.permute.xlu0 %718  ;;  %22937 = vst [vmem:[#allocation67_spill] sm:$0xff] %v17756_v52 }
 0x1c8   :  { %14603 = vmatprep.subr.bf16.mxu1 %v14602_v53  ;;  %22924 = vst [vmem:[#allocation54_spill] sm:$0xff] %v17702_v43  ;;  %v17745_v40 = vpop.permute.xlu1 %743 }
 0x1c9   :  { %22935 = vst [vmem:[#allocation65_spill] sm:$0xff] %v17745_v40 }
 0x1cb   :  { %14605 = vmatpush3.bf16.msra.mxu1 %v14602_v53  ;;  %v17720_v53 = vpop.permute.xlu0 %728 }
 0x1cc   :  { %22928 = vst [vmem:[#allocation58_spill] sm:$0xff] %v17720_v53 }
 0x1ce   :  { %13519 = vmatmul.mubr.msk.f32.vlgmr.msra.gmra.mrb[4].mxu1 %vm942_vm3, %v17599_v61 }
 0x1cf   :  { %13521 = vmatprep.mubr.msk.f32.mxu1 %vm942_vm3, %v17601_v62  ;;  %v17743_v22 = vpop.permute.xlu0 %738 }
 0x1d0   :  { %22934 = vst [vmem:[#allocation64_spill] sm:$0xff] %v17743_v22 }
 0x1d2   :  { %13522 = vmatmul.mubr.msk.f32.gmra.mrb[6].mxu1 %vm942_vm3, %v17612_v2 }
 0x1d3   :  { %13524 = vmatprep.mubr.msk.f32.mxu1 %vm942_vm3, %v17616_v44 }
 0x1d6   :  { %13525 = vmatmul.mubr.msk.f32.gmra.mrb[8].mxu1 %vm942_vm3, %v17627_v6 }
 0x1d7   :  { %13527 = vmatprep.mubr.msk.f32.mxu1 %vm942_vm3, %v17631_v7 }
 0x1da   :  { %13528 = vmatmul.mubr.msk.f32.gmra.mrb[10].mxu1 %vm942_vm3, %v17642_v11 }
 0x1db   :  { %13530 = vmatprep.mubr.msk.f32.mxu1 %vm942_vm3, %v17646_v12 }
 0x1de   :  { %13531 = vmatmul.mubr.msk.f32.gmra.mrb[12].mxu1 %vm942_vm3, %v17655_v15 }
 0x1df   :  { %13533 = vmatprep.mubr.msk.f32.mxu1 %vm942_vm3, %v17659_v16 }
 0x1e2   :  { %13534 = vmatmul.mubr.msk.f32.gmra.mrb[14].mxu1 %vm942_vm3, %v17670_v20 }
 0x1e3   :  { %13536 = vmatprep.mubr.msk.f32.mxu1 %vm942_vm3, %v17674_v21 }
 0x1e6   :  { %13537 = vmatmul.mubr.msk.f32.gmra.mrb[16].mxu1 %vm942_vm3, %v17685_v38 }
 0x1e7   :  { %13539 = vmatprep.mubr.msk.f32.mxu1 %vm942_vm3, %v17689_v39 }
 0x1ea   :  { %13540 = vmatmul.mubr.msk.f32.gmra.mrb[18].mxu1 %vm942_vm3, %v17696_v41 }
 0x1eb   :  { %13542 = vmatprep.mubr.msk.f32.mxu1 %vm942_vm3, %v17700_v42  ;;  %v17767_v42 = vunpack.c.h.bf16 %v12579_v49 }
 0x1ed   :  { %22940 = vst [vmem:[#allocation70_spill] sm:$0xff] %v17767_v42 }
 0x1ee   :  { %13543 = vmatmul.mubr.msk.f32.gmra.mrb[20].mxu1 %vm942_vm3, %v17711_v50  ;;  %v17763_v50 = vpop.permute.xlu1 %753 }
 0x1ef   :  { %13545 = vmatprep.mubr.msk.f32.mxu1 %vm942_vm3, %v17715_v51  ;;  %v17752_v51 = vunpack.c.h.bf16 %v12578_v8  ;;  %22939 = vst [vmem:[#allocation69_spill] sm:$0xff] %v17763_v50 }
 0x1f1   :  { %22936 = vst [vmem:[#allocation66_spill] sm:$0xff] %v17752_v51 }
 0x1f2   :  { %13546 = vmatmul.mubr.msk.f32.gmra.mrb[22].mxu1 %vm942_vm3, %v17726_v63  ;;  %v17761_v63 = vpop.permute.xlu0 %748  ;;  %v17786_v41 = vpop.permute.xlu1 %763 }
 0x1f3   :  { %13548 = vmatprep.mubr.msk.f32.mxu1 %vm942_vm3, %v17730_v3  ;;  %v12580_v3 = vld [vmem:[%s22878_s27 + $0x68] sm:$0xff]   ;;  %22938 = vst [vmem:[#allocation68_spill] sm:$0xff] %v17761_v63  ;;  %22945 = vst [vmem:[#allocation75_spill] sm:$0xff] %v17786_v41 }
 0x1f4   :  { %v17771_v8 = vunpack.c.l.bf16 %v12580_v3 }
 0x1f6   :  { %13549 = vmatmul.mubr.msk.f32.gmra.mrb[24].mxu1 %vm942_vm3, %v17737_v13  ;;  %22941 = vst [vmem:[#allocation71_spill] sm:$0xff] %v17771_v8  ;;  %v17778_v13 = vunpack.c.h.bf16 %v12580_v3  ;;  %v17784_v49 = vpop.permute.xlu0 %758  ;;  %v17804_v38 = vpop.permute.xlu1 %773 }
 0x1f7   :  { %13551 = vmatprep.mubr.msk.f32.mxu1 %vm942_vm3, %v17741_v18  ;;  %v12581_v18 = vld [vmem:[%s22878_s27 + $0x70] sm:$0xff]   ;;  %22944 = vst [vmem:[#allocation74_spill] sm:$0xff] %v17784_v49  ;;  %22949 = vst [vmem:[#allocation79_spill] sm:$0xff] %v17804_v38 }
 0x1f8   :  { %22942 = vst [vmem:[#allocation72_spill] sm:$0xff] %v17778_v13  ;;  %v17793_v39 = vunpack.c.h.bf16 %v12581_v18 }
 0x1fa   :  { %13552 = vmatmul.mubr.msk.f32.gmra.mrb[26].mxu1 %vm942_vm3, %v17752_v51  ;;  %v17782_v51 = vunpack.c.l.bf16 %v12581_v18  ;;  %22946 = vst [vmem:[#allocation76_spill] sm:$0xff] %v17793_v39  ;;  %v17827_v20 = vpop.permute.xlu1 %783 }
 0x1fb   :  { %13554 = vmatprep.mubr.msk.f32.mxu1 %vm942_vm3, %v17756_v52  ;;  %v12582_v52 = vld [vmem:[%s22878_s27 + $0x78] sm:$0xff]   ;;  %22955 = vst [vmem:[#allocation85_spill] sm:$0xff] %v17827_v20 }
 0x1fc   :  { %22943 = vst [vmem:[#allocation73_spill] sm:$0xff] %v17782_v51  ;;  %v17797_v3 = vunpack.c.l.bf16 %v12582_v52  ;;  %v17808_v21 = vunpack.c.h.bf16 %v12582_v52 }
 0x1fe   :  { %13555 = vmatmul.mubr.msk.f32.gmra.mrb[28].mxu1 %vm942_vm3, %v17767_v42  ;;  %22947 = vst [vmem:[#allocation77_spill] sm:$0xff] %v17797_v3  ;;  %v17802_v42 = vpop.permute.xlu0 %768  ;;  %22950 = vst [vmem:[#allocation80_spill] sm:$0xff] %v17808_v21  ;;  %v17845_v15 = vpop.permute.xlu1 %793 }
 0x1ff   :  { %13557 = vmatprep.mubr.msk.f32.mxu1 %vm942_vm3, %v17771_v8  ;;  %v12583_v8 = vld [vmem:[%s22878_s27 + $0x80] sm:$0xff]   ;;  %22948 = vst [vmem:[#allocation78_spill] sm:$0xff] %v17802_v42  ;;  %22959 = vst [vmem:[#allocation89_spill] sm:$0xff] %v17845_v15 }
 0x200   :  { %v17812_v18 = vunpack.c.l.bf16 %v12583_v8 }
 0x202   :  { %13558 = vmatmul.mubr.msk.f32.gmra.mrb[30].mxu1 %vm942_vm3, %v17778_v13  ;;  %22951 = vst [vmem:[#allocation81_spill] sm:$0xff] %v17812_v18  ;;  %v17819_v13 = vunpack.c.h.bf16 %v12583_v8  ;;  %v17825_v52 = vpop.permute.xlu0 %778  ;;  %v17868_v11 = vpop.permute.xlu1 %803 }
 0x203   :  { %13560 = vmatprep.mubr.msk.f32.mxu1 %vm942_vm3, %v17782_v51  ;;  %v12584_v51 = vld [vmem:[%s22878_s27 + $0x88] sm:$0xff]   ;;  %22954 = vst [vmem:[#allocation84_spill] sm:$0xff] %v17825_v52  ;;  %22965 = vst [vmem:[#allocation95_spill] sm:$0xff] %v17868_v11 }
 0x204   :  { %22952 = vst [vmem:[#allocation82_spill] sm:$0xff] %v17819_v13  ;;  %v17834_v16 = vunpack.c.h.bf16 %v12584_v51 }
 0x206   :  { %13561 = vmatmul.mubr.msk.f32.gmra.mrb[32].mxu1 %vm942_vm3, %v17793_v39  ;;  %v17823_v39 = vunpack.c.l.bf16 %v12584_v51  ;;  %22956 = vst [vmem:[#allocation86_spill] sm:$0xff] %v17834_v16  ;;  %v17886_v6 = vpop.permute.xlu1 %813 }
 0x207   :  { %13563 = vmatprep.mubr.msk.f32.mxu1 %vm942_vm3, %v17797_v3  ;;  %v12585_v3 = vld [vmem:[%s22878_s27 + $0x90] sm:$0xff]   ;;  %22969 = vst [vmem:[#allocation99_spill] sm:$0xff] %v17886_v6 }
 0x208   :  { %22953 = vst [vmem:[#allocation83_spill] sm:$0xff] %v17823_v39  ;;  %v17838_v8 = vunpack.c.l.bf16 %v12585_v3  ;;  %v17849_v12 = vunpack.c.h.bf16 %v12585_v3 }
 0x20a   :  { %13564 = vmatmul.mubr.msk.f32.gmra.mrb[34].mxu1 %vm942_vm3, %v17808_v21  ;;  %22957 = vst [vmem:[#allocation87_spill] sm:$0xff] %v17838_v8  ;;  %v17843_v21 = vpop.permute.xlu0 %788  ;;  %22960 = vst [vmem:[#allocation90_spill] sm:$0xff] %v17849_v12  ;;  %v17909_v2 = vpop.permute.xlu1 %823 }
 0x20b   :  { %13566 = vmatprep.mubr.msk.f32.mxu1 %vm942_vm3, %v17812_v18  ;;  %v12586_v18 = vld [vmem:[%s22878_s27 + $0x98] sm:$0xff]   ;;  %22958 = vst [vmem:[#allocation88_spill] sm:$0xff] %v17843_v21  ;;  %22975 = vst [vmem:[#allocation105_spill] sm:$0xff] %v17909_v2 }
 0x20c   :  { %v17853_v51 = vunpack.c.l.bf16 %v12586_v18 }
 0x20e   :  { %13567 = vmatmul.mubr.msk.f32.gmra.mrb[36].mxu1 %vm942_vm3, %v17819_v13  ;;  %22961 = vst [vmem:[#allocation91_spill] sm:$0xff] %v17853_v51  ;;  %v17860_v13 = vunpack.c.h.bf16 %v12586_v18  ;;  %v17866_v3 = vpop.permute.xlu0 %798  ;;  %v17927_v61 = vpop.permute.xlu1 %833 }
 0x20f   :  { %13569 = vmatprep.mubr.msk.f32.mxu1 %vm942_vm3, %v17823_v39  ;;  %v12587_v39 = vld [vmem:[%s22878_s27 + $0xa0] sm:$0xff]   ;;  %22964 = vst [vmem:[#allocation94_spill] sm:$0xff] %v17866_v3  ;;  %22979 = vst [vmem:[#allocation109_spill] sm:$0xff] %v17927_v61 }
 0x210   :  { %22962 = vst [vmem:[#allocation92_spill] sm:$0xff] %v17860_v13  ;;  %v17875_v7 = vunpack.c.h.bf16 %v12587_v39 }
 0x212   :  { %13570 = vmatmul.mubr.msk.f32.gmra.mrb[38].mxu1 %vm942_vm3, %v17834_v16  ;;  %v17864_v16 = vunpack.c.l.bf16 %v12587_v39  ;;  %22966 = vst [vmem:[#allocation96_spill] sm:$0xff] %v17875_v7  ;;  %v17950_v33 = vpop.permute.xlu1 %843 }
 0x213   :  { %13572 = vmatprep.mubr.msk.f32.mxu1 %vm942_vm3, %v17838_v8  ;;  %v12588_v8 = vld [vmem:[%s22878_s27 + $0xa8] sm:$0xff]   ;;  %22985 = vst [vmem:[#allocation115_spill] sm:$0xff] %v17950_v33 }
 0x214   :  { %22963 = vst [vmem:[#allocation93_spill] sm:$0xff] %v17864_v16  ;;  %v17879_v18 = vunpack.c.l.bf16 %v12588_v8  ;;  %v17890_v44 = vunpack.c.h.bf16 %v12588_v8  ;;  %v1976_v33 = vld [vmem:[%s22601_s10 + $0x8] sm:$0xff] }
 0x216   :  { %13573 = vmatmul.mubr.msk.f32.gmra.mrb[40].mxu1 %vm942_vm3, %v17849_v12  ;;  %22967 = vst [vmem:[#allocation97_spill] sm:$0xff] %v17879_v18  ;;  %v17884_v12 = vpop.permute.xlu0 %808  ;;  %22970 = vst [vmem:[#allocation100_spill] sm:$0xff] %v17890_v44  ;;  %v17968_v29 = vpop.permute.xlu1 %853 }
 0x217   :  { %13575 = vmatprep.mubr.msk.f32.mxu1 %vm942_vm3, %v17853_v51  ;;  %v12589_v51 = vld [vmem:[%s22878_s27 + $0xb0] sm:$0xff]   ;;  %22968 = vst [vmem:[#allocation98_spill] sm:$0xff] %v17884_v12  ;;  %22989 = vst [vmem:[#allocation119_spill] sm:$0xff] %v17968_v29 }
 0x218   :  { %v17894_v39 = vunpack.c.l.bf16 %v12589_v51 }
 0x21a   :  { %13576 = vmatmul.mubr.msk.f32.gmra.mrb[42].mxu1 %vm942_vm3, %v17860_v13  ;;  %22971 = vst [vmem:[#allocation101_spill] sm:$0xff] %v17894_v39  ;;  %v17901_v13 = vunpack.c.h.bf16 %v12589_v51  ;;  %v17907_v8 = vpop.permute.xlu0 %818 }
 0x21b   :  { %13578 = vmatprep.mubr.msk.f32.mxu1 %vm942_vm3, %v17864_v16  ;;  %v12590_v16 = vld [vmem:[%s22878_s27 + $0xb8] sm:$0xff]   ;;  %22974 = vst [vmem:[#allocation104_spill] sm:$0xff] %v17907_v8 }
 0x21c   :  { %22972 = vst [vmem:[#allocation102_spill] sm:$0xff] %v17901_v13  ;;  %v17916_v62 = vunpack.c.h.bf16 %v12590_v16 }
 0x21e   :  { %13579 = vmatmul.mubr.msk.f32.gmra.mrb[44].mxu1 %vm942_vm3, %v17875_v7  ;;  %v17905_v7 = vunpack.c.l.bf16 %v12590_v16  ;;  %22976 = vst [vmem:[#allocation106_spill] sm:$0xff] %v17916_v62 }
 0x21f   :  { %13581 = vmatprep.mubr.msk.f32.mxu1 %vm942_vm3, %v17879_v18  ;;  %v12591_v18 = vld [vmem:[%s22878_s27 + $0xc0] sm:$0xff]  }
 0x220   :  { %22973 = vst [vmem:[#allocation103_spill] sm:$0xff] %v17905_v7  ;;  %v17920_v51 = vunpack.c.l.bf16 %v12591_v18  ;;  %v17931_v45 = vunpack.c.h.bf16 %v12591_v18 }
 0x222   :  { %13582 = vmatmul.mubr.msk.f32.gmra.mrb[46].mxu1 %vm942_vm3, %v17890_v44  ;;  %22977 = vst [vmem:[#allocation107_spill] sm:$0xff] %v17920_v51  ;;  %v17925_v44 = vpop.permute.xlu0 %828  ;;  %22980 = vst [vmem:[#allocation110_spill] sm:$0xff] %v17931_v45 }
 0x223   :  { %13584 = vmatprep.mubr.msk.f32.mxu1 %vm942_vm3, %v17894_v39  ;;  %v12592_v39 = vld [vmem:[%s22878_s27 + $0xc8] sm:$0xff]   ;;  %22978 = vst [vmem:[#allocation108_spill] sm:$0xff] %v17925_v44 }
 0x224   :  { %v17935_v16 = vunpack.c.l.bf16 %v12592_v39 }
 0x226   :  { %13585 = vmatmul.mubr.msk.f32.gmra.mrb[48].mxu1 %vm942_vm3, %v17901_v13  ;;  %22981 = vst [vmem:[#allocation111_spill] sm:$0xff] %v17935_v16  ;;  %v17942_v13 = vunpack.c.h.bf16 %v12592_v39  ;;  %v17948_v18 = vpop.permute.xlu0 %838 }
 0x227   :  { %13587 = vmatprep.mubr.msk.f32.mxu1 %vm942_vm3, %v17905_v7  ;;  %v12593_v7 = vld [vmem:[%s22878_s27 + $0xd0] sm:$0xff]   ;;  %22984 = vst [vmem:[#allocation114_spill] sm:$0xff] %v17948_v18  ;;  %v1975_v18 = vld [vmem:[%s22601_s10] sm:$0xff] }
 0x228   :  { %22982 = vst [vmem:[#allocation112_spill] sm:$0xff] %v17942_v13  ;;  %v17957_v32 = vunpack.c.h.bf16 %v12593_v7 }
 0x22a   :  { %13588 = vmatmul.mubr.msk.f32.gmra.mrb[50].mxu1 %vm942_vm3, %v17916_v62  ;;  %v17946_v62 = vunpack.c.l.bf16 %v12593_v7  ;;  %22986 = vst [vmem:[#allocation116_spill] sm:$0xff] %v17957_v32 }
 0x22b   :  { %13590 = vmatprep.mubr.msk.f32.mxu1 %vm942_vm3, %v17920_v51  ;;  %v12594_v51 = vld [vmem:[%s22878_s27 + $0xd8] sm:$0xff]  }
 0x22c   :  { %22983 = vst [vmem:[#allocation113_spill] sm:$0xff] %v17946_v62  ;;  %v17961_v39 = vunpack.c.l.bf16 %v12594_v51  ;;  %v17972_v28 = vunpack.c.h.bf16 %v12594_v51 }
 0x22e   :  { %13591 = vmatmul.mubr.msk.f32.gmra.mrb[52].mxu1 %vm942_vm3, %v17931_v45  ;;  %22987 = vst [vmem:[#allocation117_spill] sm:$0xff] %v17961_v39  ;;  %v17966_v45 = vpop.permute.xlu0 %848  ;;  %22990 = vst [vmem:[#allocation120_spill] sm:$0xff] %v17972_v28 }
 0x22f   :  { %13593 = vmatprep.mubr.msk.f32.mxu1 %vm942_vm3, %v17935_v16  ;;  %v12595_v16 = vld [vmem:[%s22878_s27 + $0xe0] sm:$0xff]   ;;  %22988 = vst [vmem:[#allocation118_spill] sm:$0xff] %v17966_v45 }
 0x230   :  { %v17976_v7 = vunpack.c.l.bf16 %v12595_v16  ;;  %v17986_v45 = vunpack.c.h.bf16 %v12595_v16 }
 0x232   :  { %13594 = vmatmul.mubr.msk.f32.gmra.mrb[54].mxu1 %vm942_vm3, %v17942_v13  ;;  %22991 = vst [vmem:[#allocation121_spill] sm:$0xff] %v17976_v7  ;;  %v11557_v13 = vld [vmem:[%s22599_s8 + $0x1] ss:$0 sm:$0xff]  ;;  %22992 = vst [vmem:[#allocation122_spill] sm:$0xff] %v17986_v45 }
 0x233   :  { %13596 = vmatprep.mubr.msk.f32.mxu1 %vm942_vm3, %v17946_v62  ;;  %v12596_v62 = vld [vmem:[%s22878_s27 + $0xe8] sm:$0xff]   ;;  %v18003_v16 = vmul.f32 %v11557_v13, %v17968_v29 }
 0x234   :  { %v17990_v51 = vunpack.c.l.bf16 %v12596_v62  ;;  %v18013_v61 = vunpack.c.h.bf16 %v12596_v62  ;;  %v11855_v62 = vld [vmem:[%s22599_s8 + $0x2] ss:$0 sm:$0xff] }
 0x235   :  { %22996 = vst [vmem:[#allocation126_spill] sm:$0xff] %v18003_v16 }
 0x236   :  { %13597 = vmatmul.mubr.msk.f32.gmra.mrb[56].mxu1 %vm942_vm3, %v17957_v32  ;;  %22993 = vst [vmem:[#allocation123_spill] sm:$0xff] %v17990_v51  ;;  %v17994_v32 = vpop.permute.xlu1 %863  ;;  %22999 = vst [vmem:[#allocation129_spill] sm:$0xff] %v18013_v61 }
 0x237   :  { %13599 = vmatprep.mubr.msk.f32.mxu1 %vm942_vm3, %v17961_v39  ;;  %v17992_v39 = vpop.permute.xlu0 %858  ;;  %22995 = vst [vmem:[#allocation125_spill] sm:$0xff] %v17994_v32 }
 0x238   :  { %22994 = vst [vmem:[#allocation124_spill] sm:$0xff] %v17992_v39  ;;  %v18009_v44 = vmul.f32 %v11557_v13, %v17992_v39 }
 0x23a   :  { %13600 = vmatmul.mubr.msk.f32.gmra.mrb[58].mxu1 %vm942_vm3, %v17972_v28  ;;  %v14606_v28 = vpack.c.bf16 %v1976_v33, %v1975_v18  ;;  %22998 = vst [vmem:[#allocation128_spill] sm:$0xff] %v18009_v44  ;;  %v1977_v33 = vld [vmem:[%s22601_s10 + $0x10] sm:$0xff]  ;;  %v1978_v18 = vld [vmem:[%s22601_s10 + $0x18] sm:$0xff]  ;;  %v18032_v44 = vmul.f32 %v11855_v62, %v17994_v32 }
 0x23b   :  { %13602 = vmatprep.mubr.msk.f32.mxu1 %vm942_vm3, %v17976_v7  ;;  %v18006_v7 = vmul.f32 %v11557_v13, %v17994_v32  ;;  %v14610_v13 = vpack.c.bf16 %v1978_v18, %v1977_v33  ;;  %v12153_v33 = vld [vmem:[%s22599_s8 + $0x3] ss:$0 sm:$0xff] }
 0x23c   :  { %14607 = vmatprep.subr.bf16.mxu0 %v14606_v28  ;;  %23001 = vst [vmem:[#allocation131_spill] sm:$0xff] %v18032_v44  ;;  %v18041_v18 = vmul.f32 %v12153_v33, %v17968_v29  ;;  %v18047_v16 = vmul.f32 %v12153_v33, %v17992_v39  ;;  %v18052_v44 = vld [vmem:[%s22599_s8] ss:$0 sm:$0xff] }
 0x23d   :  { %22997 = vst [vmem:[#allocation127_spill] sm:$0xff] %v18006_v7  ;;  %14609 = vmatpush3.bf16.msra.mxu0 %v14606_v28  ;;  %v18029_v28 = vmul.f32 %v11855_v62, %v17968_v29  ;;  %v18035_v7 = vmul.f32 %v11855_v62, %v17992_v39  ;;  %v883_v62 = vmul.f32 %v18052_v44, %v17565_v27 }
 0x23e   :  { %13603 = vmatmul.mubr.msk.f32.gmra.mrb[60].mxu1 %vm942_vm3, %v17986_v45  ;;  %14611 = vmatprep.subr.bf16.mxu0 %v14610_v13  ;;  %23003 = vst [vmem:[#allocation133_spill] sm:$0xff] %v18041_v18  ;;  %23005 = vst [vmem:[#allocation135_spill] sm:$0xff] %v18047_v16  ;;  %v884_v39 = vmul.f32 %v18052_v44, %v17563_v26  ;;  %v886_v26 = vmul.f32 %v18052_v44, %v17569_v31 }
 0x23f   :  { %13605 = vmatprep.mubr.msk.f32.mxu1 %vm942_vm3, %v17990_v51  ;;  %23000 = vst [vmem:[#allocation130_spill] sm:$0xff] %v18029_v28  ;;  %23002 = vst [vmem:[#allocation132_spill] sm:$0xff] %v18035_v7  ;;  %v18059_v28 = vld [vmem:[%s22600_s9] ss:$0 sm:$0xff]  ;;  %v885_v51 = vmul.f32 %v18052_v44, %v17567_v30  ;;  %v888_v31 = vmul.f32 %v18052_v44, %v17573_v35  ;;  %v890_v35 = vmul.f32 %v18052_v44, %v17577_v37 }
 0x241   :  { %14613 = vmatpush3.bf16.msra.mxu0 %v14610_v13  ;;  %v18044_v13 = vmul.f32 %v12153_v33, %v17994_v32 }
 0x242   :  { %13606 = vmatmul.mubr.msk.f32.gmra.mrb[62].mxu1 %vm942_vm3, %v18013_v61 }
 0x243   :  { %23004 = vst [vmem:[#allocation134_spill] sm:$0xff] %v18044_v13  ;;  %v882_v13 = vmul.f32 %v18052_v44, %v17561_v25 }
 0x2a1   :  { %v13520_v7 = vpop.f32.mrb[4].mxu1 }
 0x2a2   :  { %v1195_v18 = vadd.f32 %v13520_v7, %v883_v62  ;;  %v1189_v33 = vpop.f32.mrb[5].mxu1  ;;  %v887_v62 = vmul.f32 %v18052_v44, %v17571_v34 }
 0x2a3   :  { %v1190_v16 = vadd.f32 %v1189_v33, %v882_v13 }
 0x2a4   :  { %v18064_v61 = vadd.f32 %v18059_v28, %v1195_v18 }
 0x2a5   :  { %v18069_v27 = vadd.f32 %v18059_v28, %v1190_v16  ;;  %v13523_v45 = vpop.f32.mrb[6].mxu1 }
 0x2a6   :  { %v11342_v32 = vmul.f32 -1.442695, %v18064_v61  ;;  %v1205_v29 = vadd.f32 %v13523_v45, %v885_v51  ;;  %v1199_v25 = vpop.f32.mrb[7].mxu1 }
 0x2a7   :  { %v11341_v7 = vmul.f32 -1.442695, %v18069_v27  ;;  %v1200_v13 = vadd.f32 %v1199_v25, %v884_v39  ;;  %v889_v39 = vmul.f32 %v18052_v44, %v17575_v36 }
 0x2a8   :  { %15150 = vpow2.f32 %v11342_v32  ;;  %v18076_v18 = vadd.f32 %v18059_v28, %v1205_v29 }
 0x2a9   :  { %15152 = vpow2.f32 %v11341_v7  ;;  %v18081_v16 = vadd.f32 %v18059_v28, %v1200_v13  ;;  %v13526_v33 = vpop.f32.mrb[8].mxu1 }
 0x2aa   :  { %v11344_v45 = vmul.f32 -1.442695, %v18076_v18  ;;  %v1215_v51 = vadd.f32 %v13526_v33, %v887_v62  ;;  %v1209_v30 = vpop.f32.mrb[9].mxu1 }
 0x2ab   :  { %v11343_v32 = vmul.f32 -1.442695, %v18081_v16  ;;  %v1210_v25 = vadd.f32 %v1209_v30, %v886_v26 }
 0x2ac   :  { %15154 = vpow2.f32 %v11344_v45  ;;  %v18088_v29 = vadd.f32 %v18059_v28, %v1215_v51  ;;  %v891_v51 = vmul.f32 %v18052_v44, %v17579_v46 }
 0x2ad   :  { %15156 = vpow2.f32 %v11343_v32  ;;  %v18093_v7 = vadd.f32 %v18059_v28, %v1210_v25  ;;  %v13529_v13 = vpop.f32.mrb[10].mxu1 }
 0x2ae   :  { %v11346_v62 = vmul.f32 -1.442695, %v18088_v29  ;;  %v1225_v33 = vadd.f32 %v13529_v13, %v889_v39  ;;  %v1219_v34 = vpop.f32.mrb[11].mxu1 }
 0x2af   :  { %v11345_v26 = vmul.f32 -1.442695, %v18093_v7  ;;  %v1220_v30 = vadd.f32 %v1219_v34, %v888_v31 }
 0x2b0   :  { %15158 = vpow2.f32 %v11346_v62  ;;  %v18100_v45 = vadd.f32 %v18059_v28, %v1225_v33 }
 0x2b1   :  { %15160 = vpow2.f32 %v11345_v26  ;;  %v18105_v32 = vadd.f32 %v18059_v28, %v1220_v30  ;;  %v13532_v25 = vpop.f32.mrb[12].mxu1  ;;  %v893_v30 = vmul.f32 %v18052_v44, %v17583_v54 }
 0x2b2   :  { %v15151_v39 = vpop.eup %15150  ;;  %v11348_v13 = vmul.f32 -1.442695, %v18100_v45  ;;  %v1235_v36 = vadd.f32 %v13532_v25, %v891_v51  ;;  %v1229_v31 = vpop.f32.mrb[13].mxu1  ;;  %v892_v51 = vmul.f32 %v18052_v44, %v17581_v47  ;;  %v895_v47 = vmul.f32 %v18052_v44, %v17587_v56 }
 0x2b3   :  { %v15153_v34 = vpop.eup %15152  ;;  %v1736_v62 = vadd.f32 1.0, %v15151_v39  ;;  %v11347_v33 = vmul.f32 -1.442695, %v18105_v32  ;;  %v1230_v8 = vadd.f32 %v1229_v31, %v890_v35 }
 0x2b4   :  { %v1735_v2 = vadd.f32 1.0, %v15153_v34  ;;  %15162 = vpow2.f32 %v11348_v13  ;;  %v18112_v26 = vadd.f32 %v18059_v28, %v1235_v36 }
 0x2b5   :  { %15164 = vrcp.f32 %v1736_v62  ;;  %v18117_v37 = vadd.f32 %v18059_v28, %v1230_v8  ;;  %v13535_v46 = vpop.f32.mrb[14].mxu1 }
 0x2b6   :  { %v15155_v25 = vpop.eup %15154  ;;  %15166 = vrcp.f32 %v1735_v2  ;;  %v11350_v35 = vmul.f32 -1.442695, %v18112_v26  ;;  %v1245_v39 = vadd.f32 %v13535_v46, %v893_v30  ;;  %v1239_v13 = vpop.f32.mrb[15].mxu1  ;;  %v894_v30 = vmul.f32 %v18052_v44, %v17585_v55 }
 0x2b7   :  { %v15157_v31 = vpop.eup %15156  ;;  %v1738_v36 = vadd.f32 1.0, %v15155_v25  ;;  %15168 = vpow2.f32 %v11347_v33  ;;  %v11349_v34 = vmul.f32 -1.442695, %v18117_v37  ;;  %v1240_v54 = vadd.f32 %v1239_v13, %v892_v51 }
 0x2b8   :  { %v1737_v62 = vadd.f32 1.0, %v15157_v31  ;;  %15170 = vpow2.f32 %v11350_v35  ;;  %v18124_v8 = vadd.f32 %v18059_v28, %v1245_v39  ;;  %v897_v55 = vmul.f32 %v18052_v44, %v17594_v59 }
 0x2b9   :  { %15172 = vrcp.f32 %v1738_v36  ;;  %v18129_v2 = vadd.f32 %v18059_v28, %v1240_v54  ;;  %v13538_v46 = vpop.f32.mrb[16].mxu1 }
 0x2ba   :  { %v15159_v33 = vpop.eup %15158  ;;  %15174 = vrcp.f32 %v1737_v62  ;;  %v11352_v51 = vmul.f32 -1.442695, %v18124_v8  ;;  %v1255_v25 = vadd.f32 %v13538_v46, %v895_v47  ;;  %v1249_v35 = vpop.f32.mrb[17].mxu1  ;;  %v896_v46 = vmul.f32 %v18052_v44, %v17589_v57 }
 0x2bb   :  { %v15161_v13 = vpop.eup %15160  ;;  %v1740_v39 = vadd.f32 1.0, %v15159_v33  ;;  %15176 = vpow2.f32 %v11349_v34  ;;  %v11351_v31 = vmul.f32 -1.442695, %v18129_v2  ;;  %v1250_v56 = vadd.f32 %v1249_v35, %v894_v30 }
 0x2bc   :  { %v1739_v36 = vadd.f32 1.0, %v15161_v13  ;;  %15178 = vpow2.f32 %v11352_v51  ;;  %v18136_v54 = vadd.f32 %v18059_v28, %v1255_v25  ;;  %v899_v57 = vmul.f32 %v18052_v44, %v17606_v0 }
 0x2bd   :  { %15180 = vrcp.f32 %v1740_v39  ;;  %v18141_v62 = vadd.f32 %v18059_v28, %v1250_v56  ;;  %v13541_v47 = vpop.f32.mrb[18].mxu1 }
 0x2be   :  { %v15163_v34 = vpop.eup %15162  ;;  %15182 = vrcp.f32 %v1739_v36  ;;  %v11354_v30 = vmul.f32 -1.442695, %v18136_v54  ;;  %v1265_v33 = vadd.f32 %v13541_v47, %v897_v55  ;;  %v1259_v51 = vpop.f32.mrb[19].mxu1 }
 0x2bf   :  { %v15165_v35 = vpop.eup %15164  ;;  %v1742_v25 = vadd.f32 1.0, %v15163_v34  ;;  %15184 = vpow2.f32 %v11351_v31  ;;  %v11353_v13 = vmul.f32 -1.442695, %v18141_v62  ;;  %v1260_v59 = vadd.f32 %v1259_v51, %v896_v46 }
 0x2c0   :  { %v15167_v39 = vpop.eup %15166  ;;  %15186 = vpow2.f32 %v11354_v30  ;;  %v18148_v56 = vadd.f32 %v18059_v28, %v1265_v33  ;;  %v1916_v36 = vmul.f32 %v15165_v35, %v18064_v61  ;;  %v898_v31 = vmul.f32 %v18052_v44, %v17596_v60 }
 0x2c1   :  { %v15169_v12 = vpop.eup %15168  ;;  %v18154_v55 = vadd.f32 %v18059_v28, %v1260_v59  ;;  %v13544_v47 = vpop.f32.mrb[20].mxu1  ;;  %v1915_v46 = vmul.f32 %v15167_v39, %v18069_v27  ;;  %15188 = vpow2.f32 %v11353_v13  ;;  %v901_v27 = vmul.f32 %v18052_v44, %v17621_v4 }
 0x2c2   :  { %v15171_v34 = vpop.eup %15170  ;;  %v1741_v30 = vadd.f32 1.0, %v15169_v12  ;;  %v11356_v33 = vmul.f32 -1.442695, %v18148_v56  ;;  %v1275_v51 = vadd.f32 %v13544_v47, %v899_v57  ;;  %v1269_v6 = vpop.f32.mrb[21].mxu1  ;;  %15190 = vrcp.f32 %v1742_v25 }
 0x2c3   :  { %v15173_v0 = vpop.eup %15172  ;;  %v1744_v3 = vadd.f32 1.0, %v15171_v34  ;;  %v11355_v61 = vmul.f32 -1.442695, %v18154_v55  ;;  %v1270_v59 = vadd.f32 %v1269_v6, %v898_v31  ;;  %13616 = vmatprep.mubr.msk.f32.mxu0 %vm388_vm2, %v1915_v46  ;;  %v900_v57 = vmul.f32 %v18052_v44, %v17608_v1 }
 0x2c4   :  { %v15175_v35 = vpop.eup %15174  ;;  %15192 = vrcp.f32 %v1741_v30  ;;  %v18163_v60 = vadd.f32 %v18059_v28, %v1275_v51  ;;  %13617 = vmatmul.mubr.msk.f32.vlgmr.msra.gmra.mrb[8].mxu0 %vm388_vm2, %v1916_v36  ;;  %v1918_v39 = vmul.f32 %v15173_v0, %v18076_v18  ;;  %v903_v0 = vmul.f32 %v18052_v44, %v17636_v9 }
 0x2c5   :  { %v15177_v12 = vpop.eup %15176  ;;  %15194 = vrcp.f32 %v1744_v3  ;;  %v18171_v25 = vadd.f32 %v18059_v28, %v1270_v59  ;;  %v13547_v6 = vpop.f32.mrb[22].mxu1  ;;  %v1917_v13 = vmul.f32 %v15175_v35, %v18081_v16  ;;  %v902_v18 = vmul.f32 %v18052_v44, %v17623_v5 }
 0x2c6   :  { %v15179_v47 = vpop.eup %15178  ;;  %v1743_v31 = vadd.f32 1.0, %v15177_v12  ;;  %15196 = vpow2.f32 %v11356_v33  ;;  %v11358_v36 = vmul.f32 -1.442695, %v18163_v60  ;;  %v1285_v46 = vadd.f32 %v13547_v6, %v901_v27  ;;  %v1279_v34 = vpop.f32.mrb[23].mxu1 }
 0x2c7   :  { %v15181_v30 = vpop.eup %15180  ;;  %v1746_v51 = vadd.f32 1.0, %v15179_v47  ;;  %15198 = vpow2.f32 %v11355_v61  ;;  %v11357_v3 = vmul.f32 -1.442695, %v18171_v25  ;;  %v1280_v1 = vadd.f32 %v1279_v34, %v900_v57  ;;  %13619 = vmatprep.mubr.msk.f32.mxu0 %vm388_vm2, %v1917_v13 }
 0x2c8   :  { %v15183_v59 = vpop.eup %15182  ;;  %15200 = vrcp.f32 %v1743_v31  ;;  %v18179_v16 = vadd.f32 %v18059_v28, %v1285_v46  ;;  %13620 = vmatmul.mubr.msk.f32.gmra.mrb[10].mxu0 %vm388_vm2, %v1918_v39  ;;  %v1920_v57 = vmul.f32 %v15181_v30, %v18088_v29  ;;  %v905_v29 = vmul.f32 %v18052_v44, %v17651_v14 }
 0x2c9   :  { %v15185_v33 = vpop.eup %15184  ;;  %15202 = vrcp.f32 %v1746_v51  ;;  %v18187_v61 = vadd.f32 %v18059_v28, %v1280_v1  ;;  %v13550_v35 = vpop.f32.mrb[24].mxu1  ;;  %v1919_v27 = vmul.f32 %v15183_v59, %v18093_v7  ;;  %v904_v59 = vmul.f32 %v18052_v44, %v17638_v10 }
 0x2ca   :  { %v15187_v12 = vpop.eup %15186  ;;  %v1745_v6 = vadd.f32 1.0, %v15185_v33  ;;  %15204 = vpow2.f32 %v11358_v36  ;;  %v11360_v13 = vmul.f32 -1.442695, %v18179_v16  ;;  %v1295_v39 = vadd.f32 %v13550_v35, %v903_v0  ;;  %v1289_v47 = vpop.f32.mrb[25].mxu1 }
 0x2cb   :  { %v1748_v31 = vadd.f32 1.0, %v15187_v12  ;;  %15206 = vpow2.f32 %v11357_v3  ;;  %v1290_v46 = vadd.f32 %v1289_v47, %v902_v18  ;;  %13622 = vmatprep.mubr.msk.f32.mxu0 %vm388_vm2, %v1919_v27  ;;  %v15189_v34 = vpop.eup %15188  ;;  %v11359_v1 = vmul.f32 -1.442695, %v18187_v61 }
 0x2cc   :  { %15208 = vrcp.f32 %v1745_v6  ;;  %v18195_v7 = vadd.f32 %v18059_v28, %v1295_v39  ;;  %13623 = vmatmul.mubr.msk.f32.gmra.mrb[12].mxu0 %vm388_vm2, %v1920_v57  ;;  %v15191_v36 = vpop.eup %15190  ;;  %v1747_v30 = vadd.f32 1.0, %v15189_v34  ;;  %v906_v27 = vmul.f32 %v18052_v44, %v17661_v17 }
 0x2cd   :  { %15210 = vrcp.f32 %v1748_v31  ;;  %v18201_v51 = vadd.f32 %v18059_v28, %v1290_v46  ;;  %v13553_v3 = vpop.f32.mrb[26].mxu1  ;;  %v907_v46 = vmul.f32 %v18052_v44, %v17666_v19 }
 0x2ce   :  { %v15193_v0 = vpop.eup %15192  ;;  %15212 = vpow2.f32 %v11360_v13  ;;  %v11362_v18 = vmul.f32 -1.442695, %v18195_v7  ;;  %v1305_v33 = vadd.f32 %v13553_v3, %v905_v29  ;;  %v1299_v35 = vpop.f32.mrb[27].mxu1  ;;  %v1922_v13 = vmul.f32 %v15191_v36, %v18100_v45 }
 0x2cf   :  { %v15195_v57 = vpop.eup %15194  ;;  %15214 = vrcp.f32 %v1747_v30  ;;  %v11361_v12 = vmul.f32 -1.442695, %v18201_v51  ;;  %v1300_v6 = vadd.f32 %v1299_v35, %v904_v59  ;;  %v1921_v39 = vmul.f32 %v15193_v0, %v18105_v32 }
 0x2d0   :  { %v15197_v47 = vpop.eup %15196  ;;  %15216 = vpow2.f32 %v11359_v1  ;;  %v18211_v31 = vadd.f32 %v18059_v28, %v1305_v33  ;;  %v908_v32 = vmul.f32 %v18052_v44, %v17679_v23 }
 0x2d1   :  { %v15199_v34 = vpop.eup %15198  ;;  %v1750_v29 = vadd.f32 1.0, %v15197_v47  ;;  %15218 = vpow2.f32 %v11362_v18  ;;  %v18217_v30 = vadd.f32 %v18059_v28, %v1300_v6  ;;  %13625 = vmatprep.mubr.msk.f32.mxu0 %vm388_vm2, %v1921_v39  ;;  %v13556_v3 = vpop.f32.mrb[28].mxu1 }
 0x2d2   :  { %v15201_v1 = vpop.eup %15200  ;;  %v1749_v59 = vadd.f32 1.0, %v15199_v34  ;;  %15220 = vpow2.f32 %v11361_v12  ;;  %v11364_v45 = vmul.f32 -1.442695, %v18211_v31  ;;  %13626 = vmatmul.mubr.msk.f32.gmra.mrb[14].mxu0 %vm388_vm2, %v1922_v13  ;;  %v1315_v36 = vadd.f32 %v13556_v3, %v907_v46  ;;  %v1309_v0 = vpop.f32.mrb[29].mxu1 }
 0x2d3   :  { %v15203_v33 = vpop.eup %15202  ;;  %15222 = vrcp.f32 %v1750_v29  ;;  %v11363_v18 = vmul.f32 -1.442695, %v18217_v30  ;;  %v1310_v35 = vadd.f32 %v1309_v0, %v906_v27  ;;  %v1923_v6 = vmul.f32 %v15201_v1, %v18117_v37 }
 0x2d4   :  { %v15205_v39 = vpop.eup %15204  ;;  %15224 = vrcp.f32 %v1749_v59  ;;  %v18227_v47 = vadd.f32 %v18059_v28, %v1315_v36  ;;  %v1924_v12 = vmul.f32 %v15195_v57, %v18112_v26  ;;  %v909_v34 = vmul.f32 %v18052_v44, %v17681_v24 }
 0x2d5   :  { %v15207_v13 = vpop.eup %15206  ;;  %v1752_v46 = vadd.f32 1.0, %v15205_v39  ;;  %15226 = vpow2.f32 %v11364_v45  ;;  %v18233_v29 = vadd.f32 %v18059_v28, %v1310_v35  ;;  %13628 = vmatprep.mubr.msk.f32.mxu0 %vm388_vm2, %v1923_v6  ;;  %v13559_v27 = vpop.f32.mrb[30].mxu1  ;;  %v910_v37 = vmul.f32 %v18052_v44, %v17702_v43 }
 0x2d6   :  { %v15209_v3 = vpop.eup %15208  ;;  %v1751_v1 = vadd.f32 1.0, %v15207_v13  ;;  %15228 = vpow2.f32 %v11363_v18  ;;  %v11366_v26 = vmul.f32 -1.442695, %v18227_v47  ;;  %13629 = vmatmul.mubr.msk.f32.gmra.mrb[16].mxu0 %vm388_vm2, %v1924_v12  ;;  %v1325_v57 = vadd.f32 %v13559_v27, %v909_v34  ;;  %v1319_v59 = vpop.f32.mrb[31].mxu1 }
 0x2d7   :  { %v15211_v36 = vpop.eup %15210  ;;  %15230 = vrcp.f32 %v1752_v46  ;;  %v11365_v45 = vmul.f32 -1.442695, %v18233_v29  ;;  %v1320_v0 = vadd.f32 %v1319_v59, %v908_v32  ;;  %v1925_v35 = vmul.f32 %v15209_v3, %v18129_v2 }
 0x2d8   :  { %v15213_v6 = vpop.eup %15212  ;;  %15232 = vrcp.f32 %v1751_v1  ;;  %v18243_v39 = vadd.f32 %v18059_v28, %v1325_v57  ;;  %v1926_v18 = vmul.f32 %v15203_v33, %v18124_v8  ;;  %v911_v13 = vmul.f32 %v18052_v44, %v17704_v48 }
 0x2d9   :  { %v15215_v12 = vpop.eup %15214  ;;  %v1754_v34 = vadd.f32 1.0, %v15213_v6  ;;  %15234 = vpow2.f32 %v11366_v26  ;;  %v18249_v46 = vadd.f32 %v18059_v28, %v1320_v0  ;;  %13631 = vmatprep.mubr.msk.f32.mxu0 %vm388_vm2, %v1925_v35  ;;  %v13562_v32 = vpop.f32.mrb[32].mxu1  ;;  %v913_v2 = vmul.f32 %v18052_v44, %v17722_v58 }
 0x2da   :  { %v15217_v27 = vpop.eup %15216  ;;  %15236 = vpow2.f32 %v11365_v45  ;;  %v11368_v3 = vmul.f32 -1.442695, %v18243_v39  ;;  %13632 = vmatmul.mubr.msk.f32.gmra.mrb[18].mxu0 %vm388_vm2, %v1926_v18  ;;  %v1335_v8 = vadd.f32 %v13562_v32, %v911_v13  ;;  %v1329_v33 = vpop.f32.mrb[33].mxu1  ;;  %v1927_v1 = vmul.f32 %v15215_v12, %v18141_v62 }
 0x2db   :  { %v15219_v26 = vpop.eup %15218  ;;  %15238 = vrcp.f32 %v1754_v34  ;;  %v1753_v57 = vadd.f32 1.0, %v15217_v27  ;;  %v1330_v59 = vadd.f32 %v1329_v33, %v910_v37  ;;  %v1928_v0 = vmul.f32 %v15211_v36, %v18136_v54 }
 0x2dc   :  { %v15221_v35 = vpop.eup %15220  ;;  %v1756_v6 = vadd.f32 1.0, %v15219_v26  ;;  %15240 = vpow2.f32 %v11368_v3  ;;  %v11367_v58 = vmul.f32 -1.442695, %v18249_v46  ;;  %v18260_v45 = vadd.f32 %v18059_v28, %v1335_v8  ;;  %13634 = vmatprep.mubr.msk.f32.mxu0 %vm388_vm2, %v1927_v1 }
 0x2dd   :  { %v15223_v18 = vpop.eup %15222  ;;  %15242 = vrcp.f32 %v1753_v57  ;;  %v1755_v13 = vadd.f32 1.0, %v15221_v35  ;;  %v18264_v62 = vadd.f32 %v18059_v28, %v1330_v59  ;;  %v13565_v12 = vpop.f32.mrb[34].mxu1  ;;  %v912_v54 = vmul.f32 %v18052_v44, %v17720_v53 }
 0x2de   :  { %v15225_v37 = vpop.eup %15224  ;;  %15244 = vrcp.f32 %v1756_v6  ;;  %v11370_v36 = vmul.f32 -1.442695, %v18260_v45  ;;  %13635 = vmatmul.mubr.msk.f32.gmra.mrb[20].mxu0 %vm388_vm2, %v1928_v0  ;;  %v1345_v34 = vadd.f32 %v13565_v12, %v913_v2  ;;  %v1339_v32 = vpop.f32.mrb[35].mxu1  ;;  %v915_v27 = vmul.f32 %v18052_v44, %v17745_v40 }
 0x2df   :  { %v15227_v3 = vpop.eup %15226  ;;  %15246 = vrcp.f32 %v1755_v13  ;;  %v1340_v8 = vadd.f32 %v1339_v32, %v912_v54  ;;  %v1929_v33 = vmul.f32 %v15225_v37, %v18154_v55  ;;  %v1930_v1 = vmul.f32 %v15223_v18, %v18148_v56 }
 0x2e0   :  { %v15229_v26 = vpop.eup %15228  ;;  %v1758_v57 = vadd.f32 1.0, %v15227_v3  ;;  %15248 = vpow2.f32 %v11367_v58  ;;  %v11369_v59 = vmul.f32 -1.442695, %v18264_v62  ;;  %v18276_v35 = vadd.f32 %v18059_v28, %v1345_v34 }
 0x2e1   :  { %v15231_v2 = vpop.eup %15230  ;;  %v1757_v0 = vadd.f32 1.0, %v15229_v26  ;;  %15250 = vpow2.f32 %v11370_v36  ;;  %v18279_v6 = vadd.f32 %v18059_v28, %v1340_v8  ;;  %13637 = vmatprep.mubr.msk.f32.mxu0 %vm388_vm2, %v1929_v33  ;;  %v13568_v13 = vpop.f32.mrb[36].mxu1  ;;  %v914_v56 = vmul.f32 %v18052_v44, %v17743_v22 }
 0x2e2   :  { %v15233_v55 = vpop.eup %15232  ;;  %15252 = vrcp.f32 %v1758_v57  ;;  %v11372_v58 = vmul.f32 -1.442695, %v18276_v35  ;;  %13638 = vmatmul.mubr.msk.f32.gmra.mrb[22].mxu0 %vm388_vm2, %v1930_v1  ;;  %v1355_v18 = vadd.f32 %v13568_v13, %v915_v27  ;;  %v1349_v12 = vpop.f32.mrb[37].mxu1  ;;  %v917_v54 = vmul.f32 %v18052_v44, %v17763_v50 }
 0x2e3   :  { %v15235_v37 = vpop.eup %15234  ;;  %15254 = vrcp.f32 %v1757_v0  ;;  %v1350_v36 = vadd.f32 %v1349_v12, %v914_v56  ;;  %v1931_v34 = vmul.f32 %v15233_v55, %v18171_v25  ;;  %v1932_v32 = vmul.f32 %v15231_v2, %v18163_v60 }
 0x2e4   :  { %v15237_v3 = vpop.eup %15236  ;;  %v1760_v8 = vadd.f32 1.0, %v15235_v37  ;;  %15256 = vpow2.f32 %v11369_v59  ;;  %v11371_v33 = vmul.f32 -1.442695, %v18279_v6  ;;  %v18292_v26 = vadd.f32 %v18059_v28, %v1355_v18 }
 0x2e5   :  { %v15239_v27 = vpop.eup %15238  ;;  %v1759_v1 = vadd.f32 1.0, %v15237_v3  ;;  %15258 = vpow2.f32 %v11372_v58  ;;  %v18295_v57 = vadd.f32 %v18059_v28, %v1350_v36  ;;  %13640 = vmatprep.mubr.msk.f32.mxu0 %vm388_vm2, %v1931_v34  ;;  %v13571_v0 = vpop.f32.mrb[38].mxu1  ;;  %v916_v60 = vmul.f32 %v18052_v44, %v17761_v63 }
 0x2e6   :  { %v15241_v25 = vpop.eup %15240  ;;  %15260 = vrcp.f32 %v1760_v8  ;;  %v11374_v59 = vmul.f32 -1.442695, %v18292_v26  ;;  %13641 = vmatmul.mubr.msk.f32.gmra.mrb[24].mxu0 %vm388_vm2, %v1932_v32  ;;  %v1365_v2 = vadd.f32 %v13571_v0, %v917_v54  ;;  %v1359_v13 = vpop.f32.mrb[39].mxu1  ;;  %v919_v56 = vmul.f32 %v18052_v44, %v17786_v41 }
 0x2e7   :  { %v15243_v55 = vpop.eup %15242  ;;  %15262 = vrcp.f32 %v1759_v1  ;;  %v1762_v58 = vadd.f32 1.0, %v15241_v25  ;;  %v11373_v18 = vmul.f32 -1.442695, %v18295_v57  ;;  %v1360_v12 = vadd.f32 %v1359_v13, %v916_v60 }
 0x2e8   :  { %v15245_v37 = vpop.eup %15244  ;;  %15264 = vpow2.f32 %v11371_v33  ;;  %v18306_v36 = vadd.f32 %v18059_v28, %v1365_v2  ;;  %v1933_v34 = vmul.f32 %v15243_v55, %v18187_v61  ;;  %v918_v54 = vmul.f32 %v18052_v44, %v17784_v49 }
 0x2e9   :  { %v15247_v32 = vpop.eup %15246  ;;  %15266 = vrcp.f32 %v1762_v58  ;;  %v18312_v3 = vadd.f32 %v18059_v28, %v1360_v12  ;;  %v1934_v8 = vmul.f32 %v15239_v27, %v18179_v16  ;;  %v13574_v1 = vpop.f32.mrb[40].mxu1  ;;  %v921_v0 = vmul.f32 %v18052_v44, %v17804_v38 }
 0x2ea   :  { %v15249_v33 = vpop.eup %15248  ;;  %15268 = vpow2.f32 %v11374_v59  ;;  %v11376_v60 = vmul.f32 -1.442695, %v18306_v36  ;;  %13643 = vmatprep.mubr.msk.f32.mxu0 %vm388_vm2, %v1933_v34  ;;  %v1375_v61 = vadd.f32 %v13574_v1, %v919_v56  ;;  %v1369_v25 = vpop.f32.mrb[41].mxu1  ;;  %v1935_v2 = vmul.f32 %v15247_v32, %v18201_v51 }
 0x2eb   :  { %v15251_v13 = vpop.eup %15250  ;;  %v1761_v55 = vadd.f32 1.0, %v15249_v33  ;;  %15270 = vpow2.f32 %v11373_v18  ;;  %v11375_v58 = vmul.f32 -1.442695, %v18312_v3  ;;  %13644 = vmatmul.mubr.msk.f32.gmra.mrb[26].mxu0 %vm388_vm2, %v1934_v8  ;;  %v1370_v16 = vadd.f32 %v1369_v25, %v918_v54 }
 0x2ec   :  { %v15253_v27 = vpop.eup %15252  ;;  %v1764_v12 = vadd.f32 1.0, %v15251_v13  ;;  %15272 = vpow2.f32 %v11376_v60  ;;  %v18323_v59 = vadd.f32 %v18059_v28, %v1375_v61  ;;  %13646 = vmatprep.mubr.msk.f32.mxu0 %vm388_vm2, %v1935_v2  ;;  %v920_v56 = vmul.f32 %v18052_v44, %v17802_v42 }
 0x2ed   :  { %v15255_v51 = vpop.eup %15254  ;;  %15274 = vrcp.f32 %v1761_v55  ;;  %v18329_v18 = vadd.f32 %v18059_v28, %v1370_v16  ;;  %v1936_v34 = vmul.f32 %v15245_v37, %v18195_v7  ;;  %v13577_v32 = vpop.f32.mrb[42].mxu1  ;;  %v923_v54 = vmul.f32 %v18052_v44, %v17827_v20 }
 0x2ee   :  { %v15257_v8 = vpop.eup %15256  ;;  %15276 = vrcp.f32 %v1764_v12  ;;  %v11378_v1 = vmul.f32 -1.442695, %v18323_v59  ;;  %v1385_v33 = vadd.f32 %v13577_v32, %v921_v0  ;;  %v1379_v60 = vpop.f32.mrb[43].mxu1  ;;  %v1937_v61 = vmul.f32 %v15255_v51, %v18217_v30 }
 0x2ef   :  { %v15259_v25 = vpop.eup %15258  ;;  %v1763_v2 = vadd.f32 1.0, %v15257_v8  ;;  %15278 = vpow2.f32 %v11375_v58  ;;  %v11377_v13 = vmul.f32 -1.442695, %v18329_v18  ;;  %13647 = vmatmul.mubr.msk.f32.gmra.mrb[28].mxu0 %vm388_vm2, %v1936_v34  ;;  %v1380_v7 = vadd.f32 %v1379_v60, %v920_v56 }
 0x2f0   :  { %v15261_v37 = vpop.eup %15260  ;;  %v1766_v55 = vadd.f32 1.0, %v15259_v25  ;;  %15280 = vpow2.f32 %v11378_v1  ;;  %v18339_v16 = vadd.f32 %v18059_v28, %v1385_v33  ;;  %13649 = vmatprep.mubr.msk.f32.mxu0 %vm388_vm2, %v1937_v61  ;;  %v922_v0 = vmul.f32 %v18052_v44, %v17825_v52 }
 0x2f1   :  { %v15263_v30 = vpop.eup %15262  ;;  %15282 = vrcp.f32 %v1763_v2  ;;  %v18345_v58 = vadd.f32 %v18059_v28, %v1380_v7  ;;  %v1938_v12 = vmul.f32 %v15253_v27, %v18211_v31  ;;  %v13580_v51 = vpop.f32.mrb[44].mxu1  ;;  %v925_v56 = vmul.f32 %v18052_v44, %v17845_v15 }
 0x2f2   :  { %v15265_v34 = vpop.eup %15264  ;;  %15284 = vrcp.f32 %v1766_v55  ;;  %v11380_v32 = vmul.f32 -1.442695, %v18339_v16  ;;  %v1395_v8 = vadd.f32 %v13580_v51, %v923_v54  ;;  %v1389_v1 = vpop.f32.mrb[45].mxu1  ;;  %v1939_v33 = vmul.f32 %v15263_v30, %v18233_v29 }
 0x2f3   :  { %v15267_v60 = vpop.eup %15266  ;;  %v1765_v61 = vadd.f32 1.0, %v15265_v34  ;;  %15286 = vpow2.f32 %v11377_v13  ;;  %v11379_v25 = vmul.f32 -1.442695, %v18345_v58  ;;  %13650 = vmatmul.mubr.msk.f32.gmra.mrb[30].mxu0 %vm388_vm2, %v1938_v12  ;;  %v1390_v31 = vadd.f32 %v1389_v1, %v922_v0 }
 0x2f4   :  { %v15269_v27 = vpop.eup %15268  ;;  %15288 = vpow2.f32 %v11380_v32  ;;  %v18355_v2 = vadd.f32 %v18059_v28, %v1395_v8  ;;  %13652 = vmatprep.mubr.msk.f32.mxu0 %vm388_vm2, %v1939_v33  ;;  %v924_v54 = vmul.f32 %v18052_v44, %v17843_v21  ;;  %v927_v29 = vmul.f32 %v18052_v44, %v17868_v11 }
 0x2f5   :  { %v15271_v7 = vpop.eup %15270  ;;  %15290 = vrcp.f32 %v1765_v61  ;;  %v1768_v13 = vadd.f32 1.0, %v15269_v27  ;;  %v18363_v55 = vadd.f32 %v18059_v28, %v1390_v31  ;;  %v1940_v0 = vmul.f32 %v15261_v37, %v18227_v47  ;;  %v13583_v30 = vpop.f32.mrb[46].mxu1 }
 0x2f6   :  { %v15273_v12 = vpop.eup %15272  ;;  %v1767_v51 = vadd.f32 1.0, %v15271_v7  ;;  %15292 = vpow2.f32 %v11379_v25  ;;  %v11382_v34 = vmul.f32 -1.442695, %v18355_v2  ;;  %v1405_v32 = vadd.f32 %v13583_v30, %v925_v56  ;;  %v1399_v8 = vpop.f32.mrb[47].mxu1  ;;  %v23006_v25 = vld [vmem:[#allocation94_spill] sm:$0xff] }
 0x2f7   :  { %v15275_v1 = vpop.eup %15274  ;;  %15294 = vrcp.f32 %v1768_v13  ;;  %v1770_v33 = vadd.f32 1.0, %v15273_v12  ;;  %v11381_v11 = vmul.f32 -1.442695, %v18363_v55  ;;  %13653 = vmatmul.mubr.msk.f32.gmra.mrb[32].mxu0 %vm388_vm2, %v1940_v0  ;;  %v1400_v61 = vadd.f32 %v1399_v8, %v924_v54  ;;  %v23007_v0 = vld [vmem:[#allocation99_spill] sm:$0xff] }
 0x2f8   :  { %v15277_v31 = vpop.eup %15276  ;;  %15296 = vrcp.f32 %v1767_v51  ;;  %v18370_v47 = vadd.f32 %v18059_v28, %v1405_v32  ;;  %v1941_v37 = vmul.f32 %v15275_v1, %v18249_v46  ;;  %v926_v27 = vmul.f32 %v18052_v44, %v23006_v25 }
 0x2f9   :  { %v15279_v56 = vpop.eup %15278  ;;  %15298 = vrcp.f32 %v1770_v33  ;;  %v18376_v7 = vadd.f32 %v18059_v28, %v1400_v61  ;;  %v1942_v13 = vmul.f32 %v15267_v60, %v18243_v39  ;;  %v13586_v30 = vpop.f32.mrb[48].mxu1  ;;  %v929_v54 = vmul.f32 %v18052_v44, %v23007_v0 }
 0x2fa   :  { %v15281_v12 = vpop.eup %15280  ;;  %v1769_v51 = vadd.f32 1.0, %v15279_v56  ;;  %15300 = vpow2.f32 %v11382_v34  ;;  %v11384_v32 = vmul.f32 -1.442695, %v18370_v47  ;;  %13655 = vmatprep.mubr.msk.f32.mxu0 %vm388_vm2, %v1941_v37  ;;  %v1415_v46 = vadd.f32 %v13586_v30, %v927_v29  ;;  %v1409_v8 = vpop.f32.mrb[49].mxu1  ;;  %v23008_v56 = vld [vmem:[#allocation98_spill] sm:$0xff] }
 0x2fb   :  { %v15283_v1 = vpop.eup %15282  ;;  %v1772_v33 = vadd.f32 1.0, %v15281_v12  ;;  %15302 = vpow2.f32 %v11381_v11  ;;  %v11383_v61 = vmul.f32 -1.442695, %v18376_v7  ;;  %13656 = vmatmul.mubr.msk.f32.gmra.mrb[34].mxu0 %vm388_vm2, %v1942_v13  ;;  %v1410_v39 = vadd.f32 %v1409_v8, %v926_v27  ;;  %v23009_v13 = vld [vmem:[#allocation105_spill] sm:$0xff] }
 0x2fc   :  { %v15285_v60 = vpop.eup %15284  ;;  %15304 = vrcp.f32 %v1769_v51  ;;  %v18386_v0 = vadd.f32 %v18059_v28, %v1415_v46  ;;  %v1943_v34 = vmul.f32 %v15283_v1, %v18264_v62  ;;  %v928_v37 = vmul.f32 %v18052_v44, %v23008_v56 }
 0x2fd   :  { %v15287_v29 = vpop.eup %15286  ;;  %15306 = vrcp.f32 %v1772_v33  ;;  %v18392_v30 = vadd.f32 %v18059_v28, %v1410_v39  ;;  %v1944_v11 = vmul.f32 %v15277_v31, %v18260_v45  ;;  %v13589_v12 = vpop.f32.mrb[50].mxu1  ;;  %v931_v27 = vmul.f32 %v18052_v44, %v23009_v13  ;;  %v23010_v45 = vld [vmem:[#allocation104_spill] sm:$0xff] }
 0x2fe   :  { %v15289_v51 = vpop.eup %15288  ;;  %v1771_v8 = vadd.f32 1.0, %v15287_v29  ;;  %15308 = vpow2.f32 %v11384_v32  ;;  %v11386_v46 = vmul.f32 -1.442695, %v18386_v0  ;;  %13658 = vmatprep.mubr.msk.f32.mxu0 %vm388_vm2, %v1943_v34  ;;  %v1425_v62 = vadd.f32 %v13589_v12, %v929_v54  ;;  %v1419_v1 = vpop.f32.mrb[51].mxu1 }
 0x2ff   :  { %v15291_v56 = vpop.eup %15290  ;;  %v1774_v33 = vadd.f32 1.0, %v15289_v51  ;;  %15310 = vpow2.f32 %v11383_v61  ;;  %13659 = vmatmul.mubr.msk.f32.gmra.mrb[36].mxu0 %vm388_vm2, %v1944_v11  ;;  %v1420_v39 = vadd.f32 %v1419_v1, %v928_v37  ;;  %v930_v31 = vmul.f32 %v18052_v44, %v23010_v45  ;;  %v23011_v45 = vld [vmem:[#allocation109_spill] sm:$0xff] }
 0x300   :  { %v15293_v25 = vpop.eup %15292  ;;  %15312 = vrcp.f32 %v1771_v8  ;;  %v11385_v29 = vmul.f32 -1.442695, %v18392_v30  ;;  %v18404_v32 = vadd.f32 %v18059_v28, %v1425_v62  ;;  %v1945_v34 = vmul.f32 %v15291_v56, %v18279_v6 }
 0x301   :  { %v15295_v54 = vpop.eup %15294  ;;  %15314 = vrcp.f32 %v1774_v33  ;;  %v1773_v12 = vadd.f32 1.0, %v15293_v25  ;;  %v18408_v61 = vadd.f32 %v18059_v28, %v1420_v39  ;;  %v1946_v37 = vmul.f32 %v15285_v60, %v18276_v35  ;;  %v13592_v11 = vpop.f32.mrb[52].mxu1  ;;  %v23012_v33 = vld [vmem:[#allocation108_spill] sm:$0xff] }
 0x302   :  { %v15297_v51 = vpop.eup %15296  ;;  %15316 = vpow2.f32 %v11386_v46  ;;  %v11388_v8 = vmul.f32 -1.442695, %v18404_v32  ;;  %13661 = vmatprep.mubr.msk.f32.mxu0 %vm388_vm2, %v1945_v34  ;;  %v1435_v1 = vadd.f32 %v13592_v11, %v931_v27  ;;  %v1429_v62 = vpop.f32.mrb[53].mxu1  ;;  %v933_v6 = vmul.f32 %v18052_v44, %v23011_v45  ;;  %v18421_v46 = vld [vmem:[%s22600_s9] ss:$0 sm:$0xff] }
 0x303   :  { %v15299_v56 = vpop.eup %15298  ;;  %15318 = vrcp.f32 %v1773_v12  ;;  %v11387_v25 = vmul.f32 -1.442695, %v18408_v61  ;;  %13662 = vmatmul.mubr.msk.f32.gmra.mrb[38].mxu0 %vm388_vm2, %v1946_v37  ;;  %v1430_v28 = vadd.f32 %v1429_v62, %v930_v31  ;;  %v1947_v35 = vmul.f32 %v15297_v51, %v18295_v57  ;;  %v18429_v44 = vld [vmem:[%s22599_s8] ss:$0 sm:$0xff] }
 0x304   :  { %v15301_v60 = vpop.eup %15300  ;;  %15320 = vpow2.f32 %v11385_v29  ;;  %v18424_v27 = vadd.f32 %v18421_v46, %v1435_v1  ;;  %v932_v39 = vmul.f32 %v18429_v44, %v23012_v33  ;;  %v23013_v31 = vld [vmem:[#allocation115_spill] sm:$0xff]  ;;  %v1948_v37 = vmul.f32 %v15295_v54, %v18292_v26  ;;  %v23014_v54 = vld [vmem:[#allocation114_spill] sm:$0xff] }
 0x305   :  { %v935_v57 = vmul.f32 %v18429_v44, %v23013_v31  ;;  %v15303_v29 = vpop.eup %15302  ;;  %v1776_v34 = vadd.f32 1.0, %v15301_v60  ;;  %15322 = vpow2.f32 %v11388_v8  ;;  %v18436_v12 = vadd.f32 %v18421_v46, %v1430_v28  ;;  %13664 = vmatprep.mubr.msk.f32.mxu0 %vm388_vm2, %v1947_v35  ;;  %v13595_v11 = vpop.f32.mrb[54].mxu1 }
 0x306   :  { %v15305_v51 = vpop.eup %15304  ;;  %v1775_v1 = vadd.f32 1.0, %v15303_v29  ;;  %15324 = vpow2.f32 %v11387_v25  ;;  %v11390_v62 = vmul.f32 -1.442695, %v18424_v27  ;;  %v1445_v33 = vadd.f32 %v13595_v11, %v933_v6  ;;  %v1439_v45 = vpop.f32.mrb[55].mxu1  ;;  %v23015_v29 = vld [vmem:[#allocation119_spill] sm:$0xff] }
 0x307   :  { %v15307_v13 = vpop.eup %15306  ;;  %15326 = vrcp.f32 %v1776_v34  ;;  %v11389_v60 = vmul.f32 -1.442695, %v18436_v12  ;;  %13665 = vmatmul.mubr.msk.f32.gmra.mrb[40].mxu0 %vm388_vm2, %v1948_v37  ;;  %v1440_v8 = vadd.f32 %v1439_v45, %v932_v39  ;;  %v1949_v28 = vmul.f32 %v15305_v51, %v18312_v3 }
 0x308   :  { %v15309_v35 = vpop.eup %15308  ;;  %15328 = vrcp.f32 %v1775_v1  ;;  %v18445_v26 = vadd.f32 %v18421_v46, %v1445_v33  ;;  %v934_v25 = vmul.f32 %v18429_v44, %v23014_v54  ;;  %v937_v6 = vmul.f32 %v18429_v44, %v23015_v29  ;;  %v23017_v29 = vld [vmem:[#allocation125_spill] sm:$0xff] }
 0x309   :  { %v15311_v11 = vpop.eup %15310  ;;  %v1778_v34 = vadd.f32 1.0, %v15309_v35  ;;  %15330 = vpow2.f32 %v11390_v62  ;;  %v18452_v31 = vadd.f32 %v18421_v46, %v1440_v8  ;;  %13667 = vmatprep.mubr.msk.f32.mxu0 %vm388_vm2, %v1949_v28  ;;  %v1950_v3 = vmul.f32 %v15299_v56, %v18306_v36  ;;  %v13598_v45 = vpop.f32.mrb[56].mxu1  ;;  %v23016_v56 = vld [vmem:[#allocation118_spill] sm:$0xff] }
 0x30a   :  { %v15313_v39 = vpop.eup %15312  ;;  %v1777_v33 = vadd.f32 1.0, %v15311_v11  ;;  %15332 = vpow2.f32 %v11389_v60  ;;  %v11392_v37 = vmul.f32 -1.442695, %v18445_v26  ;;  %v1455_v51 = vadd.f32 %v13598_v45, %v935_v57  ;;  %v1449_v1 = vpop.f32.mrb[57].mxu1 }
 0x30b   :  { %v15315_v54 = vpop.eup %15314  ;;  %15334 = vrcp.f32 %v1778_v34  ;;  %v11391_v35 = vmul.f32 -1.442695, %v18452_v31  ;;  %13668 = vmatmul.mubr.msk.f32.gmra.mrb[42].mxu0 %vm388_vm2, %v1950_v3  ;;  %v1450_v62 = vadd.f32 %v1449_v1, %v934_v25  ;;  %v1951_v8 = vmul.f32 %v15313_v39, %v18329_v18 }
 0x30c   :  { %v15317_v28 = vpop.eup %15316  ;;  %15336 = vrcp.f32 %v1777_v33  ;;  %v18461_v36 = vadd.f32 %v18421_v46, %v1455_v51  ;;  %v936_v60 = vmul.f32 %v18429_v44, %v23016_v56  ;;  %v939_v57 = vmul.f32 %v18429_v44, %v23017_v29  ;;  %v18474_v56 = vpop.permute.xlu1 %873 }
 0x30d   :  { %v15319_v11 = vpop.eup %15318  ;;  %v1780_v34 = vadd.f32 1.0, %v15317_v28  ;;  %15338 = vpow2.f32 %v11392_v37  ;;  %v18468_v45 = vadd.f32 %v18421_v46, %v1450_v62  ;;  %13670 = vmatprep.mubr.msk.f32.mxu0 %vm388_vm2, %v1951_v8  ;;  %v1952_v18 = vmul.f32 %v15307_v13, %v18323_v59  ;;  %v13601_v25 = vpop.f32.mrb[58].mxu1  ;;  %23018 = vst [vmem:[#allocation119_spill] sm:$0xff] %v18474_v56  ;;  %v23019_v8 = vld [vmem:[#allocation124_spill] sm:$0xff] }
 0x30e   :  { %v15321_v3 = vpop.eup %15320  ;;  %15340 = vpow2.f32 %v11391_v35  ;;  %v11394_v39 = vmul.f32 -1.442695, %v18461_v36  ;;  %v1465_v33 = vadd.f32 %v13601_v25, %v937_v6  ;;  %v1459_v51 = vpop.f32.mrb[59].mxu1  ;;  %v1953_v1 = vmul.f32 %v15319_v11, %v18345_v58 }
 0x30f   :  { %v15323_v29 = vpop.eup %15322  ;;  %15342 = vrcp.f32 %v1780_v34  ;;  %v1779_v37 = vadd.f32 1.0, %v15321_v3  ;;  %13671 = vmatmul.mubr.msk.f32.gmra.mrb[44].mxu0 %vm388_vm2, %v1952_v18  ;;  %v1460_v62 = vadd.f32 %v1459_v51, %v936_v60  ;;  %v938_v59 = vmul.f32 %v18429_v44, %v23019_v8  ;;  %v18479_v28 = vpop.permute.xlu0 %868 }
 0x310   :  { %v15325_v13 = vpop.eup %15324  ;;  %23020 = vst [vmem:[#allocation125_spill] sm:$0xff] %v18479_v28  ;;  %v1782_v35 = vadd.f32 1.0, %v15323_v29  ;;  %15344 = vpow2.f32 %v11394_v39  ;;  %v11393_v6 = vmul.f32 -1.442695, %v18468_v45  ;;  %v18483_v58 = vadd.f32 %v18421_v46, %v1465_v33  ;;  %13673 = vmatprep.mubr.msk.f32.mxu0 %vm388_vm2, %v1953_v1 }
 0x311   :  { %v15327_v11 = vpop.eup %15326  ;;  %15346 = vrcp.f32 %v1779_v37  ;;  %v1781_v34 = vadd.f32 1.0, %v15325_v13  ;;  %v18487_v60 = vadd.f32 %v18421_v46, %v1460_v62  ;;  %v1954_v18 = vmul.f32 %v15315_v54, %v18339_v16  ;;  %v13604_v25 = vpop.f32.mrb[60].mxu1 }
 0x312   :  { %v15329_v3 = vpop.eup %15328  ;;  %15348 = vrcp.f32 %v1782_v35  ;;  %v11396_v39 = vmul.f32 -1.442695, %v18483_v58  ;;  %v1475_v51 = vadd.f32 %v13604_v25, %v939_v57  ;;  %v1469_v29 = vpop.f32.mrb[61].mxu1  ;;  %v941_v33 = vmul.f32 %v18429_v44, %v18474_v56 }
 0x313   :  { %v15331_v8 = vpop.eup %15330  ;;  %15350 = vrcp.f32 %v1781_v34  ;;  %13674 = vmatmul.mubr.msk.f32.gmra.mrb[46].mxu0 %vm388_vm2, %v1954_v18  ;;  %v1470_v1 = vadd.f32 %v1469_v29, %v938_v59  ;;  %v1955_v37 = vmul.f32 %v15329_v3, %v18363_v55  ;;  %v940_v16 = vmul.f32 %v18429_v44, %v18479_v28 }
 0x314   :  { %v15333_v54 = vpop.eup %15332  ;;  %v1784_v62 = vadd.f32 1.0, %v15331_v8  ;;  %15352 = vpow2.f32 %v11393_v6  ;;  %v11395_v13 = vmul.f32 -1.442695, %v18487_v60  ;;  %v18499_v57 = vadd.f32 %v18421_v46, %v1475_v51 }
 0x315   :  { %v15335_v35 = vpop.eup %15334  ;;  %v1783_v25 = vadd.f32 1.0, %v15333_v54  ;;  %15354 = vpow2.f32 %v11396_v39  ;;  %v18502_v34 = vadd.f32 %v18421_v46, %v1470_v1  ;;  %13676 = vmatprep.mubr.msk.f32.mxu0 %vm388_vm2, %v1955_v37  ;;  %v1956_v55 = vmul.f32 %v15327_v11, %v18355_v2  ;;  %v13607_v59 = vpop.f32.mrb[62].mxu1 }
 0x316   :  { %v15337_v44 = vpop.eup %15336  ;;  %15356 = vrcp.f32 %v1784_v62  ;;  %v11398_v6 = vmul.f32 -1.442695, %v18499_v57  ;;  %v1485_v18 = vadd.f32 %v13607_v59, %v941_v33  ;;  %v1479_v3 = vpop.f32.mrb[63].mxu1 }
 0x317   :  { %v15339_v29 = vpop.eup %15338  ;;  %15358 = vrcp.f32 %v1783_v25  ;;  %13677 = vmatmul.mubr.msk.f32.gmra.mrb[48].mxu0 %vm388_vm2, %v1956_v55  ;;  %v1480_v51 = vadd.f32 %v1479_v3, %v940_v16  ;;  %v1957_v39 = vmul.f32 %v15337_v44, %v18376_v7  ;;  %v11397_v37 = vmul.f32 -1.442695, %v18502_v34 }
 0x318   :  { %v15341_v8 = vpop.eup %15340  ;;  %v1786_v1 = vadd.f32 1.0, %v15339_v29  ;;  %15360 = vpow2.f32 %v11395_v13  ;;  %v18511_v2 = vadd.f32 %v18421_v46, %v1485_v18  ;;  %v1958_v16 = vmul.f32 %v15335_v35, %v18370_v47 }
 0x319   :  { %v15343_v11 = vpop.eup %15342  ;;  %v1785_v54 = vadd.f32 1.0, %v15341_v8  ;;  %15362 = vpow2.f32 %v11398_v6  ;;  %v18514_v33 = vadd.f32 %v18421_v46, %v1480_v51  ;;  %13679 = vmatprep.mubr.msk.f32.mxu0 %vm388_vm2, %v1957_v39 }
 0x31a   :  { %v15345_v62 = vpop.eup %15344  ;;  %15364 = vrcp.f32 %v1786_v1  ;;  %v11400_v7 = vmul.f32 -1.442695, %v18511_v2  ;;  %v1960_v6 = vmul.f32 %v15343_v11, %v18386_v0 }
 0x31b   :  { %v15347_v13 = vpop.eup %15346  ;;  %15366 = vrcp.f32 %v1785_v54  ;;  %v11399_v25 = vmul.f32 -1.442695, %v18514_v33  ;;  %13680 = vmatmul.mubr.msk.f32.gmra.mrb[50].mxu0 %vm388_vm2, %v1958_v16  ;;  %v1788_v59 = vadd.f32 1.0, %v15345_v62 }
 0x31c   :  { %v15349_v55 = vpop.eup %15348  ;;  %15368 = vpow2.f32 %v11397_v37  ;;  %v1959_v46 = vmul.f32 %v15347_v13, %v18392_v30 }
 0x31d   :  { %v15351_v44 = vpop.eup %15350  ;;  %15370 = vpow2.f32 %v11400_v7  ;;  %v1962_v0 = vmul.f32 %v15349_v55, %v18404_v32 }
 0x31e   :  { %v15353_v18 = vpop.eup %15352  ;;  %13682 = vmatprep.mubr.msk.f32.mxu0 %vm388_vm2, %v1959_v46  ;;  %v1961_v47 = vmul.f32 %v15351_v44, %v18408_v61  ;;  %15372 = vpow2.f32 %v11399_v25 }
 0x31f   :  { %v15355_v35 = vpop.eup %15354  ;;  %v1787_v3 = vadd.f32 1.0, %v15353_v18  ;;  %13683 = vmatmul.mubr.msk.f32.gmra.mrb[52].mxu0 %vm388_vm2, %v1960_v6  ;;  %15374 = vrcp.f32 %v1788_v59 }
 0x320   :  { %v15357_v29 = vpop.eup %15356  ;;  %v1790_v51 = vadd.f32 1.0, %v15355_v35  ;;  %13685 = vmatprep.mubr.msk.f32.mxu0 %vm388_vm2, %v1961_v47 }
 0x321   :  { %v15359_v30 = vpop.eup %15358  ;;  %15376 = vrcp.f32 %v1787_v3  ;;  %v1964_v16 = vmul.f32 %v15357_v29, %v18424_v27 }
 0x322   :  { %v15361_v39 = vpop.eup %15360  ;;  %v1963_v8 = vmul.f32 %v15359_v30, %v18436_v12  ;;  %15378 = vrcp.f32 %v1790_v51 }
 0x323   :  { %v15363_v1 = vpop.eup %15362  ;;  %v1789_v37 = vadd.f32 1.0, %v15361_v39  ;;  %13686 = vmatmul.mubr.msk.f32.gmra.mrb[54].mxu0 %vm388_vm2, %v1962_v0 }
 0x324   :  { %v15365_v61 = vpop.eup %15364  ;;  %v1792_v11 = vadd.f32 1.0, %v15363_v1  ;;  %13688 = vmatprep.mubr.msk.f32.mxu0 %vm388_vm2, %v1963_v8 }
 0x325   :  { %v15367_v54 = vpop.eup %15366  ;;  %15380 = vrcp.f32 %v1789_v37  ;;  %v1966_v25 = vmul.f32 %v15365_v61, %v18445_v26 }
 0x326   :  { %v15369_v62 = vpop.eup %15368  ;;  %v1965_v7 = vmul.f32 %v15367_v54, %v18452_v31  ;;  %15382 = vrcp.f32 %v1792_v11 }
 0x327   :  { %v1791_v32 = vadd.f32 1.0, %v15369_v62  ;;  %13689 = vmatmul.mubr.msk.f32.gmra.mrb[56].mxu0 %vm388_vm2, %v1964_v16  ;;  %v15371_v12 = vpop.eup %15370 }
 0x328   :  { %13691 = vmatprep.mubr.msk.f32.mxu0 %vm388_vm2, %v1965_v7  ;;  %v15373_v13 = vpop.eup %15372  ;;  %v1794_v55 = vadd.f32 1.0, %v15371_v12 }
 0x329   :  { %15384 = vrcp.f32 %v1791_v32  ;;  %v15375_v59 = vpop.eup %15374  ;;  %v1793_v46 = vadd.f32 1.0, %v15373_v13 }
 0x32a   :  { %15386 = vrcp.f32 %v1794_v55  ;;  %v1968_v31 = vmul.f32 %v15375_v59, %v18461_v36 }
 0x32b   :  { %v15377_v44 = vpop.eup %15376  ;;  %13692 = vmatmul.mubr.msk.f32.gmra.mrb[58].mxu0 %vm388_vm2, %v1966_v25  ;;  %15388 = vrcp.f32 %v1793_v46 }
 0x32c   :  { %v1967_v27 = vmul.f32 %v15377_v44, %v18468_v45  ;;  %v15379_v6 = vpop.eup %15378 }
 0x32d   :  { %v1970_v47 = vmul.f32 %v15379_v6, %v18483_v58 }
 0x32e   :  { %13694 = vmatprep.mubr.msk.f32.mxu0 %vm388_vm2, %v1967_v27 }
 0x32f   :  { %v15381_v18 = vpop.eup %15380  ;;  %13695 = vmatmul.mubr.msk.f32.gmra.mrb[60].mxu0 %vm388_vm2, %v1968_v31 }
 0x330   :  { %v1969_v26 = vmul.f32 %v15381_v18, %v18487_v60  ;;  %v15383_v35 = vpop.eup %15382  ;;  %v22795_v60 = vmov 0.0|0.0  }
 0x331   :  { %v1972_v36 = vmul.f32 %v15383_v35, %v18499_v57  ;;  %14646 = vmatprep.subr.bf16.mxu1 %v22795_v60  ;;  %v18557_v57 = vld [vmem:[%s22602_s11] ss:$0 sm:$0xff] }
 0x332   :  { %13697 = vmatprep.mubr.msk.f32.mxu0 %vm388_vm2, %v1969_v26 }
 0x333   :  { %v15385_v3 = vpop.eup %15384  ;;  %13698 = vmatmul.mubr.msk.f32.gmra.mrb[62].mxu0 %vm388_vm2, %v1970_v47 }
 0x334   :  { %v1971_v45 = vmul.f32 %v15385_v3, %v18502_v34  ;;  %v15387_v29 = vpop.eup %15386 }
 0x335   :  { %v15389_v51 = vpop.eup %15388  ;;  %v1974_v58 = vmul.f32 %v15387_v29, %v18511_v2 }
 0x336   :  { %13700 = vmatprep.mubr.msk.f32.mxu0 %vm388_vm2, %v1971_v45  ;;  %v1973_v30 = vmul.f32 %v15389_v51, %v18514_v33 }
 0x337   :  { %13701 = vmatmul.mubr.msk.f32.gmra.mrb[64].mxu0 %vm388_vm2, %v1972_v36 }
 0x338   :  { %13703 = vmatprep.mubr.msk.f32.mxu0 %vm388_vm2, %v1973_v30 }
 0x33b   :  { %13704 = vmatmul.mubr.msk.f32.gmra.mrb[66].mxu0 %vm388_vm2, %v1974_v58 }
 0x397   :  { %v13618_v34 = vpop.f32.mrb[8].mxu0 }
 0x398   :  { %v18560_v0 = vadd.f32 %v13618_v34, %v18557_v57  ;;  %v2232_v33 = vpop.f32.mrb[9].mxu0 }
 0x399   :  { %v18563_v39 = vadd.f32 %v18557_v57, %v2232_v33 }
 0x39a   :  { %v11463_v2 = vmul.f32 -1.442695, %v18560_v0 }
 0x39b   :  { %v11462_v8 = vmul.f32 -1.442695, %v18563_v39  ;;  %v13621_v1 = vpop.f32.mrb[10].mxu0 }
 0x39c   :  { %15390 = vpow2.f32 %v11463_v2  ;;  %v18568_v37 = vadd.f32 %v13621_v1, %v18557_v57  ;;  %v2242_v61 = vpop.f32.mrb[11].mxu0 }
 0x39d   :  { %15392 = vpow2.f32 %v11462_v8  ;;  %v18571_v11 = vadd.f32 %v18557_v57, %v2242_v61 }
 0x39e   :  { %v11465_v54 = vmul.f32 -1.442695, %v18568_v37 }
 0x39f   :  { %v11464_v16 = vmul.f32 -1.442695, %v18571_v11  ;;  %v13624_v62 = vpop.f32.mrb[12].mxu0 }
 0x3a0   :  { %15394 = vpow2.f32 %v11465_v54  ;;  %v18576_v7 = vadd.f32 %v13624_v62, %v18557_v57  ;;  %v2252_v32 = vpop.f32.mrb[13].mxu0 }
 0x3a1   :  { %15396 = vpow2.f32 %v11464_v16  ;;  %v18579_v12 = vadd.f32 %v18557_v57, %v2252_v32 }
 0x3a2   :  { %v11467_v13 = vmul.f32 -1.442695, %v18576_v7 }
 0x3a3   :  { %v11466_v25 = vmul.f32 -1.442695, %v18579_v12 }
 0x3a4   :  { %15398 = vpow2.f32 %v11467_v13 }
 0x3a5   :  { %15400 = vpow2.f32 %v11466_v25  ;;  %v13627_v55 = vpop.f32.mrb[14].mxu0  ;;  %v18609_v25 = vld [vmem:[%s23021_s22] sm:$0xff] }
 0x3a6   :  { %v15391_v59 = vpop.eup %15390  ;;  %v18584_v46 = vadd.f32 %v13627_v55, %v18557_v57  ;;  %v2262_v44 = vpop.f32.mrb[15].mxu0 }
 0x3a7   :  { %v15393_v27 = vpop.eup %15392  ;;  %v2712_v31 = vadd.f32 1.0, %v15391_v59  ;;  %v18587_v6 = vadd.f32 %v18557_v57, %v2262_v44  ;;  %v18613_v44 = vunpack.c.h.bf16 %v18609_v25 }
 0x3a8   :  { %v2711_v18 = vadd.f32 1.0, %v15393_v27  ;;  %v11469_v26 = vmul.f32 -1.442695, %v18584_v46 }
 0x3a9   :  { %15402 = vrcp.f32 %v2712_v31  ;;  %v11468_v47 = vmul.f32 -1.442695, %v18587_v6  ;;  %v13630_v35 = vpop.f32.mrb[16].mxu0  ;;  %23022 = vst [vmem:[#allocation124_spill] sm:$0xff] %v18613_v44  ;;  %3028 = vmatprep.mubr.f32.mxu0 %v18613_v44 }
 0x3aa   :  { %v15395_v3 = vpop.eup %15394  ;;  %15404 = vrcp.f32 %v2711_v18  ;;  %v18592_v45 = vadd.f32 %v13630_v35, %v18557_v57  ;;  %v2272_v29 = vpop.f32.mrb[17].mxu0 }
 0x3ab   :  { %v15397_v36 = vpop.eup %15396  ;;  %v2714_v51 = vadd.f32 1.0, %v15395_v3  ;;  %15406 = vpow2.f32 %v11469_v26  ;;  %v18595_v30 = vadd.f32 %v18557_v57, %v2272_v29  ;;  %v187_v29 = vld [vmem:[%s23021_s22 + $0x8] sm:$0xff] }
 0x3ac   :  { %v2713_v58 = vadd.f32 1.0, %v15397_v36  ;;  %15408 = vpow2.f32 %v11468_v47  ;;  %v11471_v34 = vmul.f32 -1.442695, %v18592_v45 }
 0x3ad   :  { %15410 = vrcp.f32 %v2714_v51  ;;  %v11470_v33 = vmul.f32 -1.442695, %v18595_v30  ;;  %v13633_v2 = vpop.f32.mrb[18].mxu0 }
 0x3ae   :  { %v15399_v8 = vpop.eup %15398  ;;  %15412 = vrcp.f32 %v2713_v58  ;;  %v18600_v1 = vadd.f32 %v13633_v2, %v18557_v57  ;;  %v2282_v61 = vpop.f32.mrb[19].mxu0 }
 0x3af   :  { %v15401_v54 = vpop.eup %15400  ;;  %v2716_v16 = vadd.f32 1.0, %v15399_v8  ;;  %15414 = vpow2.f32 %v11471_v34  ;;  %v18603_v62 = vadd.f32 %v18557_v57, %v2282_v61  ;;  %v18636_v61 = vunpack.c.h.bf16 %v187_v29 }
 0x3b0   :  { %v2715_v32 = vadd.f32 1.0, %v15401_v54  ;;  %15416 = vpow2.f32 %v11470_v33  ;;  %v11473_v13 = vmul.f32 -1.442695, %v18600_v1 }
 0x3b1   :  { %15418 = vrcp.f32 %v2716_v16  ;;  %v11472_v55 = vmul.f32 -1.442695, %v18603_v62  ;;  %v13636_v59 = vpop.f32.mrb[20].mxu0  ;;  %23023 = vst [vmem:[#allocation136_spill] sm:$0xff] %v18636_v61  ;;  %11522 = vmatprep.mubr.msk.f32.mxu1 %vm2951_vm4, %v18636_v61 }
 0x3b2   :  { %15420 = vrcp.f32 %v2715_v32  ;;  %v18616_v27 = vadd.f32 %v13636_v59, %v18557_v57  ;;  %v2292_v31 = vpop.f32.mrb[21].mxu0 }
 0x3b3   :  { %v15403_v18 = vpop.eup %15402  ;;  %15422 = vpow2.f32 %v11473_v13  ;;  %v18619_v26 = vadd.f32 %v18557_v57, %v2292_v31 }
 0x3b4   :  { %v15405_v47 = vpop.eup %15404  ;;  %v18623_v35 = vmul.f32 %v15403_v18, %v18560_v0  ;;  %15424 = vpow2.f32 %v11472_v55  ;;  %v11475_v3 = vmul.f32 -1.442695, %v18616_v27 }
 0x3b5   :  { %v15407_v36 = vpop.eup %15406  ;;  %v18630_v51 = vmul.f32 %v15405_v47, %v18563_v39  ;;  %v11474_v58 = vmul.f32 -1.442695, %v18619_v26  ;;  %v13639_v34 = vpop.f32.mrb[22].mxu0 }
 0x3b6   :  { %v15409_v33 = vpop.eup %15408  ;;  %v2718_v2 = vadd.f32 1.0, %v15407_v36  ;;  %15426 = vpow2.f32 %v11475_v3  ;;  %v18634_v0 = vadd.f32 %v13639_v34, %v18557_v57  ;;  %v2302_v8 = vpop.f32.mrb[23].mxu0 }
 0x3b7   :  { %v15411_v54 = vpop.eup %15410  ;;  %v2717_v16 = vadd.f32 1.0, %v15409_v33  ;;  %15428 = vpow2.f32 %v11474_v58  ;;  %v18639_v32 = vadd.f32 %v18557_v57, %v2302_v8 }
 0x3b8   :  { %v15413_v13 = vpop.eup %15412  ;;  %v18644_v55 = vmul.f32 %v15411_v54, %v18568_v37  ;;  %15430 = vrcp.f32 %v2718_v2  ;;  %v11477_v59 = vmul.f32 -1.442695, %v18634_v0 }
 0x3b9   :  { %v15415_v31 = vpop.eup %15414  ;;  %v18648_v18 = vmul.f32 %v15413_v13, %v18571_v11  ;;  %15432 = vrcp.f32 %v2717_v16  ;;  %v11476_v47 = vmul.f32 -1.442695, %v18639_v32  ;;  %v13642_v3 = vpop.f32.mrb[24].mxu0 }
 0x3ba   :  { %v15417_v29 = vpop.eup %15416  ;;  %v2720_v36 = vadd.f32 1.0, %v15415_v31  ;;  %15434 = vpow2.f32 %v11477_v59  ;;  %v18654_v37 = vadd.f32 %v13642_v3, %v18557_v57  ;;  %v2312_v58 = vpop.f32.mrb[25].mxu0 }
 0x3bb   :  { %v15419_v34 = vpop.eup %15418  ;;  %v2719_v33 = vadd.f32 1.0, %v15417_v29  ;;  %15436 = vpow2.f32 %v11476_v47  ;;  %v18657_v11 = vadd.f32 %v18557_v57, %v2312_v58 }
 0x3bc   :  { %v15421_v8 = vpop.eup %15420  ;;  %v18662_v54 = vmul.f32 %v15419_v34, %v18576_v7  ;;  %15438 = vrcp.f32 %v2720_v36  ;;  %v11479_v16 = vmul.f32 -1.442695, %v18654_v37 }
 0x3bd   :  { %v15423_v13 = vpop.eup %15422  ;;  %v18666_v59 = vmul.f32 %v15421_v8, %v18579_v12  ;;  %15440 = vrcp.f32 %v2719_v33  ;;  %v11478_v31 = vmul.f32 -1.442695, %v18657_v11 }
 0x3be   :  { %v15425_v47 = vpop.eup %15424  ;;  %v2722_v3 = vadd.f32 1.0, %v15423_v13  ;;  %15442 = vpow2.f32 %v11479_v16  ;;  %v13645_v29 = vpop.f32.mrb[26].mxu0 }
 0x3bf   :  { %v2721_v58 = vadd.f32 1.0, %v15425_v47  ;;  %15444 = vpow2.f32 %v11478_v31  ;;  %v18670_v60 = vadd.f32 %v13645_v29, %v18557_v57  ;;  %v2322_v7 = vpop.f32.mrb[27].mxu0 }
 0x3c0   :  { %v15427_v34 = vpop.eup %15426  ;;  %15446 = vrcp.f32 %v2722_v3  ;;  %v18675_v12 = vadd.f32 %v18557_v57, %v2322_v7 }
 0x3c1   :  { %v15429_v33 = vpop.eup %15428  ;;  %15448 = vrcp.f32 %v2721_v58  ;;  %v2724_v8 = vadd.f32 1.0, %v15427_v34  ;;  %v11481_v16 = vmul.f32 -1.442695, %v18670_v60 }
 0x3c2   :  { %v15431_v13 = vpop.eup %15430  ;;  %v2723_v47 = vadd.f32 1.0, %v15429_v33  ;;  %v11480_v31 = vmul.f32 -1.442695, %v18675_v12  ;;  %v13648_v29 = vpop.f32.mrb[28].mxu0 }
 0x3c3   :  { %v15433_v2 = vpop.eup %15432  ;;  %v18680_v39 = vmul.f32 %v15431_v13, %v18584_v46  ;;  %15450 = vrcp.f32 %v2724_v8  ;;  %v18683_v3 = vadd.f32 %v13648_v29, %v18557_v57  ;;  %v2332_v7 = vpop.f32.mrb[29].mxu0 }
 0x3c4   :  { %v15435_v36 = vpop.eup %15434  ;;  %v18686_v58 = vmul.f32 %v15433_v2, %v18587_v6  ;;  %15452 = vrcp.f32 %v2723_v47  ;;  %v18689_v34 = vadd.f32 %v18557_v57, %v2332_v7 }
 0x3c5   :  { %v15437_v33 = vpop.eup %15436  ;;  %v2726_v44 = vadd.f32 1.0, %v15435_v36  ;;  %15454 = vpow2.f32 %v11481_v16  ;;  %v11483_v28 = vmul.f32 -1.442695, %v18683_v3 }
 0x3c6   :  { %v15439_v46 = vpop.eup %15438  ;;  %v2725_v13 = vadd.f32 1.0, %v15437_v33  ;;  %15456 = vpow2.f32 %v11480_v31  ;;  %v11482_v8 = vmul.f32 -1.442695, %v18689_v34  ;;  %v13651_v29 = vpop.f32.mrb[30].mxu0 }
 0x3c7   :  { %v15441_v6 = vpop.eup %15440  ;;  %v18696_v2 = vmul.f32 %v15439_v46, %v18592_v45  ;;  %15458 = vrcp.f32 %v2726_v44  ;;  %v18699_v47 = vadd.f32 %v13651_v29, %v18557_v57  ;;  %v2342_v36 = vpop.f32.mrb[31].mxu0 }
 0x3c8   :  { %v15443_v16 = vpop.eup %15442  ;;  %v18702_v7 = vmul.f32 %v15441_v6, %v18595_v30  ;;  %15460 = vrcp.f32 %v2725_v13  ;;  %v18705_v31 = vadd.f32 %v18557_v57, %v2342_v36 }
 0x3c9   :  { %v15445_v33 = vpop.eup %15444  ;;  %v2728_v21 = vadd.f32 1.0, %v15443_v16  ;;  %15462 = vpow2.f32 %v11483_v28  ;;  %v11485_v56 = vmul.f32 -1.442695, %v18699_v47 }
 0x3ca   :  { %v15447_v45 = vpop.eup %15446  ;;  %v2727_v46 = vadd.f32 1.0, %v15445_v33  ;;  %15464 = vpow2.f32 %v11482_v8  ;;  %v11484_v44 = vmul.f32 -1.442695, %v18705_v31  ;;  %v13654_v29 = vpop.f32.mrb[32].mxu0 }
 0x3cb   :  { %v15449_v30 = vpop.eup %15448  ;;  %v18712_v13 = vmul.f32 %v15447_v45, %v18600_v1  ;;  %15466 = vrcp.f32 %v2728_v21  ;;  %v18715_v6 = vadd.f32 %v13654_v29, %v18557_v57  ;;  %v2352_v28 = vpop.f32.mrb[33].mxu0 }
 0x3cc   :  { %v18718_v36 = vmul.f32 %v15449_v30, %v18603_v62  ;;  %15468 = vrcp.f32 %v2727_v46  ;;  %v18721_v8 = vadd.f32 %v18557_v57, %v2352_v28 }
 0x3cd   :  { %v15451_v16 = vpop.eup %15450  ;;  %15470 = vpow2.f32 %v11485_v56  ;;  %v11487_v33 = vmul.f32 -1.442695, %v18715_v6 }
 0x3ce   :  { %v15453_v15 = vpop.eup %15452  ;;  %v18725_v1 = vmul.f32 %v15451_v16, %v18616_v27  ;;  %15472 = vpow2.f32 %v11484_v44  ;;  %v11486_v21 = vmul.f32 -1.442695, %v18721_v8  ;;  %v13657_v45 = vpop.f32.mrb[34].mxu0 }
 0x3cf   :  { %v15455_v29 = vpop.eup %15454  ;;  %v18731_v46 = vmul.f32 %v15453_v15, %v18619_v26  ;;  %15474 = vpow2.f32 %v11487_v33  ;;  %v18734_v56 = vadd.f32 %v13657_v45, %v18557_v57  ;;  %v2362_v30 = vpop.f32.mrb[35].mxu0 }
 0x3d0   :  { %v15457_v28 = vpop.eup %15456  ;;  %v2730_v52 = vadd.f32 1.0, %v15455_v29  ;;  %15476 = vpow2.f32 %v11486_v21  ;;  %v18737_v27 = vadd.f32 %v18557_v57, %v2362_v30 }
 0x3d1   :  { %v15459_v44 = vpop.eup %15458  ;;  %v2729_v16 = vadd.f32 1.0, %v15457_v28  ;;  %v11489_v20 = vmul.f32 -1.442695, %v18734_v56 }
 0x3d2   :  { %v15461_v15 = vpop.eup %15460  ;;  %v18743_v26 = vmul.f32 %v15459_v44, %v18634_v0  ;;  %15478 = vrcp.f32 %v2730_v52  ;;  %v11488_v33 = vmul.f32 -1.442695, %v18737_v27  ;;  %v13660_v45 = vpop.f32.mrb[36].mxu0 }
 0x3d3   :  { %v15463_v29 = vpop.eup %15462  ;;  %v18747_v21 = vmul.f32 %v15461_v15, %v18639_v32  ;;  %15480 = vrcp.f32 %v2729_v16  ;;  %v18750_v30 = vadd.f32 %v13660_v45, %v18557_v57  ;;  %v2372_v28 = vpop.f32.mrb[37].mxu0 }
 0x3d4   :  { %v15465_v42 = vpop.eup %15464  ;;  %v2732_v38 = vadd.f32 1.0, %v15463_v29  ;;  %15482 = vpow2.f32 %v11489_v20  ;;  %v18753_v62 = vadd.f32 %v18557_v57, %v2372_v28 }
 0x3d5   :  { %v15467_v0 = vpop.eup %15466  ;;  %v2731_v52 = vadd.f32 1.0, %v15465_v42  ;;  %15484 = vpow2.f32 %v11488_v33  ;;  %v11491_v44 = vmul.f32 -1.442695, %v18750_v30 }
 0x3d6   :  { %v15469_v15 = vpop.eup %15468  ;;  %v2908_v16 = vmul.f32 %v15467_v0, %v18654_v37  ;;  %15486 = vrcp.f32 %v2732_v38  ;;  %v11490_v45 = vmul.f32 -1.442695, %v18753_v62  ;;  %v13663_v49 = vpop.f32.mrb[38].mxu0 }
 0x3d7   :  { %v15471_v29 = vpop.eup %15470  ;;  %v2907_v20 = vmul.f32 %v15469_v15, %v18657_v11  ;;  %15488 = vrcp.f32 %v2731_v52  ;;  %v18762_v28 = vadd.f32 %v13663_v49, %v18557_v57  ;;  %v2382_v42 = vpop.f32.mrb[39].mxu0 }
 0x3d8   :  { %v15473_v33 = vpop.eup %15472  ;;  %v2734_v41 = vadd.f32 1.0, %v15471_v29  ;;  %15490 = vpow2.f32 %v11491_v44  ;;  %v18765_v32 = vadd.f32 %v18557_v57, %v2382_v42 }
 0x3d9   :  { %v15475_v63 = vpop.eup %15474  ;;  %v2733_v37 = vadd.f32 1.0, %v15473_v33  ;;  %15492 = vpow2.f32 %v11490_v45  ;;  %v14614_v38 = vpack.c.bf16 %v2908_v16, %v2907_v20  ;;  %v11493_v11 = vmul.f32 -1.442695, %v18762_v28 }
 0x3da   :  { %v15477_v0 = vpop.eup %15476  ;;  %15494 = vrcp.f32 %v2734_v41  ;;  %v2736_v50 = vadd.f32 1.0, %v15475_v63  ;;  %v13666_v52 = vpop.f32.mrb[40].mxu0  ;;  %v11492_v15 = vmul.f32 -1.442695, %v18765_v32  ;;  %v23024_v41 = vpack.c.bf16 %v18623_v35, %v18630_v51 }
 0x3db   :  { %15496 = vrcp.f32 %v2733_v37  ;;  %v2735_v49 = vadd.f32 1.0, %v15477_v0  ;;  %v18770_v29 = vadd.f32 %v13666_v52, %v18557_v57  ;;  %v2392_v44 = vpop.f32.mrb[41].mxu0  ;;  %14615 = vmatprep.subr.bf16.mxu0 %v14614_v38 }
 0x3dc   :  { %v15479_v42 = vpop.eup %15478  ;;  %15498 = vrcp.f32 %v2736_v50  ;;  %v18773_v45 = vadd.f32 %v18557_v57, %v2392_v44  ;;  %14617 = vmatpush3.bf16.msra.mxu0 %v23024_v41 }
 0x3dd   :  { %v15481_v63 = vpop.eup %15480  ;;  %v2910_v16 = vmul.f32 %v15479_v42, %v18670_v60  ;;  %15500 = vrcp.f32 %v2735_v49  ;;  %v11495_v20 = vmul.f32 -1.442695, %v18770_v29 }
 0x3de   :  { %v15483_v33 = vpop.eup %15482  ;;  %v2909_v37 = vmul.f32 %v15481_v63, %v18675_v12  ;;  %15502 = vpow2.f32 %v11493_v11  ;;  %v13669_v38 = vpop.f32.mrb[42].mxu0  ;;  %v11494_v52 = vmul.f32 -1.442695, %v18773_v45 }
 0x3df   :  { %v15485_v0 = vpop.eup %15484  ;;  %v2738_v50 = vadd.f32 1.0, %v15483_v33  ;;  %15504 = vpow2.f32 %v11492_v15  ;;  %v18783_v44 = vadd.f32 %v13669_v38, %v18557_v57  ;;  %v2402_v35 = vpop.f32.mrb[43].mxu0 }
 0x3e0   :  { %v15487_v51 = vpop.eup %15486  ;;  %v2737_v41 = vadd.f32 1.0, %v15485_v0  ;;  %15506 = vpow2.f32 %v11495_v20  ;;  %v18786_v60 = vadd.f32 %v18557_v57, %v2402_v35  ;;  %v14618_v49 = vpack.c.bf16 %v2910_v16, %v2909_v37 }
 0x3e1   :  { %v15489_v42 = vpop.eup %15488  ;;  %v2912_v12 = vmul.f32 %v15487_v51, %v18683_v3  ;;  %15508 = vrcp.f32 %v2738_v50  ;;  %v11497_v11 = vmul.f32 -1.442695, %v18783_v44  ;;  %v23025_v16 = vpack.c.bf16 %v18644_v55, %v18648_v18 }
 0x3e2   :  { %v15491_v15 = vpop.eup %15490  ;;  %v2911_v63 = vmul.f32 %v15489_v42, %v18689_v34  ;;  %15510 = vrcp.f32 %v2737_v41  ;;  %14619 = vmatprep.subr.bf16.mxu0 %v14618_v49  ;;  %v13672_v33 = vpop.f32.mrb[44].mxu0  ;;  %v11496_v20 = vmul.f32 -1.442695, %v18786_v60 }
 0x3e3   :  { %v15493_v38 = vpop.eup %15492  ;;  %v2740_v22 = vadd.f32 1.0, %v15491_v15  ;;  %15512 = vpow2.f32 %v11494_v52  ;;  %14621 = vmatpush3.bf16.msra.mxu0 %v23025_v16  ;;  %v18796_v3 = vadd.f32 %v13672_v33, %v18557_v57  ;;  %v2412_v37 = vpop.f32.mrb[45].mxu0 }
 0x3e4   :  { %v15495_v0 = vpop.eup %15494  ;;  %v2739_v50 = vadd.f32 1.0, %v15493_v38  ;;  %15514 = vpow2.f32 %v11497_v11  ;;  %v18799_v34 = vadd.f32 %v18557_v57, %v2412_v37  ;;  %v14622_v35 = vpack.c.bf16 %v2912_v12, %v2911_v63 }
 0x3e5   :  { %v15497_v51 = vpop.eup %15496  ;;  %v2914_v52 = vmul.f32 %v15495_v0, %v18699_v47  ;;  %15516 = vrcp.f32 %v2740_v22  ;;  %v11499_v41 = vmul.f32 -1.442695, %v18796_v3  ;;  %v23026_v12 = vpack.c.bf16 %v18662_v54, %v18666_v59 }
 0x3e6   :  { %v15499_v49 = vpop.eup %15498  ;;  %v2913_v55 = vmul.f32 %v15497_v51, %v18705_v31  ;;  %15518 = vrcp.f32 %v2739_v50  ;;  %v11498_v18 = vmul.f32 -1.442695, %v18799_v34  ;;  %14623 = vmatprep.subr.bf16.mxu0 %v14622_v35  ;;  %v13675_v42 = vpop.f32.mrb[46].mxu0  ;;  %v23027_v51 = vpack.c.bf16 %v18680_v39, %v18686_v58 }
 0x3e7   :  { %v15501_v15 = vpop.eup %15500  ;;  %v2916_v11 = vmul.f32 %v15499_v49, %v18715_v6  ;;  %15520 = vpow2.f32 %v11496_v20  ;;  %14625 = vmatpush3.bf16.msra.mxu0 %v23026_v12  ;;  %v18810_v22 = vadd.f32 %v13675_v42, %v18557_v57  ;;  %v2422_v47 = vpop.f32.mrb[47].mxu0 }
 0x3e8   :  { %v15503_v63 = vpop.eup %15502  ;;  %v2915_v31 = vmul.f32 %v15501_v15, %v18721_v8  ;;  %15522 = vpow2.f32 %v11499_v41  ;;  %v18814_v33 = vadd.f32 %v18557_v57, %v2422_v47  ;;  %v14626_v38 = vpack.c.bf16 %v2914_v52, %v2913_v55 }
 0x3e9   :  { %v15505_v16 = vpop.eup %15504  ;;  %v2742_v37 = vadd.f32 1.0, %v15503_v63  ;;  %15524 = vpow2.f32 %v11498_v18  ;;  %v11501_v54 = vmul.f32 -1.442695, %v18810_v22 }
 0x3ea   :  { %v15507_v6 = vpop.eup %15506  ;;  %v2741_v20 = vadd.f32 1.0, %v15505_v16  ;;  %14627 = vmatprep.subr.bf16.mxu0 %v14626_v38  ;;  %v13678_v59 = vpop.f32.mrb[48].mxu0  ;;  %v14630_v0 = vpack.c.bf16 %v2916_v11, %v2915_v31  ;;  %v11500_v8 = vmul.f32 -1.442695, %v18814_v33 }
 0x3eb   :  { %v15509_v50 = vpop.eup %15508  ;;  %15526 = vrcp.f32 %v2742_v37  ;;  %v2744_v35 = vadd.f32 1.0, %v15507_v6  ;;  %14629 = vmatpush3.bf16.msra.mxu0 %v23027_v51  ;;  %v18822_v52 = vadd.f32 %v13678_v59, %v18557_v57  ;;  %v2432_v41 = vpop.f32.mrb[49].mxu0 }
 0x3ec   :  { %v15511_v49 = vpop.eup %15510  ;;  %v2918_v55 = vmul.f32 %v15509_v50, %v18734_v56  ;;  %15528 = vrcp.f32 %v2741_v20  ;;  %v18826_v18 = vadd.f32 %v18557_v57, %v2432_v41  ;;  %14631 = vmatprep.subr.bf16.mxu0 %v14630_v0  ;;  %v23028_v56 = vpack.c.bf16 %v18696_v2, %v18702_v7 }
 0x3ed   :  { %v15513_v42 = vpop.eup %15512  ;;  %v2917_v15 = vmul.f32 %v15511_v49, %v18737_v27  ;;  %15530 = vrcp.f32 %v2744_v35  ;;  %v11503_v39 = vmul.f32 -1.442695, %v18822_v52 }
 0x3ee   :  { %v15515_v11 = vpop.eup %15514  ;;  %v2743_v12 = vadd.f32 1.0, %v15513_v42  ;;  %15532 = vpow2.f32 %v11501_v54  ;;  %v11502_v58 = vmul.f32 -1.442695, %v18826_v18  ;;  %v13681_v47 = vpop.f32.mrb[50].mxu0 }
 0x3ef   :  { %v15517_v63 = vpop.eup %15516  ;;  %v2746_v31 = vadd.f32 1.0, %v15515_v11  ;;  %15534 = vpow2.f32 %v11500_v8  ;;  %14633 = vmatpush3.bf16.msra.mxu0 %v23028_v56  ;;  %v18835_v38 = vadd.f32 %v13681_v47, %v18557_v57  ;;  %v2442_v27 = vpop.f32.mrb[51].mxu0  ;;  %v14634_v16 = vpack.c.bf16 %v2918_v55, %v2917_v15 }
 0x3f0   :  { %v15519_v37 = vpop.eup %15518  ;;  %v2920_v6 = vmul.f32 %v15517_v63, %v18750_v30  ;;  %15536 = vrcp.f32 %v2743_v12  ;;  %v18839_v20 = vadd.f32 %v18557_v57, %v2442_v27  ;;  %v23029_v30 = vpack.c.bf16 %v18712_v13, %v18718_v36 }
 0x3f1   :  { %v15521_v54 = vpop.eup %15520  ;;  %v2919_v59 = vmul.f32 %v15519_v37, %v18753_v62  ;;  %15538 = vrcp.f32 %v2746_v31  ;;  %14635 = vmatprep.subr.bf16.mxu0 %v14634_v16  ;;  %v11505_v7 = vmul.f32 -1.442695, %v18835_v38  ;;  %v23030_v63 = vpack.c.bf16 %v18725_v1, %v18731_v46  ;;  %v188_v1 = vld [vmem:[%s23021_s22 + $0x10] sm:$0xff] }
 0x3f2   :  { %v15523_v0 = vpop.eup %15522  ;;  %v2745_v2 = vadd.f32 1.0, %v15521_v54  ;;  %15540 = vpow2.f32 %v11503_v39  ;;  %v13684_v50 = vpop.f32.mrb[52].mxu0  ;;  %v11504_v55 = vmul.f32 -1.442695, %v18839_v20 }
 0x3f3   :  { %v15525_v35 = vpop.eup %15524  ;;  %v2748_v8 = vadd.f32 1.0, %v15523_v0  ;;  %15542 = vpow2.f32 %v11502_v58  ;;  %14637 = vmatpush3.bf16.msra.mxu0 %v23029_v30  ;;  %v18847_v51 = vadd.f32 %v13684_v50, %v18557_v57  ;;  %v2452_v41 = vpop.f32.mrb[53].mxu0  ;;  %v14638_v62 = vpack.c.bf16 %v2920_v6, %v2919_v59 }
 0x3f4   :  { %15544 = vrcp.f32 %v2745_v2  ;;  %v2747_v49 = vadd.f32 1.0, %v15525_v35  ;;  %v18851_v42 = vadd.f32 %v18557_v57, %v2452_v41 }
 0x3f5   :  { %v15527_v15 = vpop.eup %15526  ;;  %15546 = vrcp.f32 %v2748_v8  ;;  %v11507_v11 = vmul.f32 -1.442695, %v18847_v51  ;;  %14639 = vmatprep.subr.bf16.mxu0 %v14638_v62  ;;  %v18877_v8 = vunpack.c.l.bf16 %v18609_v25  ;;  %v23031_v62 = vpack.c.bf16 %v18743_v26, %v18747_v21 }
 0x3f6   :  { %v15529_v12 = vpop.eup %15528  ;;  %v2922_v13 = vmul.f32 %v15527_v15, %v18762_v28  ;;  %15548 = vrcp.f32 %v2747_v49  ;;  %v11506_v36 = vmul.f32 -1.442695, %v18851_v42  ;;  %v13687_v39 = vpop.f32.mrb[54].mxu0 }
 0x3f7   :  { %v15531_v58 = vpop.eup %15530  ;;  %v2921_v47 = vmul.f32 %v15529_v12, %v18765_v32  ;;  %15550 = vpow2.f32 %v11505_v7  ;;  %14641 = vmatpush3.bf16.msra.mxu0 %v23030_v63  ;;  %v18861_v31 = vadd.f32 %v13687_v39, %v18557_v57  ;;  %v2462_v56 = vpop.f32.mrb[55].mxu0  ;;  %v18898_v63 = vunpack.c.l.bf16 %v188_v1 }
 0x3f8   :  { %v15533_v27 = vpop.eup %15532  ;;  %v2924_v16 = vmul.f32 %v15531_v58, %v18770_v29  ;;  %15552 = vpow2.f32 %v11504_v55  ;;  %v18865_v28 = vadd.f32 %v18557_v57, %v2462_v56  ;;  %v192_v56 = vld [vmem:[%s23021_s22 + $0x30] sm:$0xff] }
 0x3f9   :  { %v15535_v37 = vpop.eup %15534  ;;  %v2750_v6 = vadd.f32 1.0, %v15533_v27  ;;  %15554 = vpow2.f32 %v11507_v11  ;;  %v11509_v32 = vmul.f32 -1.442695, %v18861_v31  ;;  %v14642_v54 = vpack.c.bf16 %v2922_v13, %v2921_v47 }
 0x3fa   :  { %v15537_v46 = vpop.eup %15536  ;;  %v2749_v59 = vadd.f32 1.0, %v15535_v37  ;;  %15556 = vpow2.f32 %v11506_v36  ;;  %v11508_v0 = vmul.f32 -1.442695, %v18865_v28  ;;  %v13690_v29 = vpop.f32.mrb[56].mxu0  ;;  %v23032_v37 = vmov 0.0|0.0  }
 0x3fb   :  { %v15539_v2 = vpop.eup %15538  ;;  %v2923_v7 = vmul.f32 %v15537_v46, %v18773_v45  ;;  %15558 = vrcp.f32 %v2750_v6  ;;  %14643 = vmatprep.subr.bf16.mxu0 %v14642_v54  ;;  %v18874_v50 = vadd.f32 %v13690_v29, %v18557_v57  ;;  %v2472_v35 = vpop.f32.mrb[57].mxu0  ;;  %v18886_v45 = vunpack.c.h.bf16 %v188_v1 }
 0x3fc   :  { %v15541_v30 = vpop.eup %15540  ;;  %v2926_v41 = vmul.f32 %v15539_v2, %v18783_v44  ;;  %15560 = vrcp.f32 %v2749_v59  ;;  %14645 = vmatpush3.bf16.msra.mxu0 %v23031_v62  ;;  %v18884_v49 = vadd.f32 %v18557_v57, %v2472_v35  ;;  %v190_v44 = vld [vmem:[%s23021_s22 + $0x20] sm:$0xff]  ;;  %v18915_v2 = vunpack.c.h.bf16 %v192_v56 }
 0x3fd   :  { %v15543_v55 = vpop.eup %15542  ;;  %v2752_v15 = vadd.f32 1.0, %v15541_v30  ;;  %15562 = vpow2.f32 %v11509_v32  ;;  %v11511_v11 = vmul.f32 -1.442695, %v18874_v50  ;;  %v14647_v25 = vpack.c.bf16 %v2924_v16, %v2923_v7 }
 0x3fe   :  { %v15545_v12 = vpop.eup %15544  ;;  %v2751_v13 = vadd.f32 1.0, %v15543_v55  ;;  %15564 = vpow2.f32 %v11508_v0  ;;  %v11510_v26 = vmul.f32 -1.442695, %v18884_v49  ;;  %v13693_v21 = vpop.f32.mrb[58].mxu0  ;;  %v18909_v6 = vunpack.c.h.bf16 %v190_v44 }
 0x3ff   :  { %v15547_v36 = vpop.eup %15546  ;;  %v2925_v39 = vmul.f32 %v15545_v12, %v18786_v60  ;;  %15566 = vrcp.f32 %v2752_v15  ;;  %14648 = vmatpush1.bf16.msra.mxu1 %v14647_v25  ;;  %v18895_v58 = vadd.f32 %v13693_v21, %v18557_v57  ;;  %v2482_v47 = vpop.f32.mrb[59].mxu0  ;;  %3029 = vmatmul.mubr.f32.vlgmr.msra.gmra.mrb[68].mxu0 %v18877_v8  ;;  %v18913_v29 = vunpack.c.l.bf16 %v190_v44 }
 0x400   :  { %v15549_v27 = vpop.eup %15548  ;;  %v2928_v16 = vmul.f32 %v15547_v36, %v18796_v3  ;;  %15568 = vrcp.f32 %v2751_v13  ;;  %v18905_v60 = vadd.f32 %v18557_v57, %v2482_v47  ;;  %14649 = vmatprep.subr.bf16.mxu1 %v23032_v37  ;;  %3033 = vmatprep.mubr.f32.mxu0 %v18886_v45 }
 0x401   :  { %v15551_v32 = vpop.eup %15550  ;;  %v2927_v54 = vmul.f32 %v15549_v27, %v18799_v34  ;;  %15570 = vpow2.f32 %v11511_v11  ;;  %v11513_v1 = vmul.f32 -1.442695, %v18895_v58  ;;  %v14650_v46 = vpack.c.bf16 %v2926_v41, %v2925_v39 }
 0x402   :  { %v15553_v59 = vpop.eup %15552  ;;  %v2754_v0 = vadd.f32 1.0, %v15551_v32  ;;  %15572 = vpow2.f32 %v11510_v26  ;;  %v13696_v3 = vpop.f32.mrb[60].mxu0  ;;  %v11512_v15 = vmul.f32 -1.442695, %v18905_v60 }
 0x403   :  { %v15555_v7 = vpop.eup %15554  ;;  %v2753_v35 = vadd.f32 1.0, %v15553_v59  ;;  %15574 = vpow2.f32 %v11513_v1  ;;  %14651 = vmatpush1.bf16.msra.mxu1 %v14650_v46  ;;  %v18918_v30 = vadd.f32 %v13696_v3, %v18557_v57  ;;  %v2492_v34 = vpop.f32.mrb[61].mxu0  ;;  %v14653_v62 = vpack.c.bf16 %v2928_v16, %v2927_v54  ;;  %3034 = vmatmul.mubr.f32.gmra.mrb[70].mxu0 %v18898_v63 }
 0x404   :  { %v15557_v41 = vpop.eup %15556  ;;  %15576 = vrcp.f32 %v2754_v0  ;;  %v2756_v55 = vadd.f32 1.0, %v15555_v7  ;;  %v18923_v11 = vadd.f32 %v18557_v57, %v2492_v34  ;;  %14652 = vmatprep.subr.bf16.mxu1 %v23032_v37  ;;  %3038 = vmatprep.mubr.f32.mxu0 %v18909_v6  ;;  %v18934_v16 = vunpack.c.l.bf16 %v192_v56 }
 0x405   :  { %v15559_v25 = vpop.eup %15558  ;;  %15578 = vrcp.f32 %v2753_v35  ;;  %v2755_v44 = vadd.f32 1.0, %v15557_v41  ;;  %v11515_v12 = vmul.f32 -1.442695, %v18918_v30 }
 0x406   :  { %v15561_v13 = vpop.eup %15560  ;;  %v2930_v26 = vmul.f32 %v15559_v25, %v18810_v22  ;;  %15580 = vrcp.f32 %v2756_v55  ;;  %v13699_v21 = vpop.f32.mrb[62].mxu0  ;;  %v11514_v22 = vmul.f32 -1.442695, %v18923_v11 }
 0x407   :  { %v15563_v36 = vpop.eup %15562  ;;  %v2929_v39 = vmul.f32 %v15561_v13, %v18814_v33  ;;  %15582 = vrcp.f32 %v2755_v44  ;;  %14654 = vmatpush1.bf16.msra.mxu1 %v14653_v62  ;;  %v18931_v47 = vadd.f32 %v13699_v21, %v18557_v57  ;;  %v2502_v27 = vpop.f32.mrb[63].mxu0  ;;  %3039 = vmatmul.mubr.f32.gmra.mrb[72].mxu0 %v18913_v29 }
 0x408   :  { %v15565_v32 = vpop.eup %15564  ;;  %v2758_v54 = vadd.f32 1.0, %v15563_v36  ;;  %15584 = vpow2.f32 %v11512_v15  ;;  %v18938_v1 = vadd.f32 %v18557_v57, %v2502_v27  ;;  %14655 = vmatprep.subr.bf16.mxu1 %v23032_v37  ;;  %3043 = vmatprep.mubr.f32.mxu0 %v18915_v2  ;;  %v17152_v57 = vld [vmem:[%s22602_s11] ss:$0 sm:$0xff] }
 0x409   :  { %v15567_v33 = vpop.eup %15566  ;;  %v2757_v46 = vadd.f32 1.0, %v15565_v32  ;;  %15586 = vpow2.f32 %v11515_v12  ;;  %v11517_v59 = vmul.f32 -1.442695, %v18931_v47  ;;  %v14656_v0 = vpack.c.bf16 %v2930_v26, %v2929_v39 }
 0x40a   :  { %v15569_v56 = vpop.eup %15568  ;;  %v2932_v3 = vmul.f32 %v15567_v33, %v18822_v52  ;;  %15588 = vrcp.f32 %v2758_v54  ;;  %v13702_v7 = vpop.f32.mrb[64].mxu0  ;;  %v11516_v44 = vmul.f32 -1.442695, %v18938_v1 }
 0x40b   :  { %v15571_v35 = vpop.eup %15570  ;;  %v2931_v34 = vmul.f32 %v15569_v56, %v18826_v18  ;;  %15590 = vrcp.f32 %v2757_v46  ;;  %14657 = vmatpush1.bf16.msra.mxu1 %v14656_v0  ;;  %v18948_v62 = vadd.f32 %v17152_v57, %v13702_v7  ;;  %v2512_v41 = vpop.f32.mrb[65].mxu0  ;;  %3044 = vmatmul.mubr.f32.gmra.mrb[74].mxu0 %v18934_v16 }
 0x40c   :  { %v15573_v55 = vpop.eup %15572  ;;  %v2760_v15 = vadd.f32 1.0, %v15571_v35  ;;  %15592 = vpow2.f32 %v11514_v22  ;;  %v18951_v52 = vadd.f32 %v17152_v57, %v2512_v41  ;;  %14658 = vmatprep.subr.bf16.mxu1 %v23032_v37 }
 0x40d   :  { %v15575_v25 = vpop.eup %15574  ;;  %v2759_v18 = vadd.f32 1.0, %v15573_v55  ;;  %15594 = vpow2.f32 %v11517_v59  ;;  %v14659_v12 = vpack.c.bf16 %v2932_v3, %v2931_v34  ;;  %v11519_v21 = vmul.f32 -1.442695, %v18948_v62 }
 0x40e   :  { %v15577_v13 = vpop.eup %15576  ;;  %15596 = vrcp.f32 %v2760_v15  ;;  %v2762_v26 = vadd.f32 1.0, %v15575_v25  ;;  %v13705_v36 = vpop.f32.mrb[66].mxu0  ;;  %v11518_v32 = vmul.f32 -1.442695, %v18951_v52 }
 0x40f   :  { %v15579_v39 = vpop.eup %15578  ;;  %v2934_v27 = vmul.f32 %v15577_v13, %v18835_v38  ;;  %15598 = vrcp.f32 %v2759_v18  ;;  %14660 = vmatpush1.bf16.msra.mxu1 %v14659_v12  ;;  %v18958_v54 = vadd.f32 %v17152_v57, %v13705_v36  ;;  %v2522_v22 = vpop.f32.mrb[67].mxu0 }
 0x410   :  { %v15581_v33 = vpop.eup %15580  ;;  %v2933_v46 = vmul.f32 %v15579_v39, %v18839_v20  ;;  %15600 = vrcp.f32 %v2762_v26  ;;  %v18961_v59 = vadd.f32 %v17152_v57, %v2522_v22  ;;  %14661 = vmatprep.subr.bf16.mxu1 %v23032_v37 }
 0x411   :  { %v15583_v0 = vpop.eup %15582  ;;  %v2936_v56 = vmul.f32 %v15581_v33, %v18847_v51  ;;  %15602 = vpow2.f32 %v11516_v44  ;;  %v11521_v38 = vmul.f32 -1.442695, %v18958_v54 }
 0x412   :  { %v15585_v3 = vpop.eup %15584  ;;  %v2935_v7 = vmul.f32 %v15583_v0, %v18851_v42  ;;  %15604 = vpow2.f32 %v11519_v21  ;;  %v14662_v35 = vpack.c.bf16 %v2934_v27, %v2933_v46  ;;  %v11520_v20 = vmul.f32 -1.442695, %v18961_v59 }
 0x413   :  { %v15587_v34 = vpop.eup %15586  ;;  %v2761_v41 = vadd.f32 1.0, %v15585_v3  ;;  %15606 = vpow2.f32 %v11518_v32 }
 0x414   :  { %v15589_v57 = vpop.eup %15588  ;;  %v2764_v55 = vadd.f32 1.0, %v15587_v34  ;;  %15608 = vpow2.f32 %v11521_v38  ;;  %14663 = vmatpush1.bf16.msra.mxu1 %v14662_v35  ;;  %v14665_v15 = vpack.c.bf16 %v2936_v56, %v2935_v7 }
 0x415   :  { %v15591_v25 = vpop.eup %15590  ;;  %v2938_v51 = vmul.f32 %v15589_v57, %v18861_v31  ;;  %15610 = vrcp.f32 %v2761_v41  ;;  %14664 = vmatprep.subr.bf16.mxu1 %v23032_v37 }
 0x416   :  { %v15593_v18 = vpop.eup %15592  ;;  %v2937_v42 = vmul.f32 %v15591_v25, %v18865_v28  ;;  %15612 = vrcp.f32 %v2764_v55 }
 0x417   :  { %v15595_v44 = vpop.eup %15594  ;;  %v2763_v12 = vadd.f32 1.0, %v15593_v18  ;;  %15614 = vpow2.f32 %v11520_v20 }
 0x418   :  { %v15597_v13 = vpop.eup %15596  ;;  %v2766_v26 = vadd.f32 1.0, %v15595_v44  ;;  %14666 = vmatpush1.bf16.msra.mxu1 %v14665_v15  ;;  %v14668_v21 = vpack.c.bf16 %v2938_v51, %v2937_v42 }
 0x419   :  { %v15599_v36 = vpop.eup %15598  ;;  %v2940_v39 = vmul.f32 %v15597_v13, %v18874_v50  ;;  %15616 = vrcp.f32 %v2763_v12  ;;  %14667 = vmatprep.subr.bf16.mxu1 %v23032_v37 }
 0x41a   :  { %v15601_v31 = vpop.eup %15600  ;;  %v2939_v27 = vmul.f32 %v15599_v36, %v18884_v49  ;;  %15618 = vrcp.f32 %v2766_v26 }
 0x41b   :  { %v15603_v32 = vpop.eup %15602  ;;  %v2942_v38 = vmul.f32 %v15601_v31, %v18895_v58 }
 0x41c   :  { %v15605_v28 = vpop.eup %15604  ;;  %v14671_v22 = vpack.c.bf16 %v2940_v39, %v2939_v27  ;;  %v2765_v33 = vadd.f32 1.0, %v15603_v32  ;;  %14669 = vmatpush1.bf16.msra.mxu1 %v14668_v21  ;;  %v193_v32 = vld [vmem:[%s23021_s22 + $0x38] sm:$0xff] }
 0x41d   :  { %v15607_v46 = vpop.eup %15606  ;;  %v2768_v0 = vadd.f32 1.0, %v15605_v28  ;;  %14670 = vmatprep.subr.bf16.mxu1 %v23032_v37 }
 0x41e   :  { %v15609_v56 = vpop.eup %15608  ;;  %15620 = vrcp.f32 %v2765_v33  ;;  %v2767_v50 = vadd.f32 1.0, %v15607_v46  ;;  %v19021_v33 = vunpack.c.l.bf16 %v193_v32  ;;  %v3154_v46 = vld [vmem:[%s22603_s12] sm:$0xff] }
 0x41f   :  { %v15611_v3 = vpop.eup %15610  ;;  %15622 = vrcp.f32 %v2768_v0  ;;  %v2770_v7 = vadd.f32 1.0, %v15609_v56  ;;  %v3155_v0 = vld [vmem:[%s22603_s12 + $0x8] sm:$0xff]  ;;  %v3156_v56 = vld [vmem:[%s22603_s12 + $0x10] sm:$0xff] }
 0x420   :  { %v15613_v35 = vpop.eup %15612  ;;  %v2941_v49 = vmul.f32 %v15611_v3, %v18905_v60  ;;  %15624 = vrcp.f32 %v2767_v50  ;;  %14672 = vmatpush1.bf16.msra.mxu1 %v14671_v22  ;;  %v19018_v22 = vunpack.c.h.bf16 %v193_v32  ;;  %23033 = vst [vmem:[#allocation137_spill] sm:$0xff] %v19021_v33  ;;  %v3157_v50 = vld [vmem:[%s22603_s12 + $0x18] sm:$0xff] }
 0x421   :  { %v15615_v34 = vpop.eup %15614  ;;  %15626 = vrcp.f32 %v2770_v7  ;;  %14673 = vmatprep.subr.bf16.mxu1 %v23032_v37  ;;  %v2944_v20 = vmul.f32 %v15613_v35, %v18918_v30  ;;  %v14692_v3 = vpack.c.bf16 %v3157_v50, %v3156_v56  ;;  %v3158_v7 = vld [vmem:[%s22603_s12 + $0x20] sm:$0xff]  ;;  %v3159_v35 = vld [vmem:[%s22603_s12 + $0x28] sm:$0xff]  ;;  %v23034_v56 = vld [vmem:[#allocation5_spill] sm:$0xff] }
 0x422   :  { %v14674_v41 = vpack.c.bf16 %v2942_v38, %v2941_v49  ;;  %v2769_v57 = vadd.f32 1.0, %v15615_v34  ;;  %v14688_v38 = vpack.c.bf16 %v3155_v0, %v3154_v46  ;;  %v14696_v49 = vpack.c.bf16 %v3159_v35, %v3158_v7 }
 0x423   :  { %v15617_v55 = vpop.eup %15616 }
 0x424   :  { %v15619_v58 = vpop.eup %15618  ;;  %v2943_v15 = vmul.f32 %v15617_v55, %v18923_v11  ;;  %15628 = vrcp.f32 %v2769_v57  ;;  %14675 = vmatpush1.bf16.msra.mxu1 %v14674_v41  ;;  %14689 = vmatprep.subr.bf16.mxu0 %v14688_v38 }
 0x425   :  { %14676 = vmatprep.subr.bf16.mxu1 %v23032_v37  ;;  %v2946_v60 = vmul.f32 %v15619_v58, %v18931_v47  ;;  %14691 = vmatpush3.bf16.msra.mxu0 %v14688_v38 }
 0x426   :  { %v14677_v25 = vpack.c.bf16 %v2944_v20, %v2943_v15  ;;  %14693 = vmatprep.subr.bf16.mxu0 %v14692_v3 }
 0x428   :  { %v15621_v51 = vpop.eup %15620  ;;  %14678 = vmatpush1.bf16.msra.mxu1 %v14677_v25 }
 0x429   :  { %v15623_v18 = vpop.eup %15622  ;;  %v2945_v42 = vmul.f32 %v15621_v51, %v18938_v1  ;;  %14679 = vmatprep.subr.bf16.mxu1 %v23032_v37  ;;  %v189_v1 = vld [vmem:[%s23021_s22 + $0x18] sm:$0xff]  ;;  %14695 = vmatpush3.bf16.msra.mxu0 %v14692_v3 }
 0x42a   :  { %v15625_v30 = vpop.eup %15624  ;;  %v2948_v44 = vmul.f32 %v15623_v18, %v18948_v62  ;;  %v17153_v62 = vld [vmem:[%s23021_s22 + $0x8] sm:$0xff]  ;;  %v19004_v31 = vunpack.c.l.bf16 %v189_v1  ;;  %14697 = vmatprep.subr.bf16.mxu0 %v14696_v49  ;;  %v23035_v3 = vld [vmem:[#allocation6_spill] sm:$0xff] }
 0x42b   :  { %v15627_v12 = vpop.eup %15626  ;;  %v14680_v13 = vpack.c.bf16 %v2946_v60, %v2945_v42  ;;  %v2947_v11 = vmul.f32 %v15625_v30, %v18951_v52  ;;  %v18996_v52 = vunpack.c.l.bf16 %v17153_v62  ;;  %v3160_v30 = vld [vmem:[%s22603_s12 + $0x30] sm:$0xff] }
 0x42c   :  { %v2950_v21 = vmul.f32 %v15627_v12, %v18958_v54  ;;  %v18998_v54 = vunpack.c.h.bf16 %v189_v1 }
 0x42d   :  { %v14683_v26 = vpack.c.bf16 %v2948_v44, %v2947_v11  ;;  %14681 = vmatpush1.bf16.msra.mxu1 %v14680_v13  ;;  %14699 = vmatpush3.bf16.msra.mxu0 %v14696_v49  ;;  %v3161_v44 = vld [vmem:[%s22603_s12 + $0x38] sm:$0xff]  ;;  %v23036_v49 = vld [vmem:[#allocation7_spill] sm:$0xff] }
 0x42e   :  { %v15629_v36 = vpop.eup %15628  ;;  %14682 = vmatprep.subr.bf16.mxu1 %v23032_v37  ;;  %v14700_v12 = vpack.c.bf16 %v3161_v44, %v3160_v30  ;;  %v11548_v30 = vld [vmem:[%s22598_s7 + $0x20] sm:$0xff] }
 0x42f   :  { %v2949_v47 = vmul.f32 %v15629_v36, %v18961_v59  ;;  %v191_v59 = vld [vmem:[%s23021_s22 + $0x28] sm:$0xff] }
 0x430   :  { %v19008_v27 = vunpack.c.h.bf16 %v191_v59  ;;  %v19014_v28 = vunpack.c.l.bf16 %v191_v59  ;;  %14701 = vmatprep.subr.bf16.mxu0 %v14700_v12 }
 0x431   :  { %v14686_v39 = vpack.c.bf16 %v2950_v21, %v2949_v47  ;;  %14684 = vmatpush1.bf16.msra.mxu1 %v14683_v26  ;;  %14703 = vmatpush3.bf16.msra.mxu0 %v14700_v12  ;;  %v11549_v12 = vld [vmem:[%s22598_s7 + $0x28] sm:$0xff] }
 0x432   :  { %14685 = vmatprep.subr.bf16.mxu1 %v23032_v37 }
 0x435   :  { %14687 = vmatpush1.bf16.msra.mxu1 %v14686_v39 }
 0x438   :  { %3114 = vmatmul.mubr.f32.vlgmr.msra.gmra.mrb[64].mxu1 %v18996_v52 }
 0x439   :  { %11523 = vmatprep.mubr.msk.f32.mxu1 %vm2951_vm4, %v18998_v54 }
 0x43c   :  { %3119 = vmatmul.mubr.f32.gmra.mrb[66].mxu1 %v19004_v31 }
 0x43d   :  { %11524 = vmatprep.mubr.msk.f32.mxu1 %vm2951_vm4, %v19008_v27 }
 0x440   :  { %3124 = vmatmul.mubr.f32.gmra.mrb[68].mxu1 %v19014_v28 }
 0x441   :  { %11525 = vmatprep.mubr.msk.f32.mxu1 %vm2951_vm4, %v19018_v22 }
 0x444   :  { %3129 = vmatmul.mubr.f32.gmra.mrb[70].mxu1 %v19021_v33 }
 0x4d2   :  { %v12782_v34 = vpop.f32.mrb[68].mxu0 }
 0x4d3   :  { %v12783_v41 = vpop.f32.mrb[69].mxu0 }
 0x4d4   :  { %v12784_v20 = vadd.f32 %v12783_v41, %v12782_v34 }
 0x4d6   :  { %v12785_v57 = vpop.f32.mrb[70].mxu0 }
 0x4d7   :  { %v12786_v55 = vpop.f32.mrb[71].mxu0 }
 0x4d8   :  { %v12787_v58 = vadd.f32 %v12786_v55, %v12785_v57  ;;  %v3294_v55 = vld [vmem:[%s22605_s14] sm:$0xff] }
 0x4da   :  { %v12788_v15 = vpop.f32.mrb[72].mxu0 }
 0x4db   :  { %v12789_v25 = vpop.f32.mrb[73].mxu0 }
 0x4dc   :  { %v12790_v60 = vadd.f32 %v12789_v25, %v12788_v15  ;;  %v3296_v25 = vld [vmem:[%s22605_s14 + $0x10] sm:$0xff] }
 0x4de   :  { %v12791_v51 = vpop.f32.mrb[74].mxu0 }
 0x4df   :  { %v12792_v18 = vpop.f32.mrb[75].mxu0 }
 0x4e0   :  { %v12793_v42 = vadd.f32 %v12792_v18, %v12791_v51  ;;  %v11540_v18 = vld [vmem:[%s22597_s6 + $0x20] sm:$0xff] }
 0x50b   :  { %v3115_v13 = vpop.f32.mrb[64].mxu1 }
 0x50c   :  { %v3116_v11 = vadd.f32 %v12784_v20, %v3115_v13  ;;  %v3117_v26 = vpop.f32.mrb[65].mxu1  ;;  %v23037_v20 = vld [vmem:[#allocation8_spill] sm:$0xff]  ;;  %v14720_v13 = vpack.c.bf16 %v11549_v12, %v11548_v30  ;;  %v11550_v30 = vld [vmem:[%s22598_s7 + $0x30] sm:$0xff]  ;;  %v11551_v12 = vld [vmem:[%s22598_s7 + $0x38] sm:$0xff] }
 0x50e   :  { %3138 = vrot.lane.b32.xlu0 %v3116_v11, %s17192_s3  ;;  %v11526_v11 = vld [vmem:[%s22604_s13] ss:$0 sm:$0xff] }
 0x50f   :  { %v3120_v21 = vpop.f32.mrb[66].mxu1 }
 0x510   :  { %v3121_v36 = vadd.f32 %v12787_v58, %v3120_v21  ;;  %v3122_v47 = vpop.f32.mrb[67].mxu1  ;;  %v3295_v58 = vld [vmem:[%s22605_s14 + $0x8] sm:$0xff] }
 0x511   :  { %v14704_v15 = vpack.c.bf16 %v3295_v58, %v3294_v55 }
 0x512   :  { %3140 = vrot.lane.b32.xlu1 %v3121_v36, %s17192_s3 }
 0x513   :  { %v3125_v39 = vpop.f32.mrb[68].mxu1  ;;  %14705 = vmatprep.subr.bf16.mxu1 %v14704_v15 }
 0x514   :  { %v3126_v1 = vadd.f32 %v12790_v60, %v3125_v39  ;;  %v3127_v62 = vpop.f32.mrb[69].mxu1  ;;  %14707 = vmatpush3.bf16.msra.mxu1 %v14704_v15  ;;  %v3297_v60 = vld [vmem:[%s22605_s14 + $0x18] sm:$0xff] }
 0x515   :  { %v14708_v51 = vpack.c.bf16 %v3297_v60, %v3296_v25 }
 0x516   :  { %3142 = vrot.lane.b32.xlu0 %v3126_v1, %s17192_s3 }
 0x517   :  { %v3130_v59 = vpop.f32.mrb[70].mxu1  ;;  %14709 = vmatprep.subr.bf16.mxu1 %v14708_v51 }
 0x518   :  { %v3131_v32 = vadd.f32 %v12793_v42, %v3130_v59  ;;  %v3132_v46 = vpop.f32.mrb[71].mxu1  ;;  %14711 = vmatpush3.bf16.msra.mxu1 %v14708_v51  ;;  %v11541_v42 = vld [vmem:[%s22597_s6 + $0x28] sm:$0xff] }
 0x519   :  { %v14712_v44 = vpack.c.bf16 %v11541_v42, %v11540_v18  ;;  %14721 = vmatprep.subr.bf16.mxu1 %v14720_v13  ;;  %v11542_v18 = vld [vmem:[%s22597_s6 + $0x30] sm:$0xff]  ;;  %v11543_v42 = vld [vmem:[%s22597_s6 + $0x38] sm:$0xff] }
 0x51a   :  { %3144 = vrot.lane.b32.xlu1 %v3131_v32, %s17192_s3 }
 0x51b   :  { %14713 = vmatprep.subr.bf16.mxu0 %v14712_v44 }
 0x580   :  { %v3139_v0 = vpop.permute.xlu0 %3138 }
 0x581   :  { %v3150_v38 = vsel %vm388_vm2, %v23034_v56, %v3139_v0 }
 0x582   :  { %13722 = vmatprep.mubr.msk.f32.mxu0 %vm942_vm3, %v3150_v38 }
 0x584   :  { %v3141_v50 = vpop.permute.xlu1 %3140 }
 0x585   :  { %v3151_v7 = vsel %vm388_vm2, %v23035_v3, %v3141_v50 }
 0x586   :  { %13723 = vmatmul.mubr.msk.f32.vlgmr.msra.gmra.mrb[76].mxu0 %vm942_vm3, %v3151_v7 }
 0x587   :  { %14715 = vmatpush3.bf16.msra.mxu0 %v14712_v44  ;;  %v14716_v44 = vpack.c.bf16 %v11543_v42, %v11542_v18  ;;  %v23050_v18 = vld [vmem:[#allocation40_spill] sm:$0xff]  ;;  %v23051_v42 = vld [vmem:[#allocation42_spill] sm:$0xff] }
 0x588   :  { %v3143_v35 = vpop.permute.xlu0 %3142 }
 0x589   :  { %v3152_v34 = vsel %vm388_vm2, %v23036_v49, %v3143_v35  ;;  %14717 = vmatprep.subr.bf16.mxu0 %v14716_v44 }
 0x58a   :  { %13725 = vmatprep.mubr.msk.f32.mxu0 %vm942_vm3, %v3152_v34 }
 0x58b   :  { %14719 = vmatpush3.bf16.msra.mxu0 %v14716_v44  ;;  %v23053_v44 = vld [vmem:[#allocation46_spill] sm:$0xff] }
 0x58c   :  { %v3145_v41 = vpop.permute.xlu1 %3144 }
 0x58d   :  { %v3153_v57 = vsel %vm388_vm2, %v23037_v20, %v3145_v41 }
 0x58e   :  { %13726 = vmatmul.mubr.msk.f32.gmra.mrb[78].mxu0 %vm942_vm3, %v3153_v57 }
 0x659   :  { %v13724_v26 = vpop.f32.mrb[76].mxu0 }
 0x65a   :  { %v3253_v21 = vadd.f32 %v13724_v26, %v11526_v11  ;;  %v3247_v36 = vpop.f32.mrb[77].mxu0 }
 0x65b   :  { %v3248_v47 = vadd.f32 %v11526_v11, %v3247_v36 }
 0x65c   :  { %v11532_v39 = vmul.f32 -1.442695, %v3253_v21 }
 0x65d   :  { %v11531_v1 = vmul.f32 -1.442695, %v3248_v47 }
 0x65e   :  { %15630 = vpow2.f32 %v11532_v39 }
 0x65f   :  { %15632 = vpow2.f32 %v11531_v1 }
 0x661   :  { %v13727_v62 = vpop.f32.mrb[78].mxu0 }
 0x662   :  { %v3263_v59 = vadd.f32 %v13727_v62, %v11526_v11  ;;  %v3257_v32 = vpop.f32.mrb[79].mxu0 }
 0x663   :  { %v3258_v46 = vadd.f32 %v11526_v11, %v3257_v32  ;;  %v11535_v11 = vld [vmem:[%s22606_s15] ss:$0 sm:$0xff]  ;;  %v23042_v32 = vld [vmem:[#allocation9_spill] sm:$0xff] }
 0x664   :  { %v11534_v0 = vmul.f32 -1.442695, %v3263_v59 }
 0x665   :  { %v11533_v56 = vmul.f32 -1.442695, %v3258_v46 }
 0x666   :  { %15634 = vpow2.f32 %v11534_v0 }
 0x667   :  { %15636 = vpow2.f32 %v11533_v56 }
 0x668   :  { %v15631_v38 = vpop.eup %15630 }
 0x669   :  { %v15633_v50 = vpop.eup %15632  ;;  %v3279_v3 = vadd.f32 1.0, %v15631_v38 }
 0x66a   :  { %v3278_v7 = vadd.f32 1.0, %v15633_v50 }
 0x66b   :  { %15638 = vrcp.f32 %v3279_v3 }
 0x66c   :  { %15640 = vrcp.f32 %v3278_v7 }
 0x670   :  { %v15635_v35 = vpop.eup %15634 }
 0x671   :  { %v15637_v49 = vpop.eup %15636  ;;  %v3281_v34 = vadd.f32 1.0, %v15635_v35 }
 0x672   :  { %v3280_v41 = vadd.f32 1.0, %v15637_v49 }
 0x673   :  { %15642 = vrcp.f32 %v3281_v34 }
 0x674   :  { %15644 = vrcp.f32 %v3280_v41 }
 0x675   :  { %v15639_v20 = vpop.eup %15638 }
 0x676   :  { %v15641_v57 = vpop.eup %15640  ;;  %v3291_v58 = vmul.f32 %v15639_v20, %v3253_v21 }
 0x677   :  { %v3290_v55 = vmul.f32 %v15641_v57, %v3248_v47  ;;  %v23043_v57 = vld [vmem:[#allocation27_spill] sm:$0xff] }
 0x679   :  { %13736 = vmatprep.mubr.msk.f32.mxu1 %vm388_vm2, %v3290_v55  ;;  %v23044_v55 = vld [vmem:[#allocation28_spill] sm:$0xff] }
 0x67a   :  { %13737 = vmatmul.mubr.msk.f32.vlgmr.msra.gmra.mrb[72].mxu1 %vm388_vm2, %v3291_v58  ;;  %v23045_v58 = vld [vmem:[#allocation31_spill] sm:$0xff] }
 0x67b   :  { %14723 = vmatpush3.bf16.msra.mxu1 %v14720_v13  ;;  %v14724_v13 = vpack.c.bf16 %v11551_v12, %v11550_v30  ;;  %v23052_v30 = vld [vmem:[#allocation43_spill] sm:$0xff] }
 0x67c   :  { %v23054_v12 = vld [vmem:[#allocation47_spill] sm:$0xff] }
 0x67d   :  { %v15643_v15 = vpop.eup %15642  ;;  %14725 = vmatprep.subr.bf16.mxu1 %v14724_v13 }
 0x67e   :  { %v15645_v25 = vpop.eup %15644  ;;  %v3293_v51 = vmul.f32 %v15643_v15, %v3263_v59  ;;  %v23046_v15 = vld [vmem:[#allocation32_spill] sm:$0xff] }
 0x67f   :  { %v3292_v60 = vmul.f32 %v15645_v25, %v3258_v46  ;;  %14727 = vmatpush3.bf16.msra.mxu1 %v14724_v13  ;;  %v23047_v25 = vld [vmem:[#allocation35_spill] sm:$0xff]  ;;  %v23055_v13 = vld [vmem:[#allocation50_spill] sm:$0xff] }
 0x681   :  { %13739 = vmatprep.mubr.msk.f32.mxu1 %vm388_vm2, %v3292_v60  ;;  %v23048_v60 = vld [vmem:[#allocation36_spill] sm:$0xff] }
 0x682   :  { %13740 = vmatmul.mubr.msk.f32.gmra.mrb[74].mxu1 %vm388_vm2, %v3293_v51  ;;  %v23049_v51 = vld [vmem:[#allocation39_spill] sm:$0xff] }
 0x74d   :  { %v13738_v26 = vpop.f32.mrb[72].mxu1 }
 0x74e   :  { %v3383_v21 = vpop.f32.mrb[73].mxu1  ;;  %v19114_v47 = vadd.f32 %v13738_v26, %v11535_v11  ;;  %v23057_v26 = vld [vmem:[#allocation52_spill] sm:$0xff] }
 0x74f   :  { %v19112_v36 = vadd.f32 %v11535_v11, %v3383_v21  ;;  %v23058_v21 = vld [vmem:[#allocation53_spill] sm:$0xff] }
 0x750   :  { %23039 = vst [vmem:[#allocation6_spill] sm:$0xff] %v19114_v47 }
 0x751   :  { %23038 = vst [vmem:[#allocation5_spill] sm:$0xff] %v19112_v36  ;;  %13750 = vmatprep.mubr.msk.f32.mxu0 %vm388_vm2, %v19112_v36  ;;  %13764 = vmatprep.mubr.msk.f32.mxu1 %vm388_vm2, %v19112_v36 }
 0x752   :  { %13751 = vmatmul.mubr.msk.f32.vlgmr.msra.gmra.mrb[80].mxu0 %vm388_vm2, %v19114_v47  ;;  %13765 = vmatmul.mubr.msk.f32.vlgmr.msra.gmra.mrb[76].mxu1 %vm388_vm2, %v19114_v47 }
 0x755   :  { %v13741_v39 = vpop.f32.mrb[74].mxu1 }
 0x756   :  { %v3393_v1 = vpop.f32.mrb[75].mxu1  ;;  %v19126_v59 = vadd.f32 %v13741_v39, %v11535_v11  ;;  %v23059_v39 = vld [vmem:[#allocation56_spill] sm:$0xff] }
 0x757   :  { %v19124_v62 = vadd.f32 %v11535_v11, %v3393_v1  ;;  %v23056_v11 = vld [vmem:[#allocation51_spill] sm:$0xff]  ;;  %v23060_v1 = vld [vmem:[#allocation57_spill] sm:$0xff] }
 0x758   :  { %23041 = vst [vmem:[#allocation8_spill] sm:$0xff] %v19126_v59 }
 0x759   :  { %23040 = vst [vmem:[#allocation7_spill] sm:$0xff] %v19124_v62  ;;  %13753 = vmatprep.mubr.msk.f32.mxu0 %vm388_vm2, %v19124_v62  ;;  %13767 = vmatprep.mubr.msk.f32.mxu1 %vm388_vm2, %v19124_v62 }
 0x75a   :  { %13754 = vmatmul.mubr.msk.f32.gmra.mrb[82].mxu0 %vm388_vm2, %v19126_v59  ;;  %13768 = vmatmul.mubr.msk.f32.gmra.mrb[78].mxu1 %vm388_vm2, %v19126_v59  ;;  %v23118_v59 = vld [vmem:[#allocation29_spill] sm:$0xff] }
 0x75b   :  { %13786 = vmatprep.mubr.msk.f32.mxu0 %vm942_vm3, %v23042_v32 }
 0x825   :  { %v13752_v46 = vpop.f32.mrb[80].mxu0  ;;  %v13766_v0 = vpop.f32.mrb[76].mxu1 }
 0x826   :  { %v3485_v56 = vpop.f32.mrb[81].mxu0  ;;  %v3575_v38 = vpop.f32.mrb[77].mxu1 }
 0x827   :  { %v14728_v50 = vpack.c.bf16 %v13752_v46, %v3485_v56  ;;  %v14736_v3 = vpack.c.bf16 %v13766_v0, %v3575_v38  ;;  %v23061_v46 = vld [vmem:[#allocation60_spill] sm:$0xff]  ;;  %v23062_v0 = vld [vmem:[#allocation61_spill] sm:$0xff]  ;;  %v23063_v56 = vld [vmem:[#allocation62_spill] sm:$0xff] }
 0x828   :  { %v23064_v38 = vld [vmem:[#allocation63_spill] sm:$0xff] }
 0x829   :  { %14729 = vmatprep.subr.bf16.mxu0 %v14728_v50 }
 0x82a   :  { %14731 = vmatpush3.bf16.msra.mxu0 %v14728_v50  ;;  %v23065_v50 = vld [vmem:[#allocation66_spill] sm:$0xff] }
 0x82d   :  { %v13755_v7 = vpop.f32.mrb[82].mxu0  ;;  %v13769_v35 = vpop.f32.mrb[78].mxu1 }
 0x82e   :  { %v3495_v49 = vpop.f32.mrb[83].mxu0  ;;  %v3585_v34 = vpop.f32.mrb[79].mxu1 }
 0x82f   :  { %v14732_v41 = vpack.c.bf16 %v13755_v7, %v3495_v49  ;;  %v14740_v20 = vpack.c.bf16 %v13769_v35, %v3585_v34  ;;  %v23067_v7 = vld [vmem:[#allocation70_spill] sm:$0xff]  ;;  %v23068_v35 = vld [vmem:[#allocation71_spill] sm:$0xff]  ;;  %v23069_v49 = vld [vmem:[#allocation72_spill] sm:$0xff] }
 0x830   :  { %v23070_v34 = vld [vmem:[#allocation73_spill] sm:$0xff] }
 0x831   :  { %14733 = vmatprep.subr.bf16.mxu0 %v14732_v41 }
 0x832   :  { %14735 = vmatpush3.bf16.msra.mxu0 %v14732_v41  ;;  %v23071_v41 = vld [vmem:[#allocation76_spill] sm:$0xff] }
 0x833   :  { %14737 = vmatprep.subr.bf16.mxu0 %v14736_v3 }
 0x836   :  { %14739 = vmatpush3.bf16.msra.mxu0 %v14736_v3  ;;  %v23066_v3 = vld [vmem:[#allocation67_spill] sm:$0xff] }
 0x837   :  { %14741 = vmatprep.subr.bf16.mxu0 %v14740_v20 }
 0x83a   :  { %14743 = vmatpush3.bf16.msra.mxu0 %v14740_v20  ;;  %v23072_v20 = vld [vmem:[#allocation77_spill] sm:$0xff] }
 0x83b   :  { %14784 = vmatprep.subr.bf16.mxu0 %v23032_v37 }
 0x83d   :  { %13787 = vmatmul.mubr.msk.f32.vlgmr.msra.gmra.mrb[84].mxu0 %vm942_vm3, %v23043_v57  ;;  %v23116_v57 = vld [vmem:[#allocation25_spill] sm:$0xff] }
 0x83e   :  { %13789 = vmatprep.mubr.msk.f32.mxu0 %vm942_vm3, %v23044_v55 }
 0x841   :  { %13790 = vmatmul.mubr.msk.f32.gmra.mrb[86].mxu0 %vm942_vm3, %v23045_v58  ;;  %v23114_v58 = vld [vmem:[#allocation23_spill] sm:$0xff] }
 0x842   :  { %13792 = vmatprep.mubr.msk.f32.mxu0 %vm942_vm3, %v23046_v15 }
 0x845   :  { %13793 = vmatmul.mubr.msk.f32.gmra.mrb[88].mxu0 %vm942_vm3, %v23047_v25 }
 0x846   :  { %13795 = vmatprep.mubr.msk.f32.mxu0 %vm942_vm3, %v23048_v60 }
 0x849   :  { %13796 = vmatmul.mubr.msk.f32.gmra.mrb[90].mxu0 %vm942_vm3, %v23049_v51 }
 0x84a   :  { %13798 = vmatprep.mubr.msk.f32.mxu0 %vm942_vm3, %v23050_v18 }
 0x84d   :  { %13799 = vmatmul.mubr.msk.f32.gmra.mrb[92].mxu0 %vm942_vm3, %v23051_v42 }
 0x84e   :  { %13801 = vmatprep.mubr.msk.f32.mxu0 %vm942_vm3, %v23052_v30 }
 0x851   :  { %13802 = vmatmul.mubr.msk.f32.gmra.mrb[94].mxu0 %vm942_vm3, %v23053_v44 }
 0x852   :  { %13804 = vmatprep.mubr.msk.f32.mxu0 %vm942_vm3, %v23054_v12 }
 0x855   :  { %13805 = vmatmul.mubr.msk.f32.gmra.mrb[96].mxu0 %vm942_vm3, %v23055_v13 }
 0x856   :  { %13807 = vmatprep.mubr.msk.f32.mxu0 %vm942_vm3, %v23056_v11 }
 0x859   :  { %13808 = vmatmul.mubr.msk.f32.gmra.mrb[98].mxu0 %vm942_vm3, %v23057_v26 }
 0x85a   :  { %13810 = vmatprep.mubr.msk.f32.mxu0 %vm942_vm3, %v23058_v21 }
 0x85d   :  { %13811 = vmatmul.mubr.msk.f32.gmra.mrb[100].mxu0 %vm942_vm3, %v23059_v39  ;;  %v23105_v39 = vld [vmem:[#allocation11_spill] sm:$0xff] }
 0x85e   :  { %13813 = vmatprep.mubr.msk.f32.mxu0 %vm942_vm3, %v23060_v1 }
 0x861   :  { %13814 = vmatmul.mubr.msk.f32.gmra.mrb[102].mxu0 %vm942_vm3, %v23061_v46 }
 0x862   :  { %13816 = vmatprep.mubr.msk.f32.mxu0 %vm942_vm3, %v23062_v0  ;;  %v23104_v0 = vld [vmem:[#allocation13_spill] sm:$0xff] }
 0x865   :  { %13817 = vmatmul.mubr.msk.f32.gmra.mrb[104].mxu0 %vm942_vm3, %v23063_v56 }
 0x866   :  { %13819 = vmatprep.mubr.msk.f32.mxu0 %vm942_vm3, %v23064_v38  ;;  %v23101_v38 = vld [vmem:[#allocation129_spill] sm:$0xff] }
 0x869   :  { %13820 = vmatmul.mubr.msk.f32.gmra.mrb[106].mxu0 %vm942_vm3, %v23065_v50  ;;  %v23073_v50 = vld [vmem:[#allocation80_spill] sm:$0xff] }
 0x86a   :  { %13822 = vmatprep.mubr.msk.f32.mxu0 %vm942_vm3, %v23066_v3  ;;  %v23074_v3 = vld [vmem:[#allocation81_spill] sm:$0xff] }
 0x86d   :  { %13823 = vmatmul.mubr.msk.f32.gmra.mrb[108].mxu0 %vm942_vm3, %v23067_v7  ;;  %v23075_v7 = vld [vmem:[#allocation82_spill] sm:$0xff] }
 0x86e   :  { %13825 = vmatprep.mubr.msk.f32.mxu0 %vm942_vm3, %v23068_v35  ;;  %v23076_v35 = vld [vmem:[#allocation83_spill] sm:$0xff] }
 0x871   :  { %13826 = vmatmul.mubr.msk.f32.gmra.mrb[110].mxu0 %vm942_vm3, %v23069_v49  ;;  %v23077_v49 = vld [vmem:[#allocation86_spill] sm:$0xff] }
 0x872   :  { %13828 = vmatprep.mubr.msk.f32.mxu0 %vm942_vm3, %v23070_v34  ;;  %v23078_v34 = vld [vmem:[#allocation87_spill] sm:$0xff] }
 0x875   :  { %13829 = vmatmul.mubr.msk.f32.gmra.mrb[112].mxu0 %vm942_vm3, %v23071_v41  ;;  %v23079_v41 = vld [vmem:[#allocation90_spill] sm:$0xff] }
 0x876   :  { %13831 = vmatprep.mubr.msk.f32.mxu0 %vm942_vm3, %v23072_v20  ;;  %v23080_v20 = vld [vmem:[#allocation91_spill] sm:$0xff] }
 0x879   :  { %13832 = vmatmul.mubr.msk.f32.gmra.mrb[114].mxu0 %vm942_vm3, %v23073_v50  ;;  %v23081_v50 = vld [vmem:[#allocation92_spill] sm:$0xff] }
 0x87a   :  { %13834 = vmatprep.mubr.msk.f32.mxu0 %vm942_vm3, %v23074_v3  ;;  %v23082_v3 = vld [vmem:[#allocation93_spill] sm:$0xff] }
 0x87d   :  { %13835 = vmatmul.mubr.msk.f32.gmra.mrb[116].mxu0 %vm942_vm3, %v23075_v7  ;;  %v23083_v7 = vld [vmem:[#allocation96_spill] sm:$0xff] }
 0x87e   :  { %13837 = vmatprep.mubr.msk.f32.mxu0 %vm942_vm3, %v23076_v35  ;;  %v23084_v35 = vld [vmem:[#allocation97_spill] sm:$0xff] }
 0x881   :  { %13838 = vmatmul.mubr.msk.f32.gmra.mrb[118].mxu0 %vm942_vm3, %v23077_v49  ;;  %v23085_v49 = vld [vmem:[#allocation100_spill] sm:$0xff] }
 0x882   :  { %13840 = vmatprep.mubr.msk.f32.mxu0 %vm942_vm3, %v23078_v34  ;;  %v23086_v34 = vld [vmem:[#allocation101_spill] sm:$0xff] }
 0x885   :  { %13841 = vmatmul.mubr.msk.f32.gmra.mrb[120].mxu0 %vm942_vm3, %v23079_v41  ;;  %v23087_v41 = vld [vmem:[#allocation102_spill] sm:$0xff] }
 0x886   :  { %13843 = vmatprep.mubr.msk.f32.mxu0 %vm942_vm3, %v23080_v20  ;;  %v23088_v20 = vld [vmem:[#allocation103_spill] sm:$0xff] }
 0x889   :  { %13844 = vmatmul.mubr.msk.f32.gmra.mrb[122].mxu0 %vm942_vm3, %v23081_v50  ;;  %v23089_v50 = vld [vmem:[#allocation106_spill] sm:$0xff] }
 0x88a   :  { %13846 = vmatprep.mubr.msk.f32.mxu0 %vm942_vm3, %v23082_v3  ;;  %v23090_v3 = vld [vmem:[#allocation107_spill] sm:$0xff] }
 0x88d   :  { %13847 = vmatmul.mubr.msk.f32.gmra.mrb[124].mxu0 %vm942_vm3, %v23083_v7  ;;  %v23091_v7 = vld [vmem:[#allocation110_spill] sm:$0xff] }
 0x88e   :  { %13849 = vmatprep.mubr.msk.f32.mxu0 %vm942_vm3, %v23084_v35  ;;  %v23092_v35 = vld [vmem:[#allocation111_spill] sm:$0xff] }
 0x891   :  { %13850 = vmatmul.mubr.msk.f32.gmra.mrb[126].mxu0 %vm942_vm3, %v23085_v49  ;;  %v23093_v49 = vld [vmem:[#allocation112_spill] sm:$0xff] }
 0x892   :  { %13852 = vmatprep.mubr.msk.f32.mxu0 %vm942_vm3, %v23086_v34  ;;  %v23094_v34 = vld [vmem:[#allocation113_spill] sm:$0xff] }
 0x895   :  { %13853 = vmatmul.mubr.msk.f32.gmra.mrb[128].mxu0 %vm942_vm3, %v23087_v41  ;;  %v23095_v41 = vld [vmem:[#allocation116_spill] sm:$0xff] }
 0x896   :  { %13855 = vmatprep.mubr.msk.f32.mxu0 %vm942_vm3, %v23088_v20  ;;  %v23096_v20 = vld [vmem:[#allocation117_spill] sm:$0xff] }
 0x899   :  { %13856 = vmatmul.mubr.msk.f32.gmra.mrb[130].mxu0 %vm942_vm3, %v23089_v50  ;;  %v23097_v50 = vld [vmem:[#allocation120_spill] sm:$0xff] }
 0x89a   :  { %13858 = vmatprep.mubr.msk.f32.mxu0 %vm942_vm3, %v23090_v3  ;;  %v23098_v3 = vld [vmem:[#allocation121_spill] sm:$0xff] }
 0x89d   :  { %13859 = vmatmul.mubr.msk.f32.gmra.mrb[132].mxu0 %vm942_vm3, %v23091_v7  ;;  %v23099_v7 = vld [vmem:[#allocation122_spill] sm:$0xff] }
 0x89e   :  { %13861 = vmatprep.mubr.msk.f32.mxu0 %vm942_vm3, %v23092_v35  ;;  %v11680_v35 = vld [vmem:[%s22601_s10 + $0x20] sm:$0xff] }
 0x8a1   :  { %13862 = vmatmul.mubr.msk.f32.gmra.mrb[134].mxu0 %vm942_vm3, %v23093_v49 }
 0x8a2   :  { %13864 = vmatprep.mubr.msk.f32.mxu0 %vm942_vm3, %v23094_v34  ;;  %v11681_v34 = vld [vmem:[%s22601_s10 + $0x28] sm:$0xff] }
 0x8a3   :  { %v14744_v49 = vpack.c.bf16 %v11681_v34, %v11680_v35  ;;  %v19274_v35 = vld [vmem:[%s22599_s8 + $0x1] ss:$0 sm:$0xff] }
 0x8a4   :  { %v3605_v46 = vmul.f32 %v19274_v35, %v23104_v0  ;;  %v3604_v21 = vmul.f32 %v19274_v35, %v23105_v39  ;;  %v23107_v39 = vld [vmem:[#allocation14_spill] sm:$0xff] }
 0x8a5   :  { %13865 = vmatmul.mubr.msk.f32.gmra.mrb[136].mxu0 %vm942_vm3, %v23095_v41  ;;  %14745 = vmatprep.subr.bf16.mxu1 %v14744_v49  ;;  %v3606_v13 = vmul.f32 %v19274_v35, %v23107_v39  ;;  %v23109_v39 = vld [vmem:[#allocation16_spill] sm:$0xff] }
 0x8a6   :  { %13867 = vmatprep.mubr.msk.f32.mxu0 %vm942_vm3, %v23096_v20  ;;  %v23100_v20 = vld [vmem:[#allocation123_spill] sm:$0xff]  ;;  %14747 = vmatpush3.bf16.msra.mxu1 %v14744_v49  ;;  %v23102_v49 = vld [vmem:[#allocation12_spill] sm:$0xff]  ;;  %v3608_v44 = vmul.f32 %v19274_v35, %v23109_v39  ;;  %v23111_v39 = vld [vmem:[#allocation18_spill] sm:$0xff] }
 0x8a7   :  { %v3603_v34 = vmul.f32 %v19274_v35, %v23102_v49  ;;  %v3610_v42 = vmul.f32 %v19274_v35, %v23111_v39 }
 0x8a9   :  { %13868 = vmatmul.mubr.msk.f32.gmra.mrb[138].mxu0 %vm942_vm3, %v23097_v50  ;;  %v11683_v50 = vld [vmem:[%s22601_s10 + $0x38] sm:$0xff] }
 0x8aa   :  { %13870 = vmatprep.mubr.msk.f32.mxu0 %vm942_vm3, %v23098_v3  ;;  %v11682_v3 = vld [vmem:[%s22601_s10 + $0x30] sm:$0xff] }
 0x8ab   :  { %v14748_v41 = vpack.c.bf16 %v11683_v50, %v11682_v3  ;;  %v19281_v50 = vld [vmem:[%s22600_s9 + $0x1] ss:$0 sm:$0xff]  ;;  %v23103_v3 = vld [vmem:[#allocation10_spill] sm:$0xff] }
 0x8ad   :  { %13871 = vmatmul.mubr.msk.f32.gmra.mrb[140].mxu0 %vm942_vm3, %v23099_v7  ;;  %14749 = vmatprep.subr.bf16.mxu1 %v14748_v41 }
 0x8ae   :  { %13873 = vmatprep.mubr.msk.f32.mxu0 %vm942_vm3, %v23100_v20  ;;  %14751 = vmatpush3.bf16.msra.mxu1 %v14748_v41  ;;  %v3602_v41 = vmul.f32 %v19274_v35, %v23103_v3 }
 0x8b1   :  { %13874 = vmatmul.mubr.msk.f32.gmra.mrb[142].mxu0 %vm942_vm3, %v23101_v38 }
 0x8b2   :  { %11806 = vmatprep.mubr.msk.f32.mxu0 %vm2951_vm4, %v18636_v61 }
 0x910   :  { %v13788_v20 = vpop.f32.mrb[84].mxu0 }
 0x911   :  { %v3734_v38 = vadd.f32 %v13788_v20, %v3603_v34  ;;  %v3728_v7 = vpop.f32.mrb[85].mxu0  ;;  %v23106_v34 = vld [vmem:[#allocation15_spill] sm:$0xff] }
 0x912   :  { %v3729_v61 = vadd.f32 %v3728_v7, %v3602_v41  ;;  %v3607_v41 = vmul.f32 %v19274_v35, %v23106_v34 }
 0x913   :  { %v19286_v56 = vadd.f32 %v19281_v50, %v3734_v38 }
 0x914   :  { %v19291_v49 = vadd.f32 %v19281_v50, %v3729_v61  ;;  %v13791_v1 = vpop.f32.mrb[86].mxu0 }
 0x915   :  { %v11621_v26 = vmul.f32 -1.442695, %v19286_v56  ;;  %v3744_v11 = vadd.f32 %v13791_v1, %v3605_v46  ;;  %v3738_v3 = vpop.f32.mrb[87].mxu0 }
 0x916   :  { %v11620_v20 = vmul.f32 -1.442695, %v19291_v49  ;;  %v3739_v7 = vadd.f32 %v3738_v3, %v3604_v21  ;;  %v23108_v3 = vld [vmem:[#allocation17_spill] sm:$0xff] }
 0x917   :  { %15646 = vpow2.f32 %v11621_v26  ;;  %v19298_v38 = vadd.f32 %v19281_v50, %v3744_v11 }
 0x918   :  { %15648 = vpow2.f32 %v11620_v20  ;;  %v19303_v61 = vadd.f32 %v19281_v50, %v3739_v7  ;;  %v13794_v0 = vpop.f32.mrb[88].mxu0  ;;  %v3609_v20 = vmul.f32 %v19274_v35, %v23108_v3 }
 0x919   :  { %v11623_v1 = vmul.f32 -1.442695, %v19298_v38  ;;  %v3754_v46 = vadd.f32 %v13794_v0, %v3607_v41  ;;  %v3748_v12 = vpop.f32.mrb[89].mxu0 }
 0x91a   :  { %v11622_v26 = vmul.f32 -1.442695, %v19303_v61  ;;  %v3749_v21 = vadd.f32 %v3748_v12, %v3606_v13 }
 0x91b   :  { %15650 = vpow2.f32 %v11623_v1  ;;  %v19310_v11 = vadd.f32 %v19281_v50, %v3754_v46  ;;  %v23110_v46 = vld [vmem:[#allocation19_spill] sm:$0xff] }
 0x91c   :  { %15652 = vpow2.f32 %v11622_v26  ;;  %v19315_v7 = vadd.f32 %v19281_v50, %v3749_v21  ;;  %v13797_v34 = vpop.f32.mrb[90].mxu0  ;;  %v3611_v26 = vmul.f32 %v19274_v35, %v23110_v46 }
 0x91d   :  { %v11625_v0 = vmul.f32 -1.442695, %v19310_v11  ;;  %v3764_v41 = vadd.f32 %v13797_v34, %v3609_v20  ;;  %v3758_v30 = vpop.f32.mrb[91].mxu0 }
 0x91e   :  { %v11624_v12 = vmul.f32 -1.442695, %v19315_v7  ;;  %v3759_v13 = vadd.f32 %v3758_v30, %v3608_v44 }
 0x91f   :  { %15654 = vpow2.f32 %v11625_v0  ;;  %v19322_v1 = vadd.f32 %v19281_v50, %v3764_v41 }
 0x920   :  { %15656 = vpow2.f32 %v11624_v12  ;;  %v19327_v21 = vadd.f32 %v19281_v50, %v3759_v13  ;;  %v13800_v3 = vpop.f32.mrb[92].mxu0  ;;  %v23112_v13 = vld [vmem:[#allocation21_spill] sm:$0xff] }
 0x921   :  { %v15647_v34 = vpop.eup %15646  ;;  %v11627_v20 = vmul.f32 -1.442695, %v19322_v1  ;;  %v3774_v18 = vadd.f32 %v13800_v3, %v3611_v26  ;;  %v3768_v30 = vpop.f32.mrb[93].mxu0  ;;  %v3613_v46 = vmul.f32 %v19274_v35, %v23112_v13  ;;  %v23113_v3 = vld [vmem:[#allocation20_spill] sm:$0xff] }
 0x922   :  { %v15649_v44 = vpop.eup %15648  ;;  %v4276_v0 = vadd.f32 1.0, %v15647_v34  ;;  %v11626_v41 = vmul.f32 -1.442695, %v19327_v21  ;;  %v3769_v51 = vadd.f32 %v3768_v30, %v3610_v42  ;;  %v3612_v26 = vmul.f32 %v19274_v35, %v23113_v3 }
 0x923   :  { %v4275_v60 = vadd.f32 1.0, %v15649_v44  ;;  %15658 = vpow2.f32 %v11627_v20  ;;  %v19334_v12 = vadd.f32 %v19281_v50, %v3774_v18  ;;  %v3615_v3 = vmul.f32 %v19274_v35, %v23114_v58 }
 0x924   :  { %15660 = vrcp.f32 %v4276_v0  ;;  %v19339_v39 = vadd.f32 %v19281_v50, %v3769_v51  ;;  %v13803_v25 = vpop.f32.mrb[94].mxu0 }
 0x925   :  { %v15651_v34 = vpop.eup %15650  ;;  %15662 = vrcp.f32 %v4275_v60  ;;  %v11629_v42 = vmul.f32 -1.442695, %v19334_v12  ;;  %v3784_v30 = vadd.f32 %v13803_v25, %v3613_v46  ;;  %v3778_v20 = vpop.f32.mrb[95].mxu0  ;;  %v23115_v46 = vld [vmem:[#allocation22_spill] sm:$0xff] }
 0x926   :  { %v15653_v44 = vpop.eup %15652  ;;  %v4278_v18 = vadd.f32 1.0, %v15651_v34  ;;  %15664 = vpow2.f32 %v11626_v41  ;;  %v11628_v15 = vmul.f32 -1.442695, %v19339_v39  ;;  %v3779_v13 = vadd.f32 %v3778_v20, %v3612_v26 }
 0x927   :  { %v4277_v0 = vadd.f32 1.0, %v15653_v44  ;;  %15666 = vpow2.f32 %v11629_v42  ;;  %v19346_v51 = vadd.f32 %v19281_v50, %v3784_v30  ;;  %v3614_v34 = vmul.f32 %v19274_v35, %v23115_v46 }
 0x928   :  { %15668 = vrcp.f32 %v4278_v18  ;;  %v19351_v60 = vadd.f32 %v19281_v50, %v3779_v13  ;;  %v13806_v25 = vpop.f32.mrb[96].mxu0  ;;  %v3617_v46 = vmul.f32 %v19274_v35, %v23116_v57 }
 0x929   :  { %v15655_v41 = vpop.eup %15654  ;;  %15670 = vrcp.f32 %v4277_v0  ;;  %v11631_v26 = vmul.f32 -1.442695, %v19346_v51  ;;  %v3794_v20 = vadd.f32 %v13806_v25, %v3615_v3  ;;  %v3788_v42 = vpop.f32.mrb[97].mxu0  ;;  %v23117_v25 = vld [vmem:[#allocation24_spill] sm:$0xff] }
 0x92a   :  { %v15657_v44 = vpop.eup %15656  ;;  %v4280_v30 = vadd.f32 1.0, %v15655_v41  ;;  %15672 = vpow2.f32 %v11628_v15  ;;  %v11630_v55 = vmul.f32 -1.442695, %v19351_v60  ;;  %v3789_v58 = vadd.f32 %v3788_v42, %v3614_v34 }
 0x92b   :  { %v4279_v18 = vadd.f32 1.0, %v15657_v44  ;;  %15674 = vpow2.f32 %v11631_v26  ;;  %v19358_v13 = vadd.f32 %v19281_v50, %v3794_v20  ;;  %v3616_v41 = vmul.f32 %v19274_v35, %v23117_v25 }
 0x92c   :  { %15676 = vrcp.f32 %v4280_v30  ;;  %v19363_v0 = vadd.f32 %v19281_v50, %v3789_v58  ;;  %v13809_v3 = vpop.f32.mrb[98].mxu0  ;;  %v3619_v25 = vmul.f32 %v19274_v35, %v23118_v59 }
 0x92d   :  { %v15659_v15 = vpop.eup %15658  ;;  %15678 = vrcp.f32 %v4279_v18  ;;  %v11633_v34 = vmul.f32 -1.442695, %v19358_v13  ;;  %v3804_v42 = vadd.f32 %v13809_v3, %v3617_v46  ;;  %v3798_v26 = vpop.f32.mrb[99].mxu0 }
 0x92e   :  { %v15661_v44 = vpop.eup %15660  ;;  %v4282_v20 = vadd.f32 1.0, %v15659_v15  ;;  %15680 = vpow2.f32 %v11630_v55  ;;  %v11632_v32 = vmul.f32 -1.442695, %v19363_v0  ;;  %v3799_v57 = vadd.f32 %v3798_v26, %v3616_v41  ;;  %v23119_v15 = vld [vmem:[#allocation26_spill] sm:$0xff] }
 0x92f   :  { %v15663_v30 = vpop.eup %15662  ;;  %15682 = vpow2.f32 %v11633_v34  ;;  %v19370_v58 = vadd.f32 %v19281_v50, %v3804_v42  ;;  %v4456_v18 = vmul.f32 %v15661_v44, %v19286_v56  ;;  %v3618_v41 = vmul.f32 %v19274_v35, %v23119_v15 }
 0x930   :  { %v15665_v62 = vpop.eup %15664  ;;  %v4455_v46 = vmul.f32 %v15663_v30, %v19291_v49  ;;  %v19377_v3 = vadd.f32 %v19281_v50, %v3799_v57  ;;  %v13812_v55 = vpop.f32.mrb[100].mxu0  ;;  %15684 = vpow2.f32 %v11632_v32  ;;  %v23120_v32 = vld [vmem:[#allocation30_spill] sm:$0xff] }
 0x931   :  { %v15667_v26 = vpop.eup %15666  ;;  %v4281_v34 = vadd.f32 1.0, %v15665_v62  ;;  %v11635_v42 = vmul.f32 -1.442695, %v19370_v58  ;;  %v3814_v47 = vadd.f32 %v13812_v55, %v3619_v25  ;;  %v3808_v36 = vpop.f32.mrb[101].mxu0  ;;  %15686 = vrcp.f32 %v4282_v20 }
 0x932   :  { %v15669_v59 = vpop.eup %15668  ;;  %v4284_v33 = vadd.f32 1.0, %v15667_v26  ;;  %v11634_v56 = vmul.f32 -1.442695, %v19377_v3  ;;  %v3809_v49 = vadd.f32 %v3808_v36, %v3618_v41  ;;  %13884 = vmatprep.mubr.msk.f32.mxu1 %vm388_vm2, %v4455_v46  ;;  %v3621_v62 = vmul.f32 %v19274_v35, %v17621_v4 }
 0x933   :  { %v15671_v57 = vpop.eup %15670  ;;  %15688 = vrcp.f32 %v4281_v34  ;;  %v19385_v44 = vadd.f32 %v19281_v50, %v3814_v47  ;;  %13885 = vmatmul.mubr.msk.f32.vlgmr.msra.gmra.mrb[80].mxu1 %vm388_vm2, %v4456_v18  ;;  %v3620_v25 = vmul.f32 %v19274_v35, %v23120_v32  ;;  %v4458_v30 = vmul.f32 %v15669_v59, %v19298_v38 }
 0x934   :  { %v15673_v20 = vpop.eup %15672  ;;  %v4457_v36 = vmul.f32 %v15671_v57, %v19303_v61  ;;  %15690 = vrcp.f32 %v4284_v33  ;;  %v19395_v46 = vadd.f32 %v19281_v50, %v3809_v49  ;;  %v13815_v55 = vpop.f32.mrb[102].mxu0  ;;  %v3623_v61 = vmul.f32 %v19274_v35, %v17636_v9 }
 0x935   :  { %v15675_v47 = vpop.eup %15674  ;;  %v4283_v41 = vadd.f32 1.0, %v15673_v20  ;;  %15692 = vpow2.f32 %v11635_v42  ;;  %v11637_v18 = vmul.f32 -1.442695, %v19385_v44  ;;  %v3824_v26 = vadd.f32 %v13815_v55, %v3621_v62  ;;  %v3818_v34 = vpop.f32.mrb[103].mxu0 }
 0x936   :  { %v15677_v4 = vpop.eup %15676  ;;  %v4286_v15 = vadd.f32 1.0, %v15675_v47  ;;  %15694 = vpow2.f32 %v11634_v56  ;;  %v11636_v32 = vmul.f32 -1.442695, %v19395_v46  ;;  %v3819_v59 = vadd.f32 %v3818_v34, %v3620_v25  ;;  %13887 = vmatprep.mubr.msk.f32.mxu1 %vm388_vm2, %v4457_v36 }
 0x937   :  { %v15679_v33 = vpop.eup %15678  ;;  %15696 = vrcp.f32 %v4283_v41  ;;  %v19401_v38 = vadd.f32 %v19281_v50, %v3824_v26  ;;  %13888 = vmatmul.mubr.msk.f32.gmra.mrb[82].mxu1 %vm388_vm2, %v4458_v30  ;;  %v3622_v42 = vmul.f32 %v19274_v35, %v17623_v5  ;;  %v4460_v56 = vmul.f32 %v15677_v4, %v19310_v11 }
 0x938   :  { %v15681_v49 = vpop.eup %15680  ;;  %v4459_v57 = vmul.f32 %v15679_v33, %v19315_v7  ;;  %15698 = vrcp.f32 %v4286_v15  ;;  %v19411_v62 = vadd.f32 %v19281_v50, %v3819_v59  ;;  %v13818_v25 = vpop.f32.mrb[104].mxu0  ;;  %v3625_v15 = vmul.f32 %v19274_v35, %v17651_v14 }
 0x939   :  { %v15683_v20 = vpop.eup %15682  ;;  %v4285_v36 = vadd.f32 1.0, %v15681_v49  ;;  %15700 = vpow2.f32 %v11637_v18  ;;  %v11639_v30 = vmul.f32 -1.442695, %v19401_v38  ;;  %v3834_v55 = vadd.f32 %v13818_v25, %v3623_v61  ;;  %v3828_v47 = vpop.f32.mrb[105].mxu0 }
 0x93a   :  { %v4288_v41 = vadd.f32 1.0, %v15683_v20  ;;  %15702 = vpow2.f32 %v11636_v32  ;;  %v3829_v26 = vadd.f32 %v3828_v47, %v3622_v42  ;;  %13890 = vmatprep.mubr.msk.f32.mxu1 %vm388_vm2, %v4459_v57  ;;  %v15685_v4 = vpop.eup %15684  ;;  %v11638_v11 = vmul.f32 -1.442695, %v19411_v62 }
 0x93b   :  { %15704 = vrcp.f32 %v4285_v36  ;;  %v19417_v7 = vadd.f32 %v19281_v50, %v3834_v55  ;;  %13891 = vmatmul.mubr.msk.f32.gmra.mrb[84].mxu1 %vm388_vm2, %v4460_v56  ;;  %v15687_v18 = vpop.eup %15686  ;;  %v4287_v34 = vadd.f32 1.0, %v15685_v4  ;;  %v3624_v33 = vmul.f32 %v19274_v35, %v17638_v10 }
 0x93c   :  { %15706 = vrcp.f32 %v4288_v41  ;;  %v19423_v32 = vadd.f32 %v19281_v50, %v3829_v26  ;;  %v13821_v59 = vpop.f32.mrb[106].mxu0  ;;  %v3627_v56 = vmul.f32 %v19274_v35, %v17666_v19  ;;  %v4462_v41 = vmul.f32 %v15687_v18, %v19322_v1 }
 0x93d   :  { %v15689_v61 = vpop.eup %15688  ;;  %15708 = vpow2.f32 %v11639_v30  ;;  %v11641_v42 = vmul.f32 -1.442695, %v19417_v7  ;;  %v3844_v49 = vadd.f32 %v13821_v59, %v3625_v15  ;;  %v3838_v57 = vpop.f32.mrb[107].mxu0  ;;  %v3626_v26 = vmul.f32 %v19274_v35, %v17661_v17 }
 0x93e   :  { %v15691_v25 = vpop.eup %15690  ;;  %v4461_v20 = vmul.f32 %v15689_v61, %v19327_v21  ;;  %15710 = vrcp.f32 %v4287_v34  ;;  %v11640_v36 = vmul.f32 -1.442695, %v19423_v32  ;;  %v3839_v55 = vadd.f32 %v3838_v57, %v3624_v33 }
 0x93f   :  { %v15693_v47 = vpop.eup %15692  ;;  %15712 = vpow2.f32 %v11638_v11  ;;  %v19434_v30 = vadd.f32 %v19281_v50, %v3844_v49  ;;  %v3629_v34 = vmul.f32 %v19274_v35, %v17681_v24 }
 0x940   :  { %v15695_v4 = vpop.eup %15694  ;;  %v4290_v15 = vadd.f32 1.0, %v15693_v47  ;;  %15714 = vpow2.f32 %v11641_v42  ;;  %v19439_v59 = vadd.f32 %v19281_v50, %v3839_v55  ;;  %13893 = vmatprep.mubr.msk.f32.mxu1 %vm388_vm2, %v4461_v20  ;;  %v13824_v21 = vpop.f32.mrb[108].mxu0  ;;  %v4464_v47 = vmul.f32 %v15691_v25, %v19334_v12 }
 0x941   :  { %v15697_v1 = vpop.eup %15696  ;;  %v4289_v11 = vadd.f32 1.0, %v15695_v4  ;;  %15716 = vpow2.f32 %v11640_v36  ;;  %v11643_v18 = vmul.f32 -1.442695, %v19434_v30  ;;  %13894 = vmatmul.mubr.msk.f32.gmra.mrb[86].mxu1 %vm388_vm2, %v4462_v41  ;;  %v3854_v33 = vadd.f32 %v13824_v21, %v3627_v56  ;;  %v3848_v61 = vpop.f32.mrb[109].mxu0 }
 0x942   :  { %v15699_v49 = vpop.eup %15698  ;;  %v4463_v42 = vmul.f32 %v15697_v1, %v19339_v39  ;;  %15718 = vrcp.f32 %v4290_v15  ;;  %v11642_v57 = vmul.f32 -1.442695, %v19439_v59  ;;  %v3849_v20 = vadd.f32 %v3848_v61, %v3626_v26 }
 0x943   :  { %v15701_v55 = vpop.eup %15700  ;;  %15720 = vrcp.f32 %v4289_v11  ;;  %v19450_v4 = vadd.f32 %v19281_v50, %v3854_v33  ;;  %v3628_v36 = vmul.f32 %v19274_v35, %v17679_v23  ;;  %v3631_v26 = vmul.f32 %v19274_v35, %v17704_v48 }
 0x944   :  { %v15703_v41 = vpop.eup %15702  ;;  %v4292_v56 = vadd.f32 1.0, %v15701_v55  ;;  %15722 = vpow2.f32 %v11643_v18  ;;  %v19455_v21 = vadd.f32 %v19281_v50, %v3849_v20  ;;  %13896 = vmatprep.mubr.msk.f32.mxu1 %vm388_vm2, %v4463_v42  ;;  %v13827_v39 = vpop.f32.mrb[110].mxu0  ;;  %v4466_v55 = vmul.f32 %v15699_v49, %v19346_v51 }
 0x945   :  { %v15705_v12 = vpop.eup %15704  ;;  %v4291_v25 = vadd.f32 1.0, %v15703_v41  ;;  %15724 = vpow2.f32 %v11642_v57  ;;  %v11645_v15 = vmul.f32 -1.442695, %v19450_v4  ;;  %13897 = vmatmul.mubr.msk.f32.gmra.mrb[88].mxu1 %vm388_vm2, %v4464_v47  ;;  %v3864_v1 = vadd.f32 %v13827_v39, %v3629_v34  ;;  %v3858_v11 = vpop.f32.mrb[111].mxu0 }
 0x946   :  { %v15707_v33 = vpop.eup %15706  ;;  %v4465_v18 = vmul.f32 %v15705_v12, %v19351_v60  ;;  %15726 = vrcp.f32 %v4292_v56  ;;  %v11644_v61 = vmul.f32 -1.442695, %v19455_v21  ;;  %v3859_v42 = vadd.f32 %v3858_v11, %v3628_v36  ;;  %v23121_v36 = vld [vmem:[#allocation59_spill] sm:$0xff] }
 0x947   :  { %v15709_v20 = vpop.eup %15708  ;;  %15728 = vrcp.f32 %v4291_v25  ;;  %v19466_v41 = vadd.f32 %v19281_v50, %v3864_v1  ;;  %v3630_v57 = vmul.f32 %v19274_v35, %v17702_v43  ;;  %v3633_v56 = vmul.f32 %v19274_v35, %v23121_v36 }
 0x948   :  { %v15711_v47 = vpop.eup %15710  ;;  %v4294_v34 = vadd.f32 1.0, %v15709_v20  ;;  %15730 = vpow2.f32 %v11645_v15  ;;  %v19471_v39 = vadd.f32 %v19281_v50, %v3859_v42  ;;  %13899 = vmatprep.mubr.msk.f32.mxu1 %vm388_vm2, %v4465_v18  ;;  %v13830_v60 = vpop.f32.mrb[112].mxu0  ;;  %v4468_v11 = vmul.f32 %v15707_v33, %v19358_v13 }
 0x949   :  { %v15713_v51 = vpop.eup %15712  ;;  %v4467_v49 = vmul.f32 %v15711_v47, %v19363_v0  ;;  %15732 = vpow2.f32 %v11644_v61  ;;  %v11647_v12 = vmul.f32 -1.442695, %v19466_v41  ;;  %13900 = vmatmul.mubr.msk.f32.gmra.mrb[90].mxu1 %vm388_vm2, %v4466_v55  ;;  %v3874_v25 = vadd.f32 %v13830_v60, %v3631_v26  ;;  %v3868_v1 = vpop.f32.mrb[113].mxu0 }
 0x94a   :  { %v15715_v15 = vpop.eup %15714  ;;  %15734 = vrcp.f32 %v4294_v34  ;;  %v4293_v42 = vadd.f32 1.0, %v15713_v51  ;;  %v3869_v18 = vadd.f32 %v3868_v1, %v3630_v57  ;;  %v11646_v36 = vmul.f32 -1.442695, %v19471_v39 }
 0x94b   :  { %v15717_v20 = vpop.eup %15716  ;;  %v4296_v43 = vadd.f32 1.0, %v15715_v15  ;;  %15736 = vpow2.f32 %v11647_v12  ;;  %v19482_v0 = vadd.f32 %v19281_v50, %v3874_v25  ;;  %13902 = vmatprep.mubr.msk.f32.mxu1 %vm388_vm2, %v4467_v49  ;;  %v3632_v33 = vmul.f32 %v19274_v35, %v17720_v53 }
 0x94c   :  { %v15719_v61 = vpop.eup %15718  ;;  %15738 = vrcp.f32 %v4293_v42  ;;  %v4295_v26 = vadd.f32 1.0, %v15717_v20  ;;  %v19486_v55 = vadd.f32 %v19281_v50, %v3869_v18  ;;  %v13833_v13 = vpop.f32.mrb[114].mxu0  ;;  %v3635_v51 = vmul.f32 %v19274_v35, %v17745_v40 }
 0x94d   :  { %v15721_v57 = vpop.eup %15720  ;;  %15740 = vrcp.f32 %v4296_v43  ;;  %v11649_v47 = vmul.f32 -1.442695, %v19482_v0  ;;  %13903 = vmatmul.mubr.msk.f32.gmra.mrb[92].mxu1 %vm388_vm2, %v4468_v11  ;;  %v3884_v34 = vadd.f32 %v13833_v13, %v3633_v56  ;;  %v3878_v60 = vpop.f32.mrb[115].mxu0  ;;  %v4470_v12 = vmul.f32 %v15719_v61, %v19370_v58 }
 0x94e   :  { %v15723_v49 = vpop.eup %15722  ;;  %v4469_v25 = vmul.f32 %v15721_v57, %v19377_v3  ;;  %15742 = vrcp.f32 %v4295_v26  ;;  %v3879_v1 = vadd.f32 %v3878_v60, %v3632_v33  ;;  %v11648_v43 = vmul.f32 -1.442695, %v19486_v55  ;;  %v23122_v3 = vld [vmem:[#allocation64_spill] sm:$0xff]  ;;  %v23123_v57 = vld [vmem:[#allocation69_spill] sm:$0xff] }
 0x94f   :  { %v15725_v15 = vpop.eup %15724  ;;  %v4298_v42 = vadd.f32 1.0, %v15723_v49  ;;  %15744 = vpow2.f32 %v11646_v36  ;;  %v19498_v18 = vadd.f32 %v19281_v50, %v3884_v34  ;;  %v3634_v61 = vmul.f32 %v19274_v35, %v23122_v3 }
 0x950   :  { %v15727_v56 = vpop.eup %15726  ;;  %v4297_v11 = vadd.f32 1.0, %v15725_v15  ;;  %15746 = vpow2.f32 %v11649_v47  ;;  %v19501_v20 = vadd.f32 %v19281_v50, %v3879_v1  ;;  %13905 = vmatprep.mubr.msk.f32.mxu1 %vm388_vm2, %v4469_v25  ;;  %v13836_v58 = vpop.f32.mrb[116].mxu0  ;;  %v3637_v47 = vmul.f32 %v19274_v35, %v23123_v57  ;;  %v23126_v57 = vld [vmem:[#allocation74_spill] sm:$0xff] }
 0x951   :  { %v15729_v26 = vpop.eup %15728  ;;  %15748 = vrcp.f32 %v4298_v42  ;;  %v11651_v36 = vmul.f32 -1.442695, %v19498_v18  ;;  %13906 = vmatmul.mubr.msk.f32.gmra.mrb[94].mxu1 %vm388_vm2, %v4470_v12  ;;  %v3894_v13 = vadd.f32 %v13836_v58, %v3635_v51  ;;  %v3888_v33 = vpop.f32.mrb[117].mxu0  ;;  %v4472_v60 = vmul.f32 %v15727_v56, %v19385_v44 }
 0x952   :  { %v15731_v34 = vpop.eup %15730  ;;  %v4471_v49 = vmul.f32 %v15729_v26, %v19395_v46  ;;  %15750 = vrcp.f32 %v4297_v11  ;;  %v3889_v25 = vadd.f32 %v3888_v33, %v3634_v61  ;;  %v11650_v42 = vmul.f32 -1.442695, %v19501_v20  ;;  %v23124_v46 = vld [vmem:[#allocation68_spill] sm:$0xff] }
 0x953   :  { %v15733_v1 = vpop.eup %15732  ;;  %v4300_v15 = vadd.f32 1.0, %v15731_v34  ;;  %15752 = vpow2.f32 %v11648_v43  ;;  %v19514_v3 = vadd.f32 %v19281_v50, %v3894_v13  ;;  %v3636_v56 = vmul.f32 %v19274_v35, %v23124_v46  ;;  %v23125_v13 = vld [vmem:[#allocation75_spill] sm:$0xff] }
 0x954   :  { %v15735_v51 = vpop.eup %15734  ;;  %v4299_v12 = vadd.f32 1.0, %v15733_v1  ;;  %15754 = vpow2.f32 %v11651_v36  ;;  %v19517_v58 = vadd.f32 %v19281_v50, %v3889_v25  ;;  %13908 = vmatprep.mubr.msk.f32.mxu1 %vm388_vm2, %v4471_v49  ;;  %v13839_v44 = vpop.f32.mrb[118].mxu0  ;;  %v3639_v36 = vmul.f32 %v19274_v35, %v23125_v13  ;;  %v23127_v13 = vld [vmem:[#allocation79_spill] sm:$0xff] }
 0x955   :  { %v15737_v11 = vpop.eup %15736  ;;  %15756 = vrcp.f32 %v4300_v15  ;;  %v11653_v43 = vmul.f32 -1.442695, %v19514_v3  ;;  %13909 = vmatmul.mubr.msk.f32.gmra.mrb[96].mxu1 %vm388_vm2, %v4472_v60  ;;  %v3904_v61 = vadd.f32 %v13839_v44, %v3637_v47  ;;  %v3898_v26 = vpop.f32.mrb[119].mxu0  ;;  %v3638_v47 = vmul.f32 %v19274_v35, %v23126_v57 }
 0x956   :  { %v15739_v33 = vpop.eup %15738  ;;  %15758 = vrcp.f32 %v4299_v12  ;;  %v4302_v34 = vadd.f32 1.0, %v15737_v11  ;;  %v11652_v49 = vmul.f32 -1.442695, %v19517_v58  ;;  %v3899_v25 = vadd.f32 %v3898_v26, %v3636_v56 }
 0x957   :  { %v15741_v1 = vpop.eup %15740  ;;  %v4473_v46 = vmul.f32 %v15739_v33, %v19411_v62  ;;  %15760 = vpow2.f32 %v11650_v42  ;;  %v19529_v15 = vadd.f32 %v19281_v50, %v3904_v61  ;;  %v4474_v44 = vmul.f32 %v15735_v51, %v19401_v38 }
 0x958   :  { %v15743_v60 = vpop.eup %15742  ;;  %15762 = vrcp.f32 %v4302_v34  ;;  %v19535_v12 = vadd.f32 %v19281_v50, %v3899_v25  ;;  %v13842_v11 = vpop.f32.mrb[120].mxu0  ;;  %v3641_v56 = vmul.f32 %v19274_v35, %v23127_v13 }
 0x959   :  { %v15745_v26 = vpop.eup %15744  ;;  %v4475_v62 = vmul.f32 %v15743_v60, %v19423_v32  ;;  %15764 = vpow2.f32 %v11653_v43  ;;  %v11655_v42 = vmul.f32 -1.442695, %v19529_v15  ;;  %13911 = vmatprep.mubr.msk.f32.mxu1 %vm388_vm2, %v4473_v46  ;;  %v3914_v61 = vadd.f32 %v13842_v11, %v3639_v36  ;;  %v3908_v33 = vpop.f32.mrb[121].mxu0  ;;  %v23128_v43 = vld [vmem:[#allocation78_spill] sm:$0xff] }
 0x95a   :  { %v15747_v57 = vpop.eup %15746  ;;  %v4301_v38 = vadd.f32 1.0, %v15745_v26  ;;  %15766 = vpow2.f32 %v11652_v49  ;;  %v11654_v51 = vmul.f32 -1.442695, %v19535_v12  ;;  %13912 = vmatmul.mubr.msk.f32.gmra.mrb[98].mxu1 %vm388_vm2, %v4474_v44  ;;  %v3909_v34 = vadd.f32 %v3908_v33, %v3638_v47  ;;  %v23129_v47 = vld [vmem:[#allocation85_spill] sm:$0xff] }
 0x95b   :  { %v15749_v25 = vpop.eup %15748  ;;  %v4304_v13 = vadd.f32 1.0, %v15747_v57  ;;  %15768 = vpow2.f32 %v11655_v42  ;;  %v19545_v32 = vadd.f32 %v19281_v50, %v3914_v61  ;;  %13914 = vmatprep.mubr.msk.f32.mxu1 %vm388_vm2, %v4475_v62  ;;  %v3640_v46 = vmul.f32 %v19274_v35, %v23128_v43 }
 0x95c   :  { %v15751_v36 = vpop.eup %15750  ;;  %v4476_v60 = vmul.f32 %v15741_v1, %v19417_v7  ;;  %15770 = vrcp.f32 %v4301_v38  ;;  %v19552_v49 = vadd.f32 %v19281_v50, %v3909_v34  ;;  %v13845_v44 = vpop.f32.mrb[122].mxu0  ;;  %v3643_v57 = vmul.f32 %v19274_v35, %v23129_v47 }
 0x95d   :  { %v15753_v11 = vpop.eup %15752  ;;  %v4477_v26 = vmul.f32 %v15751_v36, %v19439_v59  ;;  %15772 = vrcp.f32 %v4304_v13  ;;  %v11657_v62 = vmul.f32 -1.442695, %v19545_v32  ;;  %v3924_v42 = vadd.f32 %v13845_v44, %v3641_v56  ;;  %v3918_v61 = vpop.f32.mrb[123].mxu0  ;;  %v23130_v59 = vld [vmem:[#allocation84_spill] sm:$0xff] }
 0x95e   :  { %v15755_v33 = vpop.eup %15754  ;;  %v4303_v43 = vadd.f32 1.0, %v15753_v11  ;;  %15774 = vpow2.f32 %v11654_v51  ;;  %v11656_v7 = vmul.f32 -1.442695, %v19552_v49  ;;  %13915 = vmatmul.mubr.msk.f32.gmra.mrb[100].mxu1 %vm388_vm2, %v4476_v60  ;;  %v3919_v1 = vadd.f32 %v3918_v61, %v3640_v46  ;;  %v23131_v46 = vld [vmem:[#allocation89_spill] sm:$0xff] }
 0x95f   :  { %v15757_v38 = vpop.eup %15756  ;;  %v4306_v34 = vadd.f32 1.0, %v15755_v33  ;;  %15776 = vpow2.f32 %v11657_v62  ;;  %v19561_v47 = vadd.f32 %v19281_v50, %v3924_v42  ;;  %13917 = vmatprep.mubr.msk.f32.mxu1 %vm388_vm2, %v4477_v26  ;;  %v3642_v13 = vmul.f32 %v19274_v35, %v23130_v59 }
 0x960   :  { %v15759_v56 = vpop.eup %15758  ;;  %v4478_v36 = vmul.f32 %v15749_v25, %v19434_v30  ;;  %15778 = vrcp.f32 %v4303_v43  ;;  %v19568_v51 = vadd.f32 %v19281_v50, %v3919_v1  ;;  %v13848_v60 = vpop.f32.mrb[124].mxu0  ;;  %v3645_v44 = vmul.f32 %v19274_v35, %v23131_v46 }
 0x961   :  { %v15761_v11 = vpop.eup %15760  ;;  %v4479_v62 = vmul.f32 %v15759_v56, %v19455_v21  ;;  %15780 = vrcp.f32 %v4306_v34  ;;  %v11659_v26 = vmul.f32 -1.442695, %v19561_v47  ;;  %v3934_v42 = vadd.f32 %v13848_v60, %v3643_v57  ;;  %v3928_v61 = vpop.f32.mrb[125].mxu0  ;;  %v23132_v21 = vld [vmem:[#allocation88_spill] sm:$0xff]  ;;  %v23133_v57 = vld [vmem:[#allocation95_spill] sm:$0xff] }
 0x962   :  { %v15763_v33 = vpop.eup %15762  ;;  %v4305_v59 = vadd.f32 1.0, %v15761_v11  ;;  %15782 = vpow2.f32 %v11656_v7  ;;  %v11658_v30 = vmul.f32 -1.442695, %v19568_v51  ;;  %13918 = vmatmul.mubr.msk.f32.gmra.mrb[102].mxu1 %vm388_vm2, %v4478_v36  ;;  %v3929_v25 = vadd.f32 %v3928_v61, %v3642_v13 }
 0x963   :  { %v15765_v43 = vpop.eup %15764  ;;  %15784 = vpow2.f32 %v11659_v26  ;;  %v19577_v1 = vadd.f32 %v19281_v50, %v3934_v42  ;;  %13920 = vmatprep.mubr.msk.f32.mxu1 %vm388_vm2, %v4479_v62  ;;  %v3644_v34 = vmul.f32 %v19274_v35, %v23132_v21  ;;  %v3647_v56 = vmul.f32 %v19274_v35, %v23133_v57 }
 0x964   :  { %v15767_v60 = vpop.eup %15766  ;;  %v4480_v7 = vmul.f32 %v15757_v38, %v19450_v4  ;;  %15786 = vrcp.f32 %v4305_v59  ;;  %v4308_v11 = vadd.f32 1.0, %v15765_v43  ;;  %v19586_v13 = vadd.f32 %v19281_v50, %v3929_v25  ;;  %v13851_v36 = vpop.f32.mrb[126].mxu0 }
 0x965   :  { %v15769_v26 = vpop.eup %15768  ;;  %v4307_v42 = vadd.f32 1.0, %v15767_v60  ;;  %15788 = vpow2.f32 %v11658_v30  ;;  %v11661_v62 = vmul.f32 -1.442695, %v19577_v1  ;;  %v3944_v61 = vadd.f32 %v13851_v36, %v3645_v44  ;;  %v3938_v46 = vpop.f32.mrb[127].mxu0  ;;  %v23134_v30 = vld [vmem:[#allocation94_spill] sm:$0xff] }
 0x966   :  { %v15771_v21 = vpop.eup %15770  ;;  %15790 = vrcp.f32 %v4308_v11  ;;  %v4310_v40 = vadd.f32 1.0, %v15769_v26  ;;  %v11660_v57 = vmul.f32 -1.442695, %v19586_v13  ;;  %13921 = vmatmul.mubr.msk.f32.gmra.mrb[104].mxu1 %vm388_vm2, %v4480_v7  ;;  %v3939_v4 = vadd.f32 %v3938_v46, %v3644_v34  ;;  %v23135_v7 = vld [vmem:[#allocation99_spill] sm:$0xff] }
 0x967   :  { %v15773_v38 = vpop.eup %15772  ;;  %v4481_v59 = vmul.f32 %v15771_v21, %v19471_v39  ;;  %15792 = vrcp.f32 %v4307_v42  ;;  %v19593_v25 = vadd.f32 %v19281_v50, %v3944_v61  ;;  %v3646_v43 = vmul.f32 %v19274_v35, %v23134_v30 }
 0x968   :  { %v15775_v44 = vpop.eup %15774  ;;  %v4482_v60 = vmul.f32 %v15763_v33, %v19466_v41  ;;  %15794 = vrcp.f32 %v4310_v40  ;;  %v19599_v11 = vadd.f32 %v19281_v50, %v3939_v4  ;;  %v13854_v36 = vpop.f32.mrb[128].mxu0  ;;  %v3649_v46 = vmul.f32 %v19274_v35, %v23135_v7 }
 0x969   :  { %v15777_v34 = vpop.eup %15776  ;;  %v4309_v39 = vadd.f32 1.0, %v15775_v44  ;;  %15796 = vpow2.f32 %v11661_v62  ;;  %v11663_v21 = vmul.f32 -1.442695, %v19593_v25  ;;  %13923 = vmatprep.mubr.msk.f32.mxu1 %vm388_vm2, %v4481_v59  ;;  %v3954_v26 = vadd.f32 %v13854_v36, %v3647_v56  ;;  %v3948_v42 = vpop.f32.mrb[129].mxu0  ;;  %v23136_v44 = vld [vmem:[#allocation98_spill] sm:$0xff] }
 0x96a   :  { %v15779_v61 = vpop.eup %15778  ;;  %v4312_v30 = vadd.f32 1.0, %v15777_v34  ;;  %15798 = vpow2.f32 %v11660_v57  ;;  %v11662_v40 = vmul.f32 -1.442695, %v19599_v11  ;;  %13924 = vmatmul.mubr.msk.f32.gmra.mrb[106].mxu1 %vm388_vm2, %v4482_v60  ;;  %v3949_v41 = vadd.f32 %v3948_v42, %v3646_v43  ;;  %v23137_v60 = vld [vmem:[#allocation105_spill] sm:$0xff] }
 0x96b   :  { %v15781_v33 = vpop.eup %15780  ;;  %v4483_v4 = vmul.f32 %v15779_v61, %v19486_v55  ;;  %15800 = vrcp.f32 %v4309_v39  ;;  %v19609_v62 = vadd.f32 %v19281_v50, %v3954_v26  ;;  %v3648_v59 = vmul.f32 %v19274_v35, %v23136_v44 }
 0x96c   :  { %v15783_v56 = vpop.eup %15782  ;;  %v4484_v36 = vmul.f32 %v15773_v38, %v19482_v0  ;;  %15802 = vrcp.f32 %v4312_v30  ;;  %v19615_v57 = vadd.f32 %v19281_v50, %v3949_v41  ;;  %v13857_v34 = vpop.f32.mrb[130].mxu0  ;;  %v3651_v43 = vmul.f32 %v19274_v35, %v23137_v60  ;;  %v23138_v38 = vld [vmem:[#allocation104_spill] sm:$0xff] }
 0x96d   :  { %v15785_v42 = vpop.eup %15784  ;;  %v4311_v55 = vadd.f32 1.0, %v15783_v56  ;;  %15804 = vpow2.f32 %v11663_v21  ;;  %v11665_v39 = vmul.f32 -1.442695, %v19609_v62  ;;  %13926 = vmatprep.mubr.msk.f32.mxu1 %vm388_vm2, %v4483_v4  ;;  %v3964_v26 = vadd.f32 %v13857_v34, %v3649_v46  ;;  %v3958_v61 = vpop.f32.mrb[131].mxu0 }
 0x96e   :  { %v15787_v44 = vpop.eup %15786  ;;  %v4314_v7 = vadd.f32 1.0, %v15785_v42  ;;  %15806 = vpow2.f32 %v11662_v40  ;;  %13927 = vmatmul.mubr.msk.f32.gmra.mrb[108].mxu1 %vm388_vm2, %v4484_v36  ;;  %v3959_v0 = vadd.f32 %v3958_v61, %v3648_v59  ;;  %v3650_v30 = vmul.f32 %v19274_v35, %v23138_v38 }
 0x96f   :  { %v15789_v41 = vpop.eup %15788  ;;  %v4485_v60 = vmul.f32 %v15787_v44, %v19501_v20  ;;  %15808 = vrcp.f32 %v4311_v55  ;;  %v11664_v21 = vmul.f32 -1.442695, %v19615_v57  ;;  %v19627_v56 = vadd.f32 %v19281_v50, %v3964_v26  ;;  %v23140_v26 = vld [vmem:[#allocation108_spill] sm:$0xff] }
 0x970   :  { %v15791_v46 = vpop.eup %15790  ;;  %v4486_v4 = vmul.f32 %v15781_v33, %v19498_v18  ;;  %15810 = vrcp.f32 %v4314_v7  ;;  %v4313_v40 = vadd.f32 1.0, %v15789_v41  ;;  %v19631_v36 = vadd.f32 %v19281_v50, %v3959_v0  ;;  %v13860_v59 = vpop.f32.mrb[132].mxu0  ;;  %v19641_v33 = vld [vmem:[%s22600_s9 + $0x1] ss:$0 sm:$0xff] }
 0x971   :  { %v15793_v34 = vpop.eup %15792  ;;  %15812 = vpow2.f32 %v11665_v39  ;;  %v11667_v35 = vmul.f32 -1.442695, %v19627_v56  ;;  %13929 = vmatprep.mubr.msk.f32.mxu1 %vm388_vm2, %v4485_v60  ;;  %v3974_v20 = vadd.f32 %v13860_v59, %v3651_v43  ;;  %v3968_v44 = vpop.f32.mrb[133].mxu0  ;;  %v23139_v43 = vld [vmem:[#allocation109_spill] sm:$0xff] }
 0x972   :  { %v15795_v42 = vpop.eup %15794  ;;  %v4487_v55 = vmul.f32 %v15793_v34, %v19517_v58  ;;  %15814 = vrcp.f32 %v4313_v40  ;;  %v11666_v18 = vmul.f32 -1.442695, %v19631_v36  ;;  %13930 = vmatmul.mubr.msk.f32.gmra.mrb[110].mxu1 %vm388_vm2, %v4486_v4  ;;  %v3969_v7 = vadd.f32 %v3968_v44, %v3650_v30  ;;  %v19649_v58 = vld [vmem:[%s22599_s8 + $0x1] ss:$0 sm:$0xff] }
 0x973   :  { %v15797_v50 = vpop.eup %15796  ;;  %15816 = vpow2.f32 %v11664_v21  ;;  %v19644_v60 = vadd.f32 %v19641_v33, %v3974_v20  ;;  %v3653_v39 = vmul.f32 %v19649_v58, %v23139_v43  ;;  %v3652_v61 = vmul.f32 %v19649_v58, %v23140_v26 }
 0x974   :  { %v15799_v0 = vpop.eup %15798  ;;  %v4488_v30 = vmul.f32 %v15791_v46, %v19514_v3  ;;  %v4316_v41 = vadd.f32 1.0, %v15797_v50  ;;  %15818 = vpow2.f32 %v11667_v35  ;;  %v19657_v21 = vadd.f32 %v19641_v33, %v3969_v7  ;;  %13932 = vmatprep.mubr.msk.f32.mxu1 %vm388_vm2, %v4487_v55  ;;  %v13863_v4 = vpop.f32.mrb[134].mxu0  ;;  %v23141_v7 = vld [vmem:[#allocation115_spill] sm:$0xff]  ;;  %v23142_v50 = vld [vmem:[#allocation114_spill] sm:$0xff] }
 0x975   :  { %v15801_v40 = vpop.eup %15800  ;;  %v4315_v59 = vadd.f32 1.0, %v15799_v0  ;;  %15820 = vpow2.f32 %v11666_v18  ;;  %v11669_v34 = vmul.f32 -1.442695, %v19644_v60  ;;  %v3984_v20 = vadd.f32 %v13863_v4, %v3653_v39  ;;  %v3978_v44 = vpop.f32.mrb[135].mxu0 }
 0x976   :  { %v15803_v43 = vpop.eup %15802  ;;  %v4489_v26 = vmul.f32 %v15801_v40, %v19535_v12  ;;  %15822 = vrcp.f32 %v4316_v41  ;;  %v11668_v3 = vmul.f32 -1.442695, %v19657_v21  ;;  %13933 = vmatmul.mubr.msk.f32.gmra.mrb[112].mxu1 %vm388_vm2, %v4488_v30  ;;  %v3979_v46 = vadd.f32 %v3978_v44, %v3652_v61 }
 0x977   :  { %v15805_v35 = vpop.eup %15804  ;;  %15824 = vrcp.f32 %v4315_v59  ;;  %v19665_v55 = vadd.f32 %v19641_v33, %v3984_v20  ;;  %v3655_v18 = vmul.f32 %v19649_v58, %v23141_v7  ;;  %v3654_v39 = vmul.f32 %v19649_v58, %v23142_v50 }
 0x978   :  { %v15807_v0 = vpop.eup %15806  ;;  %v4490_v12 = vmul.f32 %v15795_v42, %v19529_v15  ;;  %v4318_v41 = vadd.f32 1.0, %v15805_v35  ;;  %15826 = vpow2.f32 %v11669_v34  ;;  %v19673_v4 = vadd.f32 %v19641_v33, %v3979_v46  ;;  %13935 = vmatprep.mubr.msk.f32.mxu1 %vm388_vm2, %v4489_v26  ;;  %v13866_v61 = vpop.f32.mrb[136].mxu0  ;;  %v23143_v46 = vld [vmem:[#allocation118_spill] sm:$0xff] }
 0x979   :  { %v15809_v30 = vpop.eup %15808  ;;  %v4317_v40 = vadd.f32 1.0, %v15807_v0  ;;  %15828 = vpow2.f32 %v11668_v3  ;;  %v11671_v59 = vmul.f32 -1.442695, %v19665_v55  ;;  %v3994_v20 = vadd.f32 %v13866_v61, %v3655_v18  ;;  %v3988_v44 = vpop.f32.mrb[137].mxu0 }
 0x97a   :  { %v15811_v7 = vpop.eup %15810  ;;  %v4491_v50 = vmul.f32 %v15809_v30, %v19552_v49  ;;  %15830 = vrcp.f32 %v4318_v41  ;;  %v11670_v15 = vmul.f32 -1.442695, %v19673_v4  ;;  %13936 = vmatmul.mubr.msk.f32.gmra.mrb[114].mxu1 %vm388_vm2, %v4490_v12  ;;  %v3989_v42 = vadd.f32 %v3988_v44, %v3654_v39  ;;  %v23144_v30 = vld [vmem:[#allocation126_spill] sm:$0xff] }
 0x97b   :  { %v15813_v34 = vpop.eup %15812  ;;  %15832 = vrcp.f32 %v4317_v40  ;;  %v19681_v26 = vadd.f32 %v19641_v33, %v3994_v20  ;;  %v3656_v3 = vmul.f32 %v19649_v58, %v23143_v46  ;;  %v4492_v18 = vmul.f32 %v15803_v43, %v19545_v32 }
 0x97c   :  { %v15815_v35 = vpop.eup %15814  ;;  %v4320_v0 = vadd.f32 1.0, %v15813_v34  ;;  %15834 = vpow2.f32 %v11671_v59  ;;  %v19687_v49 = vadd.f32 %v19641_v33, %v3989_v42  ;;  %13938 = vmatprep.mubr.msk.f32.mxu1 %vm388_vm2, %v4491_v50  ;;  %v13869_v12 = vpop.f32.mrb[138].mxu0 }
 0x97d   :  { %v15817_v39 = vpop.eup %15816  ;;  %v4493_v41 = vmul.f32 %v15815_v35, %v19568_v51  ;;  %15836 = vpow2.f32 %v11670_v15  ;;  %v11673_v61 = vmul.f32 -1.442695, %v19681_v26  ;;  %v4004_v40 = vadd.f32 %v13869_v12, %v23144_v30  ;;  %v3998_v20 = vpop.f32.mrb[139].mxu0 }
 0x97e   :  { %v15819_v44 = vpop.eup %15818  ;;  %15838 = vrcp.f32 %v4320_v0  ;;  %v4319_v32 = vadd.f32 1.0, %v15817_v39  ;;  %13939 = vmatmul.mubr.msk.f32.gmra.mrb[116].mxu1 %vm388_vm2, %v4492_v18  ;;  %v3999_v43 = vadd.f32 %v3998_v20, %v3656_v3  ;;  %v11672_v50 = vmul.f32 -1.442695, %v19687_v49  ;;  %v23145_v39 = vld [vmem:[#allocation127_spill] sm:$0xff] }
 0x97f   :  { %v15821_v59 = vpop.eup %15820  ;;  %v4322_v42 = vadd.f32 1.0, %v15819_v44  ;;  %15840 = vpow2.f32 %v11673_v61  ;;  %v19696_v34 = vadd.f32 %v19641_v33, %v4004_v40  ;;  %13941 = vmatprep.mubr.msk.f32.mxu1 %vm388_vm2, %v4493_v41  ;;  %v4494_v15 = vmul.f32 %v15811_v7, %v19561_v47  ;;  %v23146_v40 = vld [vmem:[#allocation119_spill] sm:$0xff]  ;;  %v23147_v47 = vld [vmem:[#allocation128_spill] sm:$0xff] }
 0x980   :  { %v15823_v51 = vpop.eup %15822  ;;  %15842 = vrcp.f32 %v4319_v32  ;;  %v4321_v35 = vadd.f32 1.0, %v15821_v59  ;;  %v19701_v0 = vadd.f32 %v19641_v33, %v3999_v43  ;;  %v13872_v18 = vpop.f32.mrb[140].mxu0  ;;  %v3661_v20 = vmul.f32 %v19649_v58, %v23146_v40  ;;  %v23148_v32 = vld [vmem:[#allocation125_spill] sm:$0xff] }
 0x981   :  { %v15825_v3 = vpop.eup %15824  ;;  %15844 = vrcp.f32 %v4322_v42  ;;  %v11675_v12 = vmul.f32 -1.442695, %v19696_v34  ;;  %v4014_v61 = vadd.f32 %v13872_v18, %v23145_v39  ;;  %v4008_v30 = vpop.f32.mrb[141].mxu0  ;;  %v3660_v43 = vmul.f32 %v19649_v58, %v23148_v32 }
 0x982   :  { %v15827_v41 = vpop.eup %15826  ;;  %v4495_v44 = vmul.f32 %v15825_v3, %v19586_v13  ;;  %15846 = vrcp.f32 %v4321_v35  ;;  %13942 = vmatmul.mubr.msk.f32.gmra.mrb[118].mxu1 %vm388_vm2, %v4494_v15  ;;  %v4009_v7 = vadd.f32 %v4008_v30, %v23147_v47  ;;  %v11674_v18 = vmul.f32 -1.442695, %v19701_v0 }
 0x983   :  { %v15829_v59 = vpop.eup %15828  ;;  %v4324_v42 = vadd.f32 1.0, %v15827_v41  ;;  %15848 = vpow2.f32 %v11672_v50  ;;  %v19714_v39 = vadd.f32 %v19641_v33, %v4014_v61  ;;  %v4496_v46 = vmul.f32 %v15823_v51, %v19577_v1 }
 0x984   :  { %v15831_v40 = vpop.eup %15830  ;;  %v4323_v13 = vadd.f32 1.0, %v15829_v59  ;;  %15850 = vpow2.f32 %v11675_v12  ;;  %v19718_v15 = vadd.f32 %v19641_v33, %v4009_v7  ;;  %13944 = vmatprep.mubr.msk.f32.mxu1 %vm388_vm2, %v4495_v44  ;;  %v13875_v35 = vpop.f32.mrb[142].mxu0 }
 0x985   :  { %v15833_v58 = vpop.eup %15832  ;;  %15852 = vrcp.f32 %v4324_v42  ;;  %v11677_v50 = vmul.f32 -1.442695, %v19714_v39  ;;  %v4024_v3 = vadd.f32 %v13875_v35, %v3661_v20  ;;  %v4018_v30 = vpop.f32.mrb[143].mxu0  ;;  %v4498_v59 = vmul.f32 %v15831_v40, %v19593_v25 }
 0x986   :  { %v15835_v41 = vpop.eup %15834  ;;  %v4497_v61 = vmul.f32 %v15833_v58, %v19599_v11  ;;  %15854 = vrcp.f32 %v4323_v13  ;;  %13945 = vmatmul.mubr.msk.f32.gmra.mrb[120].mxu1 %vm388_vm2, %v4496_v46  ;;  %v4019_v1 = vadd.f32 %v4018_v30, %v3660_v43  ;;  %v11676_v47 = vmul.f32 -1.442695, %v19718_v15 }
 0x987   :  { %v15837_v51 = vpop.eup %15836  ;;  %v4326_v12 = vadd.f32 1.0, %v15835_v41  ;;  %15856 = vpow2.f32 %v11674_v18  ;;  %v19726_v44 = vadd.f32 %v19641_v33, %v4024_v3 }
 0x988   :  { %v15839_v7 = vpop.eup %15838  ;;  %v4325_v20 = vadd.f32 1.0, %v15837_v51  ;;  %15858 = vpow2.f32 %v11677_v50  ;;  %v19730_v42 = vadd.f32 %v19641_v33, %v4019_v1  ;;  %13947 = vmatprep.mubr.msk.f32.mxu1 %vm388_vm2, %v4497_v61 }
 0x989   :  { %v15841_v11 = vpop.eup %15840  ;;  %15860 = vrcp.f32 %v4326_v12  ;;  %v11679_v46 = vmul.f32 -1.442695, %v19726_v44  ;;  %v4500_v33 = vmul.f32 %v15839_v7, %v19609_v62 }
 0x98a   :  { %v15843_v43 = vpop.eup %15842  ;;  %15862 = vrcp.f32 %v4325_v20  ;;  %v11678_v18 = vmul.f32 -1.442695, %v19730_v42  ;;  %13948 = vmatmul.mubr.msk.f32.gmra.mrb[122].mxu1 %vm388_vm2, %v4498_v59  ;;  %v4328_v40 = vadd.f32 1.0, %v15841_v11 }
 0x98b   :  { %v15845_v13 = vpop.eup %15844  ;;  %v4499_v25 = vmul.f32 %v15843_v43, %v19615_v57  ;;  %15864 = vpow2.f32 %v11676_v47 }
 0x98c   :  { %v15847_v35 = vpop.eup %15846  ;;  %15866 = vpow2.f32 %v11679_v46  ;;  %v4502_v1 = vmul.f32 %v15845_v13, %v19627_v56 }
 0x98d   :  { %v15849_v58 = vpop.eup %15848  ;;  %v4501_v50 = vmul.f32 %v15847_v35, %v19631_v36  ;;  %13950 = vmatprep.mubr.msk.f32.mxu1 %vm388_vm2, %v4499_v25  ;;  %15868 = vpow2.f32 %v11678_v18 }
 0x98e   :  { %v15851_v3 = vpop.eup %15850  ;;  %v4327_v30 = vadd.f32 1.0, %v15849_v58  ;;  %13951 = vmatmul.mubr.msk.f32.gmra.mrb[124].mxu1 %vm388_vm2, %v4500_v33  ;;  %15870 = vrcp.f32 %v4328_v40 }
 0x98f   :  { %v15853_v41 = vpop.eup %15852  ;;  %v4330_v61 = vadd.f32 1.0, %v15851_v3  ;;  %13953 = vmatprep.mubr.msk.f32.mxu1 %vm388_vm2, %v4501_v50 }
 0x990   :  { %v15855_v57 = vpop.eup %15854  ;;  %15872 = vrcp.f32 %v4327_v30  ;;  %v4504_v20 = vmul.f32 %v15853_v41, %v19644_v60 }
 0x991   :  { %v15857_v62 = vpop.eup %15856  ;;  %v4503_v36 = vmul.f32 %v15855_v57, %v19657_v21  ;;  %15874 = vrcp.f32 %v4330_v61 }
 0x992   :  { %v15859_v51 = vpop.eup %15858  ;;  %v4329_v12 = vadd.f32 1.0, %v15857_v62  ;;  %13954 = vmatmul.mubr.msk.f32.gmra.mrb[126].mxu1 %vm388_vm2, %v4502_v1 }
 0x993   :  { %v15861_v47 = vpop.eup %15860  ;;  %v4332_v7 = vadd.f32 1.0, %v15859_v51  ;;  %13956 = vmatprep.mubr.msk.f32.mxu1 %vm388_vm2, %v4503_v36 }
 0x994   :  { %v15863_v59 = vpop.eup %15862  ;;  %15876 = vrcp.f32 %v4329_v12  ;;  %v4506_v18 = vmul.f32 %v15861_v47, %v19665_v55 }
 0x995   :  { %v15865_v11 = vpop.eup %15864  ;;  %v4505_v56 = vmul.f32 %v15863_v59, %v19673_v4  ;;  %15878 = vrcp.f32 %v4332_v7 }
 0x996   :  { %v4331_v46 = vadd.f32 1.0, %v15865_v11  ;;  %13957 = vmatmul.mubr.msk.f32.gmra.mrb[128].mxu1 %vm388_vm2, %v4504_v20  ;;  %v15867_v21 = vpop.eup %15866 }
 0x997   :  { %13959 = vmatprep.mubr.msk.f32.mxu1 %vm388_vm2, %v4505_v56  ;;  %v15869_v43 = vpop.eup %15868  ;;  %v4334_v13 = vadd.f32 1.0, %v15867_v21 }
 0x998   :  { %15880 = vrcp.f32 %v4331_v46  ;;  %v15871_v25 = vpop.eup %15870  ;;  %v4333_v40 = vadd.f32 1.0, %v15869_v43 }
 0x999   :  { %15882 = vrcp.f32 %v4334_v13  ;;  %v4508_v4 = vmul.f32 %v15871_v25, %v19681_v26 }
 0x99a   :  { %v15873_v35 = vpop.eup %15872  ;;  %13960 = vmatmul.mubr.msk.f32.gmra.mrb[130].mxu1 %vm388_vm2, %v4506_v18  ;;  %15884 = vrcp.f32 %v4333_v40 }
 0x99b   :  { %v4507_v60 = vmul.f32 %v15873_v35, %v19687_v49  ;;  %v15875_v33 = vpop.eup %15874 }
 0x99c   :  { %v4510_v50 = vmul.f32 %v15875_v33, %v19696_v34 }
 0x99d   :  { %13962 = vmatprep.mubr.msk.f32.mxu1 %vm388_vm2, %v4507_v60 }
 0x99e   :  { %v15877_v58 = vpop.eup %15876  ;;  %13963 = vmatmul.mubr.msk.f32.gmra.mrb[132].mxu1 %vm388_vm2, %v4508_v4 }
 0x99f   :  { %v4509_v55 = vmul.f32 %v15877_v58, %v19701_v0  ;;  %v15879_v3 = vpop.eup %15878  ;;  %v23149_v0 = vld [vmem:[#allocation124_spill] sm:$0xff] }
 0x9a0   :  { %v4512_v26 = vmul.f32 %v15879_v3, %v19714_v39 }
 0x9a1   :  { %13965 = vmatprep.mubr.msk.f32.mxu1 %vm388_vm2, %v4509_v55 }
 0x9a2   :  { %v15881_v30 = vpop.eup %15880  ;;  %13966 = vmatmul.mubr.msk.f32.gmra.mrb[134].mxu1 %vm388_vm2, %v4510_v50 }
 0x9a3   :  { %v4511_v49 = vmul.f32 %v15881_v30, %v19718_v15  ;;  %v15883_v41 = vpop.eup %15882  ;;  %v19772_v15 = vld [vmem:[%s22602_s11 + $0x1] ss:$0 sm:$0xff] }
 0x9a4   :  { %v15885_v61 = vpop.eup %15884  ;;  %v4514_v34 = vmul.f32 %v15883_v41, %v19726_v44 }
 0x9a5   :  { %13968 = vmatprep.mubr.msk.f32.mxu1 %vm388_vm2, %v4511_v49  ;;  %v4513_v57 = vmul.f32 %v15885_v61, %v19730_v42 }
 0x9a6   :  { %13969 = vmatmul.mubr.msk.f32.gmra.mrb[136].mxu1 %vm388_vm2, %v4512_v26 }
 0x9a7   :  { %13971 = vmatprep.mubr.msk.f32.mxu1 %vm388_vm2, %v4513_v57 }
 0x9aa   :  { %13972 = vmatmul.mubr.msk.f32.gmra.mrb[138].mxu1 %vm388_vm2, %v4514_v34 }
 0x9ab   :  { %5557 = vmatprep.mubr.f32.mxu1 %v23149_v0 }
 0xa06   :  { %v13886_v39 = vpop.f32.mrb[80].mxu1 }
 0xa07   :  { %v19775_v1 = vadd.f32 %v13886_v39, %v19772_v15  ;;  %v4774_v42 = vpop.f32.mrb[81].mxu1 }
 0xa08   :  { %v19778_v62 = vadd.f32 %v19772_v15, %v4774_v42 }
 0xa09   :  { %v11747_v44 = vmul.f32 -1.442695, %v19775_v1 }
 0xa0a   :  { %v11746_v36 = vmul.f32 -1.442695, %v19778_v62  ;;  %v13889_v51 = vpop.f32.mrb[82].mxu1 }
 0xa0b   :  { %15886 = vpow2.f32 %v11747_v44  ;;  %v19783_v12 = vadd.f32 %v13889_v51, %v19772_v15  ;;  %v4784_v47 = vpop.f32.mrb[83].mxu1 }
 0xa0c   :  { %15888 = vpow2.f32 %v11746_v36  ;;  %v19786_v7 = vadd.f32 %v19772_v15, %v4784_v47 }
 0xa0d   :  { %v11749_v59 = vmul.f32 -1.442695, %v19783_v12 }
 0xa0e   :  { %v11748_v20 = vmul.f32 -1.442695, %v19786_v7  ;;  %v13892_v11 = vpop.f32.mrb[84].mxu1 }
 0xa0f   :  { %15890 = vpow2.f32 %v11749_v59  ;;  %v19791_v56 = vadd.f32 %v13892_v11, %v19772_v15  ;;  %v4794_v46 = vpop.f32.mrb[85].mxu1 }
 0xa10   :  { %15892 = vpow2.f32 %v11748_v20  ;;  %v19794_v21 = vadd.f32 %v19772_v15, %v4794_v46 }
 0xa11   :  { %v11751_v43 = vmul.f32 -1.442695, %v19791_v56 }
 0xa12   :  { %v11750_v18 = vmul.f32 -1.442695, %v19794_v21 }
 0xa13   :  { %15894 = vpow2.f32 %v11751_v43 }
 0xa14   :  { %15896 = vpow2.f32 %v11750_v18  ;;  %v13895_v13 = vpop.f32.mrb[86].mxu1 }
 0xa15   :  { %v15887_v25 = vpop.eup %15886  ;;  %v19799_v40 = vadd.f32 %v13895_v13, %v19772_v15  ;;  %v4804_v35 = vpop.f32.mrb[87].mxu1 }
 0xa16   :  { %v15889_v60 = vpop.eup %15888  ;;  %v5254_v4 = vadd.f32 1.0, %v15887_v25  ;;  %v19802_v33 = vadd.f32 %v19772_v15, %v4804_v35 }
 0xa17   :  { %v5253_v58 = vadd.f32 1.0, %v15889_v60  ;;  %v11753_v55 = vmul.f32 -1.442695, %v19799_v40 }
 0xa18   :  { %15898 = vrcp.f32 %v5254_v4  ;;  %v11752_v50 = vmul.f32 -1.442695, %v19802_v33  ;;  %v13898_v3 = vpop.f32.mrb[88].mxu1 }
 0xa19   :  { %v15891_v30 = vpop.eup %15890  ;;  %15900 = vrcp.f32 %v5253_v58  ;;  %v19807_v49 = vadd.f32 %v13898_v3, %v19772_v15  ;;  %v4814_v41 = vpop.f32.mrb[89].mxu1 }
 0xa1a   :  { %v15893_v26 = vpop.eup %15892  ;;  %v5256_v61 = vadd.f32 1.0, %v15891_v30  ;;  %15902 = vpow2.f32 %v11753_v55  ;;  %v19810_v57 = vadd.f32 %v19772_v15, %v4814_v41 }
 0xa1b   :  { %v5255_v34 = vadd.f32 1.0, %v15893_v26  ;;  %15904 = vpow2.f32 %v11752_v50  ;;  %v11755_v39 = vmul.f32 -1.442695, %v19807_v49 }
 0xa1c   :  { %15906 = vrcp.f32 %v5256_v61  ;;  %v11754_v42 = vmul.f32 -1.442695, %v19810_v57  ;;  %v13901_v44 = vpop.f32.mrb[90].mxu1 }
 0xa1d   :  { %v15895_v36 = vpop.eup %15894  ;;  %15908 = vrcp.f32 %v5255_v34  ;;  %v19815_v51 = vadd.f32 %v13901_v44, %v19772_v15  ;;  %v4824_v47 = vpop.f32.mrb[91].mxu1 }
 0xa1e   :  { %v15897_v59 = vpop.eup %15896  ;;  %v5258_v20 = vadd.f32 1.0, %v15895_v36  ;;  %15910 = vpow2.f32 %v11755_v39  ;;  %v19818_v11 = vadd.f32 %v19772_v15, %v4824_v47 }
 0xa1f   :  { %v5257_v46 = vadd.f32 1.0, %v15897_v59  ;;  %15912 = vpow2.f32 %v11754_v42  ;;  %v11757_v43 = vmul.f32 -1.442695, %v19815_v51 }
 0xa20   :  { %15914 = vrcp.f32 %v5258_v20  ;;  %v11756_v18 = vmul.f32 -1.442695, %v19818_v11  ;;  %v13904_v13 = vpop.f32.mrb[92].mxu1 }
 0xa21   :  { %15916 = vrcp.f32 %v5257_v46  ;;  %v19823_v25 = vadd.f32 %v13904_v13, %v19772_v15  ;;  %v4834_v35 = vpop.f32.mrb[93].mxu1 }
 0xa22   :  { %v15899_v60 = vpop.eup %15898  ;;  %15918 = vpow2.f32 %v11757_v43  ;;  %v19826_v4 = vadd.f32 %v19772_v15, %v4834_v35 }
 0xa23   :  { %v15901_v58 = vpop.eup %15900  ;;  %v19829_v55 = vmul.f32 %v15899_v60, %v19775_v1  ;;  %15920 = vpow2.f32 %v11756_v18  ;;  %v11759_v50 = vmul.f32 -1.442695, %v19823_v25 }
 0xa24   :  { %v15903_v3 = vpop.eup %15902  ;;  %v19833_v30 = vmul.f32 %v15901_v58, %v19778_v62  ;;  %v11758_v41 = vmul.f32 -1.442695, %v19826_v4  ;;  %v13907_v26 = vpop.f32.mrb[94].mxu1 }
 0xa25   :  { %v15905_v61 = vpop.eup %15904  ;;  %v5260_v34 = vadd.f32 1.0, %v15903_v3  ;;  %15922 = vpow2.f32 %v11759_v50  ;;  %v19837_v39 = vadd.f32 %v13907_v26, %v19772_v15  ;;  %v4844_v42 = vpop.f32.mrb[95].mxu1 }
 0xa26   :  { %v15907_v44 = vpop.eup %15906  ;;  %v5259_v36 = vadd.f32 1.0, %v15905_v61  ;;  %15924 = vpow2.f32 %v11758_v41  ;;  %v19842_v47 = vadd.f32 %v19772_v15, %v4844_v42 }
 0xa27   :  { %v15909_v62 = vpop.eup %15908  ;;  %v19845_v59 = vmul.f32 %v15907_v44, %v19783_v12  ;;  %15926 = vrcp.f32 %v5260_v34  ;;  %v11761_v20 = vmul.f32 -1.442695, %v19837_v39 }
 0xa28   :  { %v15911_v46 = vpop.eup %15910  ;;  %v19849_v43 = vmul.f32 %v15909_v62, %v19786_v7  ;;  %15928 = vrcp.f32 %v5259_v36  ;;  %v11760_v18 = vmul.f32 -1.442695, %v19842_v47  ;;  %v13910_v13 = vpop.f32.mrb[96].mxu1 }
 0xa29   :  { %v15913_v35 = vpop.eup %15912  ;;  %v5262_v60 = vadd.f32 1.0, %v15911_v46  ;;  %15930 = vpow2.f32 %v11761_v20  ;;  %v19853_v58 = vadd.f32 %v13910_v13, %v19772_v15  ;;  %v4854_v50 = vpop.f32.mrb[97].mxu1 }
 0xa2a   :  { %v15915_v12 = vpop.eup %15914  ;;  %v5261_v41 = vadd.f32 1.0, %v15913_v35  ;;  %15932 = vpow2.f32 %v11760_v18  ;;  %v19858_v7 = vadd.f32 %v19772_v15, %v4854_v50 }
 0xa2b   :  { %v15917_v26 = vpop.eup %15916  ;;  %v19861_v61 = vmul.f32 %v15915_v12, %v19791_v56  ;;  %15934 = vrcp.f32 %v5262_v60  ;;  %v11763_v34 = vmul.f32 -1.442695, %v19853_v58 }
 0xa2c   :  { %v15919_v42 = vpop.eup %15918  ;;  %v19865_v44 = vmul.f32 %v15917_v26, %v19794_v21  ;;  %15936 = vrcp.f32 %v5261_v41  ;;  %v11762_v36 = vmul.f32 -1.442695, %v19858_v7 }
 0xa2d   :  { %v15921_v62 = vpop.eup %15920  ;;  %v5264_v20 = vadd.f32 1.0, %v15919_v42  ;;  %15938 = vpow2.f32 %v11763_v34  ;;  %v13913_v46 = vpop.f32.mrb[98].mxu1 }
 0xa2e   :  { %v5263_v13 = vadd.f32 1.0, %v15921_v62  ;;  %15940 = vpow2.f32 %v11762_v36  ;;  %v19871_v56 = vadd.f32 %v13913_v46, %v19772_v15  ;;  %v4864_v35 = vpop.f32.mrb[99].mxu1 }
 0xa2f   :  { %v15923_v60 = vpop.eup %15922  ;;  %15942 = vrcp.f32 %v5264_v20  ;;  %v19874_v21 = vadd.f32 %v19772_v15, %v4864_v35 }
 0xa30   :  { %v15925_v50 = vpop.eup %15924  ;;  %15944 = vrcp.f32 %v5263_v13  ;;  %v5266_v12 = vadd.f32 1.0, %v15923_v60  ;;  %v11765_v41 = vmul.f32 -1.442695, %v19871_v56 }
 0xa31   :  { %v15927_v26 = vpop.eup %15926  ;;  %v5265_v34 = vadd.f32 1.0, %v15925_v50  ;;  %v11764_v42 = vmul.f32 -1.442695, %v19874_v21  ;;  %v13916_v62 = vpop.f32.mrb[100].mxu1 }
 0xa32   :  { %v15929_v36 = vpop.eup %15928  ;;  %v19879_v46 = vmul.f32 %v15927_v26, %v19799_v40  ;;  %15946 = vrcp.f32 %v5266_v12  ;;  %v19882_v20 = vadd.f32 %v13916_v62, %v19772_v15  ;;  %v4874_v35 = vpop.f32.mrb[101].mxu1 }
 0xa33   :  { %v15931_v18 = vpop.eup %15930  ;;  %v19885_v13 = vmul.f32 %v15929_v36, %v19802_v33  ;;  %15948 = vrcp.f32 %v5265_v34  ;;  %v19888_v60 = vadd.f32 %v19772_v15, %v4874_v35 }
 0xa34   :  { %v15933_v50 = vpop.eup %15932  ;;  %v5268_v3 = vadd.f32 1.0, %v15931_v18  ;;  %15950 = vpow2.f32 %v11765_v41  ;;  %v11767_v1 = vmul.f32 -1.442695, %v19882_v20 }
 0xa35   :  { %v15935_v40 = vpop.eup %15934  ;;  %v5267_v26 = vadd.f32 1.0, %v15933_v50  ;;  %15952 = vpow2.f32 %v11764_v42  ;;  %v11766_v62 = vmul.f32 -1.442695, %v19888_v60  ;;  %v13919_v0 = vpop.f32.mrb[102].mxu1 }
 0xa36   :  { %v15937_v33 = vpop.eup %15936  ;;  %v19895_v34 = vmul.f32 %v15935_v40, %v19807_v49  ;;  %15954 = vrcp.f32 %v5268_v3  ;;  %v19898_v36 = vadd.f32 %v13919_v0, %v19772_v15  ;;  %v4884_v18 = vpop.f32.mrb[103].mxu1 }
 0xa37   :  { %v15939_v41 = vpop.eup %15938  ;;  %v19901_v35 = vmul.f32 %v15937_v33, %v19810_v57  ;;  %15956 = vrcp.f32 %v5267_v26  ;;  %v19904_v50 = vadd.f32 %v19772_v15, %v4884_v18 }
 0xa38   :  { %v15941_v42 = vpop.eup %15940  ;;  %v5270_v12 = vadd.f32 1.0, %v15939_v41  ;;  %15958 = vpow2.f32 %v11767_v1  ;;  %v11769_v32 = vmul.f32 -1.442695, %v19898_v36 }
 0xa39   :  { %v15943_v49 = vpop.eup %15942  ;;  %v5269_v0 = vadd.f32 1.0, %v15941_v42  ;;  %15960 = vpow2.f32 %v11766_v62  ;;  %v11768_v40 = vmul.f32 -1.442695, %v19904_v50  ;;  %v13922_v38 = vpop.f32.mrb[104].mxu1 }
 0xa3a   :  { %v15945_v57 = vpop.eup %15944  ;;  %v19911_v26 = vmul.f32 %v15943_v49, %v19815_v51  ;;  %15962 = vrcp.f32 %v5270_v12  ;;  %v19914_v33 = vadd.f32 %v13922_v38, %v19772_v15  ;;  %v4894_v1 = vpop.f32.mrb[105].mxu1 }
 0xa3b   :  { %v19917_v18 = vmul.f32 %v15945_v57, %v19818_v11  ;;  %15964 = vrcp.f32 %v5269_v0  ;;  %v19920_v41 = vadd.f32 %v19772_v15, %v4894_v1 }
 0xa3c   :  { %v15947_v62 = vpop.eup %15946  ;;  %15966 = vpow2.f32 %v11769_v32  ;;  %v11771_v42 = vmul.f32 -1.442695, %v19914_v33 }
 0xa3d   :  { %v15949_v3 = vpop.eup %15948  ;;  %v19926_v12 = vmul.f32 %v15947_v62, %v19823_v25  ;;  %15968 = vpow2.f32 %v11768_v40  ;;  %v11770_v38 = vmul.f32 -1.442695, %v19920_v41  ;;  %v13925_v11 = vpop.f32.mrb[106].mxu1 }
 0xa3e   :  { %v15951_v49 = vpop.eup %15950  ;;  %v19930_v0 = vmul.f32 %v15949_v3, %v19826_v4  ;;  %15970 = vpow2.f32 %v11771_v42  ;;  %v19933_v32 = vadd.f32 %v13925_v11, %v19772_v15  ;;  %v4904_v57 = vpop.f32.mrb[107].mxu1 }
 0xa3f   :  { %v15953_v1 = vpop.eup %15952  ;;  %v5272_v53 = vadd.f32 1.0, %v15951_v49  ;;  %15972 = vpow2.f32 %v11770_v38  ;;  %v19936_v51 = vadd.f32 %v19772_v15, %v4904_v57 }
 0xa40   :  { %v15955_v25 = vpop.eup %15954  ;;  %v5271_v62 = vadd.f32 1.0, %v15953_v1  ;;  %v11773_v48 = vmul.f32 -1.442695, %v19933_v32 }
 0xa41   :  { %v15957_v4 = vpop.eup %15956  ;;  %v19942_v3 = vmul.f32 %v15955_v25, %v19837_v39  ;;  %15974 = vrcp.f32 %v5272_v53  ;;  %v11772_v42 = vmul.f32 -1.442695, %v19936_v51  ;;  %v13928_v11 = vpop.f32.mrb[108].mxu1 }
 0xa42   :  { %v15959_v49 = vpop.eup %15958  ;;  %v19946_v38 = vmul.f32 %v15957_v4, %v19842_v47  ;;  %15976 = vrcp.f32 %v5271_v62  ;;  %v19949_v57 = vadd.f32 %v13928_v11, %v19772_v15  ;;  %v4914_v40 = vpop.f32.mrb[109].mxu1 }
 0xa43   :  { %v15961_v1 = vpop.eup %15960  ;;  %v5274_v23 = vadd.f32 1.0, %v15959_v49  ;;  %15978 = vpow2.f32 %v11773_v48  ;;  %v19952_v24 = vadd.f32 %v19772_v15, %v4914_v40 }
 0xa44   :  { %v15963_v39 = vpop.eup %15962  ;;  %v5273_v25 = vadd.f32 1.0, %v15961_v1  ;;  %15980 = vpow2.f32 %v11772_v42  ;;  %v11775_v47 = vmul.f32 -1.442695, %v19949_v57 }
 0xa45   :  { %v15965_v4 = vpop.eup %15964  ;;  %v5450_v62 = vmul.f32 %v15963_v39, %v19853_v58  ;;  %15982 = vrcp.f32 %v5274_v23  ;;  %v11774_v11 = vmul.f32 -1.442695, %v19952_v24  ;;  %v13931_v17 = vpop.f32.mrb[110].mxu1 }
 0xa46   :  { %v15967_v49 = vpop.eup %15966  ;;  %v5449_v48 = vmul.f32 %v15965_v4, %v19858_v7  ;;  %15984 = vrcp.f32 %v5273_v25  ;;  %v19961_v40 = vadd.f32 %v13931_v17, %v19772_v15  ;;  %v4924_v19 = vpop.f32.mrb[111].mxu1 }
 0xa47   :  { %v15969_v53 = vpop.eup %15968  ;;  %v5276_v1 = vadd.f32 1.0, %v15967_v49  ;;  %15986 = vpow2.f32 %v11775_v47  ;;  %v19964_v42 = vadd.f32 %v19772_v15, %v4924_v19 }
 0xa48   :  { %v15971_v10 = vpop.eup %15970  ;;  %v5275_v58 = vadd.f32 1.0, %v15969_v53  ;;  %15988 = vpow2.f32 %v11774_v11  ;;  %v14752_v23 = vpack.c.bf16 %v5450_v62, %v5449_v48  ;;  %v11777_v7 = vmul.f32 -1.442695, %v19961_v40 }
 0xa49   :  { %v15973_v39 = vpop.eup %15972  ;;  %15990 = vrcp.f32 %v5276_v1  ;;  %v5278_v14 = vadd.f32 1.0, %v15971_v10  ;;  %v13934_v25 = vpop.f32.mrb[112].mxu1  ;;  %v11776_v4 = vmul.f32 -1.442695, %v19964_v42  ;;  %v23150_v10 = vpack.c.bf16 %v19829_v55, %v19833_v30 }
 0xa4a   :  { %15992 = vrcp.f32 %v5275_v58  ;;  %v5277_v17 = vadd.f32 1.0, %v15973_v39  ;;  %v19969_v49 = vadd.f32 %v13934_v25, %v19772_v15  ;;  %v4934_v47 = vpop.f32.mrb[113].mxu1  ;;  %14753 = vmatprep.subr.bf16.mxu1 %v14752_v23 }
 0xa4b   :  { %v15975_v19 = vpop.eup %15974  ;;  %15994 = vrcp.f32 %v5278_v14  ;;  %v19972_v53 = vadd.f32 %v19772_v15, %v4934_v47  ;;  %14755 = vmatpush3.bf16.msra.mxu1 %v23150_v10 }
 0xa4c   :  { %v15977_v62 = vpop.eup %15976  ;;  %v5452_v11 = vmul.f32 %v15975_v19, %v19871_v56  ;;  %15996 = vrcp.f32 %v5277_v17  ;;  %v11779_v48 = vmul.f32 -1.442695, %v19969_v49 }
 0xa4d   :  { %v15979_v1 = vpop.eup %15978  ;;  %v5451_v58 = vmul.f32 %v15977_v62, %v19874_v21  ;;  %15998 = vpow2.f32 %v11777_v7  ;;  %v13937_v23 = vpop.f32.mrb[114].mxu1  ;;  %v11778_v25 = vmul.f32 -1.442695, %v19972_v53 }
 0xa4e   :  { %v15981_v39 = vpop.eup %15980  ;;  %v5280_v14 = vadd.f32 1.0, %v15979_v1  ;;  %16000 = vpow2.f32 %v11776_v4  ;;  %v19982_v47 = vadd.f32 %v13937_v23, %v19772_v15  ;;  %v4944_v55 = vpop.f32.mrb[115].mxu1 }
 0xa4f   :  { %v15983_v30 = vpop.eup %15982  ;;  %v5279_v10 = vadd.f32 1.0, %v15981_v39  ;;  %16002 = vpow2.f32 %v11779_v48  ;;  %v19985_v56 = vadd.f32 %v19772_v15, %v4944_v55  ;;  %v14756_v17 = vpack.c.bf16 %v5452_v11, %v5451_v58 }
 0xa50   :  { %v15985_v19 = vpop.eup %15984  ;;  %v5454_v21 = vmul.f32 %v15983_v30, %v19882_v20  ;;  %16004 = vrcp.f32 %v5280_v14  ;;  %v11781_v7 = vmul.f32 -1.442695, %v19982_v47  ;;  %v23151_v11 = vpack.c.bf16 %v19845_v59, %v19849_v43 }
 0xa51   :  { %v15987_v4 = vpop.eup %15986  ;;  %v5453_v62 = vmul.f32 %v15985_v19, %v19888_v60  ;;  %16006 = vrcp.f32 %v5279_v10  ;;  %14757 = vmatprep.subr.bf16.mxu1 %v14756_v17  ;;  %v13940_v1 = vpop.f32.mrb[116].mxu1  ;;  %v11780_v48 = vmul.f32 -1.442695, %v19985_v56 }
 0xa52   :  { %v15989_v23 = vpop.eup %15988  ;;  %v5282_v5 = vadd.f32 1.0, %v15987_v4  ;;  %16008 = vpow2.f32 %v11778_v25  ;;  %14759 = vmatpush3.bf16.msra.mxu1 %v23151_v11  ;;  %v19995_v20 = vadd.f32 %v13940_v1, %v19772_v15  ;;  %v4954_v58 = vpop.f32.mrb[117].mxu1 }
 0xa53   :  { %v15991_v39 = vpop.eup %15990  ;;  %v5281_v14 = vadd.f32 1.0, %v15989_v23  ;;  %16010 = vpow2.f32 %v11781_v7  ;;  %v19998_v60 = vadd.f32 %v19772_v15, %v4954_v58  ;;  %v14760_v55 = vpack.c.bf16 %v5454_v21, %v5453_v62 }
 0xa54   :  { %v15993_v30 = vpop.eup %15992  ;;  %v5456_v25 = vmul.f32 %v15991_v39, %v19898_v36  ;;  %16012 = vrcp.f32 %v5282_v5  ;;  %v11783_v10 = vmul.f32 -1.442695, %v19995_v20  ;;  %v23152_v21 = vpack.c.bf16 %v19861_v61, %v19865_v44 }
 0xa55   :  { %v15995_v17 = vpop.eup %15994  ;;  %v5455_v59 = vmul.f32 %v15993_v30, %v19904_v50  ;;  %16014 = vrcp.f32 %v5281_v14  ;;  %v11782_v43 = vmul.f32 -1.442695, %v19998_v60  ;;  %14761 = vmatprep.subr.bf16.mxu1 %v14760_v55  ;;  %v13943_v19 = vpop.f32.mrb[118].mxu1  ;;  %v23153_v30 = vpack.c.bf16 %v19879_v46, %v19885_v13 }
 0xa56   :  { %v15997_v4 = vpop.eup %15996  ;;  %v5458_v7 = vmul.f32 %v15995_v17, %v19914_v33  ;;  %16016 = vpow2.f32 %v11780_v48  ;;  %14763 = vmatpush3.bf16.msra.mxu1 %v23152_v21  ;;  %v20009_v5 = vadd.f32 %v13943_v19, %v19772_v15  ;;  %v4964_v36 = vpop.f32.mrb[119].mxu1 }
 0xa57   :  { %v15999_v62 = vpop.eup %15998  ;;  %v5457_v50 = vmul.f32 %v15997_v4, %v19920_v41  ;;  %16018 = vpow2.f32 %v11783_v10  ;;  %v20013_v1 = vadd.f32 %v19772_v15, %v4964_v36  ;;  %v14764_v23 = vpack.c.bf16 %v5456_v25, %v5455_v59 }
 0xa58   :  { %v16001_v11 = vpop.eup %16000  ;;  %v5284_v58 = vadd.f32 1.0, %v15999_v62  ;;  %16020 = vpow2.f32 %v11782_v43  ;;  %v11785_v61 = vmul.f32 -1.442695, %v20009_v5 }
 0xa59   :  { %v16003_v33 = vpop.eup %16002  ;;  %v5283_v48 = vadd.f32 1.0, %v16001_v11  ;;  %14765 = vmatprep.subr.bf16.mxu1 %v14764_v23  ;;  %v13946_v44 = vpop.f32.mrb[120].mxu1  ;;  %v14768_v39 = vpack.c.bf16 %v5458_v7, %v5457_v50  ;;  %v11784_v41 = vmul.f32 -1.442695, %v20013_v1 }
 0xa5a   :  { %v16005_v14 = vpop.eup %16004  ;;  %16022 = vrcp.f32 %v5284_v58  ;;  %v5286_v55 = vadd.f32 1.0, %v16003_v33  ;;  %14767 = vmatpush3.bf16.msra.mxu1 %v23153_v30  ;;  %v20021_v25 = vadd.f32 %v13946_v44, %v19772_v15  ;;  %v4974_v10 = vpop.f32.mrb[121].mxu1 }
 0xa5b   :  { %v16007_v17 = vpop.eup %16006  ;;  %v5460_v59 = vmul.f32 %v16005_v14, %v19933_v32  ;;  %16024 = vrcp.f32 %v5283_v48  ;;  %v20025_v43 = vadd.f32 %v19772_v15, %v4974_v10  ;;  %14769 = vmatprep.subr.bf16.mxu1 %v14768_v39  ;;  %v23154_v32 = vpack.c.bf16 %v19895_v34, %v19901_v35 }
 0xa5c   :  { %v16009_v19 = vpop.eup %16008  ;;  %v5459_v4 = vmul.f32 %v16007_v17, %v19936_v51  ;;  %16026 = vrcp.f32 %v5286_v55  ;;  %v11787_v46 = vmul.f32 -1.442695, %v20021_v25 }
 0xa5d   :  { %v16011_v7 = vpop.eup %16010  ;;  %v5285_v21 = vadd.f32 1.0, %v16009_v19  ;;  %16028 = vpow2.f32 %v11785_v61  ;;  %v11786_v13 = vmul.f32 -1.442695, %v20025_v43  ;;  %v13949_v36 = vpop.f32.mrb[122].mxu1 }
 0xa5e   :  { %v16013_v62 = vpop.eup %16012  ;;  %v5288_v50 = vadd.f32 1.0, %v16011_v7  ;;  %16030 = vpow2.f32 %v11784_v41  ;;  %14771 = vmatpush3.bf16.msra.mxu1 %v23154_v32  ;;  %v20034_v23 = vadd.f32 %v13949_v36, %v19772_v15  ;;  %v4984_v51 = vpop.f32.mrb[123].mxu1  ;;  %v14772_v11 = vpack.c.bf16 %v5460_v59, %v5459_v4 }
 0xa5f   :  { %v16015_v58 = vpop.eup %16014  ;;  %v5462_v33 = vmul.f32 %v16013_v62, %v19949_v57  ;;  %16032 = vrcp.f32 %v5285_v21  ;;  %v20038_v48 = vadd.f32 %v19772_v15, %v4984_v51  ;;  %v23155_v57 = vpack.c.bf16 %v19911_v26, %v19917_v18 }
 0xa60   :  { %v16017_v61 = vpop.eup %16016  ;;  %v5461_v44 = vmul.f32 %v16015_v58, %v19952_v24  ;;  %16034 = vrcp.f32 %v5288_v50  ;;  %14773 = vmatprep.subr.bf16.mxu1 %v14772_v11  ;;  %v11789_v35 = vmul.f32 -1.442695, %v20034_v23  ;;  %v23156_v62 = vpack.c.bf16 %v19926_v12, %v19930_v0 }
 0xa61   :  { %v16019_v39 = vpop.eup %16018  ;;  %v5287_v34 = vadd.f32 1.0, %v16017_v61  ;;  %16036 = vpow2.f32 %v11787_v46  ;;  %v13952_v14 = vpop.f32.mrb[124].mxu1  ;;  %v11788_v59 = vmul.f32 -1.442695, %v20038_v48 }
 0xa62   :  { %v16021_v55 = vpop.eup %16020  ;;  %v5290_v41 = vadd.f32 1.0, %v16019_v39  ;;  %16038 = vpow2.f32 %v11786_v13  ;;  %14775 = vmatpush3.bf16.msra.mxu1 %v23155_v57  ;;  %v20046_v30 = vadd.f32 %v13952_v14, %v19772_v15  ;;  %v4994_v10 = vpop.f32.mrb[125].mxu1  ;;  %v14776_v24 = vpack.c.bf16 %v5462_v33, %v5461_v44 }
 0xa63   :  { %16040 = vrcp.f32 %v5287_v34  ;;  %v5289_v17 = vadd.f32 1.0, %v16021_v55  ;;  %v20050_v19 = vadd.f32 %v19772_v15, %v4994_v10  ;;  %v23157_v57 = vpack.c.bf16 %v19942_v3, %v19946_v38 }
 0xa64   :  { %v16023_v4 = vpop.eup %16022  ;;  %16042 = vrcp.f32 %v5290_v41  ;;  %v11791_v7 = vmul.f32 -1.442695, %v20046_v30  ;;  %14777 = vmatprep.subr.bf16.mxu1 %v14776_v24 }
 0xa65   :  { %v16025_v21 = vpop.eup %16024  ;;  %v5464_v26 = vmul.f32 %v16023_v4, %v19961_v40  ;;  %16044 = vrcp.f32 %v5289_v17  ;;  %v11790_v18 = vmul.f32 -1.442695, %v20050_v19  ;;  %v13955_v46 = vpop.f32.mrb[126].mxu1 }
 0xa66   :  { %v16027_v13 = vpop.eup %16026  ;;  %v5463_v36 = vmul.f32 %v16025_v21, %v19964_v42  ;;  %16046 = vpow2.f32 %v11789_v35  ;;  %14779 = vmatpush3.bf16.msra.mxu1 %v23156_v62  ;;  %v20060_v50 = vadd.f32 %v13955_v46, %v19772_v15  ;;  %v5004_v32 = vpop.f32.mrb[127].mxu1 }
 0xa67   :  { %v16029_v51 = vpop.eup %16028  ;;  %v5466_v11 = vmul.f32 %v16027_v13, %v19969_v49  ;;  %16048 = vpow2.f32 %v11788_v59  ;;  %v20064_v40 = vadd.f32 %v19772_v15, %v5004_v32 }
 0xa68   :  { %v16031_v58 = vpop.eup %16030  ;;  %v5292_v33 = vadd.f32 1.0, %v16029_v51  ;;  %16050 = vpow2.f32 %v11791_v7  ;;  %v11793_v42 = vmul.f32 -1.442695, %v20060_v50  ;;  %v14780_v61 = vpack.c.bf16 %v5464_v26, %v5463_v36 }
 0xa69   :  { %v16033_v44 = vpop.eup %16032  ;;  %v5291_v12 = vadd.f32 1.0, %v16031_v58  ;;  %16052 = vpow2.f32 %v11790_v18  ;;  %v11792_v0 = vmul.f32 -1.442695, %v20064_v40  ;;  %v13958_v39 = vpop.f32.mrb[128].mxu1 }
 0xa6a   :  { %v16035_v34 = vpop.eup %16034  ;;  %v5465_v35 = vmul.f32 %v16033_v44, %v19972_v53  ;;  %16054 = vrcp.f32 %v5292_v33  ;;  %14781 = vmatprep.subr.bf16.mxu1 %v14780_v61  ;;  %v20070_v49 = vadd.f32 %v13958_v39, %v19772_v15  ;;  %v5014_v14 = vpop.f32.mrb[129].mxu1 }
 0xa6b   :  { %v16037_v55 = vpop.eup %16036  ;;  %v5468_v41 = vmul.f32 %v16035_v34, %v19982_v47  ;;  %16056 = vrcp.f32 %v5291_v12  ;;  %14783 = vmatpush3.bf16.msra.mxu1 %v23157_v57  ;;  %v20077_v10 = vadd.f32 %v19772_v15, %v5014_v14 }
 0xa6c   :  { %v16039_v24 = vpop.eup %16038  ;;  %v14785_v17 = vpack.c.bf16 %v5466_v11, %v5465_v35  ;;  %v5294_v53 = vadd.f32 1.0, %v16037_v55  ;;  %16058 = vpow2.f32 %v11793_v42  ;;  %v11795_v59 = vmul.f32 -1.442695, %v20070_v49 }
 0xa6d   :  { %v16041_v4 = vpop.eup %16040  ;;  %v5293_v7 = vadd.f32 1.0, %v16039_v24  ;;  %16060 = vpow2.f32 %v11792_v0  ;;  %v11794_v21 = vmul.f32 -1.442695, %v20077_v10  ;;  %v13961_v47 = vpop.f32.mrb[130].mxu1 }
 0xa6e   :  { %v16043_v26 = vpop.eup %16042  ;;  %v5467_v18 = vmul.f32 %v16041_v4, %v19985_v56  ;;  %16062 = vrcp.f32 %v5294_v53  ;;  %14786 = vmatpush1.bf16.msra.mxu0 %v14785_v17  ;;  %v20083_v3 = vadd.f32 %v13961_v47, %v19772_v15  ;;  %v5024_v38 = vpop.f32.mrb[131].mxu1  ;;  %5558 = vmatmul.mubr.f32.vlgmr.msra.gmra.mrb[140].mxu1 %v18877_v8 }
 0xa6f   :  { %v16045_v46 = vpop.eup %16044  ;;  %v5470_v13 = vmul.f32 %v16043_v26, %v19995_v20  ;;  %16064 = vrcp.f32 %v5293_v7  ;;  %v20088_v36 = vadd.f32 %v19772_v15, %v5024_v38  ;;  %14787 = vmatprep.subr.bf16.mxu0 %v23032_v37  ;;  %5562 = vmatprep.mubr.f32.mxu1 %v18886_v45 }
 0xa70   :  { %v16047_v56 = vpop.eup %16046  ;;  %v14788_v62 = vpack.c.bf16 %v5468_v41, %v5467_v18  ;;  %v5469_v32 = vmul.f32 %v16045_v46, %v19998_v60  ;;  %16066 = vpow2.f32 %v11795_v59  ;;  %v11797_v51 = vmul.f32 -1.442695, %v20083_v3 }
 0xa71   :  { %v16049_v11 = vpop.eup %16048  ;;  %v5296_v58 = vadd.f32 1.0, %v16047_v56  ;;  %16068 = vpow2.f32 %v11794_v21  ;;  %v13964_v33 = vpop.f32.mrb[132].mxu1  ;;  %v11796_v39 = vmul.f32 -1.442695, %v20088_v36 }
 0xa72   :  { %v16051_v20 = vpop.eup %16050  ;;  %v14791_v42 = vpack.c.bf16 %v5470_v13, %v5469_v32  ;;  %v5295_v61 = vadd.f32 1.0, %v16049_v11  ;;  %16070 = vpow2.f32 %v11797_v51  ;;  %14789 = vmatpush1.bf16.msra.mxu0 %v14788_v62  ;;  %v20095_v44 = vadd.f32 %v13964_v33, %v19772_v15  ;;  %v5034_v12 = vpop.f32.mrb[133].mxu1  ;;  %5563 = vmatmul.mubr.f32.gmra.mrb[142].mxu1 %v18898_v63 }
 0xa73   :  { %v16053_v0 = vpop.eup %16052  ;;  %16072 = vrcp.f32 %v5296_v58  ;;  %v5298_v60 = vadd.f32 1.0, %v16051_v20  ;;  %v20100_v34 = vadd.f32 %v19772_v15, %v5034_v12  ;;  %14790 = vmatprep.subr.bf16.mxu0 %v23032_v37  ;;  %5567 = vmatprep.mubr.f32.mxu1 %v18909_v6 }
 0xa74   :  { %v16055_v35 = vpop.eup %16054  ;;  %16074 = vrcp.f32 %v5295_v61  ;;  %v5297_v14 = vadd.f32 1.0, %v16053_v0  ;;  %v11799_v55 = vmul.f32 -1.442695, %v20095_v44 }
 0xa75   :  { %v16057_v41 = vpop.eup %16056  ;;  %v5472_v57 = vmul.f32 %v16055_v35, %v20009_v5  ;;  %16076 = vrcp.f32 %v5298_v60  ;;  %v13967_v24 = vpop.f32.mrb[134].mxu1  ;;  %v11798_v47 = vmul.f32 -1.442695, %v20100_v34 }
 0xa76   :  { %v16059_v17 = vpop.eup %16058  ;;  %v5471_v53 = vmul.f32 %v16057_v41, %v20013_v1  ;;  %16078 = vrcp.f32 %v5297_v14  ;;  %14792 = vmatpush1.bf16.msra.mxu0 %v14791_v42  ;;  %v20108_v59 = vadd.f32 %v13967_v24, %v19772_v15  ;;  %v5044_v4 = vpop.f32.mrb[135].mxu1  ;;  %5568 = vmatmul.mubr.f32.gmra.mrb[144].mxu1 %v18913_v29 }
 0xa77   :  { %v16061_v7 = vpop.eup %16060  ;;  %v5300_v21 = vadd.f32 1.0, %v16059_v17  ;;  %16080 = vpow2.f32 %v11796_v39  ;;  %v20113_v5 = vadd.f32 %v19772_v15, %v5044_v4  ;;  %14793 = vmatprep.subr.bf16.mxu0 %v23032_v37  ;;  %5572 = vmatprep.mubr.f32.mxu1 %v18915_v2 }
 0xa78   :  { %v16063_v1 = vpop.eup %16062  ;;  %v14794_v26 = vpack.c.bf16 %v5472_v57, %v5471_v53  ;;  %v5299_v18 = vadd.f32 1.0, %v16061_v7  ;;  %16082 = vpow2.f32 %v11799_v55  ;;  %v11801_v38 = vmul.f32 -1.442695, %v20108_v59  ;;  %v17157_v55 = vld [vmem:[%s22602_s11 + $0x1] ss:$0 sm:$0xff] }
 0xa79   :  { %v16065_v46 = vpop.eup %16064  ;;  %v5474_v13 = vmul.f32 %v16063_v1, %v20021_v25  ;;  %16084 = vrcp.f32 %v5300_v21  ;;  %v13970_v56 = vpop.f32.mrb[136].mxu1 }
 0xa7a   :  { %v16067_v62 = vpop.eup %16066  ;;  %v5473_v32 = vmul.f32 %v16065_v46, %v20025_v43  ;;  %16086 = vrcp.f32 %v5299_v18  ;;  %14795 = vmatpush1.bf16.msra.mxu0 %v14794_v26  ;;  %v20121_v51 = vadd.f32 %v13970_v56, %v19772_v15  ;;  %v5054_v11 = vpop.f32.mrb[137].mxu1  ;;  %5573 = vmatmul.mubr.f32.gmra.mrb[146].mxu1 %v18934_v16  ;;  %v11800_v43 = vmul.f32 -1.442695, %v20113_v5 }
 0xa7b   :  { %v16069_v58 = vpop.eup %16068  ;;  %v5302_v33 = vadd.f32 1.0, %v16067_v62  ;;  %16088 = vpow2.f32 %v11798_v47  ;;  %v20125_v20 = vadd.f32 %v19772_v15, %v5054_v11  ;;  %14796 = vmatprep.subr.bf16.mxu0 %v23032_v37 }
 0xa7c   :  { %v16071_v25 = vpop.eup %16070  ;;  %v14797_v42 = vpack.c.bf16 %v5474_v13, %v5473_v32  ;;  %v5301_v61 = vadd.f32 1.0, %v16069_v58  ;;  %16090 = vpow2.f32 %v11801_v38  ;;  %v11803_v60 = vmul.f32 -1.442695, %v20121_v51 }
 0xa7d   :  { %v16073_v12 = vpop.eup %16072  ;;  %16092 = vrcp.f32 %v5302_v33  ;;  %v5304_v0 = vadd.f32 1.0, %v16071_v25  ;;  %v13973_v39 = vpop.f32.mrb[138].mxu1  ;;  %v11802_v15 = vmul.f32 -1.442695, %v20125_v20 }
 0xa7e   :  { %v16075_v35 = vpop.eup %16074  ;;  %v5476_v14 = vmul.f32 %v16073_v12, %v20034_v23  ;;  %16094 = vrcp.f32 %v5301_v61  ;;  %14798 = vmatpush1.bf16.msra.mxu0 %v14797_v42  ;;  %v20135_v41 = vadd.f32 %v17157_v55, %v13973_v39  ;;  %v5064_v57 = vpop.f32.mrb[139].mxu1 }
 0xa7f   :  { %v16077_v24 = vpop.eup %16076  ;;  %v5475_v17 = vmul.f32 %v16075_v35, %v20038_v48  ;;  %16096 = vrcp.f32 %v5304_v0  ;;  %v20138_v53 = vadd.f32 %v17157_v55, %v5064_v57  ;;  %14799 = vmatprep.subr.bf16.mxu0 %v23032_v37 }
 0xa80   :  { %v16079_v23 = vpop.eup %16078  ;;  %v5478_v4 = vmul.f32 %v16077_v24, %v20046_v30  ;;  %16098 = vpow2.f32 %v11800_v43  ;;  %v11805_v7 = vmul.f32 -1.442695, %v20135_v41 }
 0xa81   :  { %v16081_v21 = vpop.eup %16080  ;;  %v14800_v47 = vpack.c.bf16 %v5476_v14, %v5475_v17  ;;  %v5477_v1 = vmul.f32 %v16079_v23, %v20050_v19  ;;  %16100 = vpow2.f32 %v11803_v60  ;;  %v11804_v48 = vmul.f32 -1.442695, %v20138_v53 }
 0xa82   :  { %v16083_v26 = vpop.eup %16082  ;;  %v5303_v18 = vadd.f32 1.0, %v16081_v21  ;;  %16102 = vpow2.f32 %v11802_v15 }
 0xa83   :  { %v16085_v38 = vpop.eup %16084  ;;  %v14803_v46 = vpack.c.bf16 %v5478_v4, %v5477_v1  ;;  %v5306_v13 = vadd.f32 1.0, %v16083_v26  ;;  %16104 = vpow2.f32 %v11805_v7  ;;  %14801 = vmatpush1.bf16.msra.mxu0 %v14800_v47 }
 0xa84   :  { %v16087_v56 = vpop.eup %16086  ;;  %v5480_v30 = vmul.f32 %v16085_v38, %v20060_v50  ;;  %16106 = vrcp.f32 %v5303_v18  ;;  %14802 = vmatprep.subr.bf16.mxu0 %v23032_v37 }
 0xa85   :  { %v16089_v62 = vpop.eup %16088  ;;  %v5479_v19 = vmul.f32 %v16087_v56, %v20064_v40  ;;  %16108 = vrcp.f32 %v5306_v13 }
 0xa86   :  { %v16091_v32 = vpop.eup %16090  ;;  %v5305_v11 = vadd.f32 1.0, %v16089_v62  ;;  %16110 = vpow2.f32 %v11804_v48 }
 0xa87   :  { %v16093_v58 = vpop.eup %16092  ;;  %v14806_v33 = vpack.c.bf16 %v5480_v30, %v5479_v19  ;;  %v5308_v25 = vadd.f32 1.0, %v16091_v32  ;;  %14804 = vmatpush1.bf16.msra.mxu0 %v14803_v46  ;;  %v11813_v32 = vld [vmem:[%s22603_s12 + $0x58] sm:$0xff] }
 0xa88   :  { %v16095_v42 = vpop.eup %16094  ;;  %v5482_v61 = vmul.f32 %v16093_v58, %v20070_v49  ;;  %16112 = vrcp.f32 %v5305_v11  ;;  %14805 = vmatprep.subr.bf16.mxu0 %v23032_v37  ;;  %v11814_v58 = vld [vmem:[%s22603_s12 + $0x60] sm:$0xff] }
 0xa89   :  { %v16097_v50 = vpop.eup %16096  ;;  %v5481_v43 = vmul.f32 %v16095_v42, %v20077_v10  ;;  %16114 = vrcp.f32 %v5308_v25 }
 0xa8a   :  { %v16099_v12 = vpop.eup %16098  ;;  %v5484_v15 = vmul.f32 %v16097_v50, %v20083_v3 }
 0xa8b   :  { %v16101_v40 = vpop.eup %16100  ;;  %v14809_v0 = vpack.c.bf16 %v5482_v61, %v5481_v43  ;;  %v5307_v60 = vadd.f32 1.0, %v16099_v12  ;;  %14807 = vmatpush1.bf16.msra.mxu0 %v14806_v33  ;;  %v11815_v33 = vld [vmem:[%s22603_s12 + $0x68] sm:$0xff] }
 0xa8c   :  { %v16103_v39 = vpop.eup %16102  ;;  %v5310_v35 = vadd.f32 1.0, %v16101_v40  ;;  %14808 = vmatprep.subr.bf16.mxu0 %v23032_v37  ;;  %v14834_v25 = vpack.c.bf16 %v11815_v33, %v11814_v58  ;;  %v11838_v58 = vld [vmem:[%s22597_s6 + $0x40] sm:$0xff]  ;;  %v11839_v33 = vld [vmem:[%s22597_s6 + $0x48] sm:$0xff] }
 0xa8d   :  { %v16105_v14 = vpop.eup %16104  ;;  %16116 = vrcp.f32 %v5307_v60  ;;  %v5309_v49 = vadd.f32 1.0, %v16103_v39 }
 0xa8e   :  { %v16107_v55 = vpop.eup %16106  ;;  %16118 = vrcp.f32 %v5310_v35  ;;  %v5312_v57 = vadd.f32 1.0, %v16105_v14 }
 0xa8f   :  { %v16109_v24 = vpop.eup %16108  ;;  %v5483_v10 = vmul.f32 %v16107_v55, %v20088_v36  ;;  %16120 = vrcp.f32 %v5309_v49  ;;  %14810 = vmatpush1.bf16.msra.mxu0 %v14809_v0  ;;  %v11816_v49 = vld [vmem:[%s22603_s12 + $0x70] sm:$0xff]  ;;  %v11817_v55 = vld [vmem:[%s22603_s12 + $0x78] sm:$0xff] }
 0xa90   :  { %v16111_v17 = vpop.eup %16110  ;;  %16122 = vrcp.f32 %v5312_v57  ;;  %14811 = vmatprep.subr.bf16.mxu0 %v23032_v37  ;;  %v5486_v4 = vmul.f32 %v16109_v24, %v20095_v44  ;;  %v14838_v57 = vpack.c.bf16 %v11817_v55, %v11816_v49 }
 0xa91   :  { %v14812_v23 = vpack.c.bf16 %v5484_v15, %v5483_v10  ;;  %v5311_v7 = vadd.f32 1.0, %v16111_v17 }
 0xa92   :  { %v16113_v21 = vpop.eup %16112 }
 0xa93   :  { %v16115_v3 = vpop.eup %16114  ;;  %v5485_v47 = vmul.f32 %v16113_v21, %v20100_v34  ;;  %16124 = vrcp.f32 %v5311_v7  ;;  %14813 = vmatpush1.bf16.msra.mxu0 %v14812_v23 }
 0xa94   :  { %14814 = vmatprep.subr.bf16.mxu0 %v23032_v37  ;;  %v5488_v36 = vmul.f32 %v16115_v3, %v20108_v59 }
 0xa95   :  { %v14815_v1 = vpack.c.bf16 %v5486_v4, %v5485_v47 }
 0xa97   :  { %v16117_v26 = vpop.eup %16116  ;;  %14816 = vmatpush1.bf16.msra.mxu0 %v14815_v1 }
 0xa98   :  { %v16119_v18 = vpop.eup %16118  ;;  %v5487_v48 = vmul.f32 %v16117_v26, %v20113_v5  ;;  %14817 = vmatprep.subr.bf16.mxu0 %v23032_v37  ;;  %v23158_v5 = vld [vmem:[#allocation137_spill] sm:$0xff] }
 0xa99   :  { %v16121_v44 = vpop.eup %16120  ;;  %v5490_v38 = vmul.f32 %v16119_v18, %v20121_v51  ;;  %v11810_v51 = vld [vmem:[%s22603_s12 + $0x40] sm:$0xff] }
 0xa9a   :  { %v16123_v46 = vpop.eup %16122  ;;  %v14818_v13 = vpack.c.bf16 %v5488_v36, %v5487_v48  ;;  %v5489_v34 = vmul.f32 %v16121_v44, %v20125_v20  ;;  %v11811_v20 = vld [vmem:[%s22603_s12 + $0x48] sm:$0xff]  ;;  %v23159_v48 = vld [vmem:[#allocation5_spill] sm:$0xff] }
 0xa9b   :  { %v5492_v30 = vmul.f32 %v16123_v46, %v20135_v41  ;;  %v11812_v41 = vld [vmem:[%s22603_s12 + $0x50] sm:$0xff]  ;;  %v23160_v46 = vld [vmem:[#allocation6_spill] sm:$0xff] }
 0xa9c   :  { %v14821_v56 = vpack.c.bf16 %v5490_v38, %v5489_v34  ;;  %14819 = vmatpush1.bf16.msra.mxu0 %v14818_v13  ;;  %v14830_v11 = vpack.c.bf16 %v11813_v32, %v11812_v41  ;;  %v11831_v32 = vld [vmem:[%s22605_s14 + $0x38] sm:$0xff] }
 0xa9d   :  { %v16125_v62 = vpop.eup %16124  ;;  %14820 = vmatprep.subr.bf16.mxu0 %v23032_v37 }
 0xa9e   :  { %v5491_v59 = vmul.f32 %v16125_v62, %v20138_v53  ;;  %v14826_v53 = vpack.c.bf16 %v11811_v20, %v11810_v51  ;;  %v11828_v51 = vld [vmem:[%s22605_s14 + $0x20] sm:$0xff]  ;;  %v11829_v20 = vld [vmem:[%s22605_s14 + $0x28] sm:$0xff] }
 0xa9f   :  { %v14842_v41 = vpack.c.bf16 %v11829_v20, %v11828_v51 }
 0xaa0   :  { %v14824_v19 = vpack.c.bf16 %v5492_v30, %v5491_v59  ;;  %14822 = vmatpush1.bf16.msra.mxu0 %v14821_v56  ;;  %14827 = vmatprep.subr.bf16.mxu1 %v14826_v53  ;;  %v23161_v56 = vld [vmem:[#allocation7_spill] sm:$0xff]  ;;  %v23162_v59 = vld [vmem:[#allocation8_spill] sm:$0xff] }
 0xaa1   :  { %14823 = vmatprep.subr.bf16.mxu0 %v23032_v37  ;;  %14829 = vmatpush3.bf16.msra.mxu1 %v14826_v53  ;;  %v11830_v53 = vld [vmem:[%s22605_s14 + $0x30] sm:$0xff] }
 0xaa2   :  { %14831 = vmatprep.subr.bf16.mxu1 %v14830_v11 }
 0xaa4   :  { %14825 = vmatpush1.bf16.msra.mxu0 %v14824_v19 }
 0xaa5   :  { %14833 = vmatpush3.bf16.msra.mxu1 %v14830_v11  ;;  %14843 = vmatprep.subr.bf16.mxu0 %v14842_v41  ;;  %v14846_v11 = vpack.c.bf16 %v11831_v32, %v11830_v53 }
 0xaa6   :  { %14835 = vmatprep.subr.bf16.mxu1 %v14834_v25 }
 0xaa7   :  { %5643 = vmatmul.mubr.f32.vlgmr.msra.gmra.mrb[144].mxu0 %v18996_v52 }
 0xaa8   :  { %11807 = vmatprep.mubr.msk.f32.mxu0 %vm2951_vm4, %v18998_v54  ;;  %14845 = vmatpush3.bf16.msra.mxu0 %v14842_v41 }
 0xaa9   :  { %14837 = vmatpush3.bf16.msra.mxu1 %v14834_v25  ;;  %14847 = vmatprep.subr.bf16.mxu0 %v14846_v11  ;;  %v11846_v25 = vld [vmem:[%s22598_s7 + $0x40] sm:$0xff] }
 0xaaa   :  { %14839 = vmatprep.subr.bf16.mxu1 %v14838_v57 }
 0xaab   :  { %5648 = vmatmul.mubr.f32.gmra.mrb[146].mxu0 %v19004_v31 }
 0xaac   :  { %11808 = vmatprep.mubr.msk.f32.mxu0 %vm2951_vm4, %v19008_v27  ;;  %14849 = vmatpush3.bf16.msra.mxu0 %v14846_v11 }
 0xaad   :  { %14841 = vmatpush3.bf16.msra.mxu1 %v14838_v57 }
 0xaaf   :  { %5653 = vmatmul.mubr.f32.gmra.mrb[148].mxu0 %v19014_v28 }
 0xab0   :  { %11809 = vmatprep.mubr.msk.f32.mxu0 %vm2951_vm4, %v19018_v22 }
 0xab3   :  { %5658 = vmatmul.mubr.f32.gmra.mrb[150].mxu0 %v23158_v5 }
 0xb41   :  { %v12994_v42 = vpop.f32.mrb[140].mxu1 }
 0xb42   :  { %v12995_v61 = vpop.f32.mrb[141].mxu1 }
 0xb43   :  { %v12996_v50 = vadd.f32 %v12995_v61, %v12994_v42  ;;  %v14850_v42 = vpack.c.bf16 %v11839_v33, %v11838_v58  ;;  %v11847_v61 = vld [vmem:[%s22598_s7 + $0x48] sm:$0xff] }
 0xb45   :  { %v12997_v43 = vpop.f32.mrb[142].mxu1  ;;  %14851 = vmatprep.subr.bf16.mxu1 %v14850_v42 }
 0xb46   :  { %v12998_v12 = vpop.f32.mrb[143].mxu1 }
 0xb47   :  { %v12999_v40 = vadd.f32 %v12998_v12, %v12997_v43  ;;  %v11819_v43 = vld [vmem:[%s22604_s13 + $0x1] ss:$0 sm:$0xff] }
 0xb49   :  { %v13000_v0 = vpop.f32.mrb[144].mxu1 }
 0xb4a   :  { %v13001_v60 = vpop.f32.mrb[145].mxu1 }
 0xb4b   :  { %v13002_v39 = vadd.f32 %v13001_v60, %v13000_v0 }
 0xb4d   :  { %v13003_v35 = vpop.f32.mrb[146].mxu1 }
 0xb4e   :  { %v13004_v14 = vpop.f32.mrb[147].mxu1 }
 0xb4f   :  { %v13005_v15 = vadd.f32 %v13004_v14, %v13003_v35 }
 0xb7a   :  { %v5644_v24 = vpop.f32.mrb[144].mxu0 }
 0xb7b   :  { %v5645_v10 = vadd.f32 %v12996_v50, %v5644_v24  ;;  %v5646_v17 = vpop.f32.mrb[145].mxu0  ;;  %v14858_v50 = vpack.c.bf16 %v11847_v61, %v11846_v25  ;;  %v23167_v25 = vld [vmem:[#allocation9_spill] sm:$0xff] }
 0xb7d   :  { %5667 = vrot.lane.b32.xlu0 %v5645_v10, %s17192_s3  ;;  %14859 = vmatprep.subr.bf16.mxu0 %v14858_v50 }
 0xb7e   :  { %v5649_v23 = vpop.f32.mrb[146].mxu0 }
 0xb7f   :  { %v5650_v4 = vadd.f32 %v12999_v40, %v5649_v23  ;;  %v5651_v7 = vpop.f32.mrb[147].mxu0 }
 0xb81   :  { %5669 = vrot.lane.b32.xlu1 %v5650_v4, %s17192_s3 }
 0xb82   :  { %v5654_v21 = vpop.f32.mrb[148].mxu0 }
 0xb83   :  { %v5655_v3 = vadd.f32 %v13002_v39, %v5654_v21  ;;  %v5656_v47 = vpop.f32.mrb[149].mxu0 }
 0xb85   :  { %5671 = vrot.lane.b32.xlu0 %v5655_v3, %s17192_s3 }
 0xb86   :  { %v5659_v1 = vpop.f32.mrb[150].mxu0 }
 0xb87   :  { %v5660_v36 = vadd.f32 %v13005_v15, %v5659_v1  ;;  %v5661_v26 = vpop.f32.mrb[151].mxu0 }
 0xb89   :  { %5673 = vrot.lane.b32.xlu1 %v5660_v36, %s17192_s3 }
 0xbef   :  { %v5668_v18 = vpop.permute.xlu0 %5667 }
 0xbf0   :  { %v5679_v44 = vsel %vm388_vm2, %v23159_v48, %v5668_v18 }
 0xbf1   :  { %13990 = vmatprep.mubr.msk.f32.mxu1 %vm942_vm3, %v5679_v44 }
 0xbf3   :  { %v5670_v38 = vpop.permute.xlu1 %5669 }
 0xbf4   :  { %v5680_v13 = vsel %vm388_vm2, %v23160_v46, %v5670_v38 }
 0xbf5   :  { %13991 = vmatmul.mubr.msk.f32.vlgmr.msra.gmra.mrb[148].mxu1 %vm942_vm3, %v5680_v13  ;;  %v11840_v13 = vld [vmem:[%s22597_s6 + $0x50] sm:$0xff] }
 0xbf6   :  { %14853 = vmatpush3.bf16.msra.mxu1 %v14850_v42 }
 0xbf7   :  { %v5672_v34 = vpop.permute.xlu0 %5671 }
 0xbf8   :  { %v5681_v30 = vsel %vm388_vm2, %v23161_v56, %v5672_v34  ;;  %v11841_v34 = vld [vmem:[%s22597_s6 + $0x58] sm:$0xff]  ;;  %v11848_v56 = vld [vmem:[%s22598_s7 + $0x50] sm:$0xff] }
 0xbf9   :  { %13993 = vmatprep.mubr.msk.f32.mxu1 %vm942_vm3, %v5681_v30  ;;  %v14854_v30 = vpack.c.bf16 %v11841_v34, %v11840_v13  ;;  %v23188_v13 = vld [vmem:[#allocation62_spill] sm:$0xff]  ;;  %v23189_v34 = vld [vmem:[#allocation63_spill] sm:$0xff] }
 0xbfb   :  { %v5674_v62 = vpop.permute.xlu1 %5673  ;;  %14855 = vmatprep.subr.bf16.mxu1 %v14854_v30 }
 0xbfc   :  { %v5682_v19 = vsel %vm388_vm2, %v23162_v59, %v5674_v62  ;;  %v11849_v62 = vld [vmem:[%s22598_s7 + $0x58] sm:$0xff]  ;;  %14857 = vmatpush3.bf16.msra.mxu1 %v14854_v30  ;;  %v23191_v30 = vld [vmem:[#allocation67_spill] sm:$0xff] }
 0xbfd   :  { %13994 = vmatmul.mubr.msk.f32.gmra.mrb[150].mxu1 %vm942_vm3, %v5682_v19  ;;  %v14862_v59 = vpack.c.bf16 %v11849_v62, %v11848_v56  ;;  %v11833_v19 = vld [vmem:[%s22606_s15 + $0x1] ss:$0 sm:$0xff]  ;;  %v23190_v56 = vld [vmem:[#allocation66_spill] sm:$0xff] }
 0xbfe   :  { %v23192_v62 = vld [vmem:[#allocation70_spill] sm:$0xff] }
 0xcc8   :  { %v13992_v12 = vpop.f32.mrb[148].mxu1 }
 0xcc9   :  { %v5784_v40 = vadd.f32 %v13992_v12, %v11819_v43  ;;  %v5778_v0 = vpop.f32.mrb[149].mxu1 }
 0xcca   :  { %v5779_v60 = vadd.f32 %v11819_v43, %v5778_v0 }
 0xccb   :  { %v11825_v39 = vmul.f32 -1.442695, %v5784_v40 }
 0xccc   :  { %v11824_v35 = vmul.f32 -1.442695, %v5779_v60 }
 0xccd   :  { %16126 = vpow2.f32 %v11825_v39 }
 0xcce   :  { %16128 = vpow2.f32 %v11824_v35 }
 0xcd0   :  { %v13995_v14 = vpop.f32.mrb[150].mxu1 }
 0xcd1   :  { %v5794_v15 = vadd.f32 %v13995_v14, %v11819_v43  ;;  %v5788_v49 = vpop.f32.mrb[151].mxu1 }
 0xcd2   :  { %v5789_v55 = vadd.f32 %v11819_v43, %v5788_v49  ;;  %v23168_v49 = vld [vmem:[#allocation27_spill] sm:$0xff] }
 0xcd3   :  { %v11827_v57 = vmul.f32 -1.442695, %v5794_v15 }
 0xcd4   :  { %v11826_v24 = vmul.f32 -1.442695, %v5789_v55 }
 0xcd5   :  { %16130 = vpow2.f32 %v11827_v57  ;;  %v23170_v57 = vld [vmem:[#allocation31_spill] sm:$0xff] }
 0xcd6   :  { %16132 = vpow2.f32 %v11826_v24  ;;  %v23171_v24 = vld [vmem:[#allocation32_spill] sm:$0xff] }
 0xcd7   :  { %v16127_v10 = vpop.eup %16126 }
 0xcd8   :  { %v16129_v17 = vpop.eup %16128  ;;  %v5810_v23 = vadd.f32 1.0, %v16127_v10  ;;  %v23172_v10 = vld [vmem:[#allocation35_spill] sm:$0xff] }
 0xcd9   :  { %v5809_v4 = vadd.f32 1.0, %v16129_v17  ;;  %v23173_v17 = vld [vmem:[#allocation36_spill] sm:$0xff] }
 0xcda   :  { %16134 = vrcp.f32 %v5810_v23  ;;  %v23174_v23 = vld [vmem:[#allocation39_spill] sm:$0xff] }
 0xcdb   :  { %16136 = vrcp.f32 %v5809_v4  ;;  %v23175_v4 = vld [vmem:[#allocation40_spill] sm:$0xff] }
 0xcdf   :  { %v16131_v7 = vpop.eup %16130 }
 0xce0   :  { %v16133_v21 = vpop.eup %16132  ;;  %v5812_v3 = vadd.f32 1.0, %v16131_v7  ;;  %v23176_v7 = vld [vmem:[#allocation42_spill] sm:$0xff] }
 0xce1   :  { %v5811_v47 = vadd.f32 1.0, %v16133_v21  ;;  %v23177_v21 = vld [vmem:[#allocation43_spill] sm:$0xff] }
 0xce2   :  { %16138 = vrcp.f32 %v5812_v3  ;;  %v23178_v3 = vld [vmem:[#allocation46_spill] sm:$0xff] }
 0xce3   :  { %16140 = vrcp.f32 %v5811_v47  ;;  %v23179_v47 = vld [vmem:[#allocation47_spill] sm:$0xff] }
 0xce4   :  { %v16135_v1 = vpop.eup %16134 }
 0xce5   :  { %v16137_v36 = vpop.eup %16136  ;;  %v5822_v18 = vmul.f32 %v16135_v1, %v5784_v40  ;;  %v23180_v1 = vld [vmem:[#allocation50_spill] sm:$0xff] }
 0xce6   :  { %v5821_v26 = vmul.f32 %v16137_v36, %v5779_v60  ;;  %v23181_v36 = vld [vmem:[#allocation51_spill] sm:$0xff] }
 0xce8   :  { %14004 = vmatprep.mubr.msk.f32.mxu0 %vm388_vm2, %v5821_v26  ;;  %v23182_v26 = vld [vmem:[#allocation52_spill] sm:$0xff] }
 0xce9   :  { %14005 = vmatmul.mubr.msk.f32.vlgmr.msra.gmra.mrb[152].mxu0 %vm388_vm2, %v5822_v18  ;;  %v23183_v18 = vld [vmem:[#allocation53_spill] sm:$0xff] }
 0xcea   :  { %14861 = vmatpush3.bf16.msra.mxu0 %v14858_v50 }
 0xceb   :  { %14863 = vmatprep.subr.bf16.mxu0 %v14862_v59 }
 0xcec   :  { %v16139_v48 = vpop.eup %16138 }
 0xced   :  { %v16141_v44 = vpop.eup %16140  ;;  %v5824_v46 = vmul.f32 %v16139_v48, %v5794_v15  ;;  %v23184_v48 = vld [vmem:[#allocation56_spill] sm:$0xff] }
 0xcee   :  { %v5823_v38 = vmul.f32 %v16141_v44, %v5789_v55  ;;  %14865 = vmatpush3.bf16.msra.mxu0 %v14862_v59  ;;  %v23169_v55 = vld [vmem:[#allocation28_spill] sm:$0xff]  ;;  %v23185_v44 = vld [vmem:[#allocation57_spill] sm:$0xff]  ;;  %v23193_v59 = vld [vmem:[#allocation71_spill] sm:$0xff] }
 0xcf0   :  { %14007 = vmatprep.mubr.msk.f32.mxu0 %vm388_vm2, %v5823_v38  ;;  %v23186_v38 = vld [vmem:[#allocation60_spill] sm:$0xff] }
 0xcf1   :  { %14008 = vmatmul.mubr.msk.f32.gmra.mrb[154].mxu0 %vm388_vm2, %v5824_v46  ;;  %v23187_v46 = vld [vmem:[#allocation61_spill] sm:$0xff] }
 0xdbc   :  { %v14006_v51 = vpop.f32.mrb[152].mxu0 }
 0xdbd   :  { %v5916_v20 = vpop.f32.mrb[153].mxu0  ;;  %v20265_v53 = vadd.f32 %v14006_v51, %v11833_v19  ;;  %v23195_v51 = vld [vmem:[#allocation73_spill] sm:$0xff] }
 0xdbe   :  { %v20263_v41 = vadd.f32 %v11833_v19, %v5916_v20  ;;  %v23196_v20 = vld [vmem:[#allocation76_spill] sm:$0xff] }
 0xdbf   :  { %23164 = vst [vmem:[#allocation127_spill] sm:$0xff] %v20265_v53 }
 0xdc0   :  { %23163 = vst [vmem:[#allocation126_spill] sm:$0xff] %v20263_v41  ;;  %14018 = vmatprep.mubr.msk.f32.mxu1 %vm388_vm2, %v20263_v41  ;;  %14032 = vmatprep.mubr.msk.f32.mxu0 %vm388_vm2, %v20263_v41 }
 0xdc1   :  { %14019 = vmatmul.mubr.msk.f32.vlgmr.msra.gmra.mrb[152].mxu1 %vm388_vm2, %v20265_v53  ;;  %14033 = vmatmul.mubr.msk.f32.vlgmr.msra.gmra.mrb[156].mxu0 %vm388_vm2, %v20265_v53 }
 0xdc4   :  { %v14009_v32 = vpop.f32.mrb[154].mxu0 }
 0xdc5   :  { %v5926_v11 = vpop.f32.mrb[155].mxu0  ;;  %v20277_v33 = vadd.f32 %v14009_v32, %v11833_v19  ;;  %v23197_v32 = vld [vmem:[#allocation77_spill] sm:$0xff] }
 0xdc6   :  { %v20275_v58 = vadd.f32 %v11833_v19, %v5926_v11  ;;  %v23194_v19 = vld [vmem:[#allocation72_spill] sm:$0xff] }
 0xdc7   :  { %23166 = vst [vmem:[#allocation137_spill] sm:$0xff] %v20277_v33  ;;  %v23198_v11 = vld [vmem:[#allocation80_spill] sm:$0xff] }
 0xdc8   :  { %23165 = vst [vmem:[#allocation128_spill] sm:$0xff] %v20275_v58  ;;  %14021 = vmatprep.mubr.msk.f32.mxu1 %vm388_vm2, %v20275_v58  ;;  %14035 = vmatprep.mubr.msk.f32.mxu0 %vm388_vm2, %v20275_v58 }
 0xdc9   :  { %14022 = vmatmul.mubr.msk.f32.gmra.mrb[154].mxu1 %vm388_vm2, %v20277_v33  ;;  %14036 = vmatmul.mubr.msk.f32.gmra.mrb[158].mxu0 %vm388_vm2, %v20277_v33 }
 0xdca   :  { %14054 = vmatprep.mubr.msk.f32.mxu1 %vm942_vm3, %v23167_v25 }
 0xe94   :  { %v14020_v42 = vpop.f32.mrb[152].mxu1  ;;  %v14034_v61 = vpop.f32.mrb[156].mxu0 }
 0xe95   :  { %v6018_v50 = vpop.f32.mrb[153].mxu1  ;;  %v6108_v43 = vpop.f32.mrb[157].mxu0 }
 0xe96   :  { %v14866_v12 = vpack.c.bf16 %v14020_v42, %v6018_v50  ;;  %v14874_v40 = vpack.c.bf16 %v14034_v61, %v6108_v43  ;;  %v23199_v42 = vld [vmem:[#allocation81_spill] sm:$0xff]  ;;  %v23200_v61 = vld [vmem:[#allocation82_spill] sm:$0xff]  ;;  %v23201_v50 = vld [vmem:[#allocation83_spill] sm:$0xff] }
 0xe97   :  { %v23202_v43 = vld [vmem:[#allocation86_spill] sm:$0xff] }
 0xe98   :  { %14867 = vmatprep.subr.bf16.mxu1 %v14866_v12 }
 0xe99   :  { %14869 = vmatpush3.bf16.msra.mxu1 %v14866_v12  ;;  %v23203_v12 = vld [vmem:[#allocation87_spill] sm:$0xff] }
 0xe9c   :  { %v14023_v0 = vpop.f32.mrb[154].mxu1  ;;  %v14037_v60 = vpop.f32.mrb[158].mxu0 }
 0xe9d   :  { %v6028_v39 = vpop.f32.mrb[155].mxu1  ;;  %v6118_v35 = vpop.f32.mrb[159].mxu0 }
 0xe9e   :  { %v14870_v14 = vpack.c.bf16 %v14023_v0, %v6028_v39  ;;  %v14878_v15 = vpack.c.bf16 %v14037_v60, %v6118_v35  ;;  %v23205_v0 = vld [vmem:[#allocation91_spill] sm:$0xff]  ;;  %v23206_v60 = vld [vmem:[#allocation92_spill] sm:$0xff]  ;;  %v23207_v39 = vld [vmem:[#allocation93_spill] sm:$0xff] }
 0xe9f   :  { %v23208_v35 = vld [vmem:[#allocation96_spill] sm:$0xff] }
 0xea0   :  { %14871 = vmatprep.subr.bf16.mxu1 %v14870_v14 }
 0xea1   :  { %14873 = vmatpush3.bf16.msra.mxu1 %v14870_v14  ;;  %v23209_v14 = vld [vmem:[#allocation97_spill] sm:$0xff] }
 0xea2   :  { %14875 = vmatprep.subr.bf16.mxu1 %v14874_v40 }
 0xea5   :  { %14877 = vmatpush3.bf16.msra.mxu1 %v14874_v40  ;;  %v23204_v40 = vld [vmem:[#allocation90_spill] sm:$0xff] }
 0xea6   :  { %14879 = vmatprep.subr.bf16.mxu1 %v14878_v15 }
 0xea9   :  { %14881 = vmatpush3.bf16.msra.mxu1 %v14878_v15  ;;  %v23210_v15 = vld [vmem:[#allocation100_spill] sm:$0xff] }
 0xeaa   :  { %14922 = vmatprep.subr.bf16.mxu1 %v23032_v37 }
 0xeac   :  { %14055 = vmatmul.mubr.msk.f32.vlgmr.msra.gmra.mrb[156].mxu1 %vm942_vm3, %v23168_v49 }
 0xead   :  { %14057 = vmatprep.mubr.msk.f32.mxu1 %vm942_vm3, %v23169_v55 }
 0xeb0   :  { %14058 = vmatmul.mubr.msk.f32.gmra.mrb[158].mxu1 %vm942_vm3, %v23170_v57 }
 0xeb1   :  { %14060 = vmatprep.mubr.msk.f32.mxu1 %vm942_vm3, %v23171_v24 }
 0xeb4   :  { %14061 = vmatmul.mubr.msk.f32.gmra.mrb[160].mxu1 %vm942_vm3, %v23172_v10 }
 0xeb5   :  { %14063 = vmatprep.mubr.msk.f32.mxu1 %vm942_vm3, %v23173_v17 }
 0xeb8   :  { %14064 = vmatmul.mubr.msk.f32.gmra.mrb[162].mxu1 %vm942_vm3, %v23174_v23 }
 0xeb9   :  { %14066 = vmatprep.mubr.msk.f32.mxu1 %vm942_vm3, %v23175_v4 }
 0xebc   :  { %14067 = vmatmul.mubr.msk.f32.gmra.mrb[164].mxu1 %vm942_vm3, %v23176_v7 }
 0xebd   :  { %14069 = vmatprep.mubr.msk.f32.mxu1 %vm942_vm3, %v23177_v21 }
 0xec0   :  { %14070 = vmatmul.mubr.msk.f32.gmra.mrb[166].mxu1 %vm942_vm3, %v23178_v3  ;;  %v23244_v3 = vld [vmem:[#allocation29_spill] sm:$0xff] }
 0xec1   :  { %14072 = vmatprep.mubr.msk.f32.mxu1 %vm942_vm3, %v23179_v47 }
 0xec4   :  { %14073 = vmatmul.mubr.msk.f32.gmra.mrb[168].mxu1 %vm942_vm3, %v23180_v1  ;;  %v23242_v1 = vld [vmem:[#allocation25_spill] sm:$0xff] }
 0xec5   :  { %14075 = vmatprep.mubr.msk.f32.mxu1 %vm942_vm3, %v23181_v36 }
 0xec8   :  { %14076 = vmatmul.mubr.msk.f32.gmra.mrb[170].mxu1 %vm942_vm3, %v23182_v26  ;;  %v23240_v26 = vld [vmem:[#allocation23_spill] sm:$0xff] }
 0xec9   :  { %14078 = vmatprep.mubr.msk.f32.mxu1 %vm942_vm3, %v23183_v18 }
 0xecc   :  { %14079 = vmatmul.mubr.msk.f32.gmra.mrb[172].mxu1 %vm942_vm3, %v23184_v48 }
 0xecd   :  { %14081 = vmatprep.mubr.msk.f32.mxu1 %vm942_vm3, %v23185_v44 }
 0xed0   :  { %14082 = vmatmul.mubr.msk.f32.gmra.mrb[174].mxu1 %vm942_vm3, %v23186_v38 }
 0xed1   :  { %14084 = vmatprep.mubr.msk.f32.mxu1 %vm942_vm3, %v23187_v46 }
 0xed4   :  { %14085 = vmatmul.mubr.msk.f32.gmra.mrb[176].mxu1 %vm942_vm3, %v23188_v13 }
 0xed5   :  { %14087 = vmatprep.mubr.msk.f32.mxu1 %vm942_vm3, %v23189_v34 }
 0xed8   :  { %14088 = vmatmul.mubr.msk.f32.gmra.mrb[178].mxu1 %vm942_vm3, %v23190_v56 }
 0xed9   :  { %14090 = vmatprep.mubr.msk.f32.mxu1 %vm942_vm3, %v23191_v30 }
 0xedc   :  { %14091 = vmatmul.mubr.msk.f32.gmra.mrb[180].mxu1 %vm942_vm3, %v23192_v62 }
 0xedd   :  { %14093 = vmatprep.mubr.msk.f32.mxu1 %vm942_vm3, %v23193_v59 }
 0xee0   :  { %14094 = vmatmul.mubr.msk.f32.gmra.mrb[182].mxu1 %vm942_vm3, %v23194_v19 }
 0xee1   :  { %14096 = vmatprep.mubr.msk.f32.mxu1 %vm942_vm3, %v23195_v51 }
 0xee4   :  { %14097 = vmatmul.mubr.msk.f32.gmra.mrb[184].mxu1 %vm942_vm3, %v23196_v20  ;;  %v23231_v20 = vld [vmem:[#allocation11_spill] sm:$0xff] }
 0xee5   :  { %14099 = vmatprep.mubr.msk.f32.mxu1 %vm942_vm3, %v23197_v32 }
 0xee8   :  { %14100 = vmatmul.mubr.msk.f32.gmra.mrb[186].mxu1 %vm942_vm3, %v23198_v11 }
 0xee9   :  { %14102 = vmatprep.mubr.msk.f32.mxu1 %vm942_vm3, %v23199_v42  ;;  %v23230_v42 = vld [vmem:[#allocation13_spill] sm:$0xff] }
 0xeec   :  { %14103 = vmatmul.mubr.msk.f32.gmra.mrb[188].mxu1 %vm942_vm3, %v23200_v61 }
 0xeed   :  { %14105 = vmatprep.mubr.msk.f32.mxu1 %vm942_vm3, %v23201_v50 }
 0xef0   :  { %14106 = vmatmul.mubr.msk.f32.gmra.mrb[190].mxu1 %vm942_vm3, %v23202_v43  ;;  %v23226_v43 = vld [vmem:[#allocation129_spill] sm:$0xff] }
 0xef1   :  { %14108 = vmatprep.mubr.msk.f32.mxu1 %vm942_vm3, %v23203_v12  ;;  %v23211_v12 = vld [vmem:[#allocation101_spill] sm:$0xff] }
 0xef4   :  { %14109 = vmatmul.mubr.msk.f32.gmra.mrb[192].mxu1 %vm942_vm3, %v23204_v40  ;;  %v23212_v40 = vld [vmem:[#allocation102_spill] sm:$0xff] }
 0xef5   :  { %14111 = vmatprep.mubr.msk.f32.mxu1 %vm942_vm3, %v23205_v0  ;;  %v23213_v0 = vld [vmem:[#allocation103_spill] sm:$0xff] }
 0xef8   :  { %14112 = vmatmul.mubr.msk.f32.gmra.mrb[194].mxu1 %vm942_vm3, %v23206_v60  ;;  %v23214_v60 = vld [vmem:[#allocation106_spill] sm:$0xff] }
 0xef9   :  { %14114 = vmatprep.mubr.msk.f32.mxu1 %vm942_vm3, %v23207_v39  ;;  %v23215_v39 = vld [vmem:[#allocation107_spill] sm:$0xff] }
 0xefc   :  { %14115 = vmatmul.mubr.msk.f32.gmra.mrb[196].mxu1 %vm942_vm3, %v23208_v35  ;;  %v23216_v35 = vld [vmem:[#allocation110_spill] sm:$0xff] }
 0xefd   :  { %14117 = vmatprep.mubr.msk.f32.mxu1 %vm942_vm3, %v23209_v14  ;;  %v23217_v14 = vld [vmem:[#allocation111_spill] sm:$0xff] }
 0xf00   :  { %14118 = vmatmul.mubr.msk.f32.gmra.mrb[198].mxu1 %vm942_vm3, %v23210_v15  ;;  %v23218_v15 = vld [vmem:[#allocation112_spill] sm:$0xff] }
 0xf01   :  { %14120 = vmatprep.mubr.msk.f32.mxu1 %vm942_vm3, %v23211_v12  ;;  %v23219_v12 = vld [vmem:[#allocation113_spill] sm:$0xff] }
 0xf04   :  { %14121 = vmatmul.mubr.msk.f32.gmra.mrb[200].mxu1 %vm942_vm3, %v23212_v40  ;;  %v23220_v40 = vld [vmem:[#allocation116_spill] sm:$0xff] }
 0xf05   :  { %14123 = vmatprep.mubr.msk.f32.mxu1 %vm942_vm3, %v23213_v0  ;;  %v23221_v0 = vld [vmem:[#allocation117_spill] sm:$0xff] }
 0xf08   :  { %14124 = vmatmul.mubr.msk.f32.gmra.mrb[202].mxu1 %vm942_vm3, %v23214_v60  ;;  %v23222_v60 = vld [vmem:[#allocation120_spill] sm:$0xff] }
 0xf09   :  { %14126 = vmatprep.mubr.msk.f32.mxu1 %vm942_vm3, %v23215_v39  ;;  %v23223_v39 = vld [vmem:[#allocation121_spill] sm:$0xff] }
 0xf0c   :  { %14127 = vmatmul.mubr.msk.f32.gmra.mrb[204].mxu1 %vm942_vm3, %v23216_v35  ;;  %v23224_v35 = vld [vmem:[#allocation122_spill] sm:$0xff] }
 0xf0d   :  { %14129 = vmatprep.mubr.msk.f32.mxu1 %vm942_vm3, %v23217_v14  ;;  %v11978_v14 = vld [vmem:[%s22601_s10 + $0x40] sm:$0xff] }
 0xf10   :  { %14130 = vmatmul.mubr.msk.f32.gmra.mrb[206].mxu1 %vm942_vm3, %v23218_v15 }
 0xf11   :  { %14132 = vmatprep.mubr.msk.f32.mxu1 %vm942_vm3, %v23219_v12  ;;  %v11979_v12 = vld [vmem:[%s22601_s10 + $0x48] sm:$0xff] }
 0xf12   :  { %v14882_v15 = vpack.c.bf16 %v11979_v12, %v11978_v14  ;;  %v23227_v12 = vld [vmem:[#allocation136_spill] sm:$0xff]  ;;  %v20425_v14 = vld [vmem:[%s22599_s8 + $0x2] ss:$0 sm:$0xff] }
 0xf13   :  { %v6138_v11 = vmul.f32 %v20425_v14, %v23230_v42  ;;  %v6137_v51 = vmul.f32 %v20425_v14, %v23231_v20  ;;  %v23233_v20 = vld [vmem:[#allocation14_spill] sm:$0xff] }
 0xf14   :  { %14133 = vmatmul.mubr.msk.f32.gmra.mrb[208].mxu1 %vm942_vm3, %v23220_v40  ;;  %14883 = vmatprep.subr.bf16.mxu0 %v14882_v15  ;;  %v6139_v62 = vmul.f32 %v20425_v14, %v23233_v20  ;;  %v23235_v20 = vld [vmem:[#allocation16_spill] sm:$0xff] }
 0xf15   :  { %14135 = vmatprep.mubr.msk.f32.mxu1 %vm942_vm3, %v23221_v0  ;;  %v23225_v0 = vld [vmem:[#allocation123_spill] sm:$0xff]  ;;  %14885 = vmatpush3.bf16.msra.mxu0 %v14882_v15  ;;  %v23228_v15 = vld [vmem:[#allocation12_spill] sm:$0xff]  ;;  %v6141_v56 = vmul.f32 %v20425_v14, %v23235_v20  ;;  %v23237_v20 = vld [vmem:[#allocation18_spill] sm:$0xff] }
 0xf16   :  { %v6143_v13 = vmul.f32 %v20425_v14, %v23237_v20 }
 0xf18   :  { %14136 = vmatmul.mubr.msk.f32.gmra.mrb[210].mxu1 %vm942_vm3, %v23222_v60  ;;  %v11981_v60 = vld [vmem:[%s22601_s10 + $0x58] sm:$0xff] }
 0xf19   :  { %14138 = vmatprep.mubr.msk.f32.mxu1 %vm942_vm3, %v23223_v39  ;;  %v11980_v39 = vld [vmem:[%s22601_s10 + $0x50] sm:$0xff] }
 0xf1a   :  { %v14886_v40 = vpack.c.bf16 %v11981_v60, %v11980_v39  ;;  %v20432_v60 = vld [vmem:[%s22600_s9 + $0x2] ss:$0 sm:$0xff]  ;;  %v23229_v39 = vld [vmem:[#allocation10_spill] sm:$0xff] }
 0xf1c   :  { %14139 = vmatmul.mubr.msk.f32.gmra.mrb[212].mxu1 %vm942_vm3, %v23224_v35  ;;  %14887 = vmatprep.subr.bf16.mxu0 %v14886_v40 }
 0xf1d   :  { %14141 = vmatprep.mubr.msk.f32.mxu1 %vm942_vm3, %v23225_v0  ;;  %14889 = vmatpush3.bf16.msra.mxu0 %v14886_v40  ;;  %v6136_v0 = vmul.f32 %v20425_v14, %v23228_v15  ;;  %v6135_v40 = vmul.f32 %v20425_v14, %v23229_v39 }
 0xf20   :  { %14142 = vmatmul.mubr.msk.f32.gmra.mrb[214].mxu1 %vm942_vm3, %v23226_v43 }
 0xf21   :  { %12104 = vmatprep.mubr.msk.f32.mxu1 %vm2951_vm4, %v23227_v12 }
 0xf7f   :  { %v14056_v35 = vpop.f32.mrb[156].mxu1 }
 0xf80   :  { %v6267_v43 = vadd.f32 %v14056_v35, %v6136_v0  ;;  %v6261_v50 = vpop.f32.mrb[157].mxu1  ;;  %v23232_v35 = vld [vmem:[#allocation15_spill] sm:$0xff] }
 0xf81   :  { %v6262_v12 = vadd.f32 %v6261_v50, %v6135_v40  ;;  %v6140_v40 = vmul.f32 %v20425_v14, %v23232_v35 }
 0xf82   :  { %v20437_v61 = vadd.f32 %v20432_v60, %v6267_v43 }
 0xf83   :  { %v20442_v15 = vadd.f32 %v20432_v60, %v6262_v12  ;;  %v14059_v32 = vpop.f32.mrb[158].mxu1 }
 0xf84   :  { %v11919_v19 = vmul.f32 -1.442695, %v20437_v61  ;;  %v6277_v59 = vadd.f32 %v14059_v32, %v6138_v11  ;;  %v6271_v39 = vpop.f32.mrb[159].mxu1 }
 0xf85   :  { %v11918_v0 = vmul.f32 -1.442695, %v20442_v15  ;;  %v6272_v50 = vadd.f32 %v6271_v39, %v6137_v51  ;;  %v23234_v39 = vld [vmem:[#allocation17_spill] sm:$0xff] }
 0xf86   :  { %16142 = vpow2.f32 %v11919_v19  ;;  %v20449_v43 = vadd.f32 %v20432_v60, %v6277_v59 }
 0xf87   :  { %16144 = vpow2.f32 %v11918_v0  ;;  %v20454_v12 = vadd.f32 %v20432_v60, %v6272_v50  ;;  %v14062_v42 = vpop.f32.mrb[160].mxu1  ;;  %v6142_v0 = vmul.f32 %v20425_v14, %v23234_v39 }
 0xf88   :  { %v11921_v32 = vmul.f32 -1.442695, %v20449_v43  ;;  %v6287_v11 = vadd.f32 %v14062_v42, %v6140_v40  ;;  %v6281_v30 = vpop.f32.mrb[161].mxu1 }
 0xf89   :  { %v11920_v19 = vmul.f32 -1.442695, %v20454_v12  ;;  %v6282_v51 = vadd.f32 %v6281_v30, %v6139_v62 }
 0xf8a   :  { %16146 = vpow2.f32 %v11921_v32  ;;  %v20461_v59 = vadd.f32 %v20432_v60, %v6287_v11  ;;  %v23236_v11 = vld [vmem:[#allocation19_spill] sm:$0xff] }
 0xf8b   :  { %16148 = vpow2.f32 %v11920_v19  ;;  %v20466_v50 = vadd.f32 %v20432_v60, %v6282_v51  ;;  %v14065_v35 = vpop.f32.mrb[162].mxu1  ;;  %v6144_v19 = vmul.f32 %v20425_v14, %v23236_v11 }
 0xf8c   :  { %v11923_v42 = vmul.f32 -1.442695, %v20461_v59  ;;  %v6297_v40 = vadd.f32 %v14065_v35, %v6142_v0  ;;  %v6291_v34 = vpop.f32.mrb[163].mxu1 }
 0xf8d   :  { %v11922_v30 = vmul.f32 -1.442695, %v20466_v50  ;;  %v6292_v62 = vadd.f32 %v6291_v34, %v6141_v56 }
 0xf8e   :  { %16150 = vpow2.f32 %v11923_v42  ;;  %v20473_v32 = vadd.f32 %v20432_v60, %v6297_v40 }
 0xf8f   :  { %16152 = vpow2.f32 %v11922_v30  ;;  %v20478_v51 = vadd.f32 %v20432_v60, %v6292_v62  ;;  %v14068_v39 = vpop.f32.mrb[164].mxu1  ;;  %v23238_v62 = vld [vmem:[#allocation21_spill] sm:$0xff] }
 0xf90   :  { %v16143_v35 = vpop.eup %16142  ;;  %v11925_v0 = vmul.f32 -1.442695, %v20473_v32  ;;  %v6307_v46 = vadd.f32 %v14068_v39, %v6144_v19  ;;  %v6301_v34 = vpop.f32.mrb[165].mxu1  ;;  %v6146_v11 = vmul.f32 %v20425_v14, %v23238_v62  ;;  %v23239_v39 = vld [vmem:[#allocation20_spill] sm:$0xff] }
 0xf91   :  { %v16145_v56 = vpop.eup %16144  ;;  %v6809_v42 = vadd.f32 1.0, %v16143_v35  ;;  %v11924_v40 = vmul.f32 -1.442695, %v20478_v51  ;;  %v6302_v38 = vadd.f32 %v6301_v34, %v6143_v13  ;;  %v6145_v19 = vmul.f32 %v20425_v14, %v23239_v39 }
 0xf92   :  { %v6808_v44 = vadd.f32 1.0, %v16145_v56  ;;  %16154 = vpow2.f32 %v11925_v0  ;;  %v20485_v30 = vadd.f32 %v20432_v60, %v6307_v46  ;;  %v6148_v39 = vmul.f32 %v20425_v14, %v23240_v26 }
 0xf93   :  { %16156 = vrcp.f32 %v6809_v42  ;;  %v20490_v20 = vadd.f32 %v20432_v60, %v6302_v38  ;;  %v14071_v48 = vpop.f32.mrb[166].mxu1 }
 0xf94   :  { %v16147_v35 = vpop.eup %16146  ;;  %16158 = vrcp.f32 %v6808_v44  ;;  %v11927_v13 = vmul.f32 -1.442695, %v20485_v30  ;;  %v6317_v34 = vadd.f32 %v14071_v48, %v6146_v11  ;;  %v6311_v0 = vpop.f32.mrb[167].mxu1  ;;  %v23241_v11 = vld [vmem:[#allocation22_spill] sm:$0xff] }
 0xf95   :  { %v16149_v56 = vpop.eup %16148  ;;  %v6811_v46 = vadd.f32 1.0, %v16147_v35  ;;  %16160 = vpow2.f32 %v11924_v40  ;;  %v11926_v18 = vmul.f32 -1.442695, %v20490_v20  ;;  %v6312_v62 = vadd.f32 %v6311_v0, %v6145_v19 }
 0xf96   :  { %v6810_v42 = vadd.f32 1.0, %v16149_v56  ;;  %16162 = vpow2.f32 %v11927_v13  ;;  %v20497_v38 = vadd.f32 %v20432_v60, %v6317_v34  ;;  %v6147_v35 = vmul.f32 %v20425_v14, %v23241_v11 }
 0xf97   :  { %16164 = vrcp.f32 %v6811_v46  ;;  %v20502_v44 = vadd.f32 %v20432_v60, %v6312_v62  ;;  %v14074_v48 = vpop.f32.mrb[168].mxu1  ;;  %v6150_v11 = vmul.f32 %v20425_v14, %v23242_v1 }
 0xf98   :  { %v16151_v40 = vpop.eup %16150  ;;  %16166 = vrcp.f32 %v6810_v42  ;;  %v11929_v19 = vmul.f32 -1.442695, %v20497_v38  ;;  %v6327_v0 = vadd.f32 %v14074_v48, %v6148_v39  ;;  %v6321_v13 = vpop.f32.mrb[169].mxu1  ;;  %v23243_v48 = vld [vmem:[#allocation24_spill] sm:$0xff] }
 0xf99   :  { %v16153_v56 = vpop.eup %16152  ;;  %v6813_v34 = vadd.f32 1.0, %v16151_v40  ;;  %16168 = vpow2.f32 %v11926_v18  ;;  %v11928_v36 = vmul.f32 -1.442695, %v20502_v44  ;;  %v6322_v26 = vadd.f32 %v6321_v13, %v6147_v35 }
 0xf9a   :  { %v6812_v46 = vadd.f32 1.0, %v16153_v56  ;;  %16170 = vpow2.f32 %v11929_v19  ;;  %v20509_v62 = vadd.f32 %v20432_v60, %v6327_v0  ;;  %v6149_v40 = vmul.f32 %v20425_v14, %v23243_v48 }
 0xf9b   :  { %16172 = vrcp.f32 %v6813_v34  ;;  %v20514_v42 = vadd.f32 %v20432_v60, %v6322_v26  ;;  %v14077_v39 = vpop.f32.mrb[170].mxu1  ;;  %v6152_v48 = vmul.f32 %v20425_v14, %v23244_v3 }
 0xf9c   :  { %v16155_v18 = vpop.eup %16154  ;;  %16174 = vrcp.f32 %v6812_v46  ;;  %v11931_v35 = vmul.f32 -1.442695, %v20509_v62  ;;  %v6337_v13 = vadd.f32 %v14077_v39, %v6150_v11  ;;  %v6331_v19 = vpop.f32.mrb[171].mxu1 }
 0xf9d   :  { %v16157_v56 = vpop.eup %16156  ;;  %v6815_v0 = vadd.f32 1.0, %v16155_v18  ;;  %16176 = vpow2.f32 %v11928_v36  ;;  %v11930_v47 = vmul.f32 -1.442695, %v20514_v42  ;;  %v6332_v1 = vadd.f32 %v6331_v19, %v6149_v40  ;;  %v23245_v18 = vld [vmem:[#allocation26_spill] sm:$0xff] }
 0xf9e   :  { %v16159_v34 = vpop.eup %16158  ;;  %16178 = vpow2.f32 %v11931_v35  ;;  %v20521_v26 = vadd.f32 %v20432_v60, %v6337_v13  ;;  %v6989_v46 = vmul.f32 %v16157_v56, %v20437_v61  ;;  %v6151_v40 = vmul.f32 %v20425_v14, %v23245_v18 }
 0xf9f   :  { %v16161_v21 = vpop.eup %16160  ;;  %v6988_v11 = vmul.f32 %v16159_v34, %v20442_v15  ;;  %v20528_v39 = vadd.f32 %v20432_v60, %v6332_v1  ;;  %v14080_v36 = vpop.f32.mrb[172].mxu1  ;;  %16180 = vpow2.f32 %v11930_v47 }
 0xfa0   :  { %v16163_v19 = vpop.eup %16162  ;;  %v6814_v35 = vadd.f32 1.0, %v16161_v21  ;;  %v11933_v13 = vmul.f32 -1.442695, %v20521_v26  ;;  %v6347_v7 = vadd.f32 %v14080_v36, %v6152_v48  ;;  %v6341_v4 = vpop.f32.mrb[173].mxu1  ;;  %16182 = vrcp.f32 %v6815_v0  ;;  %v23246_v21 = vld [vmem:[#allocation33_spill] sm:$0xff]  ;;  %v23247_v48 = vld [vmem:[#allocation30_spill] sm:$0xff] }
 0xfa1   :  { %v16165_v3 = vpop.eup %16164  ;;  %v6817_v23 = vadd.f32 1.0, %v16163_v19  ;;  %v11932_v61 = vmul.f32 -1.442695, %v20528_v39  ;;  %v6342_v15 = vadd.f32 %v6341_v4, %v6151_v40  ;;  %14152 = vmatprep.mubr.msk.f32.mxu0 %vm388_vm2, %v6988_v11  ;;  %v6154_v47 = vmul.f32 %v20425_v14, %v23246_v21 }
 0xfa2   :  { %v16167_v1 = vpop.eup %16166  ;;  %16184 = vrcp.f32 %v6814_v35  ;;  %v20536_v56 = vadd.f32 %v20432_v60, %v6347_v7  ;;  %14153 = vmatmul.mubr.msk.f32.vlgmr.msra.gmra.mrb[160].mxu0 %vm388_vm2, %v6989_v46  ;;  %v6153_v34 = vmul.f32 %v20425_v14, %v23247_v48  ;;  %v6991_v36 = vmul.f32 %v16165_v3, %v20449_v43 }
 0xfa3   :  { %v16169_v0 = vpop.eup %16168  ;;  %v6990_v4 = vmul.f32 %v16167_v1, %v20454_v12  ;;  %16186 = vrcp.f32 %v6817_v23  ;;  %v20546_v11 = vadd.f32 %v20432_v60, %v6342_v15  ;;  %v14083_v40 = vpop.f32.mrb[174].mxu1  ;;  %v6156_v12 = vmul.f32 %v20425_v14, %v17636_v9 }
 0xfa4   :  { %v16171_v7 = vpop.eup %16170  ;;  %v6816_v19 = vadd.f32 1.0, %v16169_v0  ;;  %16188 = vpow2.f32 %v11933_v13  ;;  %v11935_v46 = vmul.f32 -1.442695, %v20536_v56  ;;  %v6357_v35 = vadd.f32 %v14083_v40, %v6154_v47  ;;  %v6351_v21 = vpop.f32.mrb[175].mxu1  ;;  %v23248_v13 = vld [vmem:[#allocation34_spill] sm:$0xff] }
 0xfa5   :  { %v16173_v18 = vpop.eup %16172  ;;  %v6819_v17 = vadd.f32 1.0, %v16171_v7  ;;  %16190 = vpow2.f32 %v11932_v61  ;;  %v11934_v48 = vmul.f32 -1.442695, %v20546_v11  ;;  %v6352_v3 = vadd.f32 %v6351_v21, %v6153_v34  ;;  %14155 = vmatprep.mubr.msk.f32.mxu0 %vm388_vm2, %v6990_v4 }
 0xfa6   :  { %v16175_v23 = vpop.eup %16174  ;;  %16192 = vrcp.f32 %v6816_v19  ;;  %v20552_v43 = vadd.f32 %v20432_v60, %v6357_v35  ;;  %14156 = vmatmul.mubr.msk.f32.gmra.mrb[162].mxu0 %vm388_vm2, %v6991_v36  ;;  %v6155_v15 = vmul.f32 %v20425_v14, %v23248_v13  ;;  %v6993_v61 = vmul.f32 %v16173_v18, %v20461_v59  ;;  %v23249_v18 = vld [vmem:[#allocation41_spill] sm:$0xff] }
 0xfa7   :  { %v16177_v1 = vpop.eup %16176  ;;  %v6992_v21 = vmul.f32 %v16175_v23, %v20466_v50  ;;  %16194 = vrcp.f32 %v6819_v17  ;;  %v20562_v47 = vadd.f32 %v20432_v60, %v6352_v3  ;;  %v14086_v34 = vpop.f32.mrb[176].mxu1 }
 0xfa8   :  { %v16179_v0 = vpop.eup %16178  ;;  %v6818_v4 = vadd.f32 1.0, %v16177_v1  ;;  %16196 = vpow2.f32 %v11935_v46  ;;  %v11937_v36 = vmul.f32 -1.442695, %v20552_v43  ;;  %v6367_v40 = vadd.f32 %v14086_v34, %v6156_v12  ;;  %v6361_v7 = vpop.f32.mrb[177].mxu1 }
 0xfa9   :  { %v6821_v19 = vadd.f32 1.0, %v16179_v0  ;;  %16198 = vpow2.f32 %v11934_v48  ;;  %v6362_v35 = vadd.f32 %v6361_v7, %v6155_v15  ;;  %14158 = vmatprep.mubr.msk.f32.mxu0 %vm388_vm2, %v6992_v21  ;;  %v16181_v59 = vpop.eup %16180  ;;  %v11936_v17 = vmul.f32 -1.442695, %v20562_v47  ;;  %v23250_v15 = vld [vmem:[#allocation38_spill] sm:$0xff] }
 0xfaa   :  { %16200 = vrcp.f32 %v6818_v4  ;;  %v20568_v50 = vadd.f32 %v20432_v60, %v6367_v40  ;;  %14159 = vmatmul.mubr.msk.f32.gmra.mrb[164].mxu0 %vm388_vm2, %v6993_v61  ;;  %v6158_v46 = vmul.f32 %v20425_v14, %v23249_v18  ;;  %v16183_v3 = vpop.eup %16182  ;;  %v6820_v23 = vadd.f32 1.0, %v16181_v59  ;;  %v23251_v61 = vld [vmem:[#allocation45_spill] sm:$0xff] }
 0xfab   :  { %16202 = vrcp.f32 %v6821_v19  ;;  %v20574_v48 = vadd.f32 %v20432_v60, %v6362_v35  ;;  %v14089_v12 = vpop.f32.mrb[178].mxu1  ;;  %v6157_v1 = vmul.f32 %v20425_v14, %v23250_v15  ;;  %v6160_v40 = vmul.f32 %v20425_v14, %v23251_v61  ;;  %v23252_v15 = vld [vmem:[#allocation44_spill] sm:$0xff] }
 0xfac   :  { %v16185_v21 = vpop.eup %16184  ;;  %16204 = vpow2.f32 %v11937_v36  ;;  %v11939_v34 = vmul.f32 -1.442695, %v20568_v50  ;;  %v6377_v0 = vadd.f32 %v14089_v12, %v6158_v46  ;;  %v6371_v4 = vpop.f32.mrb[179].mxu1  ;;  %v6995_v13 = vmul.f32 %v16183_v3, %v20473_v32 }
 0xfad   :  { %v16187_v7 = vpop.eup %16186  ;;  %v6994_v19 = vmul.f32 %v16185_v21, %v20478_v51  ;;  %16206 = vrcp.f32 %v6820_v23  ;;  %v11938_v35 = vmul.f32 -1.442695, %v20574_v48  ;;  %v6372_v59 = vadd.f32 %v6371_v4, %v6157_v1  ;;  %v23253_v23 = vld [vmem:[#allocation49_spill] sm:$0xff] }
 0xfae   :  { %v16189_v18 = vpop.eup %16188  ;;  %16208 = vpow2.f32 %v11936_v17  ;;  %v20585_v36 = vadd.f32 %v20432_v60, %v6377_v0  ;;  %v6159_v46 = vmul.f32 %v20425_v14, %v23252_v15  ;;  %v6162_v1 = vmul.f32 %v20425_v14, %v23253_v23 }
 0xfaf   :  { %v16191_v12 = vpop.eup %16190  ;;  %v6823_v9 = vadd.f32 1.0, %v16189_v18  ;;  %16210 = vpow2.f32 %v11939_v34  ;;  %v20590_v61 = vadd.f32 %v20432_v60, %v6372_v59  ;;  %14161 = vmatprep.mubr.msk.f32.mxu0 %vm388_vm2, %v6994_v19  ;;  %v14092_v51 = vpop.f32.mrb[180].mxu1  ;;  %v6997_v15 = vmul.f32 %v16187_v7, %v20485_v30 }
 0xfb0   :  { %v16193_v32 = vpop.eup %16192  ;;  %v6822_v17 = vadd.f32 1.0, %v16191_v12  ;;  %16212 = vpow2.f32 %v11938_v35  ;;  %v11941_v3 = vmul.f32 -1.442695, %v20585_v36  ;;  %14162 = vmatmul.mubr.msk.f32.gmra.mrb[166].mxu0 %vm388_vm2, %v6995_v13  ;;  %v6387_v21 = vadd.f32 %v14092_v51, %v6160_v40  ;;  %v6381_v0 = vpop.f32.mrb[181].mxu1  ;;  %v23254_v35 = vld [vmem:[#allocation48_spill] sm:$0xff] }
 0xfb1   :  { %v16195_v18 = vpop.eup %16194  ;;  %v6996_v34 = vmul.f32 %v16193_v32, %v20490_v20  ;;  %16214 = vrcp.f32 %v6823_v9  ;;  %v11940_v4 = vmul.f32 -1.442695, %v20590_v61  ;;  %v6382_v19 = vadd.f32 %v6381_v0, %v6159_v46  ;;  %v23255_v20 = vld [vmem:[#allocation55_spill] sm:$0xff] }
 0xfb2   :  { %v16197_v59 = vpop.eup %16196  ;;  %16216 = vrcp.f32 %v6822_v17  ;;  %v20601_v12 = vadd.f32 %v20432_v60, %v6387_v21  ;;  %v6161_v23 = vmul.f32 %v20425_v14, %v23254_v35  ;;  %v6164_v46 = vmul.f32 %v20425_v14, %v23255_v20 }
 0xfb3   :  { %v16199_v13 = vpop.eup %16198  ;;  %v6825_v40 = vadd.f32 1.0, %v16197_v59  ;;  %16218 = vpow2.f32 %v11941_v3  ;;  %v20606_v51 = vadd.f32 %v20432_v60, %v6382_v19  ;;  %14164 = vmatprep.mubr.msk.f32.mxu0 %vm388_vm2, %v6996_v34  ;;  %v14095_v9 = vpop.f32.mrb[182].mxu1  ;;  %v6999_v35 = vmul.f32 %v16195_v18, %v20497_v38 }
 0xfb4   :  { %v16201_v30 = vpop.eup %16200  ;;  %v6824_v7 = vadd.f32 1.0, %v16199_v13  ;;  %16220 = vpow2.f32 %v11940_v4  ;;  %v11943_v32 = vmul.f32 -1.442695, %v20601_v12  ;;  %14165 = vmatmul.mubr.msk.f32.gmra.mrb[168].mxu0 %vm388_vm2, %v6997_v15  ;;  %v6397_v17 = vadd.f32 %v14095_v9, %v6162_v1  ;;  %v6391_v21 = vpop.f32.mrb[183].mxu1  ;;  %v23256_v4 = vld [vmem:[#allocation54_spill] sm:$0xff] }
 0xfb5   :  { %v16203_v0 = vpop.eup %16202  ;;  %v6998_v3 = vmul.f32 %v16201_v30, %v20502_v44  ;;  %16222 = vrcp.f32 %v6825_v40  ;;  %v11942_v19 = vmul.f32 -1.442695, %v20606_v51  ;;  %v6392_v34 = vadd.f32 %v6391_v21, %v6161_v23  ;;  %v23257_v23 = vld [vmem:[#allocation59_spill] sm:$0xff] }
 0xfb6   :  { %v16205_v59 = vpop.eup %16204  ;;  %16224 = vrcp.f32 %v6824_v7  ;;  %v20617_v13 = vadd.f32 %v20432_v60, %v6397_v17  ;;  %v6163_v20 = vmul.f32 %v20425_v14, %v23256_v4  ;;  %v6166_v40 = vmul.f32 %v20425_v14, %v23257_v23 }
 0xfb7   :  { %v16207_v15 = vpop.eup %16206  ;;  %v6827_v1 = vadd.f32 1.0, %v16205_v59  ;;  %16226 = vpow2.f32 %v11943_v32  ;;  %v20622_v9 = vadd.f32 %v20432_v60, %v6392_v34  ;;  %14167 = vmatprep.mubr.msk.f32.mxu0 %vm388_vm2, %v6998_v3  ;;  %v14098_v44 = vpop.f32.mrb[184].mxu1  ;;  %v7001_v21 = vmul.f32 %v16203_v0, %v20509_v62  ;;  %v23258_v0 = vld [vmem:[#allocation58_spill] sm:$0xff] }
 0xfb8   :  { %v16209_v38 = vpop.eup %16208  ;;  %v7000_v18 = vmul.f32 %v16207_v15, %v20514_v42  ;;  %16228 = vpow2.f32 %v11942_v19  ;;  %v11945_v30 = vmul.f32 -1.442695, %v20617_v13  ;;  %14168 = vmatmul.mubr.msk.f32.gmra.mrb[170].mxu0 %vm388_vm2, %v6999_v35  ;;  %v6407_v7 = vadd.f32 %v14098_v44, %v6164_v46  ;;  %v6401_v17 = vpop.f32.mrb[185].mxu1 }
 0xfb9   :  { %v16211_v32 = vpop.eup %16210  ;;  %16230 = vrcp.f32 %v6827_v1  ;;  %v6826_v34 = vadd.f32 1.0, %v16209_v38  ;;  %v6402_v3 = vadd.f32 %v6401_v17, %v6163_v20  ;;  %v11944_v23 = vmul.f32 -1.442695, %v20622_v9 }
 0xfba   :  { %v16213_v59 = vpop.eup %16212  ;;  %v6829_v4 = vadd.f32 1.0, %v16211_v32  ;;  %16232 = vpow2.f32 %v11945_v30  ;;  %v20633_v42 = vadd.f32 %v20432_v60, %v6407_v7  ;;  %14170 = vmatprep.mubr.msk.f32.mxu0 %vm388_vm2, %v7000_v18  ;;  %v6165_v20 = vmul.f32 %v20425_v14, %v23258_v0  ;;  %v23259_v30 = vld [vmem:[#allocation65_spill] sm:$0xff] }
 0xfbb   :  { %v16215_v19 = vpop.eup %16214  ;;  %16234 = vrcp.f32 %v6826_v34  ;;  %v6828_v35 = vadd.f32 1.0, %v16213_v59  ;;  %v20637_v46 = vadd.f32 %v20432_v60, %v6402_v3  ;;  %v14101_v62 = vpop.f32.mrb[186].mxu1  ;;  %v6168_v18 = vmul.f32 %v20425_v14, %v23259_v30 }
 0xfbc   :  { %v16217_v15 = vpop.eup %16216  ;;  %16236 = vrcp.f32 %v6829_v4  ;;  %v11947_v1 = vmul.f32 -1.442695, %v20633_v42  ;;  %14171 = vmatmul.mubr.msk.f32.gmra.mrb[172].mxu0 %vm388_vm2, %v7001_v21  ;;  %v6417_v44 = vadd.f32 %v14101_v62, %v6166_v40  ;;  %v6411_v38 = vpop.f32.mrb[187].mxu1  ;;  %v7003_v17 = vmul.f32 %v16215_v19, %v20521_v26 }
 0xfbd   :  { %v16219_v7 = vpop.eup %16218  ;;  %v7002_v32 = vmul.f32 %v16217_v15, %v20528_v39  ;;  %16238 = vrcp.f32 %v6828_v35  ;;  %v6412_v34 = vadd.f32 %v6411_v38, %v6165_v20  ;;  %v11946_v4 = vmul.f32 -1.442695, %v20637_v46  ;;  %v23260_v39 = vld [vmem:[#allocation64_spill] sm:$0xff] }
 0xfbe   :  { %v16221_v3 = vpop.eup %16220  ;;  %v6831_v59 = vadd.f32 1.0, %v16219_v7  ;;  %16240 = vpow2.f32 %v11944_v23  ;;  %v20649_v0 = vadd.f32 %v20432_v60, %v6417_v44  ;;  %v6167_v19 = vmul.f32 %v20425_v14, %v23260_v39  ;;  %v23261_v44 = vld [vmem:[#allocation69_spill] sm:$0xff] }
 0xfbf   :  { %v16223_v40 = vpop.eup %16222  ;;  %v6830_v21 = vadd.f32 1.0, %v16221_v3  ;;  %16242 = vpow2.f32 %v11947_v1  ;;  %v20652_v62 = vadd.f32 %v20432_v60, %v6412_v34  ;;  %14173 = vmatprep.mubr.msk.f32.mxu0 %vm388_vm2, %v7002_v32  ;;  %v14104_v26 = vpop.f32.mrb[188].mxu1  ;;  %v6170_v1 = vmul.f32 %v20425_v14, %v23261_v44  ;;  %v23264_v44 = vld [vmem:[#allocation74_spill] sm:$0xff] }
 0xfc0   :  { %v16225_v35 = vpop.eup %16224  ;;  %16244 = vrcp.f32 %v6831_v59  ;;  %v11949_v23 = vmul.f32 -1.442695, %v20649_v0  ;;  %14174 = vmatmul.mubr.msk.f32.gmra.mrb[174].mxu0 %vm388_vm2, %v7003_v17  ;;  %v6427_v20 = vadd.f32 %v14104_v26, %v6168_v18  ;;  %v6421_v15 = vpop.f32.mrb[189].mxu1  ;;  %v7005_v7 = vmul.f32 %v16223_v40, %v20536_v56 }
 0xfc1   :  { %v16227_v38 = vpop.eup %16226  ;;  %v7004_v32 = vmul.f32 %v16225_v35, %v20546_v11  ;;  %16246 = vrcp.f32 %v6830_v21  ;;  %v6422_v34 = vadd.f32 %v6421_v15, %v6167_v19  ;;  %v11948_v59 = vmul.f32 -1.442695, %v20652_v62  ;;  %v23262_v11 = vld [vmem:[#allocation68_spill] sm:$0xff] }
 0xfc2   :  { %v16229_v3 = vpop.eup %16228  ;;  %v6833_v39 = vadd.f32 1.0, %v16227_v38  ;;  %16248 = vpow2.f32 %v11946_v4  ;;  %v20665_v30 = vadd.f32 %v20432_v60, %v6427_v20  ;;  %v6169_v40 = vmul.f32 %v20425_v14, %v23262_v11  ;;  %v23263_v20 = vld [vmem:[#allocation75_spill] sm:$0xff] }
 0xfc3   :  { %v16231_v18 = vpop.eup %16230  ;;  %v6832_v17 = vadd.f32 1.0, %v16229_v3  ;;  %16250 = vpow2.f32 %v11949_v23  ;;  %v20668_v26 = vadd.f32 %v20432_v60, %v6422_v34  ;;  %14176 = vmatprep.mubr.msk.f32.mxu0 %vm388_vm2, %v7004_v32  ;;  %v14107_v56 = vpop.f32.mrb[190].mxu1  ;;  %v6172_v23 = vmul.f32 %v20425_v14, %v23263_v20  ;;  %v23265_v20 = vld [vmem:[#allocation79_spill] sm:$0xff] }
 0xfc4   :  { %v16233_v21 = vpop.eup %16232  ;;  %16252 = vrcp.f32 %v6833_v39  ;;  %v11951_v4 = vmul.f32 -1.442695, %v20665_v30  ;;  %14177 = vmatmul.mubr.msk.f32.gmra.mrb[176].mxu0 %vm388_vm2, %v7005_v7  ;;  %v6437_v19 = vadd.f32 %v14107_v56, %v6170_v1  ;;  %v6431_v35 = vpop.f32.mrb[191].mxu1  ;;  %v6171_v1 = vmul.f32 %v20425_v14, %v23264_v44 }
 0xfc5   :  { %v16235_v15 = vpop.eup %16234  ;;  %16254 = vrcp.f32 %v6832_v17  ;;  %v6835_v38 = vadd.f32 1.0, %v16233_v21  ;;  %v11950_v32 = vmul.f32 -1.442695, %v20668_v26  ;;  %v6432_v34 = vadd.f32 %v6431_v35, %v6169_v40 }
 0xfc6   :  { %v16237_v3 = vpop.eup %16236  ;;  %v7006_v11 = vmul.f32 %v16235_v15, %v20562_v47  ;;  %16256 = vpow2.f32 %v11948_v59  ;;  %v20680_v39 = vadd.f32 %v20432_v60, %v6437_v19  ;;  %v7007_v56 = vmul.f32 %v16231_v18, %v20552_v43 }
 0xfc7   :  { %v16239_v7 = vpop.eup %16238  ;;  %16258 = vrcp.f32 %v6835_v38  ;;  %v20686_v17 = vadd.f32 %v20432_v60, %v6432_v34  ;;  %v14110_v21 = vpop.f32.mrb[192].mxu1  ;;  %v6174_v40 = vmul.f32 %v20425_v14, %v23265_v20 }
 0xfc8   :  { %v16241_v35 = vpop.eup %16240  ;;  %v7008_v47 = vmul.f32 %v16239_v7, %v20574_v48  ;;  %16260 = vpow2.f32 %v11951_v4  ;;  %v11953_v59 = vmul.f32 -1.442695, %v20680_v39  ;;  %14179 = vmatprep.mubr.msk.f32.mxu0 %vm388_vm2, %v7006_v11  ;;  %v6447_v19 = vadd.f32 %v14110_v21, %v6172_v23  ;;  %v6441_v15 = vpop.f32.mrb[193].mxu1  ;;  %v23266_v4 = vld [vmem:[#allocation78_spill] sm:$0xff] }
 0xfc9   :  { %v16243_v44 = vpop.eup %16242  ;;  %v6834_v43 = vadd.f32 1.0, %v16241_v35  ;;  %16262 = vpow2.f32 %v11950_v32  ;;  %v11952_v18 = vmul.f32 -1.442695, %v20686_v17  ;;  %14180 = vmatmul.mubr.msk.f32.gmra.mrb[178].mxu0 %vm388_vm2, %v7007_v56  ;;  %v6442_v38 = vadd.f32 %v6441_v15, %v6171_v1  ;;  %v23267_v1 = vld [vmem:[#allocation85_spill] sm:$0xff] }
 0xfca   :  { %v16245_v34 = vpop.eup %16244  ;;  %v6837_v20 = vadd.f32 1.0, %v16243_v44  ;;  %16264 = vpow2.f32 %v11953_v59  ;;  %v20696_v48 = vadd.f32 %v20432_v60, %v6447_v19  ;;  %14182 = vmatprep.mubr.msk.f32.mxu0 %vm388_vm2, %v7008_v47  ;;  %v6173_v11 = vmul.f32 %v20425_v14, %v23266_v4 }
 0xfcb   :  { %v16247_v23 = vpop.eup %16246  ;;  %v7009_v7 = vmul.f32 %v16237_v3, %v20568_v50  ;;  %16266 = vrcp.f32 %v6834_v43  ;;  %v20703_v32 = vadd.f32 %v20432_v60, %v6442_v38  ;;  %v14113_v56 = vpop.f32.mrb[194].mxu1  ;;  %v6176_v44 = vmul.f32 %v20425_v14, %v23267_v1 }
 0xfcc   :  { %v16249_v21 = vpop.eup %16248  ;;  %v7010_v35 = vmul.f32 %v16247_v23, %v20590_v61  ;;  %16268 = vrcp.f32 %v6837_v20  ;;  %v11955_v47 = vmul.f32 -1.442695, %v20696_v48  ;;  %v6457_v59 = vadd.f32 %v14113_v56, %v6174_v40  ;;  %v6451_v19 = vpop.f32.mrb[195].mxu1  ;;  %v23268_v61 = vld [vmem:[#allocation84_spill] sm:$0xff] }
 0xfcd   :  { %v16251_v15 = vpop.eup %16250  ;;  %v6836_v4 = vadd.f32 1.0, %v16249_v21  ;;  %16270 = vpow2.f32 %v11952_v18  ;;  %v11954_v50 = vmul.f32 -1.442695, %v20703_v32  ;;  %14183 = vmatmul.mubr.msk.f32.gmra.mrb[180].mxu0 %vm388_vm2, %v7009_v7  ;;  %v6452_v3 = vadd.f32 %v6451_v19, %v6173_v11  ;;  %v23269_v11 = vld [vmem:[#allocation89_spill] sm:$0xff] }
 0xfce   :  { %v16253_v43 = vpop.eup %16252  ;;  %v6839_v38 = vadd.f32 1.0, %v16251_v15  ;;  %16272 = vpow2.f32 %v11955_v47  ;;  %v20712_v1 = vadd.f32 %v20432_v60, %v6457_v59  ;;  %14185 = vmatprep.mubr.msk.f32.mxu0 %vm388_vm2, %v7010_v35  ;;  %v6175_v20 = vmul.f32 %v20425_v14, %v23268_v61 }
 0xfcf   :  { %v16255_v40 = vpop.eup %16254  ;;  %v7011_v23 = vmul.f32 %v16245_v34, %v20585_v36  ;;  %16274 = vrcp.f32 %v6836_v4  ;;  %v20719_v18 = vadd.f32 %v20432_v60, %v6452_v3  ;;  %v14116_v7 = vpop.f32.mrb[196].mxu1  ;;  %v6178_v56 = vmul.f32 %v20425_v14, %v23269_v11 }
 0xfd0   :  { %v16257_v21 = vpop.eup %16256  ;;  %v7012_v47 = vmul.f32 %v16255_v40, %v20606_v51  ;;  %16276 = vrcp.f32 %v6839_v38  ;;  %v11957_v35 = vmul.f32 -1.442695, %v20712_v1  ;;  %v6467_v59 = vadd.f32 %v14116_v7, %v6176_v44  ;;  %v6461_v19 = vpop.f32.mrb[197].mxu1  ;;  %v23270_v51 = vld [vmem:[#allocation88_spill] sm:$0xff]  ;;  %v23271_v44 = vld [vmem:[#allocation95_spill] sm:$0xff] }
 0xfd1   :  { %v16259_v15 = vpop.eup %16258  ;;  %v6838_v61 = vadd.f32 1.0, %v16257_v21  ;;  %16278 = vpow2.f32 %v11954_v50  ;;  %v11956_v36 = vmul.f32 -1.442695, %v20719_v18  ;;  %14186 = vmatmul.mubr.msk.f32.gmra.mrb[182].mxu0 %vm388_vm2, %v7011_v23  ;;  %v6462_v34 = vadd.f32 %v6461_v19, %v6175_v20 }
 0xfd2   :  { %v16261_v4 = vpop.eup %16260  ;;  %16280 = vpow2.f32 %v11957_v35  ;;  %v20728_v3 = vadd.f32 %v20432_v60, %v6467_v59  ;;  %14188 = vmatprep.mubr.msk.f32.mxu0 %vm388_vm2, %v7012_v47  ;;  %v6177_v38 = vmul.f32 %v20425_v14, %v23270_v51  ;;  %v6180_v40 = vmul.f32 %v20425_v14, %v23271_v44 }
 0xfd3   :  { %v16263_v7 = vpop.eup %16262  ;;  %v7013_v50 = vmul.f32 %v16253_v43, %v20601_v12  ;;  %16282 = vrcp.f32 %v6838_v61  ;;  %v6841_v21 = vadd.f32 1.0, %v16261_v4  ;;  %v20737_v20 = vadd.f32 %v20432_v60, %v6462_v34  ;;  %v14119_v23 = vpop.f32.mrb[198].mxu1 }
 0xfd4   :  { %v16265_v35 = vpop.eup %16264  ;;  %v6840_v59 = vadd.f32 1.0, %v16263_v7  ;;  %16284 = vpow2.f32 %v11956_v36  ;;  %v11959_v47 = vmul.f32 -1.442695, %v20728_v3  ;;  %v6477_v19 = vadd.f32 %v14119_v23, %v6178_v56  ;;  %v6471_v11 = vpop.f32.mrb[199].mxu1  ;;  %v23272_v36 = vld [vmem:[#allocation94_spill] sm:$0xff] }
 0xfd5   :  { %v16267_v51 = vpop.eup %16266  ;;  %16286 = vrcp.f32 %v6841_v21  ;;  %v6843_v10 = vadd.f32 1.0, %v16265_v35  ;;  %v11958_v44 = vmul.f32 -1.442695, %v20737_v20  ;;  %14189 = vmatmul.mubr.msk.f32.gmra.mrb[184].mxu0 %vm388_vm2, %v7013_v50  ;;  %v6472_v12 = vadd.f32 %v6471_v11, %v6177_v38  ;;  %v23273_v50 = vld [vmem:[#allocation99_spill] sm:$0xff] }
 0xfd6   :  { %v16269_v43 = vpop.eup %16268  ;;  %v7014_v61 = vmul.f32 %v16267_v51, %v20622_v9  ;;  %16288 = vrcp.f32 %v6840_v59  ;;  %v20744_v34 = vadd.f32 %v20432_v60, %v6477_v19  ;;  %v6179_v4 = vmul.f32 %v20425_v14, %v23272_v36 }
 0xfd7   :  { %v16271_v56 = vpop.eup %16270  ;;  %v7015_v7 = vmul.f32 %v16259_v15, %v20617_v13  ;;  %16290 = vrcp.f32 %v6843_v10  ;;  %v20750_v21 = vadd.f32 %v20432_v60, %v6472_v12  ;;  %v14122_v23 = vpop.f32.mrb[200].mxu1  ;;  %v6182_v11 = vmul.f32 %v20425_v14, %v23273_v50 }
 0xfd8   :  { %v16273_v38 = vpop.eup %16272  ;;  %v6842_v9 = vadd.f32 1.0, %v16271_v56  ;;  %16292 = vpow2.f32 %v11959_v47  ;;  %v11961_v51 = vmul.f32 -1.442695, %v20744_v34  ;;  %14191 = vmatprep.mubr.msk.f32.mxu0 %vm388_vm2, %v7014_v61  ;;  %v6487_v35 = vadd.f32 %v14122_v23, %v6180_v40  ;;  %v6481_v59 = vpop.f32.mrb[201].mxu1  ;;  %v23274_v56 = vld [vmem:[#allocation98_spill] sm:$0xff] }
 0xfd9   :  { %v16275_v19 = vpop.eup %16274  ;;  %v6845_v36 = vadd.f32 1.0, %v16273_v38  ;;  %16294 = vpow2.f32 %v11958_v44  ;;  %v11960_v10 = vmul.f32 -1.442695, %v20750_v21  ;;  %14192 = vmatmul.mubr.msk.f32.gmra.mrb[186].mxu0 %vm388_vm2, %v7015_v7  ;;  %v6482_v13 = vadd.f32 %v6481_v59, %v6179_v4  ;;  %v23275_v7 = vld [vmem:[#allocation105_spill] sm:$0xff] }
 0xfda   :  { %v16277_v15 = vpop.eup %16276  ;;  %v7016_v12 = vmul.f32 %v16275_v19, %v20637_v46  ;;  %16296 = vrcp.f32 %v6842_v9  ;;  %v20760_v47 = vadd.f32 %v20432_v60, %v6487_v35  ;;  %v6181_v61 = vmul.f32 %v20425_v14, %v23274_v56 }
 0xfdb   :  { %v16279_v40 = vpop.eup %16278  ;;  %v7017_v23 = vmul.f32 %v16269_v43, %v20633_v42  ;;  %16298 = vrcp.f32 %v6845_v36  ;;  %v20766_v44 = vadd.f32 %v20432_v60, %v6482_v13  ;;  %v14125_v38 = vpop.f32.mrb[202].mxu1  ;;  %v6184_v4 = vmul.f32 %v20425_v14, %v23275_v7  ;;  %v23276_v43 = vld [vmem:[#allocation104_spill] sm:$0xff] }
 0xfdc   :  { %v16281_v59 = vpop.eup %16280  ;;  %v6844_v46 = vadd.f32 1.0, %v16279_v40  ;;  %16300 = vpow2.f32 %v11961_v51  ;;  %v11963_v9 = vmul.f32 -1.442695, %v20760_v47  ;;  %14194 = vmatprep.mubr.msk.f32.mxu0 %vm388_vm2, %v7016_v12  ;;  %v6497_v35 = vadd.f32 %v14125_v38, %v6182_v11  ;;  %v6491_v19 = vpop.f32.mrb[203].mxu1 }
 0xfdd   :  { %v16283_v56 = vpop.eup %16282  ;;  %v6847_v50 = vadd.f32 1.0, %v16281_v59  ;;  %16302 = vpow2.f32 %v11960_v10  ;;  %14195 = vmatmul.mubr.msk.f32.gmra.mrb[188].mxu0 %vm388_vm2, %v7017_v23  ;;  %v6492_v42 = vadd.f32 %v6491_v19, %v6181_v61  ;;  %v6183_v36 = vmul.f32 %v20425_v14, %v23276_v43 }
 0xfde   :  { %v16285_v13 = vpop.eup %16284  ;;  %v7018_v7 = vmul.f32 %v16283_v56, %v20652_v62  ;;  %16304 = vrcp.f32 %v6844_v46  ;;  %v11962_v51 = vmul.f32 -1.442695, %v20766_v44  ;;  %v20778_v40 = vadd.f32 %v20432_v60, %v6497_v35  ;;  %v23278_v35 = vld [vmem:[#allocation108_spill] sm:$0xff] }
 0xfdf   :  { %v16287_v11 = vpop.eup %16286  ;;  %v7019_v12 = vmul.f32 %v16277_v15, %v20649_v0  ;;  %16306 = vrcp.f32 %v6847_v50  ;;  %v6846_v10 = vadd.f32 1.0, %v16285_v13  ;;  %v20782_v23 = vadd.f32 %v20432_v60, %v6492_v42  ;;  %v14128_v61 = vpop.f32.mrb[204].mxu1  ;;  %v20792_v15 = vld [vmem:[%s22600_s9 + $0x2] ss:$0 sm:$0xff] }
 0xfe0   :  { %v16289_v38 = vpop.eup %16288  ;;  %16308 = vpow2.f32 %v11963_v9  ;;  %v11965_v14 = vmul.f32 -1.442695, %v20778_v40  ;;  %14197 = vmatprep.mubr.msk.f32.mxu0 %vm388_vm2, %v7018_v7  ;;  %v6507_v62 = vadd.f32 %v14128_v61, %v6184_v4  ;;  %v6501_v56 = vpop.f32.mrb[205].mxu1  ;;  %v23277_v4 = vld [vmem:[#allocation109_spill] sm:$0xff] }
 0xfe1   :  { %v16291_v59 = vpop.eup %16290  ;;  %v7020_v46 = vmul.f32 %v16289_v38, %v20668_v26  ;;  %16310 = vrcp.f32 %v6846_v10  ;;  %v11964_v0 = vmul.f32 -1.442695, %v20782_v23  ;;  %14198 = vmatmul.mubr.msk.f32.gmra.mrb[190].mxu0 %vm388_vm2, %v7019_v12  ;;  %v6502_v50 = vadd.f32 %v6501_v56, %v6183_v36  ;;  %v20800_v26 = vld [vmem:[%s22599_s8 + $0x2] ss:$0 sm:$0xff] }
 0xfe2   :  { %v16293_v60 = vpop.eup %16292  ;;  %16312 = vpow2.f32 %v11962_v51  ;;  %v20795_v7 = vadd.f32 %v20792_v15, %v6507_v62  ;;  %v6186_v9 = vmul.f32 %v20800_v26, %v23277_v4  ;;  %v6185_v19 = vmul.f32 %v20800_v26, %v23278_v35 }
 0xfe3   :  { %v16295_v42 = vpop.eup %16294  ;;  %v7021_v36 = vmul.f32 %v16287_v11, %v20665_v30  ;;  %v6849_v13 = vadd.f32 1.0, %v16293_v60  ;;  %16314 = vpow2.f32 %v11965_v14  ;;  %v20808_v51 = vadd.f32 %v20792_v15, %v6502_v50  ;;  %14200 = vmatprep.mubr.msk.f32.mxu0 %vm388_vm2, %v7020_v46  ;;  %v14131_v12 = vpop.f32.mrb[206].mxu1  ;;  %v23279_v50 = vld [vmem:[#allocation115_spill] sm:$0xff]  ;;  %v23280_v60 = vld [vmem:[#allocation114_spill] sm:$0xff] }
 0xfe4   :  { %v16297_v10 = vpop.eup %16296  ;;  %v6848_v61 = vadd.f32 1.0, %v16295_v42  ;;  %16316 = vpow2.f32 %v11964_v0  ;;  %v11967_v38 = vmul.f32 -1.442695, %v20795_v7  ;;  %v6517_v62 = vadd.f32 %v14131_v12, %v6186_v9  ;;  %v6511_v56 = vpop.f32.mrb[207].mxu1 }
 0xfe5   :  { %v16299_v4 = vpop.eup %16298  ;;  %v7022_v35 = vmul.f32 %v16297_v10, %v20686_v17  ;;  %16318 = vrcp.f32 %v6849_v13  ;;  %v11966_v30 = vmul.f32 -1.442695, %v20808_v51  ;;  %14201 = vmatmul.mubr.msk.f32.gmra.mrb[192].mxu0 %vm388_vm2, %v7021_v36  ;;  %v6512_v11 = vadd.f32 %v6511_v56, %v6185_v19 }
 0xfe6   :  { %v16301_v14 = vpop.eup %16300  ;;  %16320 = vrcp.f32 %v6848_v61  ;;  %v20816_v46 = vadd.f32 %v20792_v15, %v6517_v62  ;;  %v6188_v0 = vmul.f32 %v20800_v26, %v23279_v50  ;;  %v6187_v9 = vmul.f32 %v20800_v26, %v23280_v60 }
 0xfe7   :  { %v16303_v42 = vpop.eup %16302  ;;  %v7023_v17 = vmul.f32 %v16291_v59, %v20680_v39  ;;  %v6851_v13 = vadd.f32 1.0, %v16301_v14  ;;  %16322 = vpow2.f32 %v11967_v38  ;;  %v20824_v12 = vadd.f32 %v20792_v15, %v6512_v11  ;;  %14203 = vmatprep.mubr.msk.f32.mxu0 %vm388_vm2, %v7022_v35  ;;  %v14134_v19 = vpop.f32.mrb[208].mxu1  ;;  %v23281_v11 = vld [vmem:[#allocation118_spill] sm:$0xff] }
 0xfe8   :  { %v16305_v36 = vpop.eup %16304  ;;  %v6850_v10 = vadd.f32 1.0, %v16303_v42  ;;  %16324 = vpow2.f32 %v11966_v30  ;;  %v11969_v61 = vmul.f32 -1.442695, %v20816_v46  ;;  %v6527_v62 = vadd.f32 %v14134_v19, %v6188_v0  ;;  %v6521_v56 = vpop.f32.mrb[209].mxu1 }
 0xfe9   :  { %v16307_v50 = vpop.eup %16306  ;;  %v7024_v60 = vmul.f32 %v16305_v36, %v20703_v32  ;;  %16326 = vrcp.f32 %v6851_v13  ;;  %v11968_v39 = vmul.f32 -1.442695, %v20824_v12  ;;  %14204 = vmatmul.mubr.msk.f32.gmra.mrb[194].mxu0 %vm388_vm2, %v7023_v17  ;;  %v6522_v59 = vadd.f32 %v6521_v56, %v6187_v9  ;;  %v23282_v36 = vld [vmem:[#allocation130_spill] sm:$0xff] }
 0xfea   :  { %v16309_v38 = vpop.eup %16308  ;;  %16328 = vrcp.f32 %v6850_v10  ;;  %v20832_v35 = vadd.f32 %v20792_v15, %v6527_v62  ;;  %v6189_v30 = vmul.f32 %v20800_v26, %v23281_v11  ;;  %v7025_v0 = vmul.f32 %v16299_v4, %v20696_v48 }
 0xfeb   :  { %v16311_v14 = vpop.eup %16310  ;;  %v6853_v42 = vadd.f32 1.0, %v16309_v38  ;;  %16330 = vpow2.f32 %v11969_v61  ;;  %v20838_v32 = vadd.f32 %v20792_v15, %v6522_v59  ;;  %14206 = vmatprep.mubr.msk.f32.mxu0 %vm388_vm2, %v7024_v60  ;;  %v14137_v17 = vpop.f32.mrb[210].mxu1 }
 0xfec   :  { %v16313_v9 = vpop.eup %16312  ;;  %v7026_v13 = vmul.f32 %v16311_v14, %v20719_v18  ;;  %16332 = vpow2.f32 %v11968_v39  ;;  %v11971_v19 = vmul.f32 -1.442695, %v20832_v35  ;;  %v6537_v10 = vadd.f32 %v14137_v17, %v23282_v36  ;;  %v6531_v62 = vpop.f32.mrb[211].mxu1 }
 0xfed   :  { %v16315_v56 = vpop.eup %16314  ;;  %16334 = vrcp.f32 %v6853_v42  ;;  %v6852_v48 = vadd.f32 1.0, %v16313_v9  ;;  %14207 = vmatmul.mubr.msk.f32.gmra.mrb[196].mxu0 %vm388_vm2, %v7025_v0  ;;  %v6532_v4 = vadd.f32 %v6531_v62, %v6189_v30  ;;  %v11970_v60 = vmul.f32 -1.442695, %v20838_v32  ;;  %v23283_v9 = vld [vmem:[#allocation131_spill] sm:$0xff] }
 0xfee   :  { %v16317_v61 = vpop.eup %16316  ;;  %v6855_v59 = vadd.f32 1.0, %v16315_v56  ;;  %16336 = vpow2.f32 %v11971_v19  ;;  %v20847_v38 = vadd.f32 %v20792_v15, %v6537_v10  ;;  %14209 = vmatprep.mubr.msk.f32.mxu0 %vm388_vm2, %v7026_v13  ;;  %v7027_v39 = vmul.f32 %v16307_v50, %v20712_v1  ;;  %v23284_v10 = vld [vmem:[#allocation119_spill] sm:$0xff]  ;;  %v23285_v1 = vld [vmem:[#allocation132_spill] sm:$0xff] }
 0xfef   :  { %v16319_v18 = vpop.eup %16318  ;;  %16338 = vrcp.f32 %v6852_v48  ;;  %v6854_v14 = vadd.f32 1.0, %v16317_v61  ;;  %v20852_v42 = vadd.f32 %v20792_v15, %v6532_v4  ;;  %v14140_v0 = vpop.f32.mrb[212].mxu1  ;;  %v6194_v62 = vmul.f32 %v20800_v26, %v23284_v10  ;;  %v23286_v48 = vld [vmem:[#allocation125_spill] sm:$0xff] }
 0xff0   :  { %v16321_v30 = vpop.eup %16320  ;;  %16340 = vrcp.f32 %v6855_v59  ;;  %v11973_v17 = vmul.f32 -1.442695, %v20847_v38  ;;  %v6547_v19 = vadd.f32 %v14140_v0, %v23283_v9  ;;  %v6541_v36 = vpop.f32.mrb[213].mxu1  ;;  %v6193_v4 = vmul.f32 %v20800_v26, %v23286_v48 }
 0xff1   :  { %v16323_v13 = vpop.eup %16322  ;;  %v7028_v56 = vmul.f32 %v16321_v30, %v20737_v20  ;;  %16342 = vrcp.f32 %v6854_v14  ;;  %14210 = vmatmul.mubr.msk.f32.gmra.mrb[198].mxu0 %vm388_vm2, %v7027_v39  ;;  %v6542_v50 = vadd.f32 %v6541_v36, %v23285_v1  ;;  %v11972_v0 = vmul.f32 -1.442695, %v20852_v42 }
 0xff2   :  { %v16325_v61 = vpop.eup %16324  ;;  %v6857_v59 = vadd.f32 1.0, %v16323_v13  ;;  %16344 = vpow2.f32 %v11970_v60  ;;  %v20865_v9 = vadd.f32 %v20792_v15, %v6547_v19  ;;  %v7029_v11 = vmul.f32 %v16319_v18, %v20728_v3 }
 0xff3   :  { %v16327_v10 = vpop.eup %16326  ;;  %v6856_v20 = vadd.f32 1.0, %v16325_v61  ;;  %16346 = vpow2.f32 %v11973_v17  ;;  %v20869_v39 = vadd.f32 %v20792_v15, %v6542_v50  ;;  %14212 = vmatprep.mubr.msk.f32.mxu0 %vm388_vm2, %v7028_v56  ;;  %v14143_v14 = vpop.f32.mrb[214].mxu1 }
 0xff4   :  { %v16329_v26 = vpop.eup %16328  ;;  %16348 = vrcp.f32 %v6857_v59  ;;  %v11975_v60 = vmul.f32 -1.442695, %v20865_v9  ;;  %v6557_v30 = vadd.f32 %v14143_v14, %v6194_v62  ;;  %v6551_v36 = vpop.f32.mrb[215].mxu1  ;;  %v7031_v61 = vmul.f32 %v16327_v10, %v20744_v34 }
 0xff5   :  { %v16331_v13 = vpop.eup %16330  ;;  %v7030_v19 = vmul.f32 %v16329_v26, %v20750_v21  ;;  %16350 = vrcp.f32 %v6856_v20  ;;  %14213 = vmatmul.mubr.msk.f32.gmra.mrb[200].mxu0 %vm388_vm2, %v7029_v11  ;;  %v6552_v3 = vadd.f32 %v6551_v36, %v6193_v4  ;;  %v11974_v1 = vmul.f32 -1.442695, %v20869_v39 }
 0xff6   :  { %v16333_v18 = vpop.eup %16332  ;;  %v6859_v17 = vadd.f32 1.0, %v16331_v13  ;;  %16352 = vpow2.f32 %v11972_v0  ;;  %v20877_v56 = vadd.f32 %v20792_v15, %v6557_v30 }
 0xff7   :  { %v16335_v50 = vpop.eup %16334  ;;  %v6858_v62 = vadd.f32 1.0, %v16333_v18  ;;  %16354 = vpow2.f32 %v11975_v60  ;;  %v20881_v59 = vadd.f32 %v20792_v15, %v6552_v3  ;;  %14215 = vmatprep.mubr.msk.f32.mxu0 %vm388_vm2, %v7030_v19 }
 0xff8   :  { %v16337_v21 = vpop.eup %16336  ;;  %16356 = vrcp.f32 %v6859_v17  ;;  %v11977_v11 = vmul.f32 -1.442695, %v20877_v56  ;;  %v7033_v15 = vmul.f32 %v16335_v50, %v20760_v47 }
 0xff9   :  { %v16339_v4 = vpop.eup %16338  ;;  %16358 = vrcp.f32 %v6858_v62  ;;  %v11976_v0 = vmul.f32 -1.442695, %v20881_v59  ;;  %14216 = vmatmul.mubr.msk.f32.gmra.mrb[202].mxu0 %vm388_vm2, %v7031_v61  ;;  %v6861_v10 = vadd.f32 1.0, %v16337_v21 }
 0xffa   :  { %v16341_v20 = vpop.eup %16340  ;;  %v7032_v34 = vmul.f32 %v16339_v4, %v20766_v44  ;;  %16360 = vpow2.f32 %v11974_v1 }
 0xffb   :  { %v16343_v14 = vpop.eup %16342  ;;  %16362 = vpow2.f32 %v11977_v11  ;;  %v7035_v3 = vmul.f32 %v16341_v20, %v20778_v40 }
 0xffc   :  { %v16345_v26 = vpop.eup %16344  ;;  %v7034_v60 = vmul.f32 %v16343_v14, %v20782_v23  ;;  %14218 = vmatprep.mubr.msk.f32.mxu0 %vm388_vm2, %v7032_v34  ;;  %16364 = vpow2.f32 %v11976_v0 }
 0xffd   :  { %v16347_v30 = vpop.eup %16346  ;;  %v6860_v36 = vadd.f32 1.0, %v16345_v26  ;;  %14219 = vmatmul.mubr.msk.f32.gmra.mrb[204].mxu0 %vm388_vm2, %v7033_v15  ;;  %16366 = vrcp.f32 %v6861_v10 }
 0xffe   :  { %v16349_v13 = vpop.eup %16348  ;;  %v6863_v19 = vadd.f32 1.0, %v16347_v30  ;;  %14221 = vmatprep.mubr.msk.f32.mxu0 %vm388_vm2, %v7034_v60 }
 0xfff   :  { %v16351_v44 = vpop.eup %16350  ;;  %16368 = vrcp.f32 %v6860_v36  ;;  %v7037_v62 = vmul.f32 %v16349_v13, %v20795_v7 }
0x1000   :  { %v16353_v47 = vpop.eup %16352  ;;  %v7036_v23 = vmul.f32 %v16351_v44, %v20808_v51  ;;  %16370 = vrcp.f32 %v6863_v19 }
0x1001   :  { %v16355_v18 = vpop.eup %16354  ;;  %v6862_v17 = vadd.f32 1.0, %v16353_v47  ;;  %14222 = vmatmul.mubr.msk.f32.gmra.mrb[206].mxu0 %vm388_vm2, %v7035_v3 }
0x1002   :  { %v16357_v1 = vpop.eup %16356  ;;  %v6865_v50 = vadd.f32 1.0, %v16355_v18  ;;  %14224 = vmatprep.mubr.msk.f32.mxu0 %vm388_vm2, %v7036_v23 }
0x1003   :  { %v16359_v61 = vpop.eup %16358  ;;  %16372 = vrcp.f32 %v6862_v17  ;;  %v7039_v0 = vmul.f32 %v16357_v1, %v20816_v46 }
0x1004   :  { %v16361_v21 = vpop.eup %16360  ;;  %v7038_v40 = vmul.f32 %v16359_v61, %v20824_v12  ;;  %16374 = vrcp.f32 %v6865_v50 }
0x1005   :  { %v6864_v11 = vadd.f32 1.0, %v16361_v21  ;;  %14225 = vmatmul.mubr.msk.f32.gmra.mrb[208].mxu0 %vm388_vm2, %v7037_v62  ;;  %v16363_v51 = vpop.eup %16362 }
0x1006   :  { %14227 = vmatprep.mubr.msk.f32.mxu0 %vm388_vm2, %v7038_v40  ;;  %v16365_v4 = vpop.eup %16364  ;;  %v6867_v20 = vadd.f32 1.0, %v16363_v51 }
0x1007   :  { %16376 = vrcp.f32 %v6864_v11  ;;  %v16367_v34 = vpop.eup %16366  ;;  %v6866_v10 = vadd.f32 1.0, %v16365_v4 }
0x1008   :  { %16378 = vrcp.f32 %v6867_v20  ;;  %v7041_v12 = vmul.f32 %v16367_v34, %v20832_v35 }
0x1009   :  { %v16369_v14 = vpop.eup %16368  ;;  %14228 = vmatmul.mubr.msk.f32.gmra.mrb[210].mxu0 %vm388_vm2, %v7039_v0  ;;  %16380 = vrcp.f32 %v6866_v10 }
0x100a   :  { %v7040_v7 = vmul.f32 %v16369_v14, %v20838_v32  ;;  %v16371_v15 = vpop.eup %16370 }
0x100b   :  { %v7043_v60 = vmul.f32 %v16371_v15, %v20847_v38 }
0x100c   :  { %14230 = vmatprep.mubr.msk.f32.mxu0 %vm388_vm2, %v7040_v7 }
0x100d   :  { %v16373_v26 = vpop.eup %16372  ;;  %14231 = vmatmul.mubr.msk.f32.gmra.mrb[212].mxu0 %vm388_vm2, %v7041_v12 }
0x100e   :  { %v7042_v46 = vmul.f32 %v16373_v26, %v20852_v42  ;;  %v16375_v30 = vpop.eup %16374  ;;  %v23287_v42 = vld [vmem:[#allocation124_spill] sm:$0xff] }
0x100f   :  { %v7045_v35 = vmul.f32 %v16375_v30, %v20865_v9 }
0x1010   :  { %14233 = vmatprep.mubr.msk.f32.mxu0 %vm388_vm2, %v7042_v46 }
0x1011   :  { %v16377_v36 = vpop.eup %16376  ;;  %14234 = vmatmul.mubr.msk.f32.gmra.mrb[214].mxu0 %vm388_vm2, %v7043_v60 }
0x1012   :  { %v7044_v32 = vmul.f32 %v16377_v36, %v20869_v39  ;;  %v16379_v13 = vpop.eup %16378  ;;  %v20923_v39 = vld [vmem:[%s22602_s11 + $0x2] ss:$0 sm:$0xff] }
0x1013   :  { %v16381_v19 = vpop.eup %16380  ;;  %v7047_v38 = vmul.f32 %v16379_v13, %v20877_v56 }
0x1014   :  { %14236 = vmatprep.mubr.msk.f32.mxu0 %vm388_vm2, %v7044_v32  ;;  %v7046_v44 = vmul.f32 %v16381_v19, %v20881_v59 }
0x1015   :  { %14237 = vmatmul.mubr.msk.f32.gmra.mrb[216].mxu0 %vm388_vm2, %v7045_v35 }
0x1016   :  { %14239 = vmatprep.mubr.msk.f32.mxu0 %vm388_vm2, %v7046_v44 }
0x1019   :  { %14240 = vmatmul.mubr.msk.f32.gmra.mrb[218].mxu0 %vm388_vm2, %v7047_v38 }
0x101a   :  { %8090 = vmatprep.mubr.f32.mxu0 %v23287_v42 }
0x1075   :  { %v14154_v9 = vpop.f32.mrb[160].mxu0 }
0x1076   :  { %v20926_v3 = vadd.f32 %v14154_v9, %v20923_v39  ;;  %v7307_v59 = vpop.f32.mrb[161].mxu0 }
0x1077   :  { %v20929_v47 = vadd.f32 %v20923_v39, %v7307_v59 }
0x1078   :  { %v12045_v56 = vmul.f32 -1.442695, %v20926_v3 }
0x1079   :  { %v12044_v23 = vmul.f32 -1.442695, %v20929_v47  ;;  %v14157_v18 = vpop.f32.mrb[162].mxu0 }
0x107a   :  { %16382 = vpow2.f32 %v12045_v56  ;;  %v20934_v17 = vadd.f32 %v14157_v18, %v20923_v39  ;;  %v7317_v1 = vpop.f32.mrb[163].mxu0 }
0x107b   :  { %16384 = vpow2.f32 %v12044_v23  ;;  %v20937_v50 = vadd.f32 %v20923_v39, %v7317_v1 }
0x107c   :  { %v12047_v61 = vmul.f32 -1.442695, %v20934_v17 }
0x107d   :  { %v12046_v62 = vmul.f32 -1.442695, %v20937_v50  ;;  %v14160_v21 = vpop.f32.mrb[164].mxu0 }
0x107e   :  { %16386 = vpow2.f32 %v12047_v61  ;;  %v20942_v40 = vadd.f32 %v14160_v21, %v20923_v39  ;;  %v7327_v11 = vpop.f32.mrb[165].mxu0 }
0x107f   :  { %16388 = vpow2.f32 %v12046_v62  ;;  %v20945_v51 = vadd.f32 %v20923_v39, %v7327_v11 }
0x1080   :  { %v12049_v4 = vmul.f32 -1.442695, %v20942_v40 }
0x1081   :  { %v12048_v0 = vmul.f32 -1.442695, %v20945_v51 }
0x1082   :  { %16390 = vpow2.f32 %v12049_v4 }
0x1083   :  { %16392 = vpow2.f32 %v12048_v0  ;;  %v14163_v20 = vpop.f32.mrb[166].mxu0 }
0x1084   :  { %v16383_v34 = vpop.eup %16382  ;;  %v20950_v10 = vadd.f32 %v14163_v20, %v20923_v39  ;;  %v7337_v14 = vpop.f32.mrb[167].mxu0 }
0x1085   :  { %v16385_v7 = vpop.eup %16384  ;;  %v7787_v12 = vadd.f32 1.0, %v16383_v34  ;;  %v20953_v15 = vadd.f32 %v20923_v39, %v7337_v14 }
0x1086   :  { %v7786_v26 = vadd.f32 1.0, %v16385_v7  ;;  %v12051_v46 = vmul.f32 -1.442695, %v20950_v10 }
0x1087   :  { %16394 = vrcp.f32 %v7787_v12  ;;  %v12050_v60 = vmul.f32 -1.442695, %v20953_v15  ;;  %v14166_v30 = vpop.f32.mrb[168].mxu0 }
0x1088   :  { %v16387_v36 = vpop.eup %16386  ;;  %16396 = vrcp.f32 %v7786_v26  ;;  %v20958_v32 = vadd.f32 %v14166_v30, %v20923_v39  ;;  %v7347_v13 = vpop.f32.mrb[169].mxu0 }
0x1089   :  { %v16389_v35 = vpop.eup %16388  ;;  %v7789_v19 = vadd.f32 1.0, %v16387_v36  ;;  %16398 = vpow2.f32 %v12051_v46  ;;  %v20961_v44 = vadd.f32 %v20923_v39, %v7347_v13 }
0x108a   :  { %v7788_v38 = vadd.f32 1.0, %v16389_v35  ;;  %16400 = vpow2.f32 %v12050_v60  ;;  %v12053_v9 = vmul.f32 -1.442695, %v20958_v32 }
0x108b   :  { %16402 = vrcp.f32 %v7789_v19  ;;  %v12052_v59 = vmul.f32 -1.442695, %v20961_v44  ;;  %v14169_v56 = vpop.f32.mrb[170].mxu0 }
0x108c   :  { %v16391_v23 = vpop.eup %16390  ;;  %16404 = vrcp.f32 %v7788_v38  ;;  %v20966_v18 = vadd.f32 %v14169_v56, %v20923_v39  ;;  %v7357_v1 = vpop.f32.mrb[171].mxu0 }
0x108d   :  { %v16393_v61 = vpop.eup %16392  ;;  %v7791_v62 = vadd.f32 1.0, %v16391_v23  ;;  %16406 = vpow2.f32 %v12053_v9  ;;  %v20969_v21 = vadd.f32 %v20923_v39, %v7357_v1 }
0x108e   :  { %v7790_v11 = vadd.f32 1.0, %v16393_v61  ;;  %16408 = vpow2.f32 %v12052_v59  ;;  %v12055_v4 = vmul.f32 -1.442695, %v20966_v18 }
0x108f   :  { %16410 = vrcp.f32 %v7791_v62  ;;  %v12054_v0 = vmul.f32 -1.442695, %v20969_v21  ;;  %v14172_v20 = vpop.f32.mrb[172].mxu0 }
0x1090   :  { %16412 = vrcp.f32 %v7790_v11  ;;  %v20974_v34 = vadd.f32 %v14172_v20, %v20923_v39  ;;  %v7367_v14 = vpop.f32.mrb[173].mxu0 }
0x1091   :  { %v16395_v7 = vpop.eup %16394  ;;  %16414 = vpow2.f32 %v12055_v4  ;;  %v20977_v12 = vadd.f32 %v20923_v39, %v7367_v14 }
0x1092   :  { %v16397_v26 = vpop.eup %16396  ;;  %v20980_v46 = vmul.f32 %v16395_v7, %v20926_v3  ;;  %16416 = vpow2.f32 %v12054_v0  ;;  %v12057_v60 = vmul.f32 -1.442695, %v20974_v34 }
0x1093   :  { %v16399_v30 = vpop.eup %16398  ;;  %v20984_v36 = vmul.f32 %v16397_v26, %v20929_v47  ;;  %v12056_v13 = vmul.f32 -1.442695, %v20977_v12  ;;  %v14175_v35 = vpop.f32.mrb[174].mxu0 }
0x1094   :  { %v16401_v19 = vpop.eup %16400  ;;  %v7793_v38 = vadd.f32 1.0, %v16399_v30  ;;  %16418 = vpow2.f32 %v12057_v60  ;;  %v20988_v9 = vadd.f32 %v14175_v35, %v20923_v39  ;;  %v7377_v59 = vpop.f32.mrb[175].mxu0 }
0x1095   :  { %v16403_v56 = vpop.eup %16402  ;;  %v7792_v23 = vadd.f32 1.0, %v16401_v19  ;;  %16420 = vpow2.f32 %v12056_v13  ;;  %v20993_v1 = vadd.f32 %v20923_v39, %v7377_v59 }
0x1096   :  { %v16405_v47 = vpop.eup %16404  ;;  %v20996_v61 = vmul.f32 %v16403_v56, %v20934_v17  ;;  %16422 = vrcp.f32 %v7793_v38  ;;  %v12059_v62 = vmul.f32 -1.442695, %v20988_v9 }
0x1097   :  { %v16407_v11 = vpop.eup %16406  ;;  %v21000_v4 = vmul.f32 %v16405_v47, %v20937_v50  ;;  %16424 = vrcp.f32 %v7792_v23  ;;  %v12058_v0 = vmul.f32 -1.442695, %v20993_v1  ;;  %v14178_v20 = vpop.f32.mrb[176].mxu0 }
0x1098   :  { %v16409_v14 = vpop.eup %16408  ;;  %v7795_v7 = vadd.f32 1.0, %v16407_v11  ;;  %16426 = vpow2.f32 %v12059_v62  ;;  %v21004_v26 = vadd.f32 %v14178_v20, %v20923_v39  ;;  %v7387_v60 = vpop.f32.mrb[177].mxu0 }
0x1099   :  { %v16411_v17 = vpop.eup %16410  ;;  %v7794_v13 = vadd.f32 1.0, %v16409_v14  ;;  %16428 = vpow2.f32 %v12058_v0  ;;  %v21009_v50 = vadd.f32 %v20923_v39, %v7387_v60 }
0x109a   :  { %v16413_v35 = vpop.eup %16412  ;;  %v21012_v19 = vmul.f32 %v16411_v17, %v20942_v40  ;;  %16430 = vrcp.f32 %v7795_v7  ;;  %v12061_v38 = vmul.f32 -1.442695, %v21004_v26 }
0x109b   :  { %v16415_v59 = vpop.eup %16414  ;;  %v21016_v56 = vmul.f32 %v16413_v35, %v20945_v51  ;;  %16432 = vrcp.f32 %v7794_v13  ;;  %v12060_v23 = vmul.f32 -1.442695, %v21009_v50 }
0x109c   :  { %v16417_v47 = vpop.eup %16416  ;;  %v7797_v62 = vadd.f32 1.0, %v16415_v59  ;;  %16434 = vpow2.f32 %v12061_v38  ;;  %v14181_v11 = vpop.f32.mrb[178].mxu0 }
0x109d   :  { %v7796_v20 = vadd.f32 1.0, %v16417_v47  ;;  %16436 = vpow2.f32 %v12060_v23  ;;  %v21022_v40 = vadd.f32 %v14181_v11, %v20923_v39  ;;  %v7397_v14 = vpop.f32.mrb[179].mxu0 }
0x109e   :  { %v16419_v7 = vpop.eup %16418  ;;  %16438 = vrcp.f32 %v7797_v62  ;;  %v21025_v51 = vadd.f32 %v20923_v39, %v7397_v14 }
0x109f   :  { %v16421_v60 = vpop.eup %16420  ;;  %16440 = vrcp.f32 %v7796_v20  ;;  %v7799_v17 = vadd.f32 1.0, %v16419_v7  ;;  %v12063_v13 = vmul.f32 -1.442695, %v21022_v40 }
0x10a0   :  { %v16423_v35 = vpop.eup %16422  ;;  %v7798_v38 = vadd.f32 1.0, %v16421_v60  ;;  %v12062_v59 = vmul.f32 -1.442695, %v21025_v51  ;;  %v14184_v47 = vpop.f32.mrb[180].mxu0 }
0x10a1   :  { %v16425_v23 = vpop.eup %16424  ;;  %v21030_v11 = vmul.f32 %v16423_v35, %v20950_v10  ;;  %16442 = vrcp.f32 %v7799_v17  ;;  %v21033_v62 = vadd.f32 %v14184_v47, %v20923_v39  ;;  %v7407_v14 = vpop.f32.mrb[181].mxu0 }
0x10a2   :  { %v16427_v0 = vpop.eup %16426  ;;  %v21036_v20 = vmul.f32 %v16425_v23, %v20953_v15  ;;  %16444 = vrcp.f32 %v7798_v38  ;;  %v21039_v7 = vadd.f32 %v20923_v39, %v7407_v14 }
0x10a3   :  { %v16429_v60 = vpop.eup %16428  ;;  %v7801_v30 = vadd.f32 1.0, %v16427_v0  ;;  %16446 = vpow2.f32 %v12063_v13  ;;  %v12065_v3 = vmul.f32 -1.442695, %v21033_v62 }
0x10a4   :  { %v16431_v10 = vpop.eup %16430  ;;  %v7800_v35 = vadd.f32 1.0, %v16429_v60  ;;  %16448 = vpow2.f32 %v12062_v59  ;;  %v12064_v47 = vmul.f32 -1.442695, %v21039_v7  ;;  %v14187_v42 = vpop.f32.mrb[182].mxu0 }
0x10a5   :  { %v16433_v15 = vpop.eup %16432  ;;  %v21046_v38 = vmul.f32 %v16431_v10, %v20958_v32  ;;  %16450 = vrcp.f32 %v7801_v30  ;;  %v21049_v23 = vadd.f32 %v14187_v42, %v20923_v39  ;;  %v7417_v0 = vpop.f32.mrb[183].mxu0 }
0x10a6   :  { %v16435_v13 = vpop.eup %16434  ;;  %v21052_v14 = vmul.f32 %v16433_v15, %v20961_v44  ;;  %16452 = vrcp.f32 %v7800_v35  ;;  %v21055_v60 = vadd.f32 %v20923_v39, %v7417_v0 }
0x10a7   :  { %v16437_v59 = vpop.eup %16436  ;;  %v7803_v17 = vadd.f32 1.0, %v16435_v13  ;;  %16454 = vpow2.f32 %v12065_v3  ;;  %v12067_v48 = vmul.f32 -1.442695, %v21049_v23 }
0x10a8   :  { %v16439_v32 = vpop.eup %16438  ;;  %v7802_v42 = vadd.f32 1.0, %v16437_v59  ;;  %16456 = vpow2.f32 %v12064_v47  ;;  %v12066_v10 = vmul.f32 -1.442695, %v21055_v60  ;;  %v14190_v43 = vpop.f32.mrb[184].mxu0 }
0x10a9   :  { %v16441_v44 = vpop.eup %16440  ;;  %v21062_v35 = vmul.f32 %v16439_v32, %v20966_v18  ;;  %16458 = vrcp.f32 %v7803_v17  ;;  %v21065_v15 = vadd.f32 %v14190_v43, %v20923_v39  ;;  %v7427_v3 = vpop.f32.mrb[185].mxu0 }
0x10aa   :  { %v21068_v0 = vmul.f32 %v16441_v44, %v20969_v21  ;;  %16460 = vrcp.f32 %v7802_v42  ;;  %v21071_v13 = vadd.f32 %v20923_v39, %v7427_v3 }
0x10ab   :  { %v16443_v47 = vpop.eup %16442  ;;  %16462 = vpow2.f32 %v12067_v48  ;;  %v12069_v59 = vmul.f32 -1.442695, %v21065_v15 }
0x10ac   :  { %v16445_v30 = vpop.eup %16444  ;;  %v21077_v17 = vmul.f32 %v16443_v47, %v20974_v34  ;;  %16464 = vpow2.f32 %v12066_v10  ;;  %v12068_v43 = vmul.f32 -1.442695, %v21071_v13  ;;  %v14193_v21 = vpop.f32.mrb[186].mxu0 }
0x10ad   :  { %v16447_v32 = vpop.eup %16446  ;;  %v21081_v42 = vmul.f32 %v16445_v30, %v20977_v12  ;;  %16466 = vpow2.f32 %v12069_v59  ;;  %v21084_v48 = vadd.f32 %v14193_v21, %v20923_v39  ;;  %v7437_v44 = vpop.f32.mrb[187].mxu0 }
0x10ae   :  { %v16449_v3 = vpop.eup %16448  ;;  %v7805_v24 = vadd.f32 1.0, %v16447_v32  ;;  %16468 = vpow2.f32 %v12068_v43  ;;  %v21087_v18 = vadd.f32 %v20923_v39, %v7437_v44 }
0x10af   :  { %v16451_v34 = vpop.eup %16450  ;;  %v7804_v47 = vadd.f32 1.0, %v16449_v3  ;;  %v12071_v57 = vmul.f32 -1.442695, %v21084_v48 }
0x10b0   :  { %v16453_v12 = vpop.eup %16452  ;;  %v21093_v30 = vmul.f32 %v16451_v34, %v20988_v9  ;;  %16470 = vrcp.f32 %v7805_v24  ;;  %v12070_v59 = vmul.f32 -1.442695, %v21087_v18  ;;  %v14196_v21 = vpop.f32.mrb[188].mxu0 }
0x10b1   :  { %v16455_v32 = vpop.eup %16454  ;;  %v21097_v43 = vmul.f32 %v16453_v12, %v20993_v1  ;;  %16472 = vrcp.f32 %v7804_v47  ;;  %v21100_v44 = vadd.f32 %v14196_v21, %v20923_v39  ;;  %v7447_v10 = vpop.f32.mrb[189].mxu0 }
0x10b2   :  { %v16457_v3 = vpop.eup %16456  ;;  %v7807_v55 = vadd.f32 1.0, %v16455_v32  ;;  %16474 = vpow2.f32 %v12071_v57  ;;  %v21103_v49 = vadd.f32 %v20923_v39, %v7447_v10 }
0x10b3   :  { %v16459_v9 = vpop.eup %16458  ;;  %v7806_v34 = vadd.f32 1.0, %v16457_v3  ;;  %16476 = vpow2.f32 %v12070_v59  ;;  %v12073_v1 = vmul.f32 -1.442695, %v21100_v44 }
0x10b4   :  { %v16461_v12 = vpop.eup %16460  ;;  %v7983_v47 = vmul.f32 %v16459_v9, %v21004_v26  ;;  %16478 = vrcp.f32 %v7807_v55  ;;  %v12072_v21 = vmul.f32 -1.442695, %v21103_v49  ;;  %v14199_v25 = vpop.f32.mrb[190].mxu0 }
0x10b5   :  { %v16463_v32 = vpop.eup %16462  ;;  %v7982_v57 = vmul.f32 %v16461_v12, %v21009_v50  ;;  %16480 = vrcp.f32 %v7806_v34  ;;  %v21112_v10 = vadd.f32 %v14199_v25, %v20923_v39  ;;  %v7457_v33 = vpop.f32.mrb[191].mxu0 }
0x10b6   :  { %v16465_v24 = vpop.eup %16464  ;;  %v7809_v3 = vadd.f32 1.0, %v16463_v32  ;;  %16482 = vpow2.f32 %v12073_v1  ;;  %v21115_v59 = vadd.f32 %v20923_v39, %v7457_v33 }
0x10b7   :  { %v16467_v58 = vpop.eup %16466  ;;  %v7808_v26 = vadd.f32 1.0, %v16465_v24  ;;  %16484 = vpow2.f32 %v12072_v21  ;;  %v14890_v55 = vpack.c.bf16 %v7983_v47, %v7982_v57  ;;  %v12075_v50 = vmul.f32 -1.442695, %v21112_v10 }
0x10b8   :  { %v16469_v9 = vpop.eup %16468  ;;  %16486 = vrcp.f32 %v7809_v3  ;;  %v7811_v53 = vadd.f32 1.0, %v16467_v58  ;;  %v14202_v34 = vpop.f32.mrb[192].mxu0  ;;  %v12074_v12 = vmul.f32 -1.442695, %v21115_v59  ;;  %v23288_v58 = vpack.c.bf16 %v20980_v46, %v20984_v36 }
0x10b9   :  { %16488 = vrcp.f32 %v7808_v26  ;;  %v7810_v25 = vadd.f32 1.0, %v16469_v9  ;;  %v21120_v32 = vadd.f32 %v14202_v34, %v20923_v39  ;;  %v7467_v1 = vpop.f32.mrb[193].mxu0  ;;  %14891 = vmatprep.subr.bf16.mxu0 %v14890_v55 }
0x10ba   :  { %v16471_v33 = vpop.eup %16470  ;;  %16490 = vrcp.f32 %v7811_v53  ;;  %v21123_v24 = vadd.f32 %v20923_v39, %v7467_v1  ;;  %14893 = vmatpush3.bf16.msra.mxu0 %v23288_v58 }
0x10bb   :  { %v16473_v47 = vpop.eup %16472  ;;  %v7985_v21 = vmul.f32 %v16471_v33, %v21022_v40  ;;  %16492 = vrcp.f32 %v7810_v25  ;;  %v12077_v57 = vmul.f32 -1.442695, %v21120_v32 }
0x10bc   :  { %v16475_v3 = vpop.eup %16474  ;;  %v7984_v26 = vmul.f32 %v16473_v47, %v21025_v51  ;;  %16494 = vpow2.f32 %v12075_v50  ;;  %v14205_v55 = vpop.f32.mrb[194].mxu0  ;;  %v12076_v34 = vmul.f32 -1.442695, %v21123_v24 }
0x10bd   :  { %v16477_v9 = vpop.eup %16476  ;;  %v7813_v53 = vadd.f32 1.0, %v16475_v3  ;;  %16496 = vpow2.f32 %v12074_v12  ;;  %v21133_v1 = vadd.f32 %v14205_v55, %v20923_v39  ;;  %v7477_v46 = vpop.f32.mrb[195].mxu0 }
0x10be   :  { %v16479_v36 = vpop.eup %16478  ;;  %v7812_v58 = vadd.f32 1.0, %v16477_v9  ;;  %16498 = vpow2.f32 %v12077_v57  ;;  %v21136_v40 = vadd.f32 %v20923_v39, %v7477_v46  ;;  %v14894_v25 = vpack.c.bf16 %v7985_v21, %v7984_v26 }
0x10bf   :  { %v16481_v33 = vpop.eup %16480  ;;  %v7987_v51 = vmul.f32 %v16479_v36, %v21033_v62  ;;  %16500 = vrcp.f32 %v7813_v53  ;;  %v12079_v50 = vmul.f32 -1.442695, %v21133_v1  ;;  %v23289_v21 = vpack.c.bf16 %v20996_v61, %v21000_v4 }
0x10c0   :  { %v16483_v12 = vpop.eup %16482  ;;  %v7986_v47 = vmul.f32 %v16481_v33, %v21039_v7  ;;  %16502 = vrcp.f32 %v7812_v58  ;;  %14895 = vmatprep.subr.bf16.mxu0 %v14894_v25  ;;  %v14208_v3 = vpop.f32.mrb[196].mxu0  ;;  %v12078_v57 = vmul.f32 -1.442695, %v21136_v40 }
0x10c1   :  { %v16485_v55 = vpop.eup %16484  ;;  %v7815_v41 = vadd.f32 1.0, %v16483_v12  ;;  %16504 = vpow2.f32 %v12076_v34  ;;  %14897 = vmatpush3.bf16.msra.mxu0 %v23289_v21  ;;  %v21146_v62 = vadd.f32 %v14208_v3, %v20923_v39  ;;  %v7487_v26 = vpop.f32.mrb[197].mxu0 }
0x10c2   :  { %v16487_v9 = vpop.eup %16486  ;;  %v7814_v53 = vadd.f32 1.0, %v16485_v55  ;;  %16506 = vpow2.f32 %v12079_v50  ;;  %v21149_v7 = vadd.f32 %v20923_v39, %v7487_v26  ;;  %v14898_v46 = vpack.c.bf16 %v7987_v51, %v7986_v47 }
0x10c3   :  { %v16489_v36 = vpop.eup %16488  ;;  %v7989_v34 = vmul.f32 %v16487_v9, %v21049_v23  ;;  %16508 = vrcp.f32 %v7815_v41  ;;  %v12081_v58 = vmul.f32 -1.442695, %v21146_v62  ;;  %v23290_v51 = vpack.c.bf16 %v21012_v19, %v21016_v56 }
0x10c4   :  { %v16491_v25 = vpop.eup %16490  ;;  %v7988_v61 = vmul.f32 %v16489_v36, %v21055_v60  ;;  %16510 = vrcp.f32 %v7814_v53  ;;  %v12080_v4 = vmul.f32 -1.442695, %v21149_v7  ;;  %14899 = vmatprep.subr.bf16.mxu0 %v14898_v46  ;;  %v14211_v33 = vpop.f32.mrb[198].mxu0  ;;  %v23291_v36 = vpack.c.bf16 %v21030_v11, %v21036_v20 }
0x10c5   :  { %v16493_v12 = vpop.eup %16492  ;;  %v7991_v50 = vmul.f32 %v16491_v25, %v21065_v15  ;;  %16512 = vpow2.f32 %v12078_v57  ;;  %14901 = vmatpush3.bf16.msra.mxu0 %v23290_v51  ;;  %v21160_v41 = vadd.f32 %v14211_v33, %v20923_v39  ;;  %v7497_v23 = vpop.f32.mrb[199].mxu0 }
0x10c6   :  { %v16495_v47 = vpop.eup %16494  ;;  %v7990_v60 = vmul.f32 %v16493_v12, %v21071_v13  ;;  %16514 = vpow2.f32 %v12081_v58  ;;  %v21164_v3 = vadd.f32 %v20923_v39, %v7497_v23  ;;  %v14902_v55 = vpack.c.bf16 %v7989_v34, %v7988_v61 }
0x10c7   :  { %v16497_v21 = vpop.eup %16496  ;;  %v7817_v26 = vadd.f32 1.0, %v16495_v47  ;;  %16516 = vpow2.f32 %v12080_v4  ;;  %v12083_v19 = vmul.f32 -1.442695, %v21160_v41 }
0x10c8   :  { %v16499_v15 = vpop.eup %16498  ;;  %v7816_v57 = vadd.f32 1.0, %v16497_v21  ;;  %14903 = vmatprep.subr.bf16.mxu0 %v14902_v55  ;;  %v14214_v56 = vpop.f32.mrb[200].mxu0  ;;  %v14906_v9 = vpack.c.bf16 %v7991_v50, %v7990_v60  ;;  %v12082_v13 = vmul.f32 -1.442695, %v21164_v3 }
0x10c9   :  { %v16501_v53 = vpop.eup %16500  ;;  %16518 = vrcp.f32 %v7817_v26  ;;  %v7819_v46 = vadd.f32 1.0, %v16499_v15  ;;  %14905 = vmatpush3.bf16.msra.mxu0 %v23291_v36  ;;  %v21172_v34 = vadd.f32 %v14214_v56, %v20923_v39  ;;  %v7507_v58 = vpop.f32.mrb[201].mxu0 }
0x10ca   :  { %v16503_v25 = vpop.eup %16502  ;;  %v7993_v61 = vmul.f32 %v16501_v53, %v21084_v48  ;;  %16520 = vrcp.f32 %v7816_v57  ;;  %v21176_v4 = vadd.f32 %v20923_v39, %v7507_v58  ;;  %14907 = vmatprep.subr.bf16.mxu0 %v14906_v9  ;;  %v23292_v48 = vpack.c.bf16 %v21046_v38, %v21052_v14 }
0x10cb   :  { %v16505_v33 = vpop.eup %16504  ;;  %v7992_v12 = vmul.f32 %v16503_v25, %v21087_v18  ;;  %16522 = vrcp.f32 %v7819_v46  ;;  %v12085_v11 = vmul.f32 -1.442695, %v21172_v34 }
0x10cc   :  { %v16507_v50 = vpop.eup %16506  ;;  %v7818_v51 = vadd.f32 1.0, %v16505_v33  ;;  %16524 = vpow2.f32 %v12083_v19  ;;  %v12084_v20 = vmul.f32 -1.442695, %v21176_v4  ;;  %v14217_v23 = vpop.f32.mrb[202].mxu0 }
0x10cd   :  { %v16509_v47 = vpop.eup %16508  ;;  %v7821_v60 = vadd.f32 1.0, %v16507_v50  ;;  %16526 = vpow2.f32 %v12082_v13  ;;  %14909 = vmatpush3.bf16.msra.mxu0 %v23292_v48  ;;  %v21185_v55 = vadd.f32 %v14217_v23, %v20923_v39  ;;  %v7517_v18 = vpop.f32.mrb[203].mxu0  ;;  %v14910_v21 = vpack.c.bf16 %v7993_v61, %v7992_v12 }
0x10ce   :  { %v16511_v26 = vpop.eup %16510  ;;  %v7995_v15 = vmul.f32 %v16509_v47, %v21100_v44  ;;  %16528 = vrcp.f32 %v7818_v51  ;;  %v21189_v57 = vadd.f32 %v20923_v39, %v7517_v18  ;;  %v23293_v44 = vpack.c.bf16 %v21062_v35, %v21068_v0 }
0x10cf   :  { %v16513_v19 = vpop.eup %16512  ;;  %v7994_v56 = vmul.f32 %v16511_v26, %v21103_v49  ;;  %16530 = vrcp.f32 %v7821_v60  ;;  %14911 = vmatprep.subr.bf16.mxu0 %v14910_v21  ;;  %v12087_v14 = vmul.f32 -1.442695, %v21185_v55  ;;  %v23294_v47 = vpack.c.bf16 %v21077_v17, %v21081_v42 }
0x10d0   :  { %v16515_v9 = vpop.eup %16514  ;;  %v7820_v38 = vadd.f32 1.0, %v16513_v19  ;;  %16532 = vpow2.f32 %v12085_v11  ;;  %v14220_v53 = vpop.f32.mrb[204].mxu0  ;;  %v12086_v61 = vmul.f32 -1.442695, %v21189_v57 }
0x10d1   :  { %v16517_v46 = vpop.eup %16516  ;;  %v7823_v13 = vadd.f32 1.0, %v16515_v9  ;;  %16534 = vpow2.f32 %v12084_v20  ;;  %14913 = vmatpush3.bf16.msra.mxu0 %v23293_v44  ;;  %v21197_v36 = vadd.f32 %v14220_v53, %v20923_v39  ;;  %v7527_v58 = vpop.f32.mrb[205].mxu0  ;;  %v14914_v49 = vpack.c.bf16 %v7995_v15, %v7994_v56 }
0x10d2   :  { %16536 = vrcp.f32 %v7820_v38  ;;  %v7822_v25 = vadd.f32 1.0, %v16517_v46  ;;  %v21201_v33 = vadd.f32 %v20923_v39, %v7527_v58  ;;  %v23295_v44 = vpack.c.bf16 %v21093_v30, %v21097_v43 }
0x10d3   :  { %v16519_v12 = vpop.eup %16518  ;;  %16538 = vrcp.f32 %v7823_v13  ;;  %v12089_v50 = vmul.f32 -1.442695, %v21197_v36  ;;  %14915 = vmatprep.subr.bf16.mxu0 %v14914_v49 }
0x10d4   :  { %v16521_v51 = vpop.eup %16520  ;;  %v7997_v35 = vmul.f32 %v16519_v12, %v21112_v10  ;;  %16540 = vrcp.f32 %v7822_v25  ;;  %v12088_v0 = vmul.f32 -1.442695, %v21201_v33  ;;  %v14223_v11 = vpop.f32.mrb[206].mxu0 }
0x10d5   :  { %v16523_v20 = vpop.eup %16522  ;;  %v7996_v23 = vmul.f32 %v16521_v51, %v21115_v59  ;;  %16542 = vpow2.f32 %v12087_v14  ;;  %14917 = vmatpush3.bf16.msra.mxu0 %v23294_v47  ;;  %v21211_v60 = vadd.f32 %v14223_v11, %v20923_v39  ;;  %v7537_v48 = vpop.f32.mrb[207].mxu0 }
0x10d6   :  { %v16525_v18 = vpop.eup %16524  ;;  %v7999_v21 = vmul.f32 %v16523_v20, %v21120_v32  ;;  %16544 = vpow2.f32 %v12086_v61  ;;  %v21215_v10 = vadd.f32 %v20923_v39, %v7537_v48 }
0x10d7   :  { %v16527_v26 = vpop.eup %16526  ;;  %v7825_v15 = vadd.f32 1.0, %v16525_v18  ;;  %16546 = vpow2.f32 %v12089_v50  ;;  %v12091_v59 = vmul.f32 -1.442695, %v21211_v60  ;;  %v14918_v19 = vpack.c.bf16 %v7997_v35, %v7996_v23 }
0x10d8   :  { %v16529_v56 = vpop.eup %16528  ;;  %v7824_v17 = vadd.f32 1.0, %v16527_v26  ;;  %16548 = vpow2.f32 %v12088_v0  ;;  %v12090_v42 = vmul.f32 -1.442695, %v21215_v10  ;;  %v14226_v9 = vpop.f32.mrb[208].mxu0 }
0x10d9   :  { %v16531_v38 = vpop.eup %16530  ;;  %v7998_v14 = vmul.f32 %v16529_v56, %v21123_v24  ;;  %16550 = vrcp.f32 %v7825_v15  ;;  %14919 = vmatprep.subr.bf16.mxu0 %v14918_v19  ;;  %v21221_v32 = vadd.f32 %v14226_v9, %v20923_v39  ;;  %v7547_v53 = vpop.f32.mrb[209].mxu0 }
0x10da   :  { %v16533_v46 = vpop.eup %16532  ;;  %v8001_v13 = vmul.f32 %v16531_v38, %v21133_v1  ;;  %16552 = vrcp.f32 %v7824_v17  ;;  %14921 = vmatpush3.bf16.msra.mxu0 %v23295_v44  ;;  %v21228_v58 = vadd.f32 %v20923_v39, %v7547_v53 }
0x10db   :  { %v16535_v49 = vpop.eup %16534  ;;  %v14923_v25 = vpack.c.bf16 %v7999_v21, %v7998_v14  ;;  %v7827_v24 = vadd.f32 1.0, %v16533_v46  ;;  %16554 = vpow2.f32 %v12091_v59  ;;  %v12093_v61 = vmul.f32 -1.442695, %v21221_v32 }
0x10dc   :  { %v16537_v12 = vpop.eup %16536  ;;  %v7826_v50 = vadd.f32 1.0, %v16535_v49  ;;  %16556 = vpow2.f32 %v12090_v42  ;;  %v12092_v51 = vmul.f32 -1.442695, %v21228_v58  ;;  %v14229_v1 = vpop.f32.mrb[210].mxu0 }
0x10dd   :  { %v16539_v35 = vpop.eup %16538  ;;  %v8000_v0 = vmul.f32 %v16537_v12, %v21136_v40  ;;  %16558 = vrcp.f32 %v7827_v24  ;;  %14924 = vmatpush1.bf16.msra.mxu1 %v14923_v25  ;;  %v21234_v30 = vadd.f32 %v14229_v1, %v20923_v39  ;;  %v7557_v43 = vpop.f32.mrb[211].mxu0  ;;  %8091 = vmatmul.mubr.f32.vlgmr.msra.gmra.mrb[220].mxu0 %v18877_v8 }
0x10de   :  { %v16541_v11 = vpop.eup %16540  ;;  %v8003_v20 = vmul.f32 %v16539_v35, %v21146_v62  ;;  %16560 = vrcp.f32 %v7826_v50  ;;  %v21239_v23 = vadd.f32 %v20923_v39, %v7557_v43  ;;  %14925 = vmatprep.subr.bf16.mxu1 %v23032_v37  ;;  %8095 = vmatprep.mubr.f32.mxu0 %v18886_v45 }
0x10df   :  { %v16543_v40 = vpop.eup %16542  ;;  %v14926_v47 = vpack.c.bf16 %v8001_v13, %v8000_v0  ;;  %v8002_v48 = vmul.f32 %v16541_v11, %v21149_v7  ;;  %16562 = vpow2.f32 %v12093_v61  ;;  %v12095_v18 = vmul.f32 -1.442695, %v21234_v30 }
0x10e0   :  { %v16545_v21 = vpop.eup %16544  ;;  %v7829_v26 = vadd.f32 1.0, %v16543_v40  ;;  %16564 = vpow2.f32 %v12092_v51  ;;  %v14232_v15 = vpop.f32.mrb[212].mxu0  ;;  %v12094_v9 = vmul.f32 -1.442695, %v21239_v23 }
0x10e1   :  { %v16547_v62 = vpop.eup %16546  ;;  %v14929_v59 = vpack.c.bf16 %v8003_v20, %v8002_v48  ;;  %v7828_v19 = vadd.f32 1.0, %v16545_v21  ;;  %16566 = vpow2.f32 %v12095_v18  ;;  %14927 = vmatpush1.bf16.msra.mxu1 %v14926_v47  ;;  %v21246_v56 = vadd.f32 %v14232_v15, %v20923_v39  ;;  %v7567_v17 = vpop.f32.mrb[213].mxu0  ;;  %8096 = vmatmul.mubr.f32.gmra.mrb[222].mxu0 %v18898_v63 }
0x10e2   :  { %v16549_v42 = vpop.eup %16548  ;;  %16568 = vrcp.f32 %v7829_v26  ;;  %v7831_v7 = vadd.f32 1.0, %v16547_v62  ;;  %v21251_v38 = vadd.f32 %v20923_v39, %v7567_v17  ;;  %14928 = vmatprep.subr.bf16.mxu1 %v23032_v37  ;;  %8100 = vmatprep.mubr.f32.mxu0 %v18909_v6 }
0x10e3   :  { %v16551_v14 = vpop.eup %16550  ;;  %16570 = vrcp.f32 %v7828_v19  ;;  %v7830_v53 = vadd.f32 1.0, %v16549_v42  ;;  %v12097_v46 = vmul.f32 -1.442695, %v21246_v56 }
0x10e4   :  { %v16553_v13 = vpop.eup %16552  ;;  %v8005_v44 = vmul.f32 %v16551_v14, %v21160_v41  ;;  %16572 = vrcp.f32 %v7831_v7  ;;  %v14235_v49 = vpop.f32.mrb[214].mxu0  ;;  %v12096_v1 = vmul.f32 -1.442695, %v21251_v38 }
0x10e5   :  { %v16555_v25 = vpop.eup %16554  ;;  %v8004_v24 = vmul.f32 %v16553_v13, %v21164_v3  ;;  %16574 = vrcp.f32 %v7830_v53  ;;  %14930 = vmatpush1.bf16.msra.mxu1 %v14929_v59  ;;  %v21259_v61 = vadd.f32 %v14235_v49, %v20923_v39  ;;  %v7577_v12 = vpop.f32.mrb[215].mxu0  ;;  %8101 = vmatmul.mubr.f32.gmra.mrb[224].mxu0 %v18913_v29 }
0x10e6   :  { %v16557_v50 = vpop.eup %16556  ;;  %v7833_v51 = vadd.f32 1.0, %v16555_v25  ;;  %16576 = vpow2.f32 %v12094_v9  ;;  %v21264_v41 = vadd.f32 %v20923_v39, %v7577_v12  ;;  %14931 = vmatprep.subr.bf16.mxu1 %v23032_v37  ;;  %8105 = vmatprep.mubr.f32.mxu0 %v18915_v2 }
0x10e7   :  { %v16559_v3 = vpop.eup %16558  ;;  %v14932_v35 = vpack.c.bf16 %v8005_v44, %v8004_v24  ;;  %v7832_v0 = vadd.f32 1.0, %v16557_v50  ;;  %16578 = vpow2.f32 %v12097_v46  ;;  %v12099_v43 = vmul.f32 -1.442695, %v21259_v61  ;;  %v17161_v46 = vld [vmem:[%s22602_s11 + $0x2] ss:$0 sm:$0xff] }
0x10e8   :  { %v16561_v11 = vpop.eup %16560  ;;  %v8007_v20 = vmul.f32 %v16559_v3, %v21172_v34  ;;  %16580 = vrcp.f32 %v7833_v51  ;;  %v14238_v40 = vpop.f32.mrb[216].mxu0 }
0x10e9   :  { %v16563_v47 = vpop.eup %16562  ;;  %v8006_v48 = vmul.f32 %v16561_v11, %v21176_v4  ;;  %16582 = vrcp.f32 %v7832_v0  ;;  %14933 = vmatpush1.bf16.msra.mxu1 %v14932_v35  ;;  %v21272_v18 = vadd.f32 %v14238_v40, %v20923_v39  ;;  %v7587_v21 = vpop.f32.mrb[217].mxu0  ;;  %8106 = vmatmul.mubr.f32.gmra.mrb[226].mxu0 %v18934_v16  ;;  %v12098_v4 = vmul.f32 -1.442695, %v21264_v41 }
0x10ea   :  { %v16565_v26 = vpop.eup %16564  ;;  %v7835_v15 = vadd.f32 1.0, %v16563_v47  ;;  %16584 = vpow2.f32 %v12096_v1  ;;  %v21276_v62 = vadd.f32 %v20923_v39, %v7587_v21  ;;  %14934 = vmatprep.subr.bf16.mxu1 %v23032_v37 }
0x10eb   :  { %v16567_v34 = vpop.eup %16566  ;;  %v14935_v59 = vpack.c.bf16 %v8007_v20, %v8006_v48  ;;  %v7834_v19 = vadd.f32 1.0, %v16565_v26  ;;  %16586 = vpow2.f32 %v12099_v43  ;;  %v12101_v7 = vmul.f32 -1.442695, %v21272_v18 }
0x10ec   :  { %v16569_v17 = vpop.eup %16568  ;;  %16588 = vrcp.f32 %v7835_v15  ;;  %v7837_v42 = vadd.f32 1.0, %v16567_v34  ;;  %v14241_v9 = vpop.f32.mrb[218].mxu0  ;;  %v12100_v39 = vmul.f32 -1.442695, %v21276_v62 }
0x10ed   :  { %v16571_v14 = vpop.eup %16570  ;;  %v8009_v53 = vmul.f32 %v16569_v17, %v21185_v55  ;;  %16590 = vrcp.f32 %v7834_v19  ;;  %14936 = vmatpush1.bf16.msra.mxu1 %v14935_v59  ;;  %v21286_v13 = vadd.f32 %v17161_v46, %v14241_v9  ;;  %v7597_v44 = vpop.f32.mrb[219].mxu0 }
0x10ee   :  { %v16573_v49 = vpop.eup %16572  ;;  %v8008_v25 = vmul.f32 %v16571_v14, %v21189_v57  ;;  %16592 = vrcp.f32 %v7837_v42  ;;  %v21289_v24 = vadd.f32 %v17161_v46, %v7597_v44  ;;  %14937 = vmatprep.subr.bf16.mxu1 %v23032_v37 }
0x10ef   :  { %v16575_v55 = vpop.eup %16574  ;;  %v8011_v12 = vmul.f32 %v16573_v49, %v21197_v36  ;;  %16594 = vpow2.f32 %v12098_v4  ;;  %v12103_v50 = vmul.f32 -1.442695, %v21286_v13 }
0x10f0   :  { %v16577_v51 = vpop.eup %16576  ;;  %v14938_v1 = vpack.c.bf16 %v8009_v53, %v8008_v25  ;;  %v8010_v3 = vmul.f32 %v16575_v55, %v21201_v33  ;;  %16596 = vpow2.f32 %v12101_v7  ;;  %v12102_v57 = vmul.f32 -1.442695, %v21289_v24 }
0x10f1   :  { %v16579_v35 = vpop.eup %16578  ;;  %v7836_v0 = vadd.f32 1.0, %v16577_v51  ;;  %16598 = vpow2.f32 %v12100_v39 }
0x10f2   :  { %v16581_v43 = vpop.eup %16580  ;;  %v14941_v11 = vpack.c.bf16 %v8011_v12, %v8010_v3  ;;  %v7839_v20 = vadd.f32 1.0, %v16579_v35  ;;  %16600 = vpow2.f32 %v12103_v50  ;;  %14939 = vmatpush1.bf16.msra.mxu1 %v14938_v1 }
0x10f3   :  { %v16583_v40 = vpop.eup %16582  ;;  %v8013_v36 = vmul.f32 %v16581_v43, %v21211_v60  ;;  %16602 = vrcp.f32 %v7836_v0  ;;  %14940 = vmatprep.subr.bf16.mxu1 %v23032_v37 }
0x10f4   :  { %v16585_v47 = vpop.eup %16584  ;;  %v8012_v33 = vmul.f32 %v16583_v40, %v21215_v10  ;;  %16604 = vrcp.f32 %v7839_v20 }
0x10f5   :  { %v16587_v48 = vpop.eup %16586  ;;  %v7838_v21 = vadd.f32 1.0, %v16585_v47  ;;  %16606 = vpow2.f32 %v12102_v57 }
0x10f6   :  { %v16589_v26 = vpop.eup %16588  ;;  %v14944_v15 = vpack.c.bf16 %v8013_v36, %v8012_v33  ;;  %v7841_v34 = vadd.f32 1.0, %v16587_v48  ;;  %14942 = vmatpush1.bf16.msra.mxu1 %v14941_v11 }
0x10f7   :  { %v16591_v59 = vpop.eup %16590  ;;  %v8015_v19 = vmul.f32 %v16589_v26, %v21221_v32  ;;  %16608 = vrcp.f32 %v7838_v21  ;;  %14943 = vmatprep.subr.bf16.mxu1 %v23032_v37  ;;  %v12112_v21 = vld [vmem:[%s22603_s12 + $0xa0] sm:$0xff]  ;;  %v12113_v26 = vld [vmem:[%s22603_s12 + $0xa8] sm:$0xff] }
0x10f8   :  { %v16593_v60 = vpop.eup %16592  ;;  %v8014_v4 = vmul.f32 %v16591_v59, %v21228_v58  ;;  %16610 = vrcp.f32 %v7841_v34 }
0x10f9   :  { %v16595_v17 = vpop.eup %16594  ;;  %v8017_v39 = vmul.f32 %v16593_v60, %v21234_v30 }
0x10fa   :  { %v16597_v10 = vpop.eup %16596  ;;  %v14947_v42 = vpack.c.bf16 %v8015_v19, %v8014_v4  ;;  %v7840_v7 = vadd.f32 1.0, %v16595_v17  ;;  %14945 = vmatpush1.bf16.msra.mxu1 %v14944_v15  ;;  %v14972_v15 = vpack.c.bf16 %v12113_v26, %v12112_v21  ;;  %v12137_v21 = vld [vmem:[%s22597_s6 + $0x68] sm:$0xff]  ;;  %v12144_v26 = vld [vmem:[%s22598_s7 + $0x60] sm:$0xff] }
0x10fb   :  { %v16599_v9 = vpop.eup %16598  ;;  %v7843_v14 = vadd.f32 1.0, %v16597_v10  ;;  %14946 = vmatprep.subr.bf16.mxu1 %v23032_v37 }
0x10fc   :  { %v16601_v53 = vpop.eup %16600  ;;  %16612 = vrcp.f32 %v7840_v7  ;;  %v7842_v32 = vadd.f32 1.0, %v16599_v9 }
0x10fd   :  { %v16603_v46 = vpop.eup %16602  ;;  %16614 = vrcp.f32 %v7843_v14  ;;  %v7845_v44 = vadd.f32 1.0, %v16601_v53 }
0x10fe   :  { %v16605_v49 = vpop.eup %16604  ;;  %v8016_v58 = vmul.f32 %v16603_v46, %v21239_v23  ;;  %16616 = vrcp.f32 %v7842_v32  ;;  %14948 = vmatpush1.bf16.msra.mxu1 %v14947_v42  ;;  %v12115_v32 = vld [vmem:[%s22603_s12 + $0xb8] sm:$0xff] }
0x10ff   :  { %v16607_v25 = vpop.eup %16606  ;;  %16618 = vrcp.f32 %v7845_v44  ;;  %14949 = vmatprep.subr.bf16.mxu1 %v23032_v37  ;;  %v8019_v12 = vmul.f32 %v16605_v49, %v21246_v56 }
0x1100   :  { %v14950_v55 = vpack.c.bf16 %v8017_v39, %v8016_v58  ;;  %v7844_v50 = vadd.f32 1.0, %v16607_v25  ;;  %v12114_v39 = vld [vmem:[%s22603_s12 + $0xb0] sm:$0xff] }
0x1101   :  { %v16609_v51 = vpop.eup %16608  ;;  %v14976_v46 = vpack.c.bf16 %v12115_v32, %v12114_v39 }
0x1102   :  { %v16611_v30 = vpop.eup %16610  ;;  %v8018_v1 = vmul.f32 %v16609_v51, %v21251_v38  ;;  %16620 = vrcp.f32 %v7844_v50  ;;  %14951 = vmatpush1.bf16.msra.mxu1 %v14950_v55 }
0x1103   :  { %14952 = vmatprep.subr.bf16.mxu1 %v23032_v37  ;;  %v8021_v23 = vmul.f32 %v16611_v30, %v21259_v61 }
0x1104   :  { %v14953_v3 = vpack.c.bf16 %v8019_v12, %v8018_v1 }
0x1106   :  { %v16613_v35 = vpop.eup %16612  ;;  %14954 = vmatpush1.bf16.msra.mxu1 %v14953_v3 }
0x1107   :  { %v16615_v0 = vpop.eup %16614  ;;  %v8020_v57 = vmul.f32 %v16613_v35, %v21264_v41  ;;  %14955 = vmatprep.subr.bf16.mxu1 %v23032_v37  ;;  %v12108_v41 = vld [vmem:[%s22603_s12 + $0x80] sm:$0xff] }
0x1108   :  { %v16617_v56 = vpop.eup %16616  ;;  %v8023_v43 = vmul.f32 %v16615_v0, %v21272_v18  ;;  %v12109_v18 = vld [vmem:[%s22603_s12 + $0x88] sm:$0xff]  ;;  %v23296_v0 = vld [vmem:[#allocation126_spill] sm:$0xff] }
0x1109   :  { %v16619_v11 = vpop.eup %16618  ;;  %v14956_v20 = vpack.c.bf16 %v8021_v23, %v8020_v57  ;;  %v8022_v38 = vmul.f32 %v16617_v56, %v21276_v62  ;;  %v12110_v62 = vld [vmem:[%s22603_s12 + $0x90] sm:$0xff] }
0x110a   :  { %v8025_v36 = vmul.f32 %v16619_v11, %v21286_v13  ;;  %v14964_v13 = vpack.c.bf16 %v12109_v18, %v12108_v41  ;;  %v12127_v41 = vld [vmem:[%s22605_s14 + $0x48] sm:$0xff] }
0x110b   :  { %v14959_v40 = vpack.c.bf16 %v8023_v43, %v8022_v38  ;;  %14957 = vmatpush1.bf16.msra.mxu1 %v14956_v20  ;;  %v23297_v43 = vld [vmem:[#allocation127_spill] sm:$0xff]  ;;  %v23298_v38 = vld [vmem:[#allocation128_spill] sm:$0xff] }
0x110c   :  { %v16621_v47 = vpop.eup %16620  ;;  %14958 = vmatprep.subr.bf16.mxu1 %v23032_v37  ;;  %14965 = vmatprep.subr.bf16.mxu0 %v14964_v13 }
0x110d   :  { %v8024_v61 = vmul.f32 %v16621_v47, %v21289_v24  ;;  %v12111_v24 = vld [vmem:[%s22603_s12 + $0x98] sm:$0xff]  ;;  %14967 = vmatpush3.bf16.msra.mxu0 %v14964_v13  ;;  %v23299_v47 = vld [vmem:[#allocation137_spill] sm:$0xff] }
0x110e   :  { %v14968_v48 = vpack.c.bf16 %v12111_v24, %v12110_v62  ;;  %v12128_v62 = vld [vmem:[%s22605_s14 + $0x50] sm:$0xff]  ;;  %v12129_v13 = vld [vmem:[%s22605_s14 + $0x58] sm:$0xff] }
0x110f   :  { %v14962_v33 = vpack.c.bf16 %v8025_v36, %v8024_v61  ;;  %14960 = vmatpush1.bf16.msra.mxu1 %v14959_v40  ;;  %v14984_v24 = vpack.c.bf16 %v12129_v13, %v12128_v62 }
0x1110   :  { %14961 = vmatprep.subr.bf16.mxu1 %v23032_v37  ;;  %14969 = vmatprep.subr.bf16.mxu0 %v14968_v48 }
0x1111   :  { %14971 = vmatpush3.bf16.msra.mxu0 %v14968_v48  ;;  %v12136_v48 = vld [vmem:[%s22597_s6 + $0x60] sm:$0xff] }
0x1112   :  { %14973 = vmatprep.subr.bf16.mxu0 %v14972_v15 }
0x1113   :  { %14963 = vmatpush1.bf16.msra.mxu1 %v14962_v33  ;;  %v12126_v33 = vld [vmem:[%s22605_s14 + $0x40] sm:$0xff] }
0x1114   :  { %v14980_v18 = vpack.c.bf16 %v12127_v41, %v12126_v33 }
0x1115   :  { %14975 = vmatpush3.bf16.msra.mxu0 %v14972_v15  ;;  %v14988_v15 = vpack.c.bf16 %v12137_v21, %v12136_v48  ;;  %v23304_v21 = vld [vmem:[#allocation9_spill] sm:$0xff] }
0x1116   :  { %8176 = vmatmul.mubr.f32.vlgmr.msra.gmra.mrb[216].mxu1 %v18996_v52  ;;  %14977 = vmatprep.subr.bf16.mxu0 %v14976_v46 }
0x1117   :  { %12105 = vmatprep.mubr.msk.f32.mxu1 %vm2951_vm4, %v18998_v54  ;;  %14981 = vmatprep.subr.bf16.mxu1 %v14980_v18 }
0x1118   :  { %14983 = vmatpush3.bf16.msra.mxu1 %v14980_v18 }
0x1119   :  { %14979 = vmatpush3.bf16.msra.mxu0 %v14976_v46  ;;  %14985 = vmatprep.subr.bf16.mxu1 %v14984_v24 }
0x111a   :  { %8181 = vmatmul.mubr.f32.gmra.mrb[218].mxu1 %v19004_v31  ;;  %14989 = vmatprep.subr.bf16.mxu0 %v14988_v15 }
0x111b   :  { %12106 = vmatprep.mubr.msk.f32.mxu1 %vm2951_vm4, %v19008_v27 }
0x111c   :  { %14987 = vmatpush3.bf16.msra.mxu1 %v14984_v24 }
0x111e   :  { %8186 = vmatmul.mubr.f32.gmra.mrb[220].mxu1 %v19014_v28 }
0x111f   :  { %12107 = vmatprep.mubr.msk.f32.mxu1 %vm2951_vm4, %v19018_v22 }
0x1122   :  { %8191 = vmatmul.mubr.f32.gmra.mrb[222].mxu1 %v23158_v5 }
0x11b0   :  { %v13206_v34 = vpop.f32.mrb[220].mxu0 }
0x11b1   :  { %v13207_v59 = vpop.f32.mrb[221].mxu0 }
0x11b2   :  { %v13208_v19 = vadd.f32 %v13207_v59, %v13206_v34  ;;  %v12145_v34 = vld [vmem:[%s22598_s7 + $0x68] sm:$0xff] }
0x11b3   :  { %v14996_v59 = vpack.c.bf16 %v12145_v34, %v12144_v26 }
0x11b4   :  { %v13209_v60 = vpop.f32.mrb[222].mxu0 }
0x11b5   :  { %v13210_v4 = vpop.f32.mrb[223].mxu0  ;;  %14997 = vmatprep.subr.bf16.mxu1 %v14996_v59 }
0x11b6   :  { %v13211_v17 = vadd.f32 %v13210_v4, %v13209_v60 }
0x11b8   :  { %v13212_v10 = vpop.f32.mrb[224].mxu0 }
0x11b9   :  { %v13213_v42 = vpop.f32.mrb[225].mxu0 }
0x11ba   :  { %v13214_v7 = vadd.f32 %v13213_v42, %v13212_v10 }
0x11bc   :  { %v13215_v9 = vpop.f32.mrb[226].mxu0 }
0x11bd   :  { %v13216_v14 = vpop.f32.mrb[227].mxu0 }
0x11be   :  { %v13217_v53 = vadd.f32 %v13216_v14, %v13215_v9 }
0x11e9   :  { %v8177_v44 = vpop.f32.mrb[216].mxu1 }
0x11ea   :  { %v8178_v49 = vadd.f32 %v13208_v19, %v8177_v44  ;;  %v8179_v58 = vpop.f32.mrb[217].mxu1  ;;  %v12117_v19 = vld [vmem:[%s22604_s13 + $0x2] ss:$0 sm:$0xff] }
0x11ec   :  { %8200 = vrot.lane.b32.xlu0 %v8178_v49, %s17192_s3 }
0x11ed   :  { %v8182_v25 = vpop.f32.mrb[218].mxu1 }
0x11ee   :  { %v8183_v55 = vadd.f32 %v13211_v17, %v8182_v25  ;;  %v8184_v12 = vpop.f32.mrb[219].mxu1 }
0x11f0   :  { %8202 = vrot.lane.b32.xlu1 %v8183_v55, %s17192_s3 }
0x11f1   :  { %v8187_v50 = vpop.f32.mrb[220].mxu1 }
0x11f2   :  { %v8188_v51 = vadd.f32 %v13214_v7, %v8187_v50  ;;  %v8189_v30 = vpop.f32.mrb[221].mxu1 }
0x11f4   :  { %8204 = vrot.lane.b32.xlu0 %v8188_v51, %s17192_s3 }
0x11f5   :  { %v8192_v1 = vpop.f32.mrb[222].mxu1 }
0x11f6   :  { %v8193_v3 = vadd.f32 %v13217_v53, %v8192_v1  ;;  %v8194_v23 = vpop.f32.mrb[223].mxu1 }
0x11f8   :  { %8206 = vrot.lane.b32.xlu1 %v8193_v3, %s17192_s3 }
0x125e   :  { %v8201_v35 = vpop.permute.xlu0 %8200 }
0x125f   :  { %v8212_v57 = vsel %vm388_vm2, %v23296_v0, %v8201_v35 }
0x1260   :  { %14258 = vmatprep.mubr.msk.f32.mxu0 %vm942_vm3, %v8212_v57 }
0x1262   :  { %v8203_v56 = vpop.permute.xlu1 %8202 }
0x1263   :  { %v8213_v11 = vsel %vm388_vm2, %v23297_v43, %v8203_v56  ;;  %v12138_v43 = vld [vmem:[%s22597_s6 + $0x70] sm:$0xff] }
0x1264   :  { %14259 = vmatmul.mubr.msk.f32.vlgmr.msra.gmra.mrb[228].mxu0 %vm942_vm3, %v8213_v11  ;;  %v12139_v11 = vld [vmem:[%s22597_s6 + $0x78] sm:$0xff] }
0x1265   :  { %14991 = vmatpush3.bf16.msra.mxu0 %v14988_v15 }
0x1266   :  { %v8205_v20 = vpop.permute.xlu0 %8204 }
0x1267   :  { %v8214_v40 = vsel %vm388_vm2, %v23298_v38, %v8205_v20  ;;  %v12146_v20 = vld [vmem:[%s22598_s7 + $0x70] sm:$0xff]  ;;  %v14992_v38 = vpack.c.bf16 %v12139_v11, %v12138_v43  ;;  %v23326_v43 = vld [vmem:[#allocation63_spill] sm:$0xff]  ;;  %v23327_v11 = vld [vmem:[#allocation66_spill] sm:$0xff] }
0x1268   :  { %14261 = vmatprep.mubr.msk.f32.mxu0 %vm942_vm3, %v8214_v40  ;;  %v12147_v40 = vld [vmem:[%s22598_s7 + $0x78] sm:$0xff] }
0x1269   :  { %14993 = vmatprep.subr.bf16.mxu0 %v14992_v38 }
0x126a   :  { %v8207_v36 = vpop.permute.xlu1 %8206  ;;  %14995 = vmatpush3.bf16.msra.mxu0 %v14992_v38  ;;  %v23329_v38 = vld [vmem:[#allocation70_spill] sm:$0xff] }
0x126b   :  { %v8215_v61 = vsel %vm388_vm2, %v23299_v47, %v8207_v36  ;;  %v15000_v36 = vpack.c.bf16 %v12147_v40, %v12146_v20  ;;  %v12131_v47 = vld [vmem:[%s22606_s15 + $0x2] ss:$0 sm:$0xff] }
0x126c   :  { %14262 = vmatmul.mubr.msk.f32.gmra.mrb[230].mxu0 %vm942_vm3, %v8215_v61  ;;  %v23328_v20 = vld [vmem:[#allocation67_spill] sm:$0xff] }
0x126d   :  { %v23330_v40 = vld [vmem:[#allocation71_spill] sm:$0xff] }
0x1337   :  { %v14260_v60 = vpop.f32.mrb[228].mxu0 }
0x1338   :  { %v8317_v4 = vadd.f32 %v14260_v60, %v12117_v19  ;;  %v8311_v17 = vpop.f32.mrb[229].mxu0 }
0x1339   :  { %v8312_v10 = vadd.f32 %v12117_v19, %v8311_v17 }
0x133a   :  { %v12123_v42 = vmul.f32 -1.442695, %v8317_v4 }
0x133b   :  { %v12122_v7 = vmul.f32 -1.442695, %v8312_v10 }
0x133c   :  { %16622 = vpow2.f32 %v12123_v42 }
0x133d   :  { %16624 = vpow2.f32 %v12122_v7 }
0x133f   :  { %v14263_v9 = vpop.f32.mrb[230].mxu0 }
0x1340   :  { %v8327_v14 = vadd.f32 %v14263_v9, %v12117_v19  ;;  %v8321_v53 = vpop.f32.mrb[231].mxu0 }
0x1341   :  { %v8322_v39 = vadd.f32 %v12117_v19, %v8321_v53  ;;  %v23306_v53 = vld [vmem:[#allocation28_spill] sm:$0xff] }
0x1342   :  { %v12125_v32 = vmul.f32 -1.442695, %v8327_v14 }
0x1343   :  { %v12124_v46 = vmul.f32 -1.442695, %v8322_v39 }
0x1344   :  { %16626 = vpow2.f32 %v12125_v32  ;;  %v23308_v32 = vld [vmem:[#allocation32_spill] sm:$0xff] }
0x1345   :  { %16628 = vpow2.f32 %v12124_v46  ;;  %v23309_v46 = vld [vmem:[#allocation35_spill] sm:$0xff] }
0x1346   :  { %v16623_v44 = vpop.eup %16622 }
0x1347   :  { %v16625_v49 = vpop.eup %16624  ;;  %v8343_v58 = vadd.f32 1.0, %v16623_v44  ;;  %v23310_v44 = vld [vmem:[#allocation36_spill] sm:$0xff] }
0x1348   :  { %v8342_v25 = vadd.f32 1.0, %v16625_v49  ;;  %v23311_v49 = vld [vmem:[#allocation39_spill] sm:$0xff] }
0x1349   :  { %16630 = vrcp.f32 %v8343_v58  ;;  %v23312_v58 = vld [vmem:[#allocation40_spill] sm:$0xff] }
0x134a   :  { %16632 = vrcp.f32 %v8342_v25  ;;  %v23313_v25 = vld [vmem:[#allocation42_spill] sm:$0xff] }
0x134e   :  { %v16627_v55 = vpop.eup %16626 }
0x134f   :  { %v16629_v12 = vpop.eup %16628  ;;  %v8345_v50 = vadd.f32 1.0, %v16627_v55  ;;  %v23314_v55 = vld [vmem:[#allocation43_spill] sm:$0xff] }
0x1350   :  { %v8344_v51 = vadd.f32 1.0, %v16629_v12  ;;  %v23315_v12 = vld [vmem:[#allocation46_spill] sm:$0xff] }
0x1351   :  { %16634 = vrcp.f32 %v8345_v50  ;;  %v23316_v50 = vld [vmem:[#allocation47_spill] sm:$0xff] }
0x1352   :  { %16636 = vrcp.f32 %v8344_v51  ;;  %v23317_v51 = vld [vmem:[#allocation50_spill] sm:$0xff] }
0x1353   :  { %v16631_v30 = vpop.eup %16630 }
0x1354   :  { %v16633_v1 = vpop.eup %16632  ;;  %v8355_v23 = vmul.f32 %v16631_v30, %v8317_v4  ;;  %v23318_v30 = vld [vmem:[#allocation51_spill] sm:$0xff] }
0x1355   :  { %v8354_v3 = vmul.f32 %v16633_v1, %v8312_v10  ;;  %v23319_v1 = vld [vmem:[#allocation52_spill] sm:$0xff] }
0x1357   :  { %14272 = vmatprep.mubr.msk.f32.mxu1 %vm388_vm2, %v8354_v3  ;;  %v23320_v3 = vld [vmem:[#allocation53_spill] sm:$0xff] }
0x1358   :  { %14273 = vmatmul.mubr.msk.f32.vlgmr.msra.gmra.mrb[224].mxu1 %vm388_vm2, %v8355_v23  ;;  %v23321_v23 = vld [vmem:[#allocation56_spill] sm:$0xff] }
0x1359   :  { %14999 = vmatpush3.bf16.msra.mxu1 %v14996_v59 }
0x135a   :  { %15001 = vmatprep.subr.bf16.mxu1 %v15000_v36 }
0x135b   :  { %v16635_v35 = vpop.eup %16634 }
0x135c   :  { %v16637_v0 = vpop.eup %16636  ;;  %v8357_v56 = vmul.f32 %v16635_v35, %v8327_v14  ;;  %v23305_v14 = vld [vmem:[#allocation27_spill] sm:$0xff]  ;;  %v23322_v35 = vld [vmem:[#allocation57_spill] sm:$0xff] }
0x135d   :  { %v8356_v57 = vmul.f32 %v16637_v0, %v8322_v39  ;;  %15003 = vmatpush3.bf16.msra.mxu1 %v15000_v36  ;;  %v23307_v39 = vld [vmem:[#allocation31_spill] sm:$0xff]  ;;  %v23323_v0 = vld [vmem:[#allocation60_spill] sm:$0xff] }
0x135e   :  { %v23331_v36 = vld [vmem:[#allocation72_spill] sm:$0xff] }
0x135f   :  { %14275 = vmatprep.mubr.msk.f32.mxu1 %vm388_vm2, %v8356_v57  ;;  %v23324_v57 = vld [vmem:[#allocation61_spill] sm:$0xff] }
0x1360   :  { %14276 = vmatmul.mubr.msk.f32.gmra.mrb[226].mxu1 %vm388_vm2, %v8357_v56  ;;  %v23325_v56 = vld [vmem:[#allocation62_spill] sm:$0xff] }
0x142b   :  { %v14274_v61 = vpop.f32.mrb[224].mxu1 }
0x142c   :  { %v8449_v33 = vpop.f32.mrb[225].mxu1  ;;  %v21416_v18 = vadd.f32 %v14274_v61, %v12131_v47  ;;  %v23333_v61 = vld [vmem:[#allocation76_spill] sm:$0xff] }
0x142d   :  { %v21414_v41 = vadd.f32 %v12131_v47, %v8449_v33  ;;  %v23334_v33 = vld [vmem:[#allocation77_spill] sm:$0xff] }
0x142e   :  { %23301 = vst [vmem:[#allocation6_spill] sm:$0xff] %v21416_v18 }
0x142f   :  { %23300 = vst [vmem:[#allocation5_spill] sm:$0xff] %v21414_v41  ;;  %14286 = vmatprep.mubr.msk.f32.mxu0 %vm388_vm2, %v21414_v41  ;;  %14300 = vmatprep.mubr.msk.f32.mxu1 %vm388_vm2, %v21414_v41 }
0x1430   :  { %14287 = vmatmul.mubr.msk.f32.vlgmr.msra.gmra.mrb[232].mxu0 %vm388_vm2, %v21416_v18  ;;  %14301 = vmatmul.mubr.msk.f32.vlgmr.msra.gmra.mrb[228].mxu1 %vm388_vm2, %v21416_v18 }
0x1433   :  { %v14277_v62 = vpop.f32.mrb[226].mxu1 }
0x1434   :  { %v8459_v13 = vpop.f32.mrb[227].mxu1  ;;  %v21428_v48 = vadd.f32 %v14277_v62, %v12131_v47  ;;  %v23335_v62 = vld [vmem:[#allocation80_spill] sm:$0xff] }
0x1435   :  { %v21426_v24 = vadd.f32 %v12131_v47, %v8459_v13  ;;  %v23332_v47 = vld [vmem:[#allocation73_spill] sm:$0xff] }
0x1436   :  { %23303 = vst [vmem:[#allocation8_spill] sm:$0xff] %v21428_v48  ;;  %v23336_v13 = vld [vmem:[#allocation81_spill] sm:$0xff] }
0x1437   :  { %23302 = vst [vmem:[#allocation7_spill] sm:$0xff] %v21426_v24  ;;  %14289 = vmatprep.mubr.msk.f32.mxu0 %vm388_vm2, %v21426_v24  ;;  %14303 = vmatprep.mubr.msk.f32.mxu1 %vm388_vm2, %v21426_v24 }
0x1438   :  { %14290 = vmatmul.mubr.msk.f32.gmra.mrb[234].mxu0 %vm388_vm2, %v21428_v48  ;;  %14304 = vmatmul.mubr.msk.f32.gmra.mrb[230].mxu1 %vm388_vm2, %v21428_v48 }
0x1439   :  { %14322 = vmatprep.mubr.msk.f32.mxu0 %vm942_vm3, %v23304_v21  ;;  %v23337_v21 = vld [vmem:[#allocation82_spill] sm:$0xff] }
0x1503   :  { %v14288_v26 = vpop.f32.mrb[232].mxu0  ;;  %v14302_v15 = vpop.f32.mrb[228].mxu1 }
0x1504   :  { %v8551_v34 = vpop.f32.mrb[233].mxu0  ;;  %v8641_v59 = vpop.f32.mrb[229].mxu1 }
0x1505   :  { %v15004_v19 = vpack.c.bf16 %v14288_v26, %v8551_v34  ;;  %v15012_v60 = vpack.c.bf16 %v14302_v15, %v8641_v59  ;;  %v23338_v26 = vld [vmem:[#allocation83_spill] sm:$0xff]  ;;  %v23339_v15 = vld [vmem:[#allocation86_spill] sm:$0xff] }
0x1506   :  { %v23340_v34 = vld [vmem:[#allocation87_spill] sm:$0xff]  ;;  %v23341_v59 = vld [vmem:[#allocation90_spill] sm:$0xff] }
0x1507   :  { %15005 = vmatprep.subr.bf16.mxu0 %v15004_v19 }
0x1508   :  { %15007 = vmatpush3.bf16.msra.mxu0 %v15004_v19  ;;  %v23342_v19 = vld [vmem:[#allocation91_spill] sm:$0xff] }
0x150b   :  { %v14291_v4 = vpop.f32.mrb[234].mxu0  ;;  %v14305_v17 = vpop.f32.mrb[230].mxu1 }
0x150c   :  { %v8561_v10 = vpop.f32.mrb[235].mxu0  ;;  %v8651_v42 = vpop.f32.mrb[231].mxu1 }
0x150d   :  { %v15008_v7 = vpack.c.bf16 %v14291_v4, %v8561_v10  ;;  %v15016_v9 = vpack.c.bf16 %v14305_v17, %v8651_v42  ;;  %v23344_v4 = vld [vmem:[#allocation93_spill] sm:$0xff]  ;;  %v23345_v17 = vld [vmem:[#allocation96_spill] sm:$0xff] }
0x150e   :  { %v23346_v10 = vld [vmem:[#allocation97_spill] sm:$0xff]  ;;  %v23347_v42 = vld [vmem:[#allocation100_spill] sm:$0xff] }
0x150f   :  { %15009 = vmatprep.subr.bf16.mxu0 %v15008_v7 }
0x1510   :  { %15011 = vmatpush3.bf16.msra.mxu0 %v15008_v7  ;;  %v23348_v7 = vld [vmem:[#allocation101_spill] sm:$0xff] }
0x1511   :  { %15013 = vmatprep.subr.bf16.mxu0 %v15012_v60 }
0x1514   :  { %15015 = vmatpush3.bf16.msra.mxu0 %v15012_v60  ;;  %v23343_v60 = vld [vmem:[#allocation92_spill] sm:$0xff] }
0x1515   :  { %15017 = vmatprep.subr.bf16.mxu0 %v15016_v9 }
0x1518   :  { %15019 = vmatpush3.bf16.msra.mxu0 %v15016_v9  ;;  %v23349_v9 = vld [vmem:[#allocation102_spill] sm:$0xff] }
0x1519   :  { %15060 = vmatprep.subr.bf16.mxu0 %v23032_v37 }
0x151b   :  { %14323 = vmatmul.mubr.msk.f32.vlgmr.msra.gmra.mrb[236].mxu0 %vm942_vm3, %v23305_v14  ;;  %v23350_v14 = vld [vmem:[#allocation103_spill] sm:$0xff] }
0x151c   :  { %14325 = vmatprep.mubr.msk.f32.mxu0 %vm942_vm3, %v23306_v53  ;;  %v23351_v53 = vld [vmem:[#allocation106_spill] sm:$0xff] }
0x151f   :  { %14326 = vmatmul.mubr.msk.f32.gmra.mrb[238].mxu0 %vm942_vm3, %v23307_v39  ;;  %v23352_v39 = vld [vmem:[#allocation107_spill] sm:$0xff] }
0x1520   :  { %14328 = vmatprep.mubr.msk.f32.mxu0 %vm942_vm3, %v23308_v32  ;;  %v23353_v32 = vld [vmem:[#allocation110_spill] sm:$0xff] }
0x1523   :  { %14329 = vmatmul.mubr.msk.f32.gmra.mrb[240].mxu0 %vm942_vm3, %v23309_v46  ;;  %v23354_v46 = vld [vmem:[#allocation111_spill] sm:$0xff] }
0x1524   :  { %14331 = vmatprep.mubr.msk.f32.mxu0 %vm942_vm3, %v23310_v44  ;;  %v23355_v44 = vld [vmem:[#allocation112_spill] sm:$0xff] }
0x1527   :  { %14332 = vmatmul.mubr.msk.f32.gmra.mrb[242].mxu0 %vm942_vm3, %v23311_v49  ;;  %v23356_v49 = vld [vmem:[#allocation113_spill] sm:$0xff] }
0x1528   :  { %14334 = vmatprep.mubr.msk.f32.mxu0 %vm942_vm3, %v23312_v58  ;;  %v23357_v58 = vld [vmem:[#allocation116_spill] sm:$0xff] }
0x152b   :  { %14335 = vmatmul.mubr.msk.f32.gmra.mrb[244].mxu0 %vm942_vm3, %v23313_v25  ;;  %v23358_v25 = vld [vmem:[#allocation117_spill] sm:$0xff] }
0x152c   :  { %14337 = vmatprep.mubr.msk.f32.mxu0 %vm942_vm3, %v23314_v55  ;;  %v23359_v55 = vld [vmem:[#allocation120_spill] sm:$0xff] }
0x152f   :  { %14338 = vmatmul.mubr.msk.f32.gmra.mrb[246].mxu0 %vm942_vm3, %v23315_v12  ;;  %v23360_v12 = vld [vmem:[#allocation121_spill] sm:$0xff] }
0x1530   :  { %14340 = vmatprep.mubr.msk.f32.mxu0 %vm942_vm3, %v23316_v50  ;;  %v12276_v50 = vld [vmem:[%s22601_s10 + $0x60] sm:$0xff] }
0x1533   :  { %14341 = vmatmul.mubr.msk.f32.gmra.mrb[248].mxu0 %vm942_vm3, %v23317_v51  ;;  %v12277_v51 = vld [vmem:[%s22601_s10 + $0x68] sm:$0xff] }
0x1534   :  { %14343 = vmatprep.mubr.msk.f32.mxu0 %vm942_vm3, %v23318_v30  ;;  %v15020_v30 = vpack.c.bf16 %v12277_v51, %v12276_v50  ;;  %v23371_v50 = vld [vmem:[#allocation17_spill] sm:$0xff] }
0x1536   :  { %15021 = vmatprep.subr.bf16.mxu1 %v15020_v30 }
0x1537   :  { %14344 = vmatmul.mubr.msk.f32.gmra.mrb[250].mxu0 %vm942_vm3, %v23319_v1  ;;  %v23361_v1 = vld [vmem:[#allocation122_spill] sm:$0xff]  ;;  %15023 = vmatpush3.bf16.msra.mxu1 %v15020_v30 }
0x1538   :  { %14346 = vmatprep.mubr.msk.f32.mxu0 %vm942_vm3, %v23320_v3  ;;  %v23362_v3 = vld [vmem:[#allocation123_spill] sm:$0xff] }
0x153b   :  { %14347 = vmatmul.mubr.msk.f32.gmra.mrb[252].mxu0 %vm942_vm3, %v23321_v23  ;;  %v12278_v23 = vld [vmem:[%s22601_s10 + $0x70] sm:$0xff] }
0x153c   :  { %14349 = vmatprep.mubr.msk.f32.mxu0 %vm942_vm3, %v23322_v35  ;;  %v12279_v35 = vld [vmem:[%s22601_s10 + $0x78] sm:$0xff] }
0x153f   :  { %14350 = vmatmul.mubr.msk.f32.gmra.mrb[254].mxu0 %vm942_vm3, %v23323_v0  ;;  %v15024_v0 = vpack.c.bf16 %v12279_v35, %v12278_v23 }
0x1540   :  { %14352 = vmatprep.mubr.msk.f32.mxu0 %vm942_vm3, %v23324_v57  ;;  %v23363_v57 = vld [vmem:[#allocation129_spill] sm:$0xff] }
0x1541   :  { %15025 = vmatprep.subr.bf16.mxu1 %v15024_v0 }
0x1542   :  { %15027 = vmatpush3.bf16.msra.mxu1 %v15024_v0 }
0x1543   :  { %14353 = vmatmul.mubr.msk.f32.gmra.mrb[0].mxu0 %vm942_vm3, %v23325_v56  ;;  %v23364_v56 = vld [vmem:[#allocation136_spill] sm:$0xff] }
0x1544   :  { %14355 = vmatprep.mubr.msk.f32.mxu0 %vm942_vm3, %v23326_v43  ;;  %v21576_v43 = vld [vmem:[%s22599_s8 + $0x3] ss:$0 sm:$0xff] }
0x1545   :  { %v8675_v51 = vmul.f32 %v21576_v43, %v23371_v50 }
0x1547   :  { %14356 = vmatmul.mubr.msk.f32.gmra.mrb[2].mxu0 %vm942_vm3, %v23327_v11  ;;  %v23365_v11 = vld [vmem:[#allocation12_spill] sm:$0xff] }
0x1548   :  { %14358 = vmatprep.mubr.msk.f32.mxu0 %vm942_vm3, %v23328_v20  ;;  %v8669_v20 = vmul.f32 %v21576_v43, %v23365_v11 }
0x154b   :  { %14359 = vmatmul.mubr.msk.f32.gmra.mrb[4].mxu0 %vm942_vm3, %v23329_v38 }
0x154c   :  { %14361 = vmatprep.mubr.msk.f32.mxu0 %vm942_vm3, %v23330_v40  ;;  %v21583_v40 = vld [vmem:[%s22600_s9 + $0x3] ss:$0 sm:$0xff] }
0x154f   :  { %14362 = vmatmul.mubr.msk.f32.gmra.mrb[6].mxu0 %vm942_vm3, %v23331_v36  ;;  %v23366_v36 = vld [vmem:[#allocation10_spill] sm:$0xff] }
0x1550   :  { %14364 = vmatprep.mubr.msk.f32.mxu0 %vm942_vm3, %v23332_v47  ;;  %v8668_v47 = vmul.f32 %v21576_v43, %v23366_v36 }
0x1553   :  { %14365 = vmatmul.mubr.msk.f32.gmra.mrb[8].mxu0 %vm942_vm3, %v23333_v61 }
0x1554   :  { %14367 = vmatprep.mubr.msk.f32.mxu0 %vm942_vm3, %v23334_v33 }
0x1557   :  { %14368 = vmatmul.mubr.msk.f32.gmra.mrb[10].mxu0 %vm942_vm3, %v23335_v62 }
0x1558   :  { %14370 = vmatprep.mubr.msk.f32.mxu0 %vm942_vm3, %v23336_v13 }
0x155b   :  { %14371 = vmatmul.mubr.msk.f32.gmra.mrb[12].mxu0 %vm942_vm3, %v23337_v21  ;;  %v23367_v21 = vld [vmem:[#allocation13_spill] sm:$0xff] }
0x155c   :  { %14373 = vmatprep.mubr.msk.f32.mxu0 %vm942_vm3, %v23338_v26  ;;  %v8671_v26 = vmul.f32 %v21576_v43, %v23367_v21 }
0x155f   :  { %14374 = vmatmul.mubr.msk.f32.gmra.mrb[14].mxu0 %vm942_vm3, %v23339_v15 }
0x1560   :  { %14376 = vmatprep.mubr.msk.f32.mxu0 %vm942_vm3, %v23340_v34 }
0x1563   :  { %14377 = vmatmul.mubr.msk.f32.gmra.mrb[16].mxu0 %vm942_vm3, %v23341_v59  ;;  %v23368_v59 = vld [vmem:[#allocation11_spill] sm:$0xff] }
0x1564   :  { %14379 = vmatprep.mubr.msk.f32.mxu0 %vm942_vm3, %v23342_v19  ;;  %v8670_v19 = vmul.f32 %v21576_v43, %v23368_v59 }
0x1567   :  { %14380 = vmatmul.mubr.msk.f32.gmra.mrb[18].mxu0 %vm942_vm3, %v23343_v60 }
0x1568   :  { %14382 = vmatprep.mubr.msk.f32.mxu0 %vm942_vm3, %v23344_v4 }
0x156b   :  { %14383 = vmatmul.mubr.msk.f32.gmra.mrb[20].mxu0 %vm942_vm3, %v23345_v17 }
0x156c   :  { %14385 = vmatprep.mubr.msk.f32.mxu0 %vm942_vm3, %v23346_v10 }
0x156f   :  { %14386 = vmatmul.mubr.msk.f32.gmra.mrb[22].mxu0 %vm942_vm3, %v23347_v42 }
0x1570   :  { %14388 = vmatprep.mubr.msk.f32.mxu0 %vm942_vm3, %v23348_v7 }
0x1573   :  { %14389 = vmatmul.mubr.msk.f32.gmra.mrb[24].mxu0 %vm942_vm3, %v23349_v9  ;;  %v23369_v9 = vld [vmem:[#allocation15_spill] sm:$0xff] }
0x1574   :  { %14391 = vmatprep.mubr.msk.f32.mxu0 %vm942_vm3, %v23350_v14  ;;  %v8673_v14 = vmul.f32 %v21576_v43, %v23369_v9  ;;  %v23375_v9 = vld [vmem:[#allocation21_spill] sm:$0xff] }
0x1577   :  { %14392 = vmatmul.mubr.msk.f32.gmra.mrb[26].mxu0 %vm942_vm3, %v23351_v53 }
0x1578   :  { %14394 = vmatprep.mubr.msk.f32.mxu0 %vm942_vm3, %v23352_v39 }
0x157b   :  { %14395 = vmatmul.mubr.msk.f32.gmra.mrb[28].mxu0 %vm942_vm3, %v23353_v32  ;;  %v23370_v32 = vld [vmem:[#allocation14_spill] sm:$0xff] }
0x157c   :  { %14397 = vmatprep.mubr.msk.f32.mxu0 %vm942_vm3, %v23354_v46  ;;  %v8672_v46 = vmul.f32 %v21576_v43, %v23370_v32 }
0x157f   :  { %14398 = vmatmul.mubr.msk.f32.gmra.mrb[30].mxu0 %vm942_vm3, %v23355_v44 }
0x1580   :  { %14400 = vmatprep.mubr.msk.f32.mxu0 %vm942_vm3, %v23356_v49 }
0x1583   :  { %14401 = vmatmul.mubr.msk.f32.gmra.mrb[32].mxu0 %vm942_vm3, %v23357_v58 }
0x1584   :  { %14403 = vmatprep.mubr.msk.f32.mxu0 %vm942_vm3, %v23358_v25 }
0x1587   :  { %14404 = vmatmul.mubr.msk.f32.gmra.mrb[34].mxu0 %vm942_vm3, %v23359_v55 }
0x1588   :  { %14406 = vmatprep.mubr.msk.f32.mxu0 %vm942_vm3, %v23360_v12 }
0x158b   :  { %14407 = vmatmul.mubr.msk.f32.gmra.mrb[36].mxu0 %vm942_vm3, %v23361_v1 }
0x158c   :  { %14409 = vmatprep.mubr.msk.f32.mxu0 %vm942_vm3, %v23362_v3  ;;  %v23372_v3 = vld [vmem:[#allocation16_spill] sm:$0xff] }
0x158d   :  { %v8674_v23 = vmul.f32 %v21576_v43, %v23372_v3 }
0x158f   :  { %14410 = vmatmul.mubr.msk.f32.gmra.mrb[38].mxu0 %vm942_vm3, %v23363_v57 }
0x1590   :  { %12402 = vmatprep.mubr.msk.f32.mxu0 %vm2951_vm4, %v23364_v56 }
0x15ee   :  { %v14324_v38 = vpop.f32.mrb[236].mxu0 }
0x15ef   :  { %v8800_v61 = vadd.f32 %v14324_v38, %v8669_v20  ;;  %v8794_v33 = vpop.f32.mrb[237].mxu0  ;;  %v23373_v38 = vld [vmem:[#allocation19_spill] sm:$0xff] }
0x15f0   :  { %v8795_v62 = vadd.f32 %v8794_v33, %v8668_v47  ;;  %v8677_v36 = vmul.f32 %v21576_v43, %v23373_v38  ;;  %v23374_v33 = vld [vmem:[#allocation18_spill] sm:$0xff] }
0x15f1   :  { %v21588_v13 = vadd.f32 %v21583_v40, %v8800_v61  ;;  %v23378_v38 = vld [vmem:[#allocation22_spill] sm:$0xff] }
0x15f2   :  { %v21593_v15 = vadd.f32 %v21583_v40, %v8795_v62  ;;  %v14327_v34 = vpop.f32.mrb[238].mxu0  ;;  %v8676_v62 = vmul.f32 %v21576_v43, %v23374_v33 }
0x15f3   :  { %v12217_v60 = vmul.f32 -1.442695, %v21588_v13  ;;  %v8810_v4 = vadd.f32 %v14327_v34, %v8671_v26  ;;  %v8804_v17 = vpop.f32.mrb[239].mxu0 }
0x15f4   :  { %v12216_v10 = vmul.f32 -1.442695, %v21593_v15  ;;  %v8805_v42 = vadd.f32 %v8804_v17, %v8670_v19 }
0x15f5   :  { %16638 = vpow2.f32 %v12217_v60  ;;  %v21600_v7 = vadd.f32 %v21583_v40, %v8810_v4 }
0x15f6   :  { %16640 = vpow2.f32 %v12216_v10  ;;  %v21605_v53 = vadd.f32 %v21583_v40, %v8805_v42  ;;  %v14330_v39 = vpop.f32.mrb[240].mxu0 }
0x15f7   :  { %v12219_v44 = vmul.f32 -1.442695, %v21600_v7  ;;  %v8820_v49 = vadd.f32 %v14330_v39, %v8673_v14  ;;  %v8814_v58 = vpop.f32.mrb[241].mxu0  ;;  %v8679_v14 = vmul.f32 %v21576_v43, %v23375_v9 }
0x15f8   :  { %v12218_v25 = vmul.f32 -1.442695, %v21605_v53  ;;  %v8815_v55 = vadd.f32 %v8814_v58, %v8672_v46  ;;  %v23376_v46 = vld [vmem:[#allocation20_spill] sm:$0xff] }
0x15f9   :  { %16642 = vpow2.f32 %v12219_v44  ;;  %v21612_v12 = vadd.f32 %v21583_v40, %v8820_v49  ;;  %v8678_v44 = vmul.f32 %v21576_v43, %v23376_v46 }
0x15fa   :  { %16644 = vpow2.f32 %v12218_v25  ;;  %v21617_v30 = vadd.f32 %v21583_v40, %v8815_v55  ;;  %v14333_v1 = vpop.f32.mrb[242].mxu0 }
0x15fb   :  { %v12221_v35 = vmul.f32 -1.442695, %v21612_v12  ;;  %v8830_v0 = vadd.f32 %v14333_v1, %v8675_v51  ;;  %v8824_v57 = vpop.f32.mrb[243].mxu0 }
0x15fc   :  { %v12220_v56 = vmul.f32 -1.442695, %v21617_v30  ;;  %v8825_v11 = vadd.f32 %v8824_v57, %v8674_v23 }
0x15fd   :  { %16646 = vpow2.f32 %v12221_v35  ;;  %v21624_v20 = vadd.f32 %v21583_v40, %v8830_v0  ;;  %v23377_v0 = vld [vmem:[#allocation23_spill] sm:$0xff] }
0x15fe   :  { %16648 = vpow2.f32 %v12220_v56  ;;  %v21629_v47 = vadd.f32 %v21583_v40, %v8825_v11  ;;  %v14336_v61 = vpop.f32.mrb[244].mxu0  ;;  %v8681_v57 = vmul.f32 %v21576_v43, %v23377_v0  ;;  %v23381_v0 = vld [vmem:[#allocation29_spill] sm:$0xff] }
0x15ff   :  { %v16639_v21 = vpop.eup %16638  ;;  %v12223_v26 = vmul.f32 -1.442695, %v21624_v20  ;;  %v8840_v34 = vadd.f32 %v14336_v61, %v8677_v36  ;;  %v8834_v59 = vpop.f32.mrb[245].mxu0  ;;  %v8680_v36 = vmul.f32 %v21576_v43, %v23378_v38 }
0x1600   :  { %v16641_v19 = vpop.eup %16640  ;;  %v9342_v60 = vadd.f32 1.0, %v16639_v21  ;;  %v12222_v4 = vmul.f32 -1.442695, %v21629_v47  ;;  %v8835_v17 = vadd.f32 %v8834_v59, %v8676_v62 }
0x1601   :  { %v9341_v10 = vadd.f32 1.0, %v16641_v19  ;;  %16650 = vpow2.f32 %v12223_v26  ;;  %v21636_v42 = vadd.f32 %v21583_v40, %v8840_v34 }
0x1602   :  { %16652 = vrcp.f32 %v9342_v60  ;;  %v21641_v39 = vadd.f32 %v21583_v40, %v8835_v17  ;;  %v14339_v32 = vpop.f32.mrb[246].mxu0  ;;  %v23379_v17 = vld [vmem:[#allocation25_spill] sm:$0xff] }
0x1603   :  { %v16643_v49 = vpop.eup %16642  ;;  %16654 = vrcp.f32 %v9341_v10  ;;  %v12225_v58 = vmul.f32 -1.442695, %v21636_v42  ;;  %v8850_v25 = vadd.f32 %v14339_v32, %v8679_v14  ;;  %v8844_v55 = vpop.f32.mrb[247].mxu0  ;;  %v8683_v10 = vmul.f32 %v21576_v43, %v23379_v17  ;;  %v23380_v32 = vld [vmem:[#allocation24_spill] sm:$0xff] }
0x1604   :  { %v16645_v50 = vpop.eup %16644  ;;  %v9344_v51 = vadd.f32 1.0, %v16643_v49  ;;  %16656 = vpow2.f32 %v12222_v4  ;;  %v12224_v1 = vmul.f32 -1.442695, %v21641_v39  ;;  %v8845_v3 = vadd.f32 %v8844_v55, %v8678_v44 }
0x1605   :  { %v9343_v23 = vadd.f32 1.0, %v16645_v50  ;;  %16658 = vpow2.f32 %v12225_v58  ;;  %v21648_v35 = vadd.f32 %v21583_v40, %v8850_v25  ;;  %v8682_v46 = vmul.f32 %v21576_v43, %v23380_v32 }
0x1606   :  { %16660 = vrcp.f32 %v9344_v51  ;;  %v21653_v56 = vadd.f32 %v21583_v40, %v8845_v3  ;;  %v14342_v11 = vpop.f32.mrb[248].mxu0 }
0x1607   :  { %v16647_v61 = vpop.eup %16646  ;;  %16662 = vrcp.f32 %v9343_v23  ;;  %v12227_v33 = vmul.f32 -1.442695, %v21648_v35  ;;  %v8860_v62 = vadd.f32 %v14342_v11, %v8681_v57  ;;  %v8854_v21 = vpop.f32.mrb[249].mxu0  ;;  %v8685_v57 = vmul.f32 %v21576_v43, %v23381_v0 }
0x1608   :  { %v16649_v26 = vpop.eup %16648  ;;  %v9346_v34 = vadd.f32 1.0, %v16647_v61  ;;  %16664 = vpow2.f32 %v12224_v1  ;;  %v12226_v59 = vmul.f32 -1.442695, %v21653_v56  ;;  %v8855_v19 = vadd.f32 %v8854_v21, %v8680_v36 }
0x1609   :  { %v9345_v60 = vadd.f32 1.0, %v16649_v26  ;;  %16666 = vpow2.f32 %v12227_v33  ;;  %v21660_v4 = vadd.f32 %v21583_v40, %v8860_v62  ;;  %v23382_v62 = vld [vmem:[#allocation26_spill] sm:$0xff] }
0x160a   :  { %16668 = vrcp.f32 %v9346_v34  ;;  %v21665_v9 = vadd.f32 %v21583_v40, %v8855_v19  ;;  %v14345_v14 = vpop.f32.mrb[250].mxu0  ;;  %v8684_v21 = vmul.f32 %v21576_v43, %v23382_v62 }
0x160b   :  { %v16651_v44 = vpop.eup %16650  ;;  %16670 = vrcp.f32 %v9345_v60  ;;  %v12229_v49 = vmul.f32 -1.442695, %v21660_v4  ;;  %v8870_v58 = vadd.f32 %v14345_v14, %v8683_v10  ;;  %v8864_v25 = vpop.f32.mrb[251].mxu0 }
0x160c   :  { %v16653_v55 = vpop.eup %16652  ;;  %v9348_v50 = vadd.f32 1.0, %v16651_v44  ;;  %16672 = vpow2.f32 %v12226_v59  ;;  %v12228_v51 = vmul.f32 -1.442695, %v21665_v9  ;;  %v8865_v1 = vadd.f32 %v8864_v25, %v8682_v46  ;;  %v23383_v46 = vld [vmem:[#allocation33_spill] sm:$0xff] }
0x160d   :  { %v16655_v3 = vpop.eup %16654  ;;  %16674 = vpow2.f32 %v12229_v49  ;;  %v21672_v23 = vadd.f32 %v21583_v40, %v8870_v58  ;;  %v9522_v38 = vmul.f32 %v16653_v55, %v21588_v13  ;;  %v8687_v44 = vmul.f32 %v21576_v43, %v23383_v46  ;;  %v23384_v49 = vld [vmem:[#allocation30_spill] sm:$0xff] }
0x160e   :  { %v16657_v11 = vpop.eup %16656  ;;  %v9521_v36 = vmul.f32 %v16655_v3, %v21593_v15  ;;  %v21679_v61 = vadd.f32 %v21583_v40, %v8865_v1  ;;  %v14348_v33 = vpop.f32.mrb[252].mxu0  ;;  %16676 = vpow2.f32 %v12228_v51  ;;  %v8686_v58 = vmul.f32 %v21576_v43, %v23384_v49 }
0x160f   :  { %v16659_v26 = vpop.eup %16658  ;;  %v9347_v34 = vadd.f32 1.0, %v16657_v11  ;;  %v12231_v59 = vmul.f32 -1.442695, %v21672_v23  ;;  %v8880_v19 = vadd.f32 %v14348_v33, %v8685_v57  ;;  %v8874_v60 = vpop.f32.mrb[253].mxu0  ;;  %16678 = vrcp.f32 %v9348_v50 }
0x1610   :  { %v16661_v17 = vpop.eup %16660  ;;  %v9350_v10 = vadd.f32 1.0, %v16659_v26  ;;  %v12230_v13 = vmul.f32 -1.442695, %v21679_v61  ;;  %v8875_v15 = vadd.f32 %v8874_v60, %v8684_v21  ;;  %14420 = vmatprep.mubr.msk.f32.mxu1 %vm388_vm2, %v9521_v36  ;;  %v23385_v26 = vld [vmem:[#allocation37_spill] sm:$0xff] }
0x1611   :  { %v16663_v14 = vpop.eup %16662  ;;  %16680 = vrcp.f32 %v9347_v34  ;;  %v21687_v32 = vadd.f32 %v21583_v40, %v8880_v19  ;;  %14421 = vmatmul.mubr.msk.f32.vlgmr.msra.gmra.mrb[232].mxu1 %vm388_vm2, %v9522_v38  ;;  %v9524_v55 = vmul.f32 %v16661_v17, %v21600_v7  ;;  %v8689_v34 = vmul.f32 %v21576_v43, %v23385_v26 }
0x1612   :  { %v16665_v25 = vpop.eup %16664  ;;  %v9523_v50 = vmul.f32 %v16663_v14, %v21605_v53  ;;  %16682 = vrcp.f32 %v9350_v10  ;;  %v21697_v51 = vadd.f32 %v21583_v40, %v8875_v15  ;;  %v14351_v1 = vpop.f32.mrb[254].mxu0 }
0x1613   :  { %v16667_v3 = vpop.eup %16666  ;;  %v9349_v0 = vadd.f32 1.0, %v16665_v25  ;;  %16684 = vpow2.f32 %v12231_v59  ;;  %v12233_v57 = vmul.f32 -1.442695, %v21687_v32  ;;  %v8890_v11 = vadd.f32 %v14351_v1, %v8687_v44  ;;  %v8884_v38 = vpop.f32.mrb[255].mxu0  ;;  %v23386_v59 = vld [vmem:[#allocation34_spill] sm:$0xff]  ;;  %v23387_v1 = vld [vmem:[#allocation41_spill] sm:$0xff] }
0x1614   :  { %v16669_v36 = vpop.eup %16668  ;;  %v9352_v33 = vadd.f32 1.0, %v16667_v3  ;;  %16686 = vpow2.f32 %v12230_v13  ;;  %v12232_v62 = vmul.f32 -1.442695, %v21697_v51  ;;  %v8885_v7 = vadd.f32 %v8884_v38, %v8686_v58  ;;  %14423 = vmatprep.mubr.msk.f32.mxu1 %vm388_vm2, %v9523_v50 }
0x1615   :  { %v16671_v53 = vpop.eup %16670  ;;  %16688 = vrcp.f32 %v9349_v0  ;;  %v21703_v21 = vadd.f32 %v21583_v40, %v8890_v11  ;;  %14424 = vmatmul.mubr.msk.f32.gmra.mrb[234].mxu1 %vm388_vm2, %v9524_v55  ;;  %v8688_v19 = vmul.f32 %v21576_v43, %v23386_v59  ;;  %v9526_v17 = vmul.f32 %v16669_v36, %v21612_v12  ;;  %v23388_v36 = vld [vmem:[#allocation38_spill] sm:$0xff] }
0x1616   :  { %v16673_v60 = vpop.eup %16672  ;;  %v9525_v10 = vmul.f32 %v16671_v53, %v21617_v30  ;;  %16690 = vrcp.f32 %v9352_v33  ;;  %v21713_v13 = vadd.f32 %v21583_v40, %v8885_v7  ;;  %v14354_v15 = vpop.f32.mrb[0].mxu0  ;;  %v8691_v3 = vmul.f32 %v21576_v43, %v23387_v1 }
0x1617   :  { %v16675_v14 = vpop.eup %16674  ;;  %v9351_v46 = vadd.f32 1.0, %v16673_v60  ;;  %16692 = vpow2.f32 %v12233_v57  ;;  %v12235_v44 = vmul.f32 -1.442695, %v21703_v21  ;;  %v8900_v49 = vadd.f32 %v14354_v15, %v8689_v34  ;;  %v8894_v58 = vpop.f32.mrb[1].mxu0  ;;  %v23389_v34 = vld [vmem:[#allocation45_spill] sm:$0xff] }
0x1618   :  { %v9354_v25 = vadd.f32 1.0, %v16675_v14  ;;  %16694 = vpow2.f32 %v12232_v62  ;;  %v8895_v55 = vadd.f32 %v8894_v58, %v8688_v19  ;;  %14426 = vmatprep.mubr.msk.f32.mxu1 %vm388_vm2, %v9525_v10  ;;  %v16677_v12 = vpop.eup %16676  ;;  %v12234_v30 = vmul.f32 -1.442695, %v21713_v13 }
0x1619   :  { %16696 = vrcp.f32 %v9351_v46  ;;  %v21719_v50 = vadd.f32 %v21583_v40, %v8900_v49  ;;  %14427 = vmatmul.mubr.msk.f32.gmra.mrb[236].mxu1 %vm388_vm2, %v9526_v17  ;;  %v16679_v0 = vpop.eup %16678  ;;  %v9353_v57 = vadd.f32 1.0, %v16677_v12  ;;  %v8690_v33 = vmul.f32 %v21576_v43, %v23388_v36  ;;  %v23391_v12 = vld [vmem:[#allocation49_spill] sm:$0xff] }
0x161a   :  { %16698 = vrcp.f32 %v9354_v25  ;;  %v21725_v11 = vadd.f32 %v21583_v40, %v8895_v55  ;;  %v14357_v38 = vpop.f32.mrb[2].mxu0  ;;  %v8693_v59 = vmul.f32 %v21576_v43, %v23389_v34  ;;  %v9528_v14 = vmul.f32 %v16679_v0, %v21624_v20  ;;  %v23392_v34 = vld [vmem:[#allocation48_spill] sm:$0xff] }
0x161b   :  { %v16681_v62 = vpop.eup %16680  ;;  %16700 = vpow2.f32 %v12235_v44  ;;  %v12237_v7 = vmul.f32 -1.442695, %v21719_v50  ;;  %v8910_v53 = vadd.f32 %v14357_v38, %v8691_v3  ;;  %v8904_v26 = vpop.f32.mrb[3].mxu0  ;;  %v23390_v44 = vld [vmem:[#allocation44_spill] sm:$0xff]  ;;  %v8695_v1 = vmul.f32 %v21576_v43, %v23391_v12 }
0x161c   :  { %v16683_v19 = vpop.eup %16682  ;;  %v9527_v60 = vmul.f32 %v16681_v62, %v21629_v47  ;;  %16702 = vrcp.f32 %v9353_v57  ;;  %v12236_v17 = vmul.f32 -1.442695, %v21725_v11  ;;  %v8905_v10 = vadd.f32 %v8904_v26, %v8690_v33 }
0x161d   :  { %v16685_v15 = vpop.eup %16684  ;;  %16704 = vpow2.f32 %v12234_v30  ;;  %v21736_v46 = vadd.f32 %v21583_v40, %v8910_v53  ;;  %v8692_v49 = vmul.f32 %v21576_v43, %v23390_v44  ;;  %v9530_v53 = vmul.f32 %v16683_v19, %v21636_v42 }
0x161e   :  { %v16687_v58 = vpop.eup %16686  ;;  %v9356_v25 = vadd.f32 1.0, %v16685_v15  ;;  %16706 = vpow2.f32 %v12237_v7  ;;  %v21741_v55 = vadd.f32 %v21583_v40, %v8905_v10  ;;  %14429 = vmatprep.mubr.msk.f32.mxu1 %vm388_vm2, %v9527_v60  ;;  %v14360_v47 = vpop.f32.mrb[4].mxu0  ;;  %v8694_v60 = vmul.f32 %v21576_v43, %v23392_v34  ;;  %v23393_v15 = vld [vmem:[#allocation55_spill] sm:$0xff] }
0x161f   :  { %v16689_v20 = vpop.eup %16688  ;;  %v9355_v30 = vadd.f32 1.0, %v16687_v58  ;;  %16708 = vpow2.f32 %v12236_v17  ;;  %v12239_v3 = vmul.f32 -1.442695, %v21736_v46  ;;  %14430 = vmatmul.mubr.msk.f32.gmra.mrb[238].mxu1 %vm388_vm2, %v9528_v14  ;;  %v8920_v0 = vadd.f32 %v14360_v47, %v8693_v59  ;;  %v8914_v57 = vpop.f32.mrb[5].mxu0 }
0x1620   :  { %v16691_v38 = vpop.eup %16690  ;;  %v9529_v36 = vmul.f32 %v16689_v20, %v21641_v39  ;;  %16710 = vrcp.f32 %v9356_v25  ;;  %v12238_v33 = vmul.f32 -1.442695, %v21741_v55  ;;  %v8915_v62 = vadd.f32 %v8914_v57, %v8692_v49  ;;  %v23394_v57 = vld [vmem:[#allocation54_spill] sm:$0xff] }
0x1621   :  { %v16693_v7 = vpop.eup %16692  ;;  %16712 = vrcp.f32 %v9355_v30  ;;  %v21752_v26 = vadd.f32 %v21583_v40, %v8920_v0  ;;  %v8697_v14 = vmul.f32 %v21576_v43, %v23393_v15 }
0x1622   :  { %v16695_v17 = vpop.eup %16694  ;;  %v9358_v59 = vadd.f32 1.0, %v16693_v7  ;;  %16714 = vpow2.f32 %v12239_v3  ;;  %v21757_v10 = vadd.f32 %v21583_v40, %v8915_v62  ;;  %14432 = vmatprep.mubr.msk.f32.mxu1 %vm388_vm2, %v9529_v36  ;;  %v14363_v39 = vpop.f32.mrb[6].mxu0  ;;  %v9532_v3 = vmul.f32 %v16691_v38, %v21648_v35  ;;  %v23395_v7 = vld [vmem:[#allocation59_spill] sm:$0xff] }
0x1623   :  { %v16697_v42 = vpop.eup %16696  ;;  %v9357_v19 = vadd.f32 1.0, %v16695_v17  ;;  %16716 = vpow2.f32 %v12238_v33  ;;  %v12241_v44 = vmul.f32 -1.442695, %v21752_v26  ;;  %14433 = vmatmul.mubr.msk.f32.gmra.mrb[240].mxu1 %vm388_vm2, %v9530_v53  ;;  %v8930_v49 = vadd.f32 %v14363_v39, %v8695_v1  ;;  %v8924_v58 = vpop.f32.mrb[7].mxu0 }
0x1624   :  { %v16699_v25 = vpop.eup %16698  ;;  %v9531_v47 = vmul.f32 %v16697_v42, %v21653_v56  ;;  %16718 = vrcp.f32 %v9358_v59  ;;  %v12240_v12 = vmul.f32 -1.442695, %v21757_v10  ;;  %v8925_v20 = vadd.f32 %v8924_v58, %v8694_v60 }
0x1625   :  { %v16701_v30 = vpop.eup %16700  ;;  %16720 = vrcp.f32 %v9357_v19  ;;  %v21768_v0 = vadd.f32 %v21583_v40, %v8930_v49  ;;  %v8696_v36 = vmul.f32 %v21576_v43, %v23394_v57  ;;  %v8699_v53 = vmul.f32 %v21576_v43, %v23395_v7 }
0x1626   :  { %v16703_v33 = vpop.eup %16702  ;;  %v9360_v1 = vadd.f32 1.0, %v16701_v30  ;;  %16722 = vpow2.f32 %v12241_v44  ;;  %v21773_v62 = vadd.f32 %v21583_v40, %v8925_v20  ;;  %14435 = vmatprep.mubr.msk.f32.mxu1 %vm388_vm2, %v9531_v47  ;;  %v14366_v56 = vpop.f32.mrb[8].mxu0  ;;  %v9534_v39 = vmul.f32 %v16699_v25, %v21660_v4  ;;  %v23396_v25 = vld [vmem:[#allocation58_spill] sm:$0xff] }
0x1627   :  { %v16705_v35 = vpop.eup %16704  ;;  %v9533_v38 = vmul.f32 %v16703_v33, %v21665_v9  ;;  %16724 = vpow2.f32 %v12240_v12  ;;  %v12243_v34 = vmul.f32 -1.442695, %v21768_v0  ;;  %14436 = vmatmul.mubr.msk.f32.gmra.mrb[242].mxu1 %vm388_vm2, %v9532_v3  ;;  %v8940_v60 = vadd.f32 %v14366_v56, %v8697_v14  ;;  %v8934_v17 = vpop.f32.mrb[9].mxu0 }
0x1628   :  { %v16707_v59 = vpop.eup %16706  ;;  %16726 = vrcp.f32 %v9360_v1  ;;  %v9359_v15 = vadd.f32 1.0, %v16705_v35  ;;  %v8935_v42 = vadd.f32 %v8934_v17, %v8696_v36  ;;  %v12242_v49 = vmul.f32 -1.442695, %v21773_v62  ;;  %v23397_v36 = vld [vmem:[#allocation65_spill] sm:$0xff] }
0x1629   :  { %v16709_v19 = vpop.eup %16708  ;;  %v9362_v44 = vadd.f32 1.0, %v16707_v59  ;;  %16728 = vpow2.f32 %v12243_v34  ;;  %v21784_v9 = vadd.f32 %v21583_v40, %v8940_v60  ;;  %14438 = vmatprep.mubr.msk.f32.mxu1 %vm388_vm2, %v9533_v38  ;;  %v8698_v12 = vmul.f32 %v21576_v43, %v23396_v25 }
0x162a   :  { %v16711_v58 = vpop.eup %16710  ;;  %16730 = vrcp.f32 %v9359_v15  ;;  %v9361_v14 = vadd.f32 1.0, %v16709_v19  ;;  %v21788_v47 = vadd.f32 %v21583_v40, %v8935_v42  ;;  %v14369_v4 = vpop.f32.mrb[10].mxu0  ;;  %v8701_v33 = vmul.f32 %v21576_v43, %v23397_v36 }
0x162b   :  { %v16713_v20 = vpop.eup %16712  ;;  %16732 = vrcp.f32 %v9362_v44  ;;  %v12245_v30 = vmul.f32 -1.442695, %v21784_v9  ;;  %14439 = vmatmul.mubr.msk.f32.gmra.mrb[244].mxu1 %vm388_vm2, %v9534_v39  ;;  %v8950_v3 = vadd.f32 %v14369_v4, %v8699_v53  ;;  %v8944_v57 = vpop.f32.mrb[11].mxu0  ;;  %v9536_v56 = vmul.f32 %v16711_v58, %v21672_v23  ;;  %v23399_v58 = vld [vmem:[#allocation69_spill] sm:$0xff] }
0x162c   :  { %v16715_v1 = vpop.eup %16714  ;;  %v9535_v7 = vmul.f32 %v16713_v20, %v21679_v61  ;;  %16734 = vrcp.f32 %v9361_v14  ;;  %v8945_v35 = vadd.f32 %v8944_v57, %v8698_v12  ;;  %v12244_v60 = vmul.f32 -1.442695, %v21788_v47  ;;  %v23398_v61 = vld [vmem:[#allocation64_spill] sm:$0xff] }
0x162d   :  { %v16717_v38 = vpop.eup %16716  ;;  %v9364_v34 = vadd.f32 1.0, %v16715_v1  ;;  %16736 = vpow2.f32 %v12242_v49  ;;  %v21800_v17 = vadd.f32 %v21583_v40, %v8950_v3  ;;  %v8700_v15 = vmul.f32 %v21576_v43, %v23398_v61 }
0x162e   :  { %v16719_v53 = vpop.eup %16718  ;;  %v9363_v59 = vadd.f32 1.0, %v16717_v38  ;;  %16738 = vpow2.f32 %v12245_v30  ;;  %v21803_v39 = vadd.f32 %v21583_v40, %v8945_v35  ;;  %14441 = vmatprep.mubr.msk.f32.mxu1 %vm388_vm2, %v9535_v7  ;;  %v14372_v23 = vpop.f32.mrb[12].mxu0  ;;  %v8703_v14 = vmul.f32 %v21576_v43, %v23399_v58  ;;  %v23402_v58 = vld [vmem:[#allocation74_spill] sm:$0xff] }
0x162f   :  { %v16721_v42 = vpop.eup %16720  ;;  %16740 = vrcp.f32 %v9364_v34  ;;  %v12247_v19 = vmul.f32 -1.442695, %v21800_v17  ;;  %14442 = vmatmul.mubr.msk.f32.gmra.mrb[246].mxu1 %vm388_vm2, %v9536_v56  ;;  %v8960_v44 = vadd.f32 %v14372_v23, %v8701_v33  ;;  %v8954_v49 = vpop.f32.mrb[13].mxu0  ;;  %v9538_v25 = vmul.f32 %v16719_v53, %v21687_v32  ;;  %v23401_v53 = vld [vmem:[#allocation75_spill] sm:$0xff] }
0x1630   :  { %v16723_v4 = vpop.eup %16722  ;;  %v9537_v12 = vmul.f32 %v16721_v42, %v21697_v51  ;;  %16742 = vrcp.f32 %v9363_v59  ;;  %v8955_v20 = vadd.f32 %v8954_v49, %v8700_v15  ;;  %v12246_v57 = vmul.f32 -1.442695, %v21803_v39  ;;  %v23400_v51 = vld [vmem:[#allocation68_spill] sm:$0xff] }
0x1631   :  { %v16725_v30 = vpop.eup %16724  ;;  %v9366_v3 = vadd.f32 1.0, %v16723_v4  ;;  %16744 = vpow2.f32 %v12244_v60  ;;  %v21816_v36 = vadd.f32 %v21583_v40, %v8960_v44  ;;  %v8702_v7 = vmul.f32 %v21576_v43, %v23400_v51 }
0x1632   :  { %v16727_v33 = vpop.eup %16726  ;;  %v9365_v1 = vadd.f32 1.0, %v16725_v30  ;;  %16746 = vpow2.f32 %v12247_v19  ;;  %v21819_v56 = vadd.f32 %v21583_v40, %v8955_v20  ;;  %14444 = vmatprep.mubr.msk.f32.mxu1 %vm388_vm2, %v9537_v12  ;;  %v14375_v32 = vpop.f32.mrb[14].mxu0  ;;  %v8705_v59 = vmul.f32 %v21576_v43, %v23401_v53  ;;  %v23403_v30 = vld [vmem:[#allocation79_spill] sm:$0xff] }
0x1633   :  { %v16729_v35 = vpop.eup %16728  ;;  %16748 = vrcp.f32 %v9366_v3  ;;  %v12249_v38 = vmul.f32 -1.442695, %v21816_v36  ;;  %14445 = vmatmul.mubr.msk.f32.gmra.mrb[248].mxu1 %vm388_vm2, %v9538_v25  ;;  %v8970_v34 = vadd.f32 %v14375_v32, %v8703_v14  ;;  %v8964_v60 = vpop.f32.mrb[15].mxu0  ;;  %v8704_v14 = vmul.f32 %v21576_v43, %v23402_v58 }
0x1634   :  { %v16731_v23 = vpop.eup %16730  ;;  %16750 = vrcp.f32 %v9365_v1  ;;  %v9368_v61 = vadd.f32 1.0, %v16729_v35  ;;  %v12248_v15 = vmul.f32 -1.442695, %v21819_v56  ;;  %v8965_v42 = vadd.f32 %v8964_v60, %v8702_v7 }
0x1635   :  { %v16733_v19 = vpop.eup %16732  ;;  %v9539_v44 = vmul.f32 %v16731_v23, %v21713_v13  ;;  %16752 = vpow2.f32 %v12246_v57  ;;  %v21831_v49 = vadd.f32 %v21583_v40, %v8970_v34  ;;  %v9540_v25 = vmul.f32 %v16727_v33, %v21703_v21 }
0x1636   :  { %v16735_v4 = vpop.eup %16734  ;;  %16754 = vrcp.f32 %v9368_v61  ;;  %v21837_v12 = vadd.f32 %v21583_v40, %v8965_v42  ;;  %v14378_v20 = vpop.f32.mrb[16].mxu0  ;;  %v8707_v3 = vmul.f32 %v21576_v43, %v23403_v30  ;;  %v9542_v23 = vmul.f32 %v16733_v19, %v21719_v50  ;;  %v23405_v42 = vld [vmem:[#allocation85_spill] sm:$0xff] }
0x1637   :  { %v16737_v1 = vpop.eup %16736  ;;  %v9541_v13 = vmul.f32 %v16735_v4, %v21725_v11  ;;  %16756 = vpow2.f32 %v12249_v38  ;;  %v12251_v57 = vmul.f32 -1.442695, %v21831_v49  ;;  %14447 = vmatprep.mubr.msk.f32.mxu1 %vm388_vm2, %v9539_v44  ;;  %v8980_v32 = vadd.f32 %v14378_v20, %v8705_v59  ;;  %v8974_v51 = vpop.f32.mrb[17].mxu0  ;;  %v23404_v38 = vld [vmem:[#allocation78_spill] sm:$0xff] }
0x1638   :  { %v16739_v7 = vpop.eup %16738  ;;  %v9367_v21 = vadd.f32 1.0, %v16737_v1  ;;  %16758 = vpow2.f32 %v12248_v15  ;;  %v12250_v33 = vmul.f32 -1.442695, %v21837_v12  ;;  %14448 = vmatmul.mubr.msk.f32.gmra.mrb[250].mxu1 %vm388_vm2, %v9540_v25  ;;  %v8975_v35 = vadd.f32 %v8974_v51, %v8704_v14 }
0x1639   :  { %v16741_v34 = vpop.eup %16740  ;;  %v9370_v60 = vadd.f32 1.0, %v16739_v7  ;;  %16760 = vpow2.f32 %v12251_v57  ;;  %v21847_v11 = vadd.f32 %v21583_v40, %v8980_v32  ;;  %14450 = vmatprep.mubr.msk.f32.mxu1 %vm388_vm2, %v9541_v13  ;;  %v8706_v53 = vmul.f32 %v21576_v43, %v23404_v38 }
0x163a   :  { %v16743_v59 = vpop.eup %16742  ;;  %16762 = vrcp.f32 %v9367_v21  ;;  %v21854_v61 = vadd.f32 %v21583_v40, %v8975_v35  ;;  %v14381_v15 = vpop.f32.mrb[18].mxu0  ;;  %v8709_v44 = vmul.f32 %v21576_v43, %v23405_v42  ;;  %v9544_v7 = vmul.f32 %v16741_v34, %v21736_v46  ;;  %v23407_v35 = vld [vmem:[#allocation89_spill] sm:$0xff] }
0x163b   :  { %v16745_v58 = vpop.eup %16744  ;;  %v9543_v14 = vmul.f32 %v16743_v59, %v21741_v55  ;;  %16764 = vrcp.f32 %v9370_v60  ;;  %v12253_v4 = vmul.f32 -1.442695, %v21847_v11  ;;  %v8990_v25 = vadd.f32 %v14381_v15, %v8707_v3  ;;  %v8984_v20 = vpop.f32.mrb[19].mxu0  ;;  %v23406_v55 = vld [vmem:[#allocation84_spill] sm:$0xff] }
0x163c   :  { %v16747_v30 = vpop.eup %16746  ;;  %v9369_v1 = vadd.f32 1.0, %v16745_v58  ;;  %16766 = vpow2.f32 %v12250_v33  ;;  %v12252_v50 = vmul.f32 -1.442695, %v21854_v61  ;;  %14451 = vmatmul.mubr.msk.f32.gmra.mrb[252].mxu1 %vm388_vm2, %v9542_v23  ;;  %v8985_v19 = vadd.f32 %v8984_v20, %v8706_v53 }
0x163d   :  { %v16749_v13 = vpop.eup %16748  ;;  %v9372_v57 = vadd.f32 1.0, %v16747_v30  ;;  %16768 = vpow2.f32 %v12253_v4  ;;  %v21863_v32 = vadd.f32 %v21583_v40, %v8990_v25  ;;  %14453 = vmatprep.mubr.msk.f32.mxu1 %vm388_vm2, %v9543_v14  ;;  %v8708_v3 = vmul.f32 %v21576_v43, %v23406_v55 }
0x163e   :  { %v16751_v51 = vpop.eup %16750  ;;  %16770 = vrcp.f32 %v9369_v1  ;;  %v21870_v21 = vadd.f32 %v21583_v40, %v8985_v19  ;;  %v14384_v33 = vpop.f32.mrb[20].mxu0  ;;  %v8711_v60 = vmul.f32 %v21576_v43, %v23407_v35  ;;  %v9546_v1 = vmul.f32 %v16749_v13, %v21752_v26 }
0x163f   :  { %v16753_v38 = vpop.eup %16752  ;;  %v9545_v53 = vmul.f32 %v16751_v51, %v21757_v10  ;;  %16772 = vrcp.f32 %v9372_v57  ;;  %v12255_v59 = vmul.f32 -1.442695, %v21863_v32  ;;  %v9000_v23 = vadd.f32 %v14384_v33, %v8709_v44  ;;  %v8994_v15 = vpop.f32.mrb[21].mxu0  ;;  %v23408_v10 = vld [vmem:[#allocation88_spill] sm:$0xff]  ;;  %v23409_v44 = vld [vmem:[#allocation95_spill] sm:$0xff] }
0x1640   :  { %v16755_v42 = vpop.eup %16754  ;;  %v9371_v58 = vadd.f32 1.0, %v16753_v38  ;;  %16774 = vpow2.f32 %v12252_v50  ;;  %v12254_v46 = vmul.f32 -1.442695, %v21870_v21  ;;  %14454 = vmatmul.mubr.msk.f32.gmra.mrb[254].mxu1 %vm388_vm2, %v9544_v7  ;;  %v8995_v34 = vadd.f32 %v8994_v15, %v8708_v3  ;;  %v23410_v15 = vld [vmem:[#allocation94_spill] sm:$0xff] }
0x1641   :  { %v16757_v14 = vpop.eup %16756  ;;  %16776 = vpow2.f32 %v12255_v59  ;;  %v21879_v4 = vadd.f32 %v21583_v40, %v9000_v23  ;;  %14456 = vmatprep.mubr.msk.f32.mxu1 %vm388_vm2, %v9545_v53  ;;  %v8710_v25 = vmul.f32 %v21576_v43, %v23408_v10  ;;  %v8713_v20 = vmul.f32 %v21576_v43, %v23409_v44  ;;  %v23411_v10 = vld [vmem:[#allocation99_spill] sm:$0xff] }
0x1642   :  { %v16759_v30 = vpop.eup %16758  ;;  %16778 = vrcp.f32 %v9371_v58  ;;  %v9374_v50 = vadd.f32 1.0, %v16757_v14  ;;  %v21888_v19 = vadd.f32 %v21583_v40, %v8995_v34  ;;  %v14387_v57 = vpop.f32.mrb[22].mxu0  ;;  %v8712_v58 = vmul.f32 %v21576_v43, %v23410_v15 }
0x1643   :  { %v16761_v55 = vpop.eup %16760  ;;  %v9373_v3 = vadd.f32 1.0, %v16759_v30  ;;  %16780 = vpow2.f32 %v12254_v46  ;;  %v12257_v51 = vmul.f32 -1.442695, %v21879_v4  ;;  %v9010_v7 = vadd.f32 %v14387_v57, %v8711_v60  ;;  %v9004_v33 = vpop.f32.mrb[23].mxu0 }
0x1644   :  { %v16763_v35 = vpop.eup %16762  ;;  %16782 = vrcp.f32 %v9374_v50  ;;  %v9376_v38 = vadd.f32 1.0, %v16761_v55  ;;  %v12256_v53 = vmul.f32 -1.442695, %v21888_v19  ;;  %14457 = vmatmul.mubr.msk.f32.gmra.mrb[0].mxu1 %vm388_vm2, %v9546_v1  ;;  %v9005_v26 = vadd.f32 %v9004_v33, %v8710_v25  ;;  %v23412_v33 = vld [vmem:[#allocation98_spill] sm:$0xff] }
0x1645   :  { %v16765_v13 = vpop.eup %16764  ;;  %v9547_v59 = vmul.f32 %v16763_v35, %v21773_v62  ;;  %16784 = vrcp.f32 %v9373_v3  ;;  %v21895_v23 = vadd.f32 %v21583_v40, %v9010_v7  ;;  %v9548_v46 = vmul.f32 %v16755_v42, %v21768_v0 }
0x1646   :  { %v16767_v60 = vpop.eup %16766  ;;  %16786 = vrcp.f32 %v9376_v38  ;;  %v21901_v34 = vadd.f32 %v21583_v40, %v9005_v26  ;;  %v14390_v14 = vpop.f32.mrb[24].mxu0  ;;  %v8715_v25 = vmul.f32 %v21576_v43, %v23411_v10  ;;  %v8714_v35 = vmul.f32 %v21576_v43, %v23412_v33 }
0x1647   :  { %v16769_v44 = vpop.eup %16768  ;;  %v9375_v62 = vadd.f32 1.0, %v16767_v60  ;;  %16788 = vpow2.f32 %v12257_v51  ;;  %v12259_v30 = vmul.f32 -1.442695, %v21895_v23  ;;  %14459 = vmatprep.mubr.msk.f32.mxu1 %vm388_vm2, %v9547_v59  ;;  %v9020_v1 = vadd.f32 %v14390_v14, %v8713_v20  ;;  %v9014_v50 = vpop.f32.mrb[25].mxu0  ;;  %v23413_v59 = vld [vmem:[#allocation105_spill] sm:$0xff] }
0x1648   :  { %v16771_v57 = vpop.eup %16770  ;;  %v9378_v55 = vadd.f32 1.0, %v16769_v44  ;;  %16790 = vpow2.f32 %v12256_v53  ;;  %v12258_v0 = vmul.f32 -1.442695, %v21901_v34  ;;  %14460 = vmatmul.mubr.msk.f32.gmra.mrb[2].mxu1 %vm388_vm2, %v9548_v46  ;;  %v9015_v42 = vadd.f32 %v9014_v50, %v8712_v58 }
0x1649   :  { %v16773_v3 = vpop.eup %16772  ;;  %v9549_v7 = vmul.f32 %v16771_v57, %v21788_v47  ;;  %16792 = vrcp.f32 %v9375_v62  ;;  %v21911_v51 = vadd.f32 %v21583_v40, %v9020_v1  ;;  %v9550_v38 = vmul.f32 %v16765_v13, %v21784_v9  ;;  %v23414_v13 = vld [vmem:[#allocation104_spill] sm:$0xff] }
0x164a   :  { %v16775_v20 = vpop.eup %16774  ;;  %16794 = vrcp.f32 %v9378_v55  ;;  %v21917_v53 = vadd.f32 %v21583_v40, %v9015_v42  ;;  %v14393_v26 = vpop.f32.mrb[26].mxu0  ;;  %v8717_v15 = vmul.f32 %v21576_v43, %v23413_v59  ;;  %v8716_v62 = vmul.f32 %v21576_v43, %v23414_v13 }
0x164b   :  { %v16777_v58 = vpop.eup %16776  ;;  %v9377_v47 = vadd.f32 1.0, %v16775_v20  ;;  %16796 = vpow2.f32 %v12259_v30  ;;  %v12261_v60 = vmul.f32 -1.442695, %v21911_v51  ;;  %14462 = vmatprep.mubr.msk.f32.mxu1 %vm388_vm2, %v9549_v7  ;;  %v9030_v46 = vadd.f32 %v14393_v26, %v8715_v25  ;;  %v9024_v14 = vpop.f32.mrb[27].mxu0  ;;  %v21943_v26 = vld [vmem:[%s22600_s9 + $0x3] ss:$0 sm:$0xff] }
0x164c   :  { %v16779_v10 = vpop.eup %16778  ;;  %v9380_v44 = vadd.f32 1.0, %v16777_v58  ;;  %16798 = vpow2.f32 %v12258_v0  ;;  %14463 = vmatmul.mubr.msk.f32.gmra.mrb[4].mxu1 %vm388_vm2, %v9550_v38  ;;  %v9025_v9 = vadd.f32 %v9024_v14, %v8714_v35  ;;  %v12260_v30 = vmul.f32 -1.442695, %v21917_v53 }
0x164d   :  { %v16781_v1 = vpop.eup %16780  ;;  %v9551_v50 = vmul.f32 %v16779_v10, %v21803_v39  ;;  %16800 = vrcp.f32 %v9377_v47  ;;  %v21929_v57 = vadd.f32 %v21583_v40, %v9030_v46  ;;  %v9552_v55 = vmul.f32 %v16773_v3, %v21800_v17  ;;  %v23416_v47 = vld [vmem:[#allocation108_spill] sm:$0xff] }
0x164e   :  { %v16783_v25 = vpop.eup %16782  ;;  %16802 = vrcp.f32 %v9380_v44  ;;  %v9379_v0 = vadd.f32 1.0, %v16781_v1  ;;  %v21933_v42 = vadd.f32 %v21583_v40, %v9025_v9  ;;  %v14396_v7 = vpop.f32.mrb[28].mxu0 }
0x164f   :  { %v16785_v33 = vpop.eup %16784  ;;  %16804 = vpow2.f32 %v12261_v60  ;;  %v12263_v43 = vmul.f32 -1.442695, %v21929_v57  ;;  %14465 = vmatprep.mubr.msk.f32.mxu1 %vm388_vm2, %v9551_v50  ;;  %v9040_v39 = vadd.f32 %v14396_v7, %v8717_v15  ;;  %v9034_v35 = vpop.f32.mrb[29].mxu0  ;;  %v23415_v15 = vld [vmem:[#allocation109_spill] sm:$0xff]  ;;  %v9554_v14 = vmul.f32 %v16783_v25, %v21816_v36 }
0x1650   :  { %v16787_v20 = vpop.eup %16786  ;;  %v9553_v38 = vmul.f32 %v16785_v33, %v21819_v56  ;;  %16806 = vrcp.f32 %v9379_v0  ;;  %v12262_v17 = vmul.f32 -1.442695, %v21933_v42  ;;  %14466 = vmatmul.mubr.msk.f32.gmra.mrb[6].mxu1 %vm388_vm2, %v9552_v55  ;;  %v9035_v3 = vadd.f32 %v9034_v35, %v8716_v62  ;;  %v21951_v56 = vld [vmem:[%s22599_s8 + $0x3] ss:$0 sm:$0xff]  ;;  %v23418_v35 = vld [vmem:[#allocation114_spill] sm:$0xff]  ;;  %s17193_s8 = smov [#allocation2]  }
0x1651   :  { %v16789_v40 = vpop.eup %16788  ;;  %16808 = vpow2.f32 %v12260_v30  ;;  %v21946_v59 = vadd.f32 %v21943_v26, %v9040_v39  ;;  %v8719_v58 = vmul.f32 %v21951_v56, %v23415_v15  ;;  %v8718_v60 = vmul.f32 %v21951_v56, %v23416_v47  ;;  %s11254_s9 = sshll.u32 %s17193_s8, 4  ;;  %s11255_s9 = int_to_ptr.vmem [resolvable:$true] %s11254_s9 }
0x1652   :  { %v16791_v46 = vpop.eup %16790  ;;  %v9382_v10 = vadd.f32 1.0, %v16789_v40  ;;  %16810 = vpow2.f32 %v12263_v43  ;;  %v21959_v44 = vadd.f32 %v21943_v26, %v9035_v3  ;;  %14468 = vmatprep.mubr.msk.f32.mxu1 %vm388_vm2, %v9553_v38  ;;  %v14399_v9 = vpop.f32.mrb[30].mxu0  ;;  %v23417_v43 = vld [vmem:[#allocation115_spill] sm:$0xff]  ;;  %v8720_v38 = vmul.f32 %v21951_v56, %v23418_v35  ;;  %v23420_v35 = vld [vmem:[#allocation133_spill] sm:$0xff]  ;;  %s17166_s1 = scalar_lea.vmem %s11255_s9, 512  ;;  %p17171_p1 = scmp.lt.s32.totalorder %s11255_s9, %s11255_s9 }
0x1653   :  { %v16793_v13 = vpop.eup %16792  ;;  %v9381_v62 = vadd.f32 1.0, %v16791_v46  ;;  %16812 = vpow2.f32 %v12262_v17  ;;  %v12265_v1 = vmul.f32 -1.442695, %v21946_v59  ;;  %v9050_v50 = vadd.f32 %v14399_v9, %v8719_v58  ;;  %v9044_v30 = vpop.f32.mrb[31].mxu0  ;;  %p17167_p0 = scmp.ne.s32.totalorder %s11255_s9, %s17166_s1  ;;  %p17172_p2 = scmp.lt.s32.totalorder %s17166_s1, %s17166_s1 }
0x1654   :  { %v16795_v55 = vpop.eup %16794  ;;  %v9555_v0 = vmul.f32 %v16793_v13, %v21837_v12  ;;  %16814 = vrcp.f32 %v9382_v10  ;;  %v12264_v36 = vmul.f32 -1.442695, %v21959_v44  ;;  %14469 = vmatmul.mubr.msk.f32.gmra.mrb[8].mxu1 %vm388_vm2, %v9554_v14  ;;  %v9045_v25 = vadd.f32 %v9044_v30, %v8718_v60 }
0x1655   :  { %v16797_v7 = vpop.eup %16796  ;;  %16816 = vrcp.f32 %v9381_v62  ;;  %v21967_v33 = vadd.f32 %v21943_v26, %v9050_v50  ;;  %v8721_v39 = vmul.f32 %v21951_v56, %v23417_v43  ;;  %v9556_v12 = vmul.f32 %v16787_v20, %v21831_v49  ;;  %p17173_p3 = por %p17172_p2, %p17171_p1 }
0x1656   :  { %v16799_v17 = vpop.eup %16798  ;;  %v9384_v3 = vadd.f32 1.0, %v16797_v7  ;;  %16818 = vpow2.f32 %v12265_v1  ;;  %v21975_v40 = vadd.f32 %v21943_v26, %v9045_v25  ;;  %14471 = vmatprep.mubr.msk.f32.mxu1 %vm388_vm2, %v9555_v0  ;;  %v14402_v15 = vpop.f32.mrb[32].mxu0  ;;  %v23419_v1 = vld [vmem:[#allocation118_spill] sm:$0xff]  ;;  %v9558_v0 = vmul.f32 %v16795_v55, %v21847_v11 }
0x1657   :  { %v16801_v58 = vpop.eup %16800  ;;  %v9383_v47 = vadd.f32 1.0, %v16799_v17  ;;  %16820 = vpow2.f32 %v12264_v36  ;;  %v12267_v60 = vmul.f32 -1.442695, %v21967_v33  ;;  %v9060_v46 = vadd.f32 %v14402_v15, %v8721_v39  ;;  %v9054_v14 = vpop.f32.mrb[33].mxu0  ;;  %p17174_p4 = pnand %p17173_p3, %p17167_p0 }
0x1658   :  { %v16803_v10 = vpop.eup %16802  ;;  %v9557_v9 = vmul.f32 %v16801_v58, %v21854_v61  ;;  %16822 = vrcp.f32 %v9384_v3  ;;  %v12266_v49 = vmul.f32 -1.442695, %v21975_v40  ;;  %14472 = vmatmul.mubr.msk.f32.gmra.mrb[10].mxu1 %vm388_vm2, %v9556_v12  ;;  %v9055_v20 = vadd.f32 %v9054_v14, %v8720_v38 }
0x1659   :  { %v16805_v13 = vpop.eup %16804  ;;  %16824 = vrcp.f32 %v9383_v47  ;;  %v21983_v62 = vadd.f32 %v21943_v26, %v9060_v46  ;;  %v8722_v50 = vmul.f32 %v21951_v56, %v23419_v1 }
0x165a   :  { %v16807_v30 = vpop.eup %16806  ;;  %v9386_v36 = vadd.f32 1.0, %v16805_v13  ;;  %16826 = vpow2.f32 %v12267_v60  ;;  %v21989_v61 = vadd.f32 %v21943_v26, %v9055_v20  ;;  %14474 = vmatprep.mubr.msk.f32.mxu1 %vm388_vm2, %v9557_v9  ;;  %v14405_v25 = vpop.f32.mrb[34].mxu0  ;;  %v9560_v60 = vmul.f32 %v16803_v10, %v21863_v32  ;;  %v23421_v13 = vld [vmem:[#allocation134_spill] sm:$0xff]  ;;  %v23423_v32 = vld [vmem:[#allocation135_spill] sm:$0xff] }
0x165b   :  { %v16809_v7 = vpop.eup %16808  ;;  %v9559_v43 = vmul.f32 %v16807_v30, %v21870_v21  ;;  %16828 = vpow2.f32 %v12266_v49  ;;  %v12269_v39 = vmul.f32 -1.442695, %v21983_v62  ;;  %v9070_v38 = vadd.f32 %v14405_v25, %v23420_v35  ;;  %v9064_v17 = vpop.f32.mrb[35].mxu0  ;;  %v23422_v30 = vld [vmem:[#allocation119_spill] sm:$0xff] }
0x165c   :  { %v16811_v12 = vpop.eup %16810  ;;  %16830 = vrcp.f32 %v9386_v36  ;;  %v9385_v11 = vadd.f32 1.0, %v16809_v7  ;;  %14475 = vmatmul.mubr.msk.f32.gmra.mrb[12].mxu1 %vm388_vm2, %v9558_v0  ;;  %v9065_v55 = vadd.f32 %v9064_v17, %v8722_v50  ;;  %v12268_v58 = vmul.f32 -1.442695, %v21989_v61  ;;  %v23424_v7 = vld [vmem:[#allocation125_spill] sm:$0xff] }
0x165d   :  { %v16813_v3 = vpop.eup %16812  ;;  %v9388_v15 = vadd.f32 1.0, %v16811_v12  ;;  %16832 = vpow2.f32 %v12269_v39  ;;  %v21998_v47 = vadd.f32 %v21943_v26, %v9070_v38  ;;  %14477 = vmatprep.mubr.msk.f32.mxu1 %vm388_vm2, %v9559_v43  ;;  %v8727_v0 = vmul.f32 %v21951_v56, %v23422_v30 }
0x165e   :  { %v16815_v21 = vpop.eup %16814  ;;  %16834 = vrcp.f32 %v9385_v11  ;;  %v9387_v46 = vadd.f32 1.0, %v16813_v3  ;;  %v22003_v14 = vadd.f32 %v21943_v26, %v9065_v55  ;;  %v14408_v9 = vpop.f32.mrb[36].mxu0  ;;  %v8726_v43 = vmul.f32 %v21951_v56, %v23424_v7 }
0x165f   :  { %v16817_v49 = vpop.eup %16816  ;;  %16836 = vrcp.f32 %v9388_v15  ;;  %v12271_v20 = vmul.f32 -1.442695, %v21998_v47  ;;  %v9080_v1 = vadd.f32 %v14408_v9, %v23421_v13  ;;  %v9074_v50 = vpop.f32.mrb[37].mxu0  ;;  %v9562_v11 = vmul.f32 %v16815_v21, %v21879_v4 }
0x1660   :  { %v16819_v36 = vpop.eup %16818  ;;  %v9561_v25 = vmul.f32 %v16817_v49, %v21888_v19  ;;  %16838 = vrcp.f32 %v9387_v46  ;;  %14478 = vmatmul.mubr.msk.f32.gmra.mrb[14].mxu1 %vm388_vm2, %v9560_v60  ;;  %v9075_v10 = vadd.f32 %v9074_v50, %v23423_v32  ;;  %v12270_v38 = vmul.f32 -1.442695, %v22003_v14 }
0x1661   :  { %v16821_v39 = vpop.eup %16820  ;;  %v9390_v35 = vadd.f32 1.0, %v16819_v36  ;;  %16840 = vpow2.f32 %v12268_v58  ;;  %v22016_v17 = vadd.f32 %v21943_v26, %v9080_v1 }
0x1662   :  { %v16823_v12 = vpop.eup %16822  ;;  %v9389_v19 = vadd.f32 1.0, %v16821_v39  ;;  %16842 = vpow2.f32 %v12271_v20  ;;  %v22020_v55 = vadd.f32 %v21943_v26, %v9075_v10  ;;  %14480 = vmatprep.mubr.msk.f32.mxu1 %vm388_vm2, %v9561_v25  ;;  %v14411_v3 = vpop.f32.mrb[38].mxu0 }
0x1663   :  { %v16825_v56 = vpop.eup %16824  ;;  %16844 = vrcp.f32 %v9390_v35  ;;  %v12273_v15 = vmul.f32 -1.442695, %v22016_v17  ;;  %v9090_v58 = vadd.f32 %v14411_v3, %v8727_v0  ;;  %v9084_v60 = vpop.f32.mrb[39].mxu0  ;;  %v9564_v50 = vmul.f32 %v16823_v12, %v21895_v23 }
0x1664   :  { %v16827_v46 = vpop.eup %16826  ;;  %v9563_v9 = vmul.f32 %v16825_v56, %v21901_v34  ;;  %16846 = vrcp.f32 %v9389_v19  ;;  %14481 = vmatmul.mubr.msk.f32.gmra.mrb[16].mxu1 %vm388_vm2, %v9562_v11  ;;  %v9085_v4 = vadd.f32 %v9084_v60, %v8726_v43  ;;  %v12272_v20 = vmul.f32 -1.442695, %v22020_v55 }
0x1665   :  { %v16829_v21 = vpop.eup %16828  ;;  %v9392_v49 = vadd.f32 1.0, %v16827_v46  ;;  %16848 = vpow2.f32 %v12270_v38  ;;  %v22028_v13 = vadd.f32 %v21943_v26, %v9090_v58 }
0x1666   :  { %v16831_v1 = vpop.eup %16830  ;;  %v9391_v30 = vadd.f32 1.0, %v16829_v21  ;;  %16850 = vpow2.f32 %v12273_v15  ;;  %v22032_v0 = vadd.f32 %v21943_v26, %v9085_v4  ;;  %14483 = vmatprep.mubr.msk.f32.mxu1 %vm388_vm2, %v9563_v9 }
0x1667   :  { %v16833_v34 = vpop.eup %16832  ;;  %16852 = vrcp.f32 %v9392_v49  ;;  %v12275_v36 = vmul.f32 -1.442695, %v22028_v13  ;;  %v9566_v26 = vmul.f32 %v16831_v1, %v21911_v51 }
0x1668   :  { %v16835_v25 = vpop.eup %16834  ;;  %16854 = vrcp.f32 %v9391_v30  ;;  %v12274_v32 = vmul.f32 -1.442695, %v22032_v0  ;;  %14484 = vmatmul.mubr.msk.f32.gmra.mrb[18].mxu1 %vm388_vm2, %v9564_v50  ;;  %v9394_v7 = vadd.f32 1.0, %v16833_v34 }
0x1669   :  { %v16837_v10 = vpop.eup %16836  ;;  %v9565_v23 = vmul.f32 %v16835_v25, %v21917_v53  ;;  %16856 = vpow2.f32 %v12272_v20 }
0x166a   :  { %v16839_v43 = vpop.eup %16838  ;;  %16858 = vpow2.f32 %v12275_v36  ;;  %v9568_v3 = vmul.f32 %v16837_v10, %v21929_v57 }
0x166b   :  { %v16841_v39 = vpop.eup %16840  ;;  %v9567_v35 = vmul.f32 %v16839_v43, %v21933_v42  ;;  %14486 = vmatprep.mubr.msk.f32.mxu1 %vm388_vm2, %v9565_v23  ;;  %16860 = vpow2.f32 %v12274_v32 }
0x166c   :  { %v16843_v38 = vpop.eup %16842  ;;  %v9393_v12 = vadd.f32 1.0, %v16841_v39  ;;  %14487 = vmatmul.mubr.msk.f32.gmra.mrb[20].mxu1 %vm388_vm2, %v9566_v26  ;;  %16862 = vrcp.f32 %v9394_v7 }
0x166d   :  { %v16845_v11 = vpop.eup %16844  ;;  %v9396_v19 = vadd.f32 1.0, %v16843_v38  ;;  %14489 = vmatprep.mubr.msk.f32.mxu1 %vm388_vm2, %v9567_v35 }
0x166e   :  { %v16847_v53 = vpop.eup %16846  ;;  %16864 = vrcp.f32 %v9393_v12  ;;  %v9570_v9 = vmul.f32 %v16845_v11, %v21946_v59 }
0x166f   :  { %v16849_v51 = vpop.eup %16848  ;;  %v9569_v42 = vmul.f32 %v16847_v53, %v21959_v44  ;;  %16866 = vrcp.f32 %v9396_v19 }
0x1670   :  { %v16851_v56 = vpop.eup %16850  ;;  %v9395_v15 = vadd.f32 1.0, %v16849_v51  ;;  %14490 = vmatmul.mubr.msk.f32.gmra.mrb[22].mxu1 %vm388_vm2, %v9568_v3 }
0x1671   :  { %v16853_v58 = vpop.eup %16852  ;;  %v9398_v60 = vadd.f32 1.0, %v16851_v56  ;;  %14492 = vmatprep.mubr.msk.f32.mxu1 %vm388_vm2, %v9569_v42 }
0x1672   :  { %v16855_v46 = vpop.eup %16854  ;;  %16868 = vrcp.f32 %v9395_v15  ;;  %v9572_v20 = vmul.f32 %v16853_v58, %v21967_v33 }
0x1673   :  { %v16857_v4 = vpop.eup %16856  ;;  %v9571_v57 = vmul.f32 %v16855_v46, %v21975_v40  ;;  %16870 = vrcp.f32 %v9398_v60 }
0x1674   :  { %v9397_v21 = vadd.f32 1.0, %v16857_v4  ;;  %14493 = vmatmul.mubr.msk.f32.gmra.mrb[24].mxu1 %vm388_vm2, %v9570_v9  ;;  %v16859_v44 = vpop.eup %16858 }
0x1675   :  { %14495 = vmatprep.mubr.msk.f32.mxu1 %vm388_vm2, %v9571_v57  ;;  %v16861_v49 = vpop.eup %16860  ;;  %v9400_v1 = vadd.f32 1.0, %v16859_v44 }
0x1676   :  { %16872 = vrcp.f32 %v9397_v21  ;;  %v16863_v50 = vpop.eup %16862  ;;  %v9399_v30 = vadd.f32 1.0, %v16861_v49 }
0x1677   :  { %16874 = vrcp.f32 %v9400_v1  ;;  %v9574_v40 = vmul.f32 %v16863_v50, %v21983_v62 }
0x1678   :  { %v16865_v34 = vpop.eup %16864  ;;  %14496 = vmatmul.mubr.msk.f32.gmra.mrb[26].mxu1 %vm388_vm2, %v9572_v20  ;;  %16876 = vrcp.f32 %v9399_v30 }
0x1679   :  { %v9573_v59 = vmul.f32 %v16865_v34, %v21989_v61  ;;  %v16867_v36 = vpop.eup %16866 }
0x167a   :  { %v9576_v32 = vmul.f32 %v16867_v36, %v21998_v47 }
0x167b   :  { %14498 = vmatprep.mubr.msk.f32.mxu1 %vm388_vm2, %v9573_v59 }
0x167c   :  { %v16869_v25 = vpop.eup %16868  ;;  %14499 = vmatmul.mubr.msk.f32.gmra.mrb[28].mxu1 %vm388_vm2, %v9574_v40 }
0x167d   :  { %v9575_v33 = vmul.f32 %v16869_v25, %v22003_v14  ;;  %v16871_v10 = vpop.eup %16870  ;;  %v23425_v14 = vld [vmem:[#allocation124_spill] sm:$0xff] }
0x167e   :  { %v9578_v62 = vmul.f32 %v16871_v10, %v22016_v17 }
0x167f   :  { %14501 = vmatprep.mubr.msk.f32.mxu1 %vm388_vm2, %v9575_v33 }
0x1680   :  { %v16873_v23 = vpop.eup %16872  ;;  %14502 = vmatmul.mubr.msk.f32.gmra.mrb[30].mxu1 %vm388_vm2, %v9576_v32 }
0x1681   :  { %v9577_v61 = vmul.f32 %v16873_v23, %v22020_v55  ;;  %v16875_v7 = vpop.eup %16874  ;;  %v22074_v55 = vld [vmem:[%s22602_s11 + $0x3] ss:$0 sm:$0xff] }
0x1682   :  { %v16877_v43 = vpop.eup %16876  ;;  %v9580_v47 = vmul.f32 %v16875_v7, %v22028_v13 }
0x1683   :  { %14504 = vmatprep.mubr.msk.f32.mxu1 %vm388_vm2, %v9577_v61  ;;  %v9579_v26 = vmul.f32 %v16877_v43, %v22032_v0 }
0x1684   :  { %14505 = vmatmul.mubr.msk.f32.gmra.mrb[32].mxu1 %vm388_vm2, %v9578_v62 }
0x1685   :  { %14507 = vmatprep.mubr.msk.f32.mxu1 %vm388_vm2, %v9579_v26 }
0x1688   :  { %14508 = vmatmul.mubr.msk.f32.gmra.mrb[34].mxu1 %vm388_vm2, %v9580_v47 }
0x1689   :  { %10623 = vmatprep.mubr.f32.mxu1 %v23425_v14 }
0x16e4   :  { %v14422_v17 = vpop.f32.mrb[232].mxu1 }
0x16e5   :  { %v22077_v39 = vadd.f32 %v14422_v17, %v22074_v55  ;;  %v9840_v0 = vpop.f32.mrb[233].mxu1 }
0x16e6   :  { %v22080_v35 = vadd.f32 %v22074_v55, %v9840_v0 }
0x16e7   :  { %v12343_v13 = vmul.f32 -1.442695, %v22077_v39 }
0x16e8   :  { %v12342_v38 = vmul.f32 -1.442695, %v22080_v35  ;;  %v14425_v12 = vpop.f32.mrb[234].mxu1 }
0x16e9   :  { %16878 = vpow2.f32 %v12343_v13  ;;  %v22085_v11 = vadd.f32 %v14425_v12, %v22074_v55  ;;  %v9850_v19 = vpop.f32.mrb[235].mxu1 }
0x16ea   :  { %16880 = vpow2.f32 %v12342_v38  ;;  %v22088_v53 = vadd.f32 %v22074_v55, %v9850_v19 }
0x16eb   :  { %v12345_v3 = vmul.f32 -1.442695, %v22085_v11 }
0x16ec   :  { %v12344_v51 = vmul.f32 -1.442695, %v22088_v53  ;;  %v14428_v42 = vpop.f32.mrb[236].mxu1 }
0x16ed   :  { %16882 = vpow2.f32 %v12345_v3  ;;  %v22093_v56 = vadd.f32 %v14428_v42, %v22074_v55  ;;  %v9860_v15 = vpop.f32.mrb[237].mxu1 }
0x16ee   :  { %16884 = vpow2.f32 %v12344_v51  ;;  %v22096_v58 = vadd.f32 %v22074_v55, %v9860_v15 }
0x16ef   :  { %v12347_v60 = vmul.f32 -1.442695, %v22093_v56 }
0x16f0   :  { %v12346_v46 = vmul.f32 -1.442695, %v22096_v58 }
0x16f1   :  { %16886 = vpow2.f32 %v12347_v60 }
0x16f2   :  { %16888 = vpow2.f32 %v12346_v46  ;;  %v14431_v9 = vpop.f32.mrb[238].mxu1 }
0x16f3   :  { %v16879_v4 = vpop.eup %16878  ;;  %v22101_v57 = vadd.f32 %v14431_v9, %v22074_v55  ;;  %v9870_v21 = vpop.f32.mrb[239].mxu1 }
0x16f4   :  { %v16881_v44 = vpop.eup %16880  ;;  %v10320_v49 = vadd.f32 1.0, %v16879_v4  ;;  %v22104_v20 = vadd.f32 %v22074_v55, %v9870_v21 }
0x16f5   :  { %v10319_v1 = vadd.f32 1.0, %v16881_v44  ;;  %v12349_v50 = vmul.f32 -1.442695, %v22101_v57 }
0x16f6   :  { %16890 = vrcp.f32 %v10320_v49  ;;  %v12348_v30 = vmul.f32 -1.442695, %v22104_v20  ;;  %v14434_v34 = vpop.f32.mrb[240].mxu1 }
0x16f7   :  { %v16883_v59 = vpop.eup %16882  ;;  %16892 = vrcp.f32 %v10319_v1  ;;  %v22109_v40 = vadd.f32 %v14434_v34, %v22074_v55  ;;  %v9880_v36 = vpop.f32.mrb[241].mxu1 }
0x16f8   :  { %v16885_v25 = vpop.eup %16884  ;;  %v10322_v33 = vadd.f32 1.0, %v16883_v59  ;;  %16894 = vpow2.f32 %v12349_v50  ;;  %v22112_v32 = vadd.f32 %v22074_v55, %v9880_v36 }
0x16f9   :  { %v10321_v10 = vadd.f32 1.0, %v16885_v25  ;;  %16896 = vpow2.f32 %v12348_v30  ;;  %v12351_v23 = vmul.f32 -1.442695, %v22109_v40 }
0x16fa   :  { %16898 = vrcp.f32 %v10322_v33  ;;  %v12350_v61 = vmul.f32 -1.442695, %v22112_v32  ;;  %v14437_v7 = vpop.f32.mrb[242].mxu1 }
0x16fb   :  { %v16887_v62 = vpop.eup %16886  ;;  %16900 = vrcp.f32 %v10321_v10  ;;  %v22117_v43 = vadd.f32 %v14437_v7, %v22074_v55  ;;  %v9890_v26 = vpop.f32.mrb[243].mxu1 }
0x16fc   :  { %v16889_v47 = vpop.eup %16888  ;;  %v10324_v14 = vadd.f32 1.0, %v16887_v62  ;;  %16902 = vpow2.f32 %v12351_v23  ;;  %v22120_v17 = vadd.f32 %v22074_v55, %v9890_v26 }
0x16fd   :  { %v10323_v0 = vadd.f32 1.0, %v16889_v47  ;;  %16904 = vpow2.f32 %v12350_v61  ;;  %v12353_v13 = vmul.f32 -1.442695, %v22117_v43 }
0x16fe   :  { %16906 = vrcp.f32 %v10324_v14  ;;  %v12352_v38 = vmul.f32 -1.442695, %v22120_v17  ;;  %v14440_v12 = vpop.f32.mrb[244].mxu1 }
0x16ff   :  { %16908 = vrcp.f32 %v10323_v0  ;;  %v22125_v19 = vadd.f32 %v14440_v12, %v22074_v55  ;;  %v9900_v3 = vpop.f32.mrb[245].mxu1 }
0x1700   :  { %v16891_v51 = vpop.eup %16890  ;;  %16910 = vpow2.f32 %v12353_v13  ;;  %v22128_v42 = vadd.f32 %v22074_v55, %v9900_v3 }
0x1701   :  { %v16893_v15 = vpop.eup %16892  ;;  %v22131_v60 = vmul.f32 %v16891_v51, %v22077_v39  ;;  %16912 = vpow2.f32 %v12352_v38  ;;  %v12355_v46 = vmul.f32 -1.442695, %v22125_v19 }
0x1702   :  { %v16895_v9 = vpop.eup %16894  ;;  %v22135_v4 = vmul.f32 %v16893_v15, %v22080_v35  ;;  %v12354_v21 = vmul.f32 -1.442695, %v22128_v42  ;;  %v14443_v44 = vpop.f32.mrb[246].mxu1 }
0x1703   :  { %v16897_v49 = vpop.eup %16896  ;;  %v10326_v1 = vadd.f32 1.0, %v16895_v9  ;;  %16914 = vpow2.f32 %v12355_v46  ;;  %v22139_v50 = vadd.f32 %v14443_v44, %v22074_v55  ;;  %v9910_v30 = vpop.f32.mrb[247].mxu1 }
0x1704   :  { %v16899_v34 = vpop.eup %16898  ;;  %v10325_v59 = vadd.f32 1.0, %v16897_v49  ;;  %16916 = vpow2.f32 %v12354_v21  ;;  %v22144_v36 = vadd.f32 %v22074_v55, %v9910_v30 }
0x1705   :  { %v16901_v35 = vpop.eup %16900  ;;  %v22147_v25 = vmul.f32 %v16899_v34, %v22085_v11  ;;  %16918 = vrcp.f32 %v10326_v1  ;;  %v12357_v33 = vmul.f32 -1.442695, %v22139_v50 }
0x1706   :  { %v16903_v10 = vpop.eup %16902  ;;  %v22151_v23 = vmul.f32 %v16901_v35, %v22088_v53  ;;  %16920 = vrcp.f32 %v10325_v59  ;;  %v12356_v61 = vmul.f32 -1.442695, %v22144_v36  ;;  %v14446_v7 = vpop.f32.mrb[248].mxu1 }
0x1707   :  { %v16905_v62 = vpop.eup %16904  ;;  %v10328_v26 = vadd.f32 1.0, %v16903_v10  ;;  %16922 = vpow2.f32 %v12357_v33  ;;  %v22155_v47 = vadd.f32 %v14446_v7, %v22074_v55  ;;  %v9920_v14 = vpop.f32.mrb[249].mxu1 }
0x1708   :  { %v16907_v11 = vpop.eup %16906  ;;  %v10327_v13 = vadd.f32 1.0, %v16905_v62  ;;  %16924 = vpow2.f32 %v12356_v61  ;;  %v22160_v53 = vadd.f32 %v22074_v55, %v9920_v14 }
0x1709   :  { %v16909_v38 = vpop.eup %16908  ;;  %v22163_v12 = vmul.f32 %v16907_v11, %v22093_v56  ;;  %16926 = vrcp.f32 %v10328_v26  ;;  %v12359_v3 = vmul.f32 -1.442695, %v22155_v47 }
0x170a   :  { %v16911_v51 = vpop.eup %16910  ;;  %v22167_v15 = vmul.f32 %v16909_v38, %v22096_v58  ;;  %16928 = vrcp.f32 %v10327_v13  ;;  %v12358_v46 = vmul.f32 -1.442695, %v22160_v53 }
0x170b   :  { %v16913_v9 = vpop.eup %16912  ;;  %v10330_v21 = vadd.f32 1.0, %v16911_v51  ;;  %16930 = vpow2.f32 %v12359_v3  ;;  %v14449_v44 = vpop.f32.mrb[250].mxu1 }
0x170c   :  { %v10329_v1 = vadd.f32 1.0, %v16913_v9  ;;  %16932 = vpow2.f32 %v12358_v46  ;;  %v22173_v56 = vadd.f32 %v14449_v44, %v22074_v55  ;;  %v9930_v30 = vpop.f32.mrb[251].mxu1 }
0x170d   :  { %v16915_v34 = vpop.eup %16914  ;;  %16934 = vrcp.f32 %v10330_v21  ;;  %v22176_v58 = vadd.f32 %v22074_v55, %v9930_v30 }
0x170e   :  { %v16917_v59 = vpop.eup %16916  ;;  %16936 = vrcp.f32 %v10329_v1  ;;  %v10332_v35 = vadd.f32 1.0, %v16915_v34  ;;  %v12361_v33 = vmul.f32 -1.442695, %v22173_v56 }
0x170f   :  { %v16919_v10 = vpop.eup %16918  ;;  %v10331_v61 = vadd.f32 1.0, %v16917_v59  ;;  %v12360_v7 = vmul.f32 -1.442695, %v22176_v58  ;;  %v14452_v62 = vpop.f32.mrb[252].mxu1 }
0x1710   :  { %v16921_v26 = vpop.eup %16920  ;;  %v22181_v14 = vmul.f32 %v16919_v10, %v22101_v57  ;;  %16938 = vrcp.f32 %v10332_v35  ;;  %v22184_v11 = vadd.f32 %v14452_v62, %v22074_v55  ;;  %v9940_v13 = vpop.f32.mrb[253].mxu1 }
0x1711   :  { %v16923_v38 = vpop.eup %16922  ;;  %v22187_v3 = vmul.f32 %v16921_v26, %v22104_v20  ;;  %16940 = vrcp.f32 %v10331_v61  ;;  %v22190_v51 = vadd.f32 %v22074_v55, %v9940_v13 }
0x1712   :  { %v16925_v46 = vpop.eup %16924  ;;  %v10334_v9 = vadd.f32 1.0, %v16923_v38  ;;  %16942 = vpow2.f32 %v12361_v33  ;;  %v12363_v21 = vmul.f32 -1.442695, %v22184_v11 }
0x1713   :  { %v16927_v57 = vpop.eup %16926  ;;  %v10333_v1 = vadd.f32 1.0, %v16925_v46  ;;  %16944 = vpow2.f32 %v12360_v7  ;;  %v12362_v30 = vmul.f32 -1.442695, %v22190_v51  ;;  %v14455_v34 = vpop.f32.mrb[254].mxu1 }
0x1714   :  { %v16929_v20 = vpop.eup %16928  ;;  %v22197_v59 = vmul.f32 %v16927_v57, %v22109_v40  ;;  %16946 = vrcp.f32 %v10334_v9  ;;  %v22200_v35 = vadd.f32 %v14455_v34, %v22074_v55  ;;  %v9950_v33 = vpop.f32.mrb[255].mxu1 }
0x1715   :  { %v16931_v10 = vpop.eup %16930  ;;  %v22203_v61 = vmul.f32 %v16929_v20, %v22112_v32  ;;  %16948 = vrcp.f32 %v10333_v1  ;;  %v22206_v62 = vadd.f32 %v22074_v55, %v9950_v33 }
0x1716   :  { %v16933_v7 = vpop.eup %16932  ;;  %v10336_v26 = vadd.f32 1.0, %v16931_v10  ;;  %16950 = vpow2.f32 %v12363_v21  ;;  %v12365_v13 = vmul.f32 -1.442695, %v22200_v35 }
0x1717   :  { %v16935_v40 = vpop.eup %16934  ;;  %v10335_v46 = vadd.f32 1.0, %v16933_v7  ;;  %16952 = vpow2.f32 %v12362_v30  ;;  %v12364_v9 = vmul.f32 -1.442695, %v22206_v62  ;;  %v14458_v57 = vpop.f32.mrb[0].mxu1 }
0x1718   :  { %v16937_v32 = vpop.eup %16936  ;;  %v22213_v1 = vmul.f32 %v16935_v40, %v22117_v43  ;;  %16954 = vrcp.f32 %v10336_v26  ;;  %v22216_v34 = vadd.f32 %v14458_v57, %v22074_v55  ;;  %v9960_v21 = vpop.f32.mrb[1].mxu1 }
0x1719   :  { %v22219_v20 = vmul.f32 %v16937_v32, %v22120_v17  ;;  %16956 = vrcp.f32 %v10335_v46  ;;  %v22222_v33 = vadd.f32 %v22074_v55, %v9960_v21 }
0x171a   :  { %v16939_v30 = vpop.eup %16938  ;;  %16958 = vpow2.f32 %v12365_v13  ;;  %v12367_v10 = vmul.f32 -1.442695, %v22216_v34 }
0x171b   :  { %v16941_v7 = vpop.eup %16940  ;;  %v22228_v26 = vmul.f32 %v16939_v30, %v22125_v19  ;;  %16960 = vpow2.f32 %v12364_v9  ;;  %v12366_v40 = vmul.f32 -1.442695, %v22222_v33  ;;  %v14461_v17 = vpop.f32.mrb[2].mxu1 }
0x171c   :  { %v16943_v57 = vpop.eup %16942  ;;  %v22232_v46 = vmul.f32 %v16941_v7, %v22128_v42  ;;  %16962 = vpow2.f32 %v12367_v10  ;;  %v22235_v13 = vadd.f32 %v14461_v17, %v22074_v55  ;;  %v9970_v32 = vpop.f32.mrb[3].mxu1 }
0x171d   :  { %v16945_v21 = vpop.eup %16944  ;;  %v10338_v38 = vadd.f32 1.0, %v16943_v57  ;;  %16964 = vpow2.f32 %v12366_v40  ;;  %v22238_v43 = vadd.f32 %v22074_v55, %v9970_v32 }
0x171e   :  { %v16947_v19 = vpop.eup %16946  ;;  %v10337_v30 = vadd.f32 1.0, %v16945_v21  ;;  %v12369_v44 = vmul.f32 -1.442695, %v22235_v13 }
0x171f   :  { %v16949_v42 = vpop.eup %16948  ;;  %v22244_v10 = vmul.f32 %v16947_v19, %v22139_v50  ;;  %16966 = vrcp.f32 %v10338_v38  ;;  %v12368_v7 = vmul.f32 -1.442695, %v22238_v43  ;;  %v14464_v17 = vpop.f32.mrb[4].mxu1 }
0x1720   :  { %v16951_v57 = vpop.eup %16950  ;;  %v22248_v40 = vmul.f32 %v16949_v42, %v22144_v36  ;;  %16968 = vrcp.f32 %v10337_v30  ;;  %v22251_v32 = vadd.f32 %v14464_v17, %v22074_v55  ;;  %v9980_v9 = vpop.f32.mrb[5].mxu1 }
0x1721   :  { %v16953_v21 = vpop.eup %16952  ;;  %v10340_v49 = vadd.f32 1.0, %v16951_v57  ;;  %16970 = vpow2.f32 %v12369_v44  ;;  %v22254_v0 = vadd.f32 %v22074_v55, %v9980_v9 }
0x1722   :  { %v16955_v50 = vpop.eup %16954  ;;  %v10339_v19 = vadd.f32 1.0, %v16953_v21  ;;  %16972 = vpow2.f32 %v12368_v7  ;;  %v12371_v36 = vmul.f32 -1.442695, %v22251_v32 }
0x1723   :  { %v16957_v42 = vpop.eup %16956  ;;  %v10516_v30 = vmul.f32 %v16955_v50, %v22155_v47  ;;  %16974 = vrcp.f32 %v10340_v49  ;;  %v12370_v17 = vmul.f32 -1.442695, %v22254_v0  ;;  %v14467_v39 = vpop.f32.mrb[6].mxu1 }
0x1724   :  { %v16959_v57 = vpop.eup %16958  ;;  %v10515_v44 = vmul.f32 %v16957_v42, %v22160_v53  ;;  %16976 = vrcp.f32 %v10339_v19  ;;  %v22263_v9 = vadd.f32 %v14467_v39, %v22074_v55  ;;  %v9990_v48 = vpop.f32.mrb[7].mxu1 }
0x1725   :  { %v16961_v38 = vpop.eup %16960  ;;  %v10342_v21 = vadd.f32 1.0, %v16959_v57  ;;  %16978 = vpow2.f32 %v12371_v36  ;;  %v22266_v7 = vadd.f32 %v22074_v55, %v9990_v48 }
0x1726   :  { %v16963_v24 = vpop.eup %16962  ;;  %v10341_v47 = vadd.f32 1.0, %v16961_v38  ;;  %16980 = vpow2.f32 %v12370_v17  ;;  %v15028_v49 = vpack.c.bf16 %v10516_v30, %v10515_v44  ;;  %v12373_v53 = vmul.f32 -1.442695, %v22263_v9 }
0x1727   :  { %v16965_v50 = vpop.eup %16964  ;;  %16982 = vrcp.f32 %v10342_v21  ;;  %v10344_v18 = vadd.f32 1.0, %v16963_v24  ;;  %v14470_v19 = vpop.f32.mrb[8].mxu1  ;;  %v12372_v42 = vmul.f32 -1.442695, %v22266_v7  ;;  %v23426_v24 = vpack.c.bf16 %v22131_v60, %v22135_v4 }
0x1728   :  { %16984 = vrcp.f32 %v10341_v47  ;;  %v10343_v39 = vadd.f32 1.0, %v16965_v50  ;;  %v22271_v57 = vadd.f32 %v14470_v19, %v22074_v55  ;;  %v10000_v36 = vpop.f32.mrb[9].mxu1  ;;  %15029 = vmatprep.subr.bf16.mxu1 %v15028_v49 }
0x1729   :  { %v16967_v48 = vpop.eup %16966  ;;  %16986 = vrcp.f32 %v10344_v18  ;;  %v22274_v38 = vadd.f32 %v22074_v55, %v10000_v36  ;;  %15031 = vmatpush3.bf16.msra.mxu1 %v23426_v24 }
0x172a   :  { %v16969_v30 = vpop.eup %16968  ;;  %v10518_v17 = vmul.f32 %v16967_v48, %v22173_v56  ;;  %16988 = vrcp.f32 %v10343_v39  ;;  %v12375_v44 = vmul.f32 -1.442695, %v22271_v57 }
0x172b   :  { %v16971_v21 = vpop.eup %16970  ;;  %v10517_v47 = vmul.f32 %v16969_v30, %v22176_v58  ;;  %16990 = vpow2.f32 %v12373_v53  ;;  %v14473_v49 = vpop.f32.mrb[10].mxu1  ;;  %v12374_v19 = vmul.f32 -1.442695, %v22274_v38 }
0x172c   :  { %v16973_v50 = vpop.eup %16972  ;;  %v10346_v18 = vadd.f32 1.0, %v16971_v21  ;;  %16992 = vpow2.f32 %v12372_v42  ;;  %v22284_v36 = vadd.f32 %v14473_v49, %v22074_v55  ;;  %v10010_v60 = vpop.f32.mrb[11].mxu1 }
0x172d   :  { %v16975_v4 = vpop.eup %16974  ;;  %v10345_v24 = vadd.f32 1.0, %v16973_v50  ;;  %16994 = vpow2.f32 %v12375_v44  ;;  %v22287_v56 = vadd.f32 %v22074_v55, %v10010_v60  ;;  %v15032_v39 = vpack.c.bf16 %v10518_v17, %v10517_v47 }
0x172e   :  { %v16977_v48 = vpop.eup %16976  ;;  %v10520_v58 = vmul.f32 %v16975_v4, %v22184_v11  ;;  %16996 = vrcp.f32 %v10346_v18  ;;  %v12377_v53 = vmul.f32 -1.442695, %v22284_v36  ;;  %v23427_v17 = vpack.c.bf16 %v22147_v25, %v22151_v23 }
0x172f   :  { %v16979_v42 = vpop.eup %16978  ;;  %v10519_v30 = vmul.f32 %v16977_v48, %v22190_v51  ;;  %16998 = vrcp.f32 %v10345_v24  ;;  %15033 = vmatprep.subr.bf16.mxu1 %v15032_v39  ;;  %v14476_v21 = vpop.f32.mrb[12].mxu1  ;;  %v12376_v44 = vmul.f32 -1.442695, %v22287_v56 }
0x1730   :  { %v16981_v49 = vpop.eup %16980  ;;  %v10348_v41 = vadd.f32 1.0, %v16979_v42  ;;  %17000 = vpow2.f32 %v12374_v19  ;;  %15035 = vmatpush3.bf16.msra.mxu1 %v23427_v17  ;;  %v22297_v11 = vadd.f32 %v14476_v21, %v22074_v55  ;;  %v10020_v47 = vpop.f32.mrb[13].mxu1 }
0x1731   :  { %v16983_v50 = vpop.eup %16982  ;;  %v10347_v18 = vadd.f32 1.0, %v16981_v49  ;;  %17002 = vpow2.f32 %v12377_v53  ;;  %v22300_v51 = vadd.f32 %v22074_v55, %v10020_v47  ;;  %v15036_v60 = vpack.c.bf16 %v10520_v58, %v10519_v30 }
0x1732   :  { %v16985_v4 = vpop.eup %16984  ;;  %v10522_v19 = vmul.f32 %v16983_v50, %v22200_v35  ;;  %17004 = vrcp.f32 %v10348_v41  ;;  %v12379_v24 = vmul.f32 -1.442695, %v22297_v11  ;;  %v23428_v58 = vpack.c.bf16 %v22163_v12, %v22167_v15 }
0x1733   :  { %v16987_v39 = vpop.eup %16986  ;;  %v10521_v25 = vmul.f32 %v16985_v4, %v22206_v62  ;;  %17006 = vrcp.f32 %v10347_v18  ;;  %v12378_v23 = vmul.f32 -1.442695, %v22300_v51  ;;  %15037 = vmatprep.subr.bf16.mxu1 %v15036_v60  ;;  %v14479_v48 = vpop.f32.mrb[14].mxu1  ;;  %v23429_v4 = vpack.c.bf16 %v22181_v14, %v22187_v3 }
0x1734   :  { %v16989_v42 = vpop.eup %16988  ;;  %v10524_v53 = vmul.f32 %v16987_v39, %v22216_v34  ;;  %17008 = vpow2.f32 %v12376_v44  ;;  %15039 = vmatpush3.bf16.msra.mxu1 %v23428_v58  ;;  %v22311_v41 = vadd.f32 %v14479_v48, %v22074_v55  ;;  %v10030_v35 = vpop.f32.mrb[15].mxu1 }
0x1735   :  { %v16991_v30 = vpop.eup %16990  ;;  %v10523_v62 = vmul.f32 %v16989_v42, %v22222_v33  ;;  %17010 = vpow2.f32 %v12379_v24  ;;  %v22315_v21 = vadd.f32 %v22074_v55, %v10030_v35  ;;  %v15040_v49 = vpack.c.bf16 %v10522_v19, %v10521_v25 }
0x1736   :  { %v16993_v17 = vpop.eup %16992  ;;  %v10350_v47 = vadd.f32 1.0, %v16991_v30  ;;  %17012 = vpow2.f32 %v12378_v23  ;;  %v12381_v12 = vmul.f32 -1.442695, %v22311_v41 }
0x1737   :  { %v16995_v34 = vpop.eup %16994  ;;  %v10349_v44 = vadd.f32 1.0, %v16993_v17  ;;  %15041 = vmatprep.subr.bf16.mxu1 %v15040_v49  ;;  %v14482_v15 = vpop.f32.mrb[16].mxu1  ;;  %v15044_v50 = vpack.c.bf16 %v10524_v53, %v10523_v62  ;;  %v12380_v33 = vmul.f32 -1.442695, %v22315_v21 }
0x1738   :  { %v16997_v18 = vpop.eup %16996  ;;  %17014 = vrcp.f32 %v10350_v47  ;;  %v10352_v60 = vadd.f32 1.0, %v16995_v34  ;;  %15043 = vmatpush3.bf16.msra.mxu1 %v23429_v4  ;;  %v22323_v19 = vadd.f32 %v14482_v15, %v22074_v55  ;;  %v10040_v24 = vpop.f32.mrb[17].mxu1 }
0x1739   :  { %v16999_v39 = vpop.eup %16998  ;;  %v10526_v25 = vmul.f32 %v16997_v18, %v22235_v13  ;;  %17016 = vrcp.f32 %v10349_v44  ;;  %v22327_v23 = vadd.f32 %v22074_v55, %v10040_v24  ;;  %15045 = vmatprep.subr.bf16.mxu1 %v15044_v50  ;;  %v23430_v13 = vpack.c.bf16 %v22197_v59, %v22203_v61 }
0x173a   :  { %v17001_v48 = vpop.eup %17000  ;;  %v10525_v42 = vmul.f32 %v16999_v39, %v22238_v43  ;;  %17018 = vrcp.f32 %v10352_v60  ;;  %v12383_v14 = vmul.f32 -1.442695, %v22323_v19 }
0x173b   :  { %v17003_v53 = vpop.eup %17002  ;;  %v10351_v58 = vadd.f32 1.0, %v17001_v48  ;;  %17020 = vpow2.f32 %v12381_v12  ;;  %v12382_v3 = vmul.f32 -1.442695, %v22327_v23  ;;  %v14485_v35 = vpop.f32.mrb[18].mxu1 }
0x173c   :  { %v17005_v30 = vpop.eup %17004  ;;  %v10354_v62 = vadd.f32 1.0, %v17003_v53  ;;  %17022 = vpow2.f32 %v12380_v33  ;;  %15047 = vmatpush3.bf16.msra.mxu1 %v23430_v13  ;;  %v22336_v49 = vadd.f32 %v14485_v35, %v22074_v55  ;;  %v10050_v43 = vpop.f32.mrb[19].mxu1  ;;  %v15048_v17 = vpack.c.bf16 %v10526_v25, %v10525_v42 }
0x173d   :  { %v17007_v47 = vpop.eup %17006  ;;  %v10528_v34 = vmul.f32 %v17005_v30, %v22251_v32  ;;  %17024 = vrcp.f32 %v10351_v58  ;;  %v22340_v44 = vadd.f32 %v22074_v55, %v10050_v43  ;;  %v23431_v32 = vpack.c.bf16 %v22213_v1, %v22219_v20 }
0x173e   :  { %v17009_v12 = vpop.eup %17008  ;;  %v10527_v15 = vmul.f32 %v17007_v47, %v22254_v0  ;;  %17026 = vrcp.f32 %v10354_v62  ;;  %15049 = vmatprep.subr.bf16.mxu1 %v15048_v17  ;;  %v12385_v61 = vmul.f32 -1.442695, %v22336_v49  ;;  %v23432_v30 = vpack.c.bf16 %v22228_v26, %v22232_v46 }
0x173f   :  { %v17011_v50 = vpop.eup %17010  ;;  %v10353_v59 = vadd.f32 1.0, %v17009_v12  ;;  %17028 = vpow2.f32 %v12383_v14  ;;  %v14488_v18 = vpop.f32.mrb[20].mxu1  ;;  %v12384_v25 = vmul.f32 -1.442695, %v22340_v44 }
0x1740   :  { %v17013_v60 = vpop.eup %17012  ;;  %v10356_v33 = vadd.f32 1.0, %v17011_v50  ;;  %17030 = vpow2.f32 %v12382_v3  ;;  %15051 = vmatpush3.bf16.msra.mxu1 %v23431_v32  ;;  %v22348_v4 = vadd.f32 %v14488_v18, %v22074_v55  ;;  %v10060_v24 = vpop.f32.mrb[21].mxu1  ;;  %v15052_v0 = vpack.c.bf16 %v10528_v34, %v10527_v15 }
0x1741   :  { %17032 = vrcp.f32 %v10353_v59  ;;  %v10355_v39 = vadd.f32 1.0, %v17013_v60  ;;  %v22352_v48 = vadd.f32 %v22074_v55, %v10060_v24  ;;  %v23433_v32 = vpack.c.bf16 %v22244_v10, %v22248_v40 }
0x1742   :  { %v17015_v42 = vpop.eup %17014  ;;  %17034 = vrcp.f32 %v10356_v33  ;;  %v12387_v53 = vmul.f32 -1.442695, %v22348_v4  ;;  %15053 = vmatprep.subr.bf16.mxu1 %v15052_v0 }
0x1743   :  { %v17017_v58 = vpop.eup %17016  ;;  %v10530_v1 = vmul.f32 %v17015_v42, %v22263_v9  ;;  %17036 = vrcp.f32 %v10355_v39  ;;  %v12386_v20 = vmul.f32 -1.442695, %v22352_v48  ;;  %v14491_v14 = vpop.f32.mrb[22].mxu1 }
0x1744   :  { %v17019_v3 = vpop.eup %17018  ;;  %v10529_v35 = vmul.f32 %v17017_v58, %v22266_v7  ;;  %17038 = vpow2.f32 %v12385_v61  ;;  %15055 = vmatpush3.bf16.msra.mxu1 %v23432_v30  ;;  %v22362_v62 = vadd.f32 %v14491_v14, %v22074_v55  ;;  %v10070_v13 = vpop.f32.mrb[23].mxu1 }
0x1745   :  { %v17021_v43 = vpop.eup %17020  ;;  %v10532_v17 = vmul.f32 %v17019_v3, %v22271_v57  ;;  %17040 = vpow2.f32 %v12384_v25  ;;  %v22366_v9 = vadd.f32 %v22074_v55, %v10070_v13 }
0x1746   :  { %v17023_v47 = vpop.eup %17022  ;;  %v10358_v34 = vadd.f32 1.0, %v17021_v43  ;;  %17042 = vpow2.f32 %v12387_v53  ;;  %v12389_v7 = vmul.f32 -1.442695, %v22362_v62  ;;  %v15056_v12 = vpack.c.bf16 %v10530_v1, %v10529_v35 }
0x1747   :  { %v17025_v15 = vpop.eup %17024  ;;  %v10357_v26 = vadd.f32 1.0, %v17023_v47  ;;  %17044 = vpow2.f32 %v12386_v20  ;;  %v12388_v46 = vmul.f32 -1.442695, %v22366_v9  ;;  %v14494_v50 = vpop.f32.mrb[24].mxu1 }
0x1748   :  { %v17027_v59 = vpop.eup %17026  ;;  %v10531_v61 = vmul.f32 %v17025_v15, %v22274_v38  ;;  %17046 = vrcp.f32 %v10358_v34  ;;  %15057 = vmatprep.subr.bf16.mxu1 %v15056_v12  ;;  %v22372_v57 = vadd.f32 %v14494_v50, %v22074_v55  ;;  %v10080_v18 = vpop.f32.mrb[25].mxu1 }
0x1749   :  { %v17029_v60 = vpop.eup %17028  ;;  %v10534_v33 = vmul.f32 %v17027_v59, %v22284_v36  ;;  %17048 = vrcp.f32 %v10357_v26  ;;  %15059 = vmatpush3.bf16.msra.mxu1 %v23433_v32  ;;  %v22379_v24 = vadd.f32 %v22074_v55, %v10080_v18 }
0x174a   :  { %v17031_v0 = vpop.eup %17030  ;;  %v15061_v39 = vpack.c.bf16 %v10532_v17, %v10531_v61  ;;  %v10360_v38 = vadd.f32 1.0, %v17029_v60  ;;  %17050 = vpow2.f32 %v12389_v7  ;;  %v12391_v25 = vmul.f32 -1.442695, %v22372_v57 }
0x174b   :  { %v17033_v42 = vpop.eup %17032  ;;  %v10359_v53 = vadd.f32 1.0, %v17031_v0  ;;  %17052 = vpow2.f32 %v12388_v46  ;;  %v12390_v58 = vmul.f32 -1.442695, %v22379_v24  ;;  %v14497_v36 = vpop.f32.mrb[26].mxu1 }
0x174c   :  { %v17035_v1 = vpop.eup %17034  ;;  %v10533_v20 = vmul.f32 %v17033_v42, %v22287_v56  ;;  %17054 = vrcp.f32 %v10360_v38  ;;  %15062 = vmatpush1.bf16.msra.mxu0 %v15061_v39  ;;  %v22385_v10 = vadd.f32 %v14497_v36, %v22074_v55  ;;  %v10090_v40 = vpop.f32.mrb[27].mxu1  ;;  %10624 = vmatmul.mubr.f32.vlgmr.msra.gmra.mrb[36].mxu1 %v18877_v8 }
0x174d   :  { %v17037_v14 = vpop.eup %17036  ;;  %v10536_v3 = vmul.f32 %v17035_v1, %v22297_v11  ;;  %17056 = vrcp.f32 %v10359_v53  ;;  %v22390_v35 = vadd.f32 %v22074_v55, %v10090_v40  ;;  %15063 = vmatprep.subr.bf16.mxu0 %v23032_v37  ;;  %10628 = vmatprep.mubr.f32.mxu1 %v18886_v45 }
0x174e   :  { %v17039_v56 = vpop.eup %17038  ;;  %v15064_v30 = vpack.c.bf16 %v10534_v33, %v10533_v20  ;;  %v10535_v13 = vmul.f32 %v17037_v14, %v22300_v51  ;;  %17058 = vpow2.f32 %v12391_v25  ;;  %v12393_v43 = vmul.f32 -1.442695, %v22385_v10 }
0x174f   :  { %v17041_v17 = vpop.eup %17040  ;;  %v10362_v8 = vadd.f32 1.0, %v17039_v56  ;;  %17060 = vpow2.f32 %v12390_v58  ;;  %v14500_v47 = vpop.f32.mrb[28].mxu1  ;;  %v12392_v26 = vmul.f32 -1.442695, %v22390_v35 }
0x1750   :  { %v17043_v11 = vpop.eup %17042  ;;  %v15067_v34 = vpack.c.bf16 %v10536_v3, %v10535_v13  ;;  %v10361_v7 = vadd.f32 1.0, %v17041_v17  ;;  %17062 = vpow2.f32 %v12393_v43  ;;  %15065 = vmatpush1.bf16.msra.mxu0 %v15064_v30  ;;  %v22397_v12 = vadd.f32 %v14500_v47, %v22074_v55  ;;  %v10100_v45 = vpop.f32.mrb[29].mxu1  ;;  %10629 = vmatmul.mubr.f32.gmra.mrb[38].mxu1 %v18898_v63 }
0x1751   :  { %v17045_v15 = vpop.eup %17044  ;;  %17064 = vrcp.f32 %v10362_v8  ;;  %v10364_v51 = vadd.f32 1.0, %v17043_v11  ;;  %v22402_v46 = vadd.f32 %v22074_v55, %v10100_v45  ;;  %15066 = vmatprep.subr.bf16.mxu0 %v23032_v37  ;;  %10633 = vmatprep.mubr.f32.mxu1 %v18909_v6 }
0x1752   :  { %v17047_v50 = vpop.eup %17046  ;;  %17066 = vrcp.f32 %v10361_v7  ;;  %v10363_v59 = vadd.f32 1.0, %v17045_v15  ;;  %v12395_v61 = vmul.f32 -1.442695, %v22397_v12  ;;  %v17165_v7 = vld [vmem:[%s22602_s11 + $0x3] ss:$0 sm:$0xff] }
0x1753   :  { %v17049_v18 = vpop.eup %17048  ;;  %v10538_v63 = vmul.f32 %v17047_v50, %v22311_v41  ;;  %17068 = vrcp.f32 %v10364_v51  ;;  %v14503_v60 = vpop.f32.mrb[30].mxu1  ;;  %v12394_v25 = vmul.f32 -1.442695, %v22402_v46 }
0x1754   :  { %v17051_v33 = vpop.eup %17050  ;;  %v10537_v32 = vmul.f32 %v17049_v18, %v22315_v21  ;;  %17070 = vrcp.f32 %v10363_v59  ;;  %15068 = vmatpush1.bf16.msra.mxu0 %v15067_v34  ;;  %v22410_v0 = vadd.f32 %v14503_v60, %v22074_v55  ;;  %v10110_v39 = vpop.f32.mrb[31].mxu1  ;;  %10634 = vmatmul.mubr.f32.gmra.mrb[40].mxu1 %v18913_v29 }
0x1755   :  { %v17053_v6 = vpop.eup %17052  ;;  %v10366_v38 = vadd.f32 1.0, %v17051_v33  ;;  %17072 = vpow2.f32 %v12392_v26  ;;  %v22415_v41 = vadd.f32 %v22074_v55, %v10110_v39  ;;  %15069 = vmatprep.subr.bf16.mxu0 %v23032_v37  ;;  %10638 = vmatprep.mubr.f32.mxu1 %v18915_v2 }
0x1756   :  { %v17055_v21 = vpop.eup %17054  ;;  %v15070_v42 = vpack.c.bf16 %v10538_v63, %v10537_v32  ;;  %v10365_v53 = vadd.f32 1.0, %v17053_v6  ;;  %17074 = vpow2.f32 %v12395_v61  ;;  %v12397_v58 = vmul.f32 -1.442695, %v22410_v0 }
0x1757   :  { %v17057_v36 = vpop.eup %17056  ;;  %v10540_v29 = vmul.f32 %v17055_v21, %v22323_v19  ;;  %17076 = vrcp.f32 %v10366_v38  ;;  %v14506_v1 = vpop.f32.mrb[32].mxu1 }
0x1758   :  { %v17059_v20 = vpop.eup %17058  ;;  %v10539_v40 = vmul.f32 %v17057_v36, %v22327_v23  ;;  %17078 = vrcp.f32 %v10365_v53  ;;  %15071 = vmatpush1.bf16.msra.mxu0 %v15070_v42  ;;  %v22423_v14 = vadd.f32 %v14506_v1, %v22074_v55  ;;  %v10120_v2 = vpop.f32.mrb[33].mxu1  ;;  %10639 = vmatmul.mubr.f32.gmra.mrb[42].mxu1 %v18934_v16  ;;  %v12396_v23 = vmul.f32 -1.442695, %v22415_v41 }
0x1759   :  { %v17061_v3 = vpop.eup %17060  ;;  %v10368_v56 = vadd.f32 1.0, %v17059_v20  ;;  %17080 = vpow2.f32 %v12394_v25  ;;  %v22427_v30 = vadd.f32 %v22074_v55, %v10120_v2  ;;  %15072 = vmatprep.subr.bf16.mxu0 %v23032_v37 }
0x175a   :  { %v17063_v19 = vpop.eup %17062  ;;  %v15073_v13 = vpack.c.bf16 %v10540_v29, %v10539_v40  ;;  %v10367_v43 = vadd.f32 1.0, %v17061_v3  ;;  %17082 = vpow2.f32 %v12397_v58  ;;  %v12399_v47 = vmul.f32 -1.442695, %v22423_v14 }
0x175b   :  { %v17065_v17 = vpop.eup %17064  ;;  %17084 = vrcp.f32 %v10368_v56  ;;  %v10370_v8 = vadd.f32 1.0, %v17063_v19  ;;  %v14509_v16 = vpop.f32.mrb[34].mxu1  ;;  %v12398_v55 = vmul.f32 -1.442695, %v22427_v30 }
0x175c   :  { %v17067_v11 = vpop.eup %17066  ;;  %v10542_v34 = vmul.f32 %v17065_v17, %v22336_v49  ;;  %17086 = vrcp.f32 %v10367_v43  ;;  %15074 = vmatpush1.bf16.msra.mxu0 %v15073_v13  ;;  %v22437_v45 = vadd.f32 %v17165_v7, %v14509_v16  ;;  %v10130_v15 = vpop.f32.mrb[35].mxu1 }
0x175d   :  { %v17069_v51 = vpop.eup %17068  ;;  %v10541_v26 = vmul.f32 %v17067_v11, %v22340_v44  ;;  %17088 = vrcp.f32 %v10370_v8  ;;  %v22440_v50 = vadd.f32 %v17165_v7, %v10130_v15  ;;  %15075 = vmatprep.subr.bf16.mxu0 %v23032_v37 }
0x175e   :  { %v17071_v49 = vpop.eup %17070  ;;  %v10544_v59 = vmul.f32 %v17069_v51, %v22348_v4  ;;  %17090 = vpow2.f32 %v12396_v23  ;;  %v12401_v61 = vmul.f32 -1.442695, %v22437_v45 }
0x175f   :  { %v17073_v18 = vpop.eup %17072  ;;  %v15076_v63 = vpack.c.bf16 %v10542_v34, %v10541_v26  ;;  %v10543_v60 = vmul.f32 %v17071_v49, %v22352_v48  ;;  %17092 = vpow2.f32 %v12399_v47  ;;  %v12400_v44 = vmul.f32 -1.442695, %v22440_v50 }
0x1760   :  { %v17075_v33 = vpop.eup %17074  ;;  %v10369_v32 = vadd.f32 1.0, %v17073_v18  ;;  %17094 = vpow2.f32 %v12398_v55 }
0x1761   :  { %v17077_v39 = vpop.eup %17076  ;;  %v15079_v6 = vpack.c.bf16 %v10544_v59, %v10543_v60  ;;  %v10372_v38 = vadd.f32 1.0, %v17075_v33  ;;  %17096 = vpow2.f32 %v12401_v61  ;;  %15077 = vmatpush1.bf16.msra.mxu0 %v15076_v63 }
0x1762   :  { %v17079_v25 = vpop.eup %17078  ;;  %v10546_v4 = vmul.f32 %v17077_v39, %v22362_v62  ;;  %17098 = vrcp.f32 %v10369_v32  ;;  %15078 = vmatprep.subr.bf16.mxu0 %v23032_v37 }
0x1763   :  { %v17081_v21 = vpop.eup %17080  ;;  %v10545_v48 = vmul.f32 %v17079_v25, %v22366_v9  ;;  %17100 = vrcp.f32 %v10372_v38 }
0x1764   :  { %v17083_v42 = vpop.eup %17082  ;;  %v10371_v53 = vadd.f32 1.0, %v17081_v21  ;;  %17102 = vpow2.f32 %v12400_v44 }
0x1765   :  { %v17085_v58 = vpop.eup %17084  ;;  %v15082_v36 = vpack.c.bf16 %v10546_v4, %v10545_v48  ;;  %v10374_v29 = vadd.f32 1.0, %v17083_v42  ;;  %15080 = vmatpush1.bf16.msra.mxu0 %v15079_v6 }
0x1766   :  { %v17087_v1 = vpop.eup %17086  ;;  %v10548_v20 = vmul.f32 %v17085_v58, %v22372_v57  ;;  %17104 = vrcp.f32 %v10371_v53  ;;  %15081 = vmatprep.subr.bf16.mxu0 %v23032_v37  ;;  %v12412_v53 = vld [vmem:[%s22603_s12 + $0xf0] sm:$0xff]  ;;  %v12413_v58 = vld [vmem:[%s22603_s12 + $0xf8] sm:$0xff] }
0x1767   :  { %v17089_v62 = vpop.eup %17088  ;;  %v10547_v40 = vmul.f32 %v17087_v1, %v22379_v24  ;;  %17106 = vrcp.f32 %v10374_v29 }
0x1768   :  { %v17091_v2 = vpop.eup %17090  ;;  %v10550_v23 = vmul.f32 %v17089_v62, %v22385_v10 }
0x1769   :  { %v17093_v9 = vpop.eup %17092  ;;  %v15085_v3 = vpack.c.bf16 %v10548_v20, %v10547_v40  ;;  %v10373_v56 = vadd.f32 1.0, %v17091_v2  ;;  %15083 = vmatpush1.bf16.msra.mxu0 %v15082_v36  ;;  %v15114_v36 = vpack.c.bf16 %v12413_v58, %v12412_v53  ;;  %v11003_v58 = vld [vmem:[%s22607_s16 + $0x10] sm:$0xff] }
0x176a   :  { %v17095_v19 = vpop.eup %17094  ;;  %v10376_v13 = vadd.f32 1.0, %v17093_v9  ;;  %15084 = vmatprep.subr.bf16.mxu0 %v23032_v37 }
0x176b   :  { %v17097_v43 = vpop.eup %17096  ;;  %17108 = vrcp.f32 %v10373_v56  ;;  %v10375_v57 = vadd.f32 1.0, %v17095_v19 }
0x176c   :  { %v17099_v17 = vpop.eup %17098  ;;  %17110 = vrcp.f32 %v10376_v13  ;;  %v10378_v8 = vadd.f32 1.0, %v17097_v43 }
0x176d   :  { %v17101_v47 = vpop.eup %17100  ;;  %v10549_v24 = vmul.f32 %v17099_v17, %v22390_v35  ;;  %17112 = vrcp.f32 %v10375_v57  ;;  %15086 = vmatpush1.bf16.msra.mxu0 %v15085_v3  ;;  %v23434_v57 = vld [vmem:[#allocation5_spill] sm:$0xff] }
0x176e   :  { %v17103_v16 = vpop.eup %17102  ;;  %17114 = vrcp.f32 %v10378_v8  ;;  %15087 = vmatprep.subr.bf16.mxu0 %v23032_v37  ;;  %v10552_v34 = vmul.f32 %v17101_v47, %v22397_v12  ;;  %v23435_v47 = vld [vmem:[#allocation6_spill] sm:$0xff] }
0x176f   :  { %v15088_v11 = vpack.c.bf16 %v10550_v23, %v10549_v24  ;;  %v10377_v55 = vadd.f32 1.0, %v17103_v16 }
0x1770   :  { %v17105_v7 = vpop.eup %17104 }
0x1771   :  { %v17107_v10 = vpop.eup %17106  ;;  %v10551_v15 = vmul.f32 %v17105_v7, %v22402_v46  ;;  %17116 = vrcp.f32 %v10377_v55  ;;  %15089 = vmatpush1.bf16.msra.mxu0 %v15088_v11  ;;  %v23436_v11 = vld [vmem:[#allocation7_spill] sm:$0xff]  ;;  %v23437_v7 = vld [vmem:[#allocation8_spill] sm:$0xff] }
0x1772   :  { %15090 = vmatprep.subr.bf16.mxu0 %v23032_v37  ;;  %v10554_v35 = vmul.f32 %v17107_v10, %v22410_v0 }
0x1773   :  { %v15091_v51 = vpack.c.bf16 %v10552_v34, %v10551_v15  ;;  %v12424_v15 = vld [vmem:[%s22605_s14 + $0x60] sm:$0xff] }
0x1775   :  { %v17109_v26 = vpop.eup %17108  ;;  %15092 = vmatpush1.bf16.msra.mxu0 %v15091_v51  ;;  %v12425_v51 = vld [vmem:[%s22605_s14 + $0x68] sm:$0xff] }
0x1776   :  { %v17111_v49 = vpop.eup %17110  ;;  %v10553_v59 = vmul.f32 %v17109_v26, %v22415_v41  ;;  %15093 = vmatprep.subr.bf16.mxu0 %v23032_v37  ;;  %v12426_v26 = vld [vmem:[%s22605_s14 + $0x70] sm:$0xff] }
0x1777   :  { %v17113_v12 = vpop.eup %17112  ;;  %v10556_v61 = vmul.f32 %v17111_v49, %v22423_v14  ;;  %v12427_v49 = vld [vmem:[%s22605_s14 + $0x78] sm:$0xff] }
0x1778   :  { %v17115_v18 = vpop.eup %17114  ;;  %v15094_v63 = vpack.c.bf16 %v10554_v35, %v10553_v59  ;;  %v10555_v46 = vmul.f32 %v17113_v12, %v22427_v30  ;;  %v15118_v35 = vpack.c.bf16 %v12425_v51, %v12424_v15  ;;  %v15122_v59 = vpack.c.bf16 %v12427_v49, %v12426_v26  ;;  %v11001_v12 = vld [vmem:[%s22607_s16] sm:$0xff] }
0x1779   :  { %v10558_v33 = vmul.f32 %v17115_v18, %v22437_v45 }
0x177a   :  { %v15097_v60 = vpack.c.bf16 %v10556_v61, %v10555_v46  ;;  %15095 = vmatpush1.bf16.msra.mxu0 %v15094_v63  ;;  %v11002_v61 = vld [vmem:[%s22607_s16 + $0x8] sm:$0xff]  ;;  %v12415_v63 = vld [vmem:[%s22604_s13 + $0x3] ss:$0 sm:$0xff] }
0x177b   :  { %v17117_v32 = vpop.eup %17116  ;;  %15096 = vmatprep.subr.bf16.mxu0 %v23032_v37  ;;  %v15126_v18 = vpack.c.bf16 %v11002_v61, %v11001_v12 }
0x177c   :  { %v10557_v0 = vmul.f32 %v17117_v32, %v22440_v50 }
0x177e   :  { %v15100_v44 = vpack.c.bf16 %v10558_v33, %v10557_v0  ;;  %15098 = vmatpush1.bf16.msra.mxu0 %v15097_v60 }
0x177f   :  { %15099 = vmatprep.subr.bf16.mxu0 %v23032_v37  ;;  %v12406_v37 = vld [vmem:[%s22603_s12 + $0xc0] sm:$0xff] }
0x1782   :  { %15101 = vmatpush1.bf16.msra.mxu0 %v15100_v44 }
0x1783   :  { %15119 = vmatprep.subr.bf16.mxu0 %v15118_v35 }
0x1785   :  { %10709 = vmatmul.mubr.f32.vlgmr.msra.gmra.mrb[40].mxu0 %v18996_v52  ;;  %v12407_v52 = vld [vmem:[%s22603_s12 + $0xc8] sm:$0xff] }
0x1786   :  { %12403 = vmatprep.mubr.msk.f32.mxu0 %vm2951_vm4, %v18998_v54  ;;  %v12408_v54 = vld [vmem:[%s22603_s12 + $0xd0] sm:$0xff]  ;;  %15121 = vmatpush3.bf16.msra.mxu0 %v15118_v35 }
0x1787   :  { %15123 = vmatprep.subr.bf16.mxu0 %v15122_v59 }
0x1789   :  { %10714 = vmatmul.mubr.f32.gmra.mrb[42].mxu0 %v19004_v31  ;;  %v15102_v31 = vpack.c.bf16 %v12407_v52, %v12406_v37 }
0x178a   :  { %12404 = vmatprep.mubr.msk.f32.mxu0 %vm2951_vm4, %v19008_v27  ;;  %v12409_v27 = vld [vmem:[%s22603_s12 + $0xd8] sm:$0xff]  ;;  %15125 = vmatpush3.bf16.msra.mxu0 %v15122_v59 }
0x178b   :  { %15103 = vmatprep.subr.bf16.mxu1 %v15102_v31 }
0x178c   :  { %15105 = vmatpush3.bf16.msra.mxu1 %v15102_v31 }
0x178d   :  { %10719 = vmatmul.mubr.f32.gmra.mrb[44].mxu0 %v19014_v28  ;;  %v15106_v28 = vpack.c.bf16 %v12409_v27, %v12408_v54 }
0x178e   :  { %12405 = vmatprep.mubr.msk.f32.mxu0 %vm2951_vm4, %v19018_v22  ;;  %v12410_v22 = vld [vmem:[%s22603_s12 + $0xe0] sm:$0xff] }
0x178f   :  { %15107 = vmatprep.subr.bf16.mxu1 %v15106_v28 }
0x1790   :  { %15109 = vmatpush3.bf16.msra.mxu1 %v15106_v28 }
0x1791   :  { %10724 = vmatmul.mubr.f32.gmra.mrb[46].mxu0 %v23158_v5  ;;  %v12411_v5 = vld [vmem:[%s22603_s12 + $0xe8] sm:$0xff] }
0x1792   :  { %v15110_v41 = vpack.c.bf16 %v12411_v5, %v12410_v22 }
0x1794   :  { %15111 = vmatprep.subr.bf16.mxu1 %v15110_v41 }
0x1795   :  { %15113 = vmatpush3.bf16.msra.mxu1 %v15110_v41 }
0x1796   :  { %15115 = vmatprep.subr.bf16.mxu1 %v15114_v36 }
0x1799   :  { %15117 = vmatpush3.bf16.msra.mxu1 %v15114_v36  ;;  %v11004_v36 = vld [vmem:[%s22607_s16 + $0x18] sm:$0xff] }
0x179a   :  { %15127 = vmatprep.subr.bf16.mxu1 %v15126_v18 }
0x181f   :  { %v13418_v14 = vpop.f32.mrb[36].mxu1 }
0x1820   :  { %v13419_v30 = vpop.f32.mrb[37].mxu1 }
0x1821   :  { %v13420_v45 = vadd.f32 %v13419_v30, %v13418_v14 }
0x1823   :  { %v13421_v50 = vpop.f32.mrb[38].mxu1 }
0x1824   :  { %v13422_v39 = vpop.f32.mrb[39].mxu1 }
0x1825   :  { %v13423_v6 = vadd.f32 %v13422_v39, %v13421_v50 }
0x1827   :  { %v13424_v38 = vpop.f32.mrb[40].mxu1 }
0x1828   :  { %v13425_v25 = vpop.f32.mrb[41].mxu1 }
0x1829   :  { %v13426_v4 = vadd.f32 %v13425_v25, %v13424_v38 }
0x182b   :  { %v13427_v21 = vpop.f32.mrb[42].mxu1 }
0x182c   :  { %v13428_v48 = vpop.f32.mrb[43].mxu1 }
0x182d   :  { %v13429_v42 = vadd.f32 %v13428_v48, %v13427_v21 }
0x1858   :  { %v10710_v29 = vpop.f32.mrb[40].mxu0 }
0x1859   :  { %v10711_v1 = vadd.f32 %v13420_v45, %v10710_v29  ;;  %v10712_v20 = vpop.f32.mrb[41].mxu0  ;;  %v15130_v29 = vpack.c.bf16 %v11004_v36, %v11003_v58 }
0x185b   :  { %10733 = vrot.lane.b32.xlu0 %v10711_v1, %s17192_s3  ;;  %v12429_v1 = vld [vmem:[%s22606_s15 + $0x3] ss:$0 sm:$0xff] }
0x185c   :  { %v10715_v62 = vpop.f32.mrb[42].mxu0 }
0x185d   :  { %v10716_v40 = vadd.f32 %v13423_v6, %v10715_v62  ;;  %v10717_v2 = vpop.f32.mrb[43].mxu0 }
0x185f   :  { %10735 = vrot.lane.b32.xlu1 %v10716_v40, %s17192_s3 }
0x1860   :  { %v10720_v9 = vpop.f32.mrb[44].mxu0 }
0x1861   :  { %v10721_v3 = vadd.f32 %v13426_v4, %v10720_v9  ;;  %v10722_v56 = vpop.f32.mrb[45].mxu0 }
0x1863   :  { %10737 = vrot.lane.b32.xlu0 %v10721_v3, %s17192_s3 }
0x1864   :  { %v10725_v19 = vpop.f32.mrb[46].mxu0 }
0x1865   :  { %v10726_v13 = vadd.f32 %v13429_v42, %v10725_v19  ;;  %v10727_v43 = vpop.f32.mrb[47].mxu0 }
0x1866   :  { %v11138_v43 = vld [vmem:[%s22609_s18 + $0x8] sm:$0xff] }
0x1867   :  { %10739 = vrot.lane.b32.xlu1 %v10726_v13, %s17192_s3  ;;  %v11137_v13 = vld [vmem:[%s22609_s18] sm:$0xff] }
0x18cd   :  { %v10734_v23 = vpop.permute.xlu0 %10733 }
0x18ce   :  { %v10745_v17 = vsel %vm388_vm2, %v23434_v57, %v10734_v23  ;;  %v15134_v23 = vpack.c.bf16 %v11138_v43, %v11137_v13  ;;  %v11139_v57 = vld [vmem:[%s22609_s18 + $0x10] sm:$0xff] }
0x18cf   :  { %14526 = vmatprep.mubr.msk.f32.mxu1 %vm942_vm3, %v10745_v17  ;;  %v11140_v17 = vld [vmem:[%s22609_s18 + $0x18] sm:$0xff] }
0x18d0   :  { %15135 = vmatprep.subr.bf16.mxu0 %v15134_v23 }
0x18d1   :  { %v10736_v8 = vpop.permute.xlu1 %10735 }
0x18d2   :  { %v10746_v24 = vsel %vm388_vm2, %v23435_v47, %v10736_v8  ;;  %v15138_v8 = vpack.c.bf16 %v11140_v17, %v11139_v57  ;;  %v12434_v47 = vld [vmem:[%s22608_s17] ss:$0 sm:$0xff] }
0x18d3   :  { %14527 = vmatmul.mubr.msk.f32.vlgmr.msra.gmra.mrb[44].mxu1 %vm942_vm3, %v10746_v24 }
0x18d4   :  { %15129 = vmatpush3.bf16.msra.mxu1 %v15126_v18 }
0x18d5   :  { %v10738_v16 = vpop.permute.xlu0 %10737  ;;  %15131 = vmatprep.subr.bf16.mxu1 %v15130_v29 }
0x18d6   :  { %v10747_v34 = vsel %vm388_vm2, %v23436_v11, %v10738_v16 }
0x18d7   :  { %14529 = vmatprep.mubr.msk.f32.mxu1 %vm942_vm3, %v10747_v34 }
0x18d8   :  { %15133 = vmatpush3.bf16.msra.mxu1 %v15130_v29 }
0x18d9   :  { %v10740_v55 = vpop.permute.xlu1 %10739 }
0x18da   :  { %v10748_v10 = vsel %vm388_vm2, %v23437_v7, %v10740_v55 }
0x18db   :  { %14530 = vmatmul.mubr.msk.f32.gmra.mrb[46].mxu1 %vm942_vm3, %v10748_v10 }
0x19a6   :  { %v14528_v46 = vpop.f32.mrb[44].mxu1 }
0x19a7   :  { %v10850_v60 = vadd.f32 %v14528_v46, %v12415_v63  ;;  %v10844_v33 = vpop.f32.mrb[45].mxu1 }
0x19a8   :  { %v10845_v32 = vadd.f32 %v12415_v63, %v10844_v33 }
0x19a9   :  { %v12421_v0 = vmul.f32 -1.442695, %v10850_v60 }
0x19aa   :  { %v12420_v44 = vmul.f32 -1.442695, %v10845_v32 }
0x19ab   :  { %17118 = vpow2.f32 %v12421_v0 }
0x19ac   :  { %17120 = vpow2.f32 %v12420_v44 }
0x19ae   :  { %v14531_v37 = vpop.f32.mrb[46].mxu1 }
0x19af   :  { %v10860_v52 = vadd.f32 %v14531_v37, %v12415_v63  ;;  %v10854_v54 = vpop.f32.mrb[47].mxu1 }
0x19b0   :  { %v10855_v31 = vadd.f32 %v12415_v63, %v10854_v54 }
0x19b1   :  { %v12423_v27 = vmul.f32 -1.442695, %v10860_v52 }
0x19b2   :  { %v12422_v28 = vmul.f32 -1.442695, %v10855_v31 }
0x19b3   :  { %17122 = vpow2.f32 %v12423_v27 }
0x19b4   :  { %17124 = vpow2.f32 %v12422_v28  ;;  %v12443_v28 = vld [vmem:[%s22610_s19] ss:$0 sm:$0xff] }
0x19b5   :  { %v17119_v22 = vpop.eup %17118 }
0x19b6   :  { %v17121_v5 = vpop.eup %17120  ;;  %v10876_v41 = vadd.f32 1.0, %v17119_v22 }
0x19b7   :  { %v10875_v14 = vadd.f32 1.0, %v17121_v5 }
0x19b8   :  { %17126 = vrcp.f32 %v10876_v41 }
0x19b9   :  { %17128 = vrcp.f32 %v10875_v14 }
0x19bd   :  { %v17123_v30 = vpop.eup %17122 }
0x19be   :  { %v17125_v45 = vpop.eup %17124  ;;  %v10878_v50 = vadd.f32 1.0, %v17123_v30 }
0x19bf   :  { %v10877_v39 = vadd.f32 1.0, %v17125_v45 }
0x19c0   :  { %17130 = vrcp.f32 %v10878_v50 }
0x19c1   :  { %17132 = vrcp.f32 %v10877_v39 }
0x19c2   :  { %v17127_v6 = vpop.eup %17126 }
0x19c3   :  { %v17129_v38 = vpop.eup %17128  ;;  %v10888_v4 = vmul.f32 %v17127_v6, %v10850_v60 }
0x19c4   :  { %v10887_v25 = vmul.f32 %v17129_v38, %v10845_v32 }
0x19c6   :  { %14540 = vmatprep.mubr.msk.f32.mxu0 %vm388_vm2, %v10887_v25 }
0x19c7   :  { %14541 = vmatmul.mubr.msk.f32.vlgmr.msra.gmra.mrb[48].mxu0 %vm388_vm2, %v10888_v4 }
0x19c8   :  { %15137 = vmatpush3.bf16.msra.mxu0 %v15134_v23 }
0x19c9   :  { %15139 = vmatprep.subr.bf16.mxu0 %v15138_v8 }
0x19ca   :  { %v17131_v21 = vpop.eup %17130 }
0x19cb   :  { %v17133_v48 = vpop.eup %17132  ;;  %v10890_v53 = vmul.f32 %v17131_v21, %v10860_v52 }
0x19cc   :  { %v10889_v42 = vmul.f32 %v17133_v48, %v10855_v31  ;;  %15141 = vmatpush3.bf16.msra.mxu0 %v15138_v8 }
0x19ce   :  { %14543 = vmatprep.mubr.msk.f32.mxu0 %vm388_vm2, %v10889_v42 }
0x19cf   :  { %14544 = vmatmul.mubr.msk.f32.gmra.mrb[50].mxu0 %vm388_vm2, %v10890_v53 }
0x1a9a   :  { %v14542_v20 = vpop.f32.mrb[48].mxu0 }
0x1a9b   :  { %v10982_v62 = vpop.f32.mrb[49].mxu0  ;;  %v10988_v2 = vadd.f32 %v14542_v20, %v12429_v1 }
0x1a9c   :  { %v10983_v40 = vadd.f32 %v12429_v1, %v10982_v62 }
0x1a9e   :  { %14554 = vmatprep.mubr.msk.f32.mxu1 %vm388_vm2, %v10983_v40 }
0x1a9f   :  { %14555 = vmatmul.mubr.msk.f32.vlgmr.msra.gmra.mrb[48].mxu1 %vm388_vm2, %v10988_v2 }
0x1aa2   :  { %v14545_v9 = vpop.f32.mrb[50].mxu0 }
0x1aa3   :  { %v10992_v3 = vpop.f32.mrb[51].mxu0  ;;  %v10998_v19 = vadd.f32 %v14545_v9, %v12429_v1 }
0x1aa4   :  { %v10993_v56 = vadd.f32 %v12429_v1, %v10992_v3 }
0x1aa6   :  { %14557 = vmatprep.mubr.msk.f32.mxu1 %vm388_vm2, %v10993_v56 }
0x1aa7   :  { %14558 = vmatmul.mubr.msk.f32.gmra.mrb[50].mxu1 %vm388_vm2, %v10998_v19 }
0x1b72   :  { %v14556_v24 = vpop.f32.mrb[48].mxu1 }
0x1b73   :  { %v11096_v16 = vadd.f32 %v14556_v24, %v12434_v47  ;;  %v11090_v11 = vpop.f32.mrb[49].mxu1 }
0x1b74   :  { %v11091_v34 = vadd.f32 %v12434_v47, %v11090_v11 }
0x1b75   :  { %v12440_v55 = vmul.f32 -1.442695, %v11096_v16 }
0x1b76   :  { %v12439_v7 = vmul.f32 -1.442695, %v11091_v34 }
0x1b77   :  { %17134 = vpow2.f32 %v12440_v55 }
0x1b78   :  { %17136 = vpow2.f32 %v12439_v7 }
0x1b7a   :  { %v14559_v10 = vpop.f32.mrb[50].mxu1 }
0x1b7b   :  { %v11106_v15 = vadd.f32 %v14559_v10, %v12434_v47  ;;  %v11100_v51 = vpop.f32.mrb[51].mxu1 }
0x1b7c   :  { %v11101_v35 = vadd.f32 %v12434_v47, %v11100_v51 }
0x1b7d   :  { %v12442_v26 = vmul.f32 -1.442695, %v11106_v15 }
0x1b7e   :  { %v12441_v49 = vmul.f32 -1.442695, %v11101_v35 }
0x1b7f   :  { %17138 = vpow2.f32 %v12442_v26 }
0x1b80   :  { %17140 = vpow2.f32 %v12441_v49 }
0x1b81   :  { %v17135_v59 = vpop.eup %17134 }
0x1b82   :  { %v17137_v12 = vpop.eup %17136  ;;  %v11122_v61 = vadd.f32 1.0, %v17135_v59 }
0x1b83   :  { %v11121_v18 = vadd.f32 1.0, %v17137_v12 }
0x1b84   :  { %17142 = vrcp.f32 %v11122_v61 }
0x1b85   :  { %17144 = vrcp.f32 %v11121_v18 }
0x1b89   :  { %v17139_v63 = vpop.eup %17138 }
0x1b8a   :  { %v17141_v46 = vpop.eup %17140  ;;  %v11124_v60 = vadd.f32 1.0, %v17139_v63 }
0x1b8b   :  { %v11123_v33 = vadd.f32 1.0, %v17141_v46 }
0x1b8c   :  { %17146 = vrcp.f32 %v11124_v60 }
0x1b8d   :  { %17148 = vrcp.f32 %v11123_v33 }
0x1b8e   :  { %v17143_v32 = vpop.eup %17142 }
0x1b8f   :  { %v17145_v0 = vpop.eup %17144  ;;  %v11134_v37 = vmul.f32 %v17143_v32, %v11096_v16 }
0x1b90   :  { %v11133_v44 = vmul.f32 %v17145_v0, %v11091_v34 }
0x1b92   :  { %14568 = vmatprep.mubr.msk.f32.mxu0 %vm388_vm2, %v11133_v44 }
0x1b93   :  { %14569 = vmatmul.mubr.msk.f32.vlgmr.msra.gmra.mrb[52].mxu0 %vm388_vm2, %v11134_v37 }
0x1b96   :  { %v17147_v52 = vpop.eup %17146 }
0x1b97   :  { %v17149_v54 = vpop.eup %17148  ;;  %v11136_v27 = vmul.f32 %v17147_v52, %v11106_v15 }
0x1b98   :  { %v11135_v31 = vmul.f32 %v17149_v54, %v11101_v35 }
0x1b9a   :  { %14571 = vmatprep.mubr.msk.f32.mxu0 %vm388_vm2, %v11135_v31 }
0x1b9b   :  { %14572 = vmatmul.mubr.msk.f32.gmra.mrb[54].mxu0 %vm388_vm2, %v11136_v27 }
0x1c66   :  { %v14570_v22 = vpop.f32.mrb[52].mxu0 }
0x1c67   :  { %v11232_v5 = vadd.f32 %v14570_v22, %v12443_v28  ;;  %v11226_v41 = vpop.f32.mrb[53].mxu0 }
0x1c68   :  { %v11227_v14 = vadd.f32 %v12443_v28, %v11226_v41 }
0x1c69   :  { %11246 = vst [vmem:[#allocation2 + $0x8] sm:$0xff] %v11232_v5 }
0x1c6a   :  { %11245 = vst [vmem:[#allocation2] sm:$0xff] %v11227_v14 }
0x1c6e   :  { %v14573_v30 = vpop.f32.mrb[54].mxu0 }
0x1c6f   :  { %v11242_v45 = vadd.f32 %v14573_v30, %v12443_v28  ;;  %v11236_v50 = vpop.f32.mrb[55].mxu0 }
0x1c70   :  { %v11237_v39 = vadd.f32 %v12443_v28, %v11236_v50 }
0x1c71   :  { %11248 = vst [vmem:[#allocation2 + $0x18] sm:$0xff] %v11242_v45 }
0x1c72   :  { %11247 = vst [vmem:[#allocation2 + $0x10] sm:$0xff] %v11237_v39 }
0x1c73   :  { %17177 = shalt.err (!%p17174_p4)
}
0x1c74   :  { %s17178_s11 = scalar_lea.hbm %s22611_s20, 512 }
0x1c75   :  { %p17179_p5 = scmp.ne.s32.totalorder %s22611_s20, %s17178_s11  ;;  %p17182_p6 = scmp.lt.u32.totalorder %s17178_s11, %s22611_s20 }
0x1c77   :  { %p17184_p7 = pnand %p17182_p6, %p17179_p5 }
0x1c79   :  { %17187 = shalt.err (!%p17184_p7)
}
0x1c7a   :  { %s17194_s30 = smov 128   ;;  %s17195_s0 = smov 8  }
0x1c7b   :  { %11260 = dma.vmem_to_hbm [thread:$0]  %s11255_s9, 512, %s22611_s20, [#allocation3], %s17194_s30, %s17194_s30, %s17195_s0  }
0x1c7c   :  { %17188 = dma.done.wait [#allocation3], 512  }
0x1c7d   :  { %17189 = vsyncadd [#allocation3], 4294966784 }
0x1c7e   :  { %11264 = vsyncpa [#allocation3], 1 }

</bundles_post_ra>
